<compile_context>
chip_gen: v5e
topology: v5e:2x2
jax: 0.10.0
libtpu: 0.0.40
codegen_flags: <defaults>
</compile_context>

<pallas_src>
import jax
import jax.numpy as jnp
from jax import lax
from jax.experimental import pallas as pl
from jax.experimental.pallas import tpu as pltpu

# ------------------------- configuration (small) -----------------------------
B = 2                 # batch
C_IN = 4              # input channels (objects/agents/destination channels off)
H = W = 16            # spatial size  (input_shape = [4, 16, 16])
PATCH = 4             # config.model.patch_size
P = (H // PATCH) * (W // PATCH)       # 16 patches
D = 32                # embed_dim
T = P + 2             # +2 saliency tokens
NUM_HEADS = 4
DH = D // NUM_HEADS
MLP_RATIO = 2
DM = D * MLP_RATIO
N_BLOCKS = 2          # config.model.block_loop
N_TAUS = 8            # number of IQN taus
NUM_COSINES = 64      # cosine embedding size of IQN head
HIDDEN = 64           # quantile-net hidden size
OUT = 5               # output_size (number of actions)
EPS = 1e-5
SCALE = DH ** -0.5
KP = C_IN * PATCH * PATCH             # flattened patch size


# ------------------------------ kernel helpers -------------------------------
def _layernorm(x, gamma, beta):
    mu = jnp.mean(x, axis=-1, keepdims=True)
    var = jnp.mean((x - mu) ** 2, axis=-1, keepdims=True)
    return (x - mu) * lax.rsqrt(var + EPS) * gamma + beta


# ----------------------------- fused Pallas kernel ----------------------------
def fused_forward_kernel(
    patches_ref, tau_ref, i_pi_ref,
    w_patch, b_patch, sal_bias, patch_pos,
    ln1_w, ln1_b, wqkv, bqkv, wproj, bproj,
    ln2_w, ln2_b, w1, b1, w2, b2,
    norm_w, norm_b,
    w_cos, b_cos, w_h, b_h, w_o, b_o,
    o_ref,
):
    f32 = jnp.float32
    bf16 = jnp.bfloat16

    # ---- 1. patch embedding: one batch-stacked matmul (B*P, KP) @ (KP, D) ----
    pe = jnp.dot(patches_ref[...].astype(bf16), w_patch[...],
                 preferred_element_type=f32) + b_patch[...]          # (B*P, D)

    # ---- 2. token assembly: [saliency(2), patches(P)] per batch (rows) -------
    sal = sal_bias[...]                                               # (2, D)  saliency + pos_embed[:2]
    ppos = patch_pos[...]                                             # (P, D)  pos_embed[2:]
    chunks = []
    for bi in range(B):
        chunks.append(sal)
        chunks.append(pe[bi * P:(bi + 1) * P, :] + ppos)
    x = jnp.concatenate(chunks, axis=0)                               # (B*T, D)

    # ---- 3. transformer blocks (batch-stacked dense matmuls) -----------------
    for blk in range(N_BLOCKS):
        y = _layernorm(x, ln1_w[blk], ln1_b[blk])
        # NOTE: attention scale (head_dim**-0.5) is already folded into the Q
        # columns of wqkv / bqkv in the wrapper.
        qkv = jnp.dot(y.astype(bf16), wqkv[blk],
                      preferred_element_type=f32) + bqkv[blk]         # (B*T, 3D)

        # batched multi-head attention: (B*NUM_HEADS, T, DH)
        q_parts, k_parts, v_parts = [], [], []
        for bi in range(B):
            r = bi * T
            for hi in range(NUM_HEADS):
                c = hi * DH
                q_parts.append(qkv[r:r + T, c:c + DH])
                k_parts.append(qkv[r:r + T, D + c:D + c + DH])
                v_parts.append(qkv[r:r + T, 2 * D + c:2 * D + c + DH])
        qh = jnp.stack(q_parts).astype(bf16)                          # (B*NH, T, DH)
        kh = jnp.stack(k_parts).astype(bf16)
        vh = jnp.stack(v_parts).astype(bf16)
        s = jnp.einsum('bqd,bkd->bqk', qh, kh,
                       preferred_element_type=f32)                    # (B*NH, T, T), pre-scaled
        p = jax.nn.softmax(s, axis=-1)                                # f32 softmax
        ctx = jnp.einsum('bqk,bkd->bqd', p.astype(bf16), vh,
                         preferred_element_type=f32)                  # (B*NH, T, DH)

        rows = []
        for bi in range(B):
            rows.append(jnp.concatenate(
                [ctx[bi * NUM_HEADS + hi] for hi in range(NUM_HEADS)], axis=-1))
        attn = jnp.concatenate(rows, axis=0)                          # (B*T, D)
        attn = jnp.dot(attn.astype(bf16), wproj[blk],
                       preferred_element_type=f32) + bproj[blk]
        x = x + attn

        y2 = _layernorm(x, ln2_w[blk], ln2_b[blk])
        # TODO(synk): PyTorch nn.GELU default is exact erf; tanh approximation
        # used here for robust Mosaic lowering (numerically very close).
        h1 = jax.nn.gelu(jnp.dot(y2.astype(bf16), w1[blk],
                                 preferred_element_type=f32) + b1[blk],
                         approximate=True)
        h2 = jnp.dot(h1.astype(bf16), w2[blk],
                     preferred_element_type=f32) + b2[blk]
        x = x + h2

    # ---- 4. final LayerNorm only on the 2 consumed saliency tokens -----------
    sal_rows = jnp.concatenate([x[bi * T:bi * T + 2, :] for bi in range(B)],
                               axis=0)                                # (2B, D): [pos0,neg0,pos1,neg1]
    sal_rows = _layernorm(sal_rows, norm_w[...], norm_b[...])
    pos_rep = jnp.concatenate(
        [jnp.broadcast_to(sal_rows[2 * bi:2 * bi + 1, :], (N_TAUS, D))
         for bi in range(B)], axis=0)                                 # (B*N_TAUS, D)
    neg_rep = jnp.concatenate(
        [jnp.broadcast_to(sal_rows[2 * bi + 1:2 * bi + 2, :], (N_TAUS, D))
         for bi in range(B)], axis=0)                                 # (B*N_TAUS, D)

    # ---- 5. fused IQN heads (pos & neg via concatenated / block-diag weights)
    # cosine basis uses i = 1..NUM_COSINES (matches reference IQN head);
    # i*pi precomputed in the wrapper, kernel only does tau-dependent work.
    cosines = jnp.cos(tau_ref[...] * i_pi_ref[...])                  # (B*N_TAUS, NC)
    tau_emb = jax.nn.relu(
        jnp.dot(cosines.astype(bf16), w_cos[...],
                preferred_element_type=f32) + b_cos[...])             # (B*N_TAUS, 2D)
    z = jnp.concatenate([pos_rep * tau_emb[:, :D],
                         neg_rep * tau_emb[:, D:]], axis=-1)          # (B*N_TAUS, 2D)
    hh = jax.nn.relu(
        jnp.dot(z.astype(bf16), w_h[...],
                preferred_element_type=f32) + b_h[...])               # (B*N_TAUS, 2*HIDDEN)
    quant = jnp.dot(hh.astype(bf16), w_o[...],
                    preferred_element_type=f32) + b_o[...]            # (B*N_TAUS, 2*OUT)
    qmeans = jnp.concatenate(
        [jnp.mean(quant[bi * N_TAUS:(bi + 1) * N_TAUS, :], axis=0, keepdims=True)
         for bi in range(B)], axis=0)                                 # (B, 2*OUT)
    o_ref[...] = qmeans[:, :OUT] - qmeans[:, OUT:]                    # (B, OUT)


# ------------------------------ Python wrapper --------------------------------
def cda3_iqn_forward(state, taus, params):
    f32, bf16 = jnp.float32, jnp.bfloat16
    Hp, Wp = H // PATCH, W // PATCH

    # --- XLA-side glue: pure layout / parameter packing (constant-folded) -----
    patches = state.reshape(B, C_IN, Hp, PATCH, Wp, PATCH)
    patches = patches.transpose(0, 2, 4, 1, 3, 5).reshape(B * P, KP)
    tau_col = taus.reshape(B * N_TAUS, 1).astype(f32)
    i_pi = (jnp.pi * jnp.arange(1, NUM_COSINES + 1, dtype=f32)).reshape(1, NUM_COSINES)

    w_patch = params['patch_w'].reshape(D, KP).T.astype(bf16)         # (KP, D)
    b_patch = params['patch_b']
    sal_bias = (jnp.concatenate([params['pos_sal'], params['neg_sal']], axis=1)
                + params['pos_embed'][:, :2])[0]                      # (2, D)
    patch_pos = params['pos_embed'][0, 2:]                            # (P, D)

    blocks = params['blocks']

    def stack(name, dtype=f32):
        return jnp.stack([blk[name] for blk in blocks]).astype(dtype)

    # fold attention scale into the Q columns of W_qkv / b_qkv (constant math).
    def scaled_qkv_w(blk):
        w = blk['wqkv']
        return jnp.concatenate([w[:, :D] * SCALE, w[:, D:]], axis=1)

    def scaled_qkv_b(blk):
        b = blk['bqkv']
        return jnp.concatenate([b[:, :D] * SCALE, b[:, D:]], axis=1)

    ln1_w, ln1_b = stack('ln1_w'), stack('ln1_b')
    wqkv = jnp.stack([scaled_qkv_w(blk) for blk in blocks]).astype(bf16)
    bqkv = jnp.stack([scaled_qkv_b(blk) for blk in blocks]).astype(f32)
    wproj, bproj = stack('wproj', bf16), stack('bproj')
    ln2_w, ln2_b = stack('ln2_w'), stack('ln2_b')
    w1, b1 = stack('w1', bf16), stack('b1')
    w2, b2 = stack('w2', bf16), stack('b2')

    ph, nh = params['pos_head'], params['neg_head']
    w_cos = jnp.concatenate([ph['w_cos'], nh['w_cos']], axis=1).astype(bf16)   # (NC, 2D)
    b_cos = jnp.concatenate([ph['b_cos'], nh['b_cos']], axis=1)                # (1, 2D)
    zh = jnp.zeros((D, HIDDEN), f32)
    w_h = jnp.concatenate(
        [jnp.concatenate([ph['w_h'], zh], axis=1),
         jnp.concatenate([zh, nh['w_h']], axis=1)], axis=0).astype(bf16)       # (2D, 2*HIDDEN)
    b_h = jnp.concatenate([ph['b_h'], nh['b_h']], axis=1)                      # (1, 2*HIDDEN)
    zo = jnp.zeros((HIDDEN, OUT), f32)
    w_o = jnp.concatenate(
        [jnp.concatenate([ph['w_o'], zo], axis=1),
         jnp.concatenate([zo, nh['w_o']], axis=1)], axis=0).astype(bf16)       # (2*HIDDEN, 2*OUT)
    b_o = jnp.concatenate([ph['b_o'], nh['b_o']], axis=1)                      # (1, 2*OUT)

    inputs = (patches, tau_col, i_pi, w_patch, b_patch, sal_bias, patch_pos,
              ln1_w, ln1_b, wqkv, bqkv, wproj, bproj,
              ln2_w, ln2_b, w1, b1, w2, b2,
              params['norm_w'], params['norm_b'],
              w_cos, b_cos, w_h, b_h, w_o, b_o)

    return pl.pallas_call(
        fused_forward_kernel,
        out_shape=jax.ShapeDtypeStruct((B, OUT), jnp.float32),
        in_specs=[pl.BlockSpec(memory_space=pltpu.MemorySpace.VMEM)] * len(inputs),
        out_specs=pl.BlockSpec(memory_space=pltpu.MemorySpace.VMEM),
    )(*inputs)


# --------------------------- deterministic parameters -------------------------
def init_params(key):
    keys = iter(jax.random.split(key, 64))

    def nrm(shape, s=0.02):
        return jax.random.normal(next(keys), shape, jnp.float32) * s

    params = {
        'patch_w': nrm((D, C_IN, PATCH, PATCH)),
        'patch_b': jnp.zeros((1, D), jnp.float32),
        'pos_sal': nrm((1, 1, D)),
        'neg_sal': nrm((1, 1, D)),
        'pos_embed': nrm((1, T, D)),
        'norm_w': jnp.ones((1, D), jnp.float32),
        'norm_b': jnp.zeros((1, D), jnp.float32),
    }
    blocks = []
    for _ in range(N_BLOCKS):
        blocks.append(dict(
            ln1_w=jnp.ones((1, D), jnp.float32), ln1_b=jnp.zeros((1, D), jnp.float32),
            wqkv=nrm((D, 3 * D)), bqkv=jnp.zeros((1, 3 * D), jnp.float32),
            wproj=nrm((D, D)), bproj=jnp.zeros((1, D), jnp.float32),
            ln2_w=jnp.ones((1, D), jnp.float32), ln2_b=jnp.zeros((1, D), jnp.float32),
            w1=nrm((D, DM)), b1=jnp.zeros((1, DM), jnp.float32),
            w2=nrm((DM, D)), b2=jnp.zeros((1, D), jnp.float32),
        ))
    params['blocks'] = blocks

    def head():
        return dict(
            w_cos=nrm((NUM_COSINES, D)), b_cos=jnp.zeros((1, D), jnp.float32),
            w_h=nrm((D, HIDDEN)), b_h=jnp.zeros((1, HIDDEN), jnp.float32),
            w_o=nrm((HIDDEN, OUT)), b_o=jnp.zeros((1, OUT), jnp.float32),
        )

    params['pos_head'] = head()
    params['neg_head'] = head()
    return params


# ------------------------------------ main ------------------------------------
if __name__ == "__main__":
    key = jax.random.PRNGKey(0)
    k_param, k_state, k_tau = jax.random.split(key, 3)
    params = init_params(k_param)
    state = jax.random.normal(k_state, (B, C_IN, H, W), jnp.float32)  # NCHW
    external_taus = jax.random.uniform(k_tau, (B, N_TAUS), jnp.float32)

    fwd = jax.jit(lambda s, t: cda3_iqn_forward(s, t, params))
    q_values = fwd(state, external_taus)
    jax.block_until_ready(q_values)
    assert q_values.shape == (B, OUT)
    assert bool(jnp.all(jnp.isfinite(q_values)))
    print("KERNEL_OK")
</pallas_src>

<mosaic_0001>
module attributes {stable_mosaic.version = 11 : i64} {
  func.func @fused_forward_kernel(%arg0: memref<32x64xf32, #tpu.memory_space<vmem>>, %arg1: memref<16x1xf32, #tpu.memory_space<vmem>>, %arg2: memref<1x64xf32, #tpu.memory_space<vmem>>, %arg3: memref<64x32xbf16, #tpu.memory_space<vmem>>, %arg4: memref<1x32xf32, #tpu.memory_space<vmem>>, %arg5: memref<2x32xf32, #tpu.memory_space<vmem>>, %arg6: memref<16x32xf32, #tpu.memory_space<vmem>>, %arg7: memref<2x1x32xf32, #tpu.memory_space<vmem>>, %arg8: memref<2x1x32xf32, #tpu.memory_space<vmem>>, %arg9: memref<2x32x96xbf16, #tpu.memory_space<vmem>>, %arg10: memref<2x1x96xf32, #tpu.memory_space<vmem>>, %arg11: memref<2x32x32xbf16, #tpu.memory_space<vmem>>, %arg12: memref<2x1x32xf32, #tpu.memory_space<vmem>>, %arg13: memref<2x1x32xf32, #tpu.memory_space<vmem>>, %arg14: memref<2x1x32xf32, #tpu.memory_space<vmem>>, %arg15: memref<2x32x64xbf16, #tpu.memory_space<vmem>>, %arg16: memref<2x1x64xf32, #tpu.memory_space<vmem>>, %arg17: memref<2x64x32xbf16, #tpu.memory_space<vmem>>, %arg18: memref<2x1x32xf32, #tpu.memory_space<vmem>>, %arg19: memref<1x32xf32, #tpu.memory_space<vmem>>, %arg20: memref<1x32xf32, #tpu.memory_space<vmem>>, %arg21: memref<64x64xbf16, #tpu.memory_space<vmem>>, %arg22: memref<1x64xf32, #tpu.memory_space<vmem>>, %arg23: memref<64x128xbf16, #tpu.memory_space<vmem>>, %arg24: memref<1x128xf32, #tpu.memory_space<vmem>>, %arg25: memref<128x10xbf16, #tpu.memory_space<vmem>>, %arg26: memref<1x10xf32, #tpu.memory_space<vmem>>, %arg27: memref<2x5xf32, #tpu.memory_space<vmem>>) attributes {dimension_semantics = [], scalar_prefetch = 0 : i64, scratch_operands = 0 : i64, tpu.core_type = #tpu.core_type<tc>} {
    %c0 = arith.constant 0 : index
    %c0_0 = arith.constant 0 : index
    %0 = vector.load %arg0[%c0, %c0_0] : memref<32x64xf32, #tpu.memory_space<vmem>>, vector<32x64xf32>
    %1 = arith.truncf %0 : vector<32x64xf32> to vector<32x64xbf16>
    %c0_1 = arith.constant 0 : index
    %c0_2 = arith.constant 0 : index
    %2 = vector.load %arg3[%c0_1, %c0_2] : memref<64x32xbf16, #tpu.memory_space<vmem>>, vector<64x32xbf16>
    %cst = arith.constant dense<0.000000e+00> : vector<32x32xf32>
    %3 = tpu.matmul %1, %2, %cst {dimension_numbers = #tpu.dot_dimension_numbers<[1], [0], [0], [1], [0, 0, 1, 1], [], []>} : vector<32x64xbf16>, vector<64x32xbf16>, vector<32x32xf32> -> vector<32x32xf32>
    %c0_3 = arith.constant 0 : index
    %c0_4 = arith.constant 0 : index
    %4 = vector.load %arg4[%c0_3, %c0_4] : memref<1x32xf32, #tpu.memory_space<vmem>>, vector<1x32xf32>
    %5 = vector.broadcast %4 : vector<1x32xf32> to vector<32x32xf32>
    %6 = arith.addf %3, %5 : vector<32x32xf32>
    %c0_5 = arith.constant 0 : index
    %c0_6 = arith.constant 0 : index
    %7 = vector.load %arg5[%c0_5, %c0_6] : memref<2x32xf32, #tpu.memory_space<vmem>>, vector<2x32xf32>
    %c0_7 = arith.constant 0 : index
    %c0_8 = arith.constant 0 : index
    %8 = vector.load %arg6[%c0_7, %c0_8] : memref<16x32xf32, #tpu.memory_space<vmem>>, vector<16x32xf32>
    %9 = vector.extract_strided_slice %6 {offsets = [0, 0], sizes = [16, 32], strides = [1, 1]} : vector<32x32xf32> to vector<16x32xf32>
    %10 = arith.addf %9, %8 : vector<16x32xf32>
    %11 = vector.extract_strided_slice %6 {offsets = [16, 0], sizes = [16, 32], strides = [1, 1]} : vector<32x32xf32> to vector<16x32xf32>
    %12 = arith.addf %11, %8 : vector<16x32xf32>
    %13 = tpu.concatenate %7, %10, %7, %12 in 0 : vector<2x32xf32>, vector<16x32xf32>, vector<2x32xf32>, vector<16x32xf32> -> vector<36x32xf32>
    %c0_9 = arith.constant 0 : index
    %c0_10 = arith.constant 0 : index
    %c0_11 = arith.constant 0 : index
    %14 = vector.load %arg7[%c0_9, %c0_10, %c0_11] : memref<2x1x32xf32, #tpu.memory_space<vmem>>, vector<1x1x32xf32>
    %15 = vector.shape_cast %14 : vector<1x1x32xf32> to vector<1x32xf32>
    %c0_12 = arith.constant 0 : index
    %c0_13 = arith.constant 0 : index
    %c0_14 = arith.constant 0 : index
    %16 = vector.load %arg8[%c0_12, %c0_13, %c0_14] : memref<2x1x32xf32, #tpu.memory_space<vmem>>, vector<1x1x32xf32>
    %17 = vector.shape_cast %16 : vector<1x1x32xf32> to vector<1x32xf32>
    %cst_15 = arith.constant dense<0.000000e+00> : vector<36xf32>
    %18 = vector.multi_reduction <add>, %13, %cst_15 [1] : vector<36x32xf32> to vector<36xf32>
    %19 = vector.shape_cast %18 : vector<36xf32> to vector<36x1xf32>
    %cst_16 = arith.constant 3.200000e+01 : f32
    %20 = vector.broadcast %cst_16 : f32 to vector<36x1xf32>
    %21 = arith.divf %19, %20 : vector<36x1xf32>
    %22 = vector.broadcast %21 : vector<36x1xf32> to vector<36x32xf32>
    %23 = arith.subf %13, %22 : vector<36x32xf32>
    %24 = arith.mulf %23, %23 : vector<36x32xf32>
    %cst_17 = arith.constant dense<0.000000e+00> : vector<36xf32>
    %25 = vector.multi_reduction <add>, %24, %cst_17 [1] : vector<36x32xf32> to vector<36xf32>
    %26 = vector.shape_cast %25 : vector<36xf32> to vector<36x1xf32>
    %cst_18 = arith.constant 3.200000e+01 : f32
    %27 = vector.broadcast %cst_18 : f32 to vector<36x1xf32>
    %28 = arith.divf %26, %27 : vector<36x1xf32>
    %29 = vector.broadcast %21 : vector<36x1xf32> to vector<36x32xf32>
    %30 = arith.subf %13, %29 : vector<36x32xf32>
    %cst_19 = arith.constant 9.99999974E-6 : f32
    %31 = vector.broadcast %cst_19 : f32 to vector<36x1xf32>
    %32 = arith.addf %28, %31 : vector<36x1xf32>
    %33 = math.rsqrt %32 : vector<36x1xf32>
    %34 = vector.broadcast %33 : vector<36x1xf32> to vector<36x32xf32>
    %35 = arith.mulf %30, %34 : vector<36x32xf32>
    %36 = vector.broadcast %15 : vector<1x32xf32> to vector<36x32xf32>
    %37 = arith.mulf %35, %36 : vector<36x32xf32>
    %38 = vector.broadcast %17 : vector<1x32xf32> to vector<36x32xf32>
    %39 = arith.addf %37, %38 : vector<36x32xf32>
    %40 = arith.truncf %39 : vector<36x32xf32> to vector<36x32xbf16>
    %c0_20 = arith.constant 0 : index
    %c0_21 = arith.constant 0 : index
    %c0_22 = arith.constant 0 : index
    %41 = vector.load %arg9[%c0_20, %c0_21, %c0_22] : memref<2x32x96xbf16, #tpu.memory_space<vmem>>, vector<1x32x96xbf16>
    %42 = vector.shape_cast %41 : vector<1x32x96xbf16> to vector<32x96xbf16>
    %cst_23 = arith.constant dense<0.000000e+00> : vector<36x96xf32>
    %43 = tpu.matmul %40, %42, %cst_23 {dimension_numbers = #tpu.dot_dimension_numbers<[1], [0], [0], [1], [0, 0, 1, 1], [], []>} : vector<36x32xbf16>, vector<32x96xbf16>, vector<36x96xf32> -> vector<36x96xf32>
    %c0_24 = arith.constant 0 : index
    %c0_25 = arith.constant 0 : index
    %c0_26 = arith.constant 0 : index
    %44 = vector.load %arg10[%c0_24, %c0_25, %c0_26] : memref<2x1x96xf32, #tpu.memory_space<vmem>>, vector<1x1x96xf32>
    %45 = vector.shape_cast %44 : vector<1x1x96xf32> to vector<1x96xf32>
    %46 = vector.broadcast %45 : vector<1x96xf32> to vector<36x96xf32>
    %47 = arith.addf %43, %46 : vector<36x96xf32>
    %48 = vector.extract_strided_slice %47 {offsets = [0, 0], sizes = [18, 8], strides = [1, 1]} : vector<36x96xf32> to vector<18x8xf32>
    %49 = vector.extract_strided_slice %47 {offsets = [0, 32], sizes = [18, 8], strides = [1, 1]} : vector<36x96xf32> to vector<18x8xf32>
    %50 = vector.extract_strided_slice %47 {offsets = [0, 64], sizes = [18, 8], strides = [1, 1]} : vector<36x96xf32> to vector<18x8xf32>
    %51 = vector.extract_strided_slice %47 {offsets = [0, 8], sizes = [18, 8], strides = [1, 1]} : vector<36x96xf32> to vector<18x8xf32>
    %52 = vector.extract_strided_slice %47 {offsets = [0, 40], sizes = [18, 8], strides = [1, 1]} : vector<36x96xf32> to vector<18x8xf32>
    %53 = vector.extract_strided_slice %47 {offsets = [0, 72], sizes = [18, 8], strides = [1, 1]} : vector<36x96xf32> to vector<18x8xf32>
    %54 = vector.extract_strided_slice %47 {offsets = [0, 16], sizes = [18, 8], strides = [1, 1]} : vector<36x96xf32> to vector<18x8xf32>
    %55 = vector.extract_strided_slice %47 {offsets = [0, 48], sizes = [18, 8], strides = [1, 1]} : vector<36x96xf32> to vector<18x8xf32>
    %56 = vector.extract_strided_slice %47 {offsets = [0, 80], sizes = [18, 8], strides = [1, 1]} : vector<36x96xf32> to vector<18x8xf32>
    %57 = vector.extract_strided_slice %47 {offsets = [0, 24], sizes = [18, 8], strides = [1, 1]} : vector<36x96xf32> to vector<18x8xf32>
    %58 = vector.extract_strided_slice %47 {offsets = [0, 56], sizes = [18, 8], strides = [1, 1]} : vector<36x96xf32> to vector<18x8xf32>
    %59 = vector.extract_strided_slice %47 {offsets = [0, 88], sizes = [18, 8], strides = [1, 1]} : vector<36x96xf32> to vector<18x8xf32>
    %60 = vector.extract_strided_slice %47 {offsets = [18, 0], sizes = [18, 8], strides = [1, 1]} : vector<36x96xf32> to vector<18x8xf32>
    %61 = vector.extract_strided_slice %47 {offsets = [18, 32], sizes = [18, 8], strides = [1, 1]} : vector<36x96xf32> to vector<18x8xf32>
    %62 = vector.extract_strided_slice %47 {offsets = [18, 64], sizes = [18, 8], strides = [1, 1]} : vector<36x96xf32> to vector<18x8xf32>
    %63 = vector.extract_strided_slice %47 {offsets = [18, 8], sizes = [18, 8], strides = [1, 1]} : vector<36x96xf32> to vector<18x8xf32>
    %64 = vector.extract_strided_slice %47 {offsets = [18, 40], sizes = [18, 8], strides = [1, 1]} : vector<36x96xf32> to vector<18x8xf32>
    %65 = vector.extract_strided_slice %47 {offsets = [18, 72], sizes = [18, 8], strides = [1, 1]} : vector<36x96xf32> to vector<18x8xf32>
    %66 = vector.extract_strided_slice %47 {offsets = [18, 16], sizes = [18, 8], strides = [1, 1]} : vector<36x96xf32> to vector<18x8xf32>
    %67 = vector.extract_strided_slice %47 {offsets = [18, 48], sizes = [18, 8], strides = [1, 1]} : vector<36x96xf32> to vector<18x8xf32>
    %68 = vector.extract_strided_slice %47 {offsets = [18, 80], sizes = [18, 8], strides = [1, 1]} : vector<36x96xf32> to vector<18x8xf32>
    %69 = vector.extract_strided_slice %47 {offsets = [18, 24], sizes = [18, 8], strides = [1, 1]} : vector<36x96xf32> to vector<18x8xf32>
    %70 = vector.extract_strided_slice %47 {offsets = [18, 56], sizes = [18, 8], strides = [1, 1]} : vector<36x96xf32> to vector<18x8xf32>
    %71 = vector.extract_strided_slice %47 {offsets = [18, 88], sizes = [18, 8], strides = [1, 1]} : vector<36x96xf32> to vector<18x8xf32>
    %72 = vector.shape_cast %48 : vector<18x8xf32> to vector<1x18x8xf32>
    %73 = vector.shape_cast %51 : vector<18x8xf32> to vector<1x18x8xf32>
    %74 = vector.shape_cast %54 : vector<18x8xf32> to vector<1x18x8xf32>
    %75 = vector.shape_cast %57 : vector<18x8xf32> to vector<1x18x8xf32>
    %76 = vector.shape_cast %60 : vector<18x8xf32> to vector<1x18x8xf32>
    %77 = vector.shape_cast %63 : vector<18x8xf32> to vector<1x18x8xf32>
    %78 = vector.shape_cast %66 : vector<18x8xf32> to vector<1x18x8xf32>
    %79 = vector.shape_cast %69 : vector<18x8xf32> to vector<1x18x8xf32>
    %80 = tpu.concatenate %72, %73, %74, %75, %76, %77, %78, %79 in 0 : vector<1x18x8xf32>, vector<1x18x8xf32>, vector<1x18x8xf32>, vector<1x18x8xf32>, vector<1x18x8xf32>, vector<1x18x8xf32>, vector<1x18x8xf32>, vector<1x18x8xf32> -> vector<8x18x8xf32>
    %81 = arith.truncf %80 : vector<8x18x8xf32> to vector<8x18x8xbf16>
    %82 = vector.shape_cast %49 : vector<18x8xf32> to vector<1x18x8xf32>
    %83 = vector.shape_cast %52 : vector<18x8xf32> to vector<1x18x8xf32>
    %84 = vector.shape_cast %55 : vector<18x8xf32> to vector<1x18x8xf32>
    %85 = vector.shape_cast %58 : vector<18x8xf32> to vector<1x18x8xf32>
    %86 = vector.shape_cast %61 : vector<18x8xf32> to vector<1x18x8xf32>
    %87 = vector.shape_cast %64 : vector<18x8xf32> to vector<1x18x8xf32>
    %88 = vector.shape_cast %67 : vector<18x8xf32> to vector<1x18x8xf32>
    %89 = vector.shape_cast %70 : vector<18x8xf32> to vector<1x18x8xf32>
    %90 = tpu.concatenate %82, %83, %84, %85, %86, %87, %88, %89 in 0 : vector<1x18x8xf32>, vector<1x18x8xf32>, vector<1x18x8xf32>, vector<1x18x8xf32>, vector<1x18x8xf32>, vector<1x18x8xf32>, vector<1x18x8xf32>, vector<1x18x8xf32> -> vector<8x18x8xf32>
    %91 = arith.truncf %90 : vector<8x18x8xf32> to vector<8x18x8xbf16>
    %92 = vector.shape_cast %50 : vector<18x8xf32> to vector<1x18x8xf32>
    %93 = vector.shape_cast %53 : vector<18x8xf32> to vector<1x18x8xf32>
    %94 = vector.shape_cast %56 : vector<18x8xf32> to vector<1x18x8xf32>
    %95 = vector.shape_cast %59 : vector<18x8xf32> to vector<1x18x8xf32>
    %96 = vector.shape_cast %62 : vector<18x8xf32> to vector<1x18x8xf32>
    %97 = vector.shape_cast %65 : vector<18x8xf32> to vector<1x18x8xf32>
    %98 = vector.shape_cast %68 : vector<18x8xf32> to vector<1x18x8xf32>
    %99 = vector.shape_cast %71 : vector<18x8xf32> to vector<1x18x8xf32>
    %100 = tpu.concatenate %92, %93, %94, %95, %96, %97, %98, %99 in 0 : vector<1x18x8xf32>, vector<1x18x8xf32>, vector<1x18x8xf32>, vector<1x18x8xf32>, vector<1x18x8xf32>, vector<1x18x8xf32>, vector<1x18x8xf32>, vector<1x18x8xf32> -> vector<8x18x8xf32>
    %101 = arith.truncf %100 : vector<8x18x8xf32> to vector<8x18x8xbf16>
    "tpu.trace_start"() <{level = 10 : i32, message = "bqd,bkd->bqk"}> : () -> ()
    %cst_27 = arith.constant dense<0.000000e+00> : vector<8x18x18xf32>
    %102 = tpu.matmul %81, %91, %cst_27 {dimension_numbers = #tpu.dot_dimension_numbers<[2], [2], [1], [1], [0, 0, 0, 1, 1, 1], [0], [0]>} : vector<8x18x8xbf16>, vector<8x18x8xbf16>, vector<8x18x18xf32> -> vector<8x18x18xf32>
    "tpu.trace_stop"() : () -> ()
    %cst_28 = arith.constant dense<0xFF800000> : vector<8x18xf32>
    %103 = vector.multi_reduction <maximumf>, %102, %cst_28 [2] : vector<8x18x18xf32> to vector<8x18xf32>
    %cst_29 = arith.constant 0xFF800000 : f32
    %104 = vector.broadcast %cst_29 : f32 to vector<8x18xf32>
    %105 = arith.maximumf %104, %103 : vector<8x18xf32>
    %106 = vector.shape_cast %105 : vector<8x18xf32> to vector<8x18x1xf32>
    %107 = vector.broadcast %106 : vector<8x18x1xf32> to vector<8x18x18xf32>
    %108 = arith.subf %102, %107 : vector<8x18x18xf32>
    %109 = math.exp %108 : vector<8x18x18xf32>
    %cst_30 = arith.constant dense<0.000000e+00> : vector<8x18xf32>
    %110 = vector.multi_reduction <add>, %109, %cst_30 [2] : vector<8x18x18xf32> to vector<8x18xf32>
    %111 = vector.shape_cast %110 : vector<8x18xf32> to vector<8x18x1xf32>
    %112 = vector.broadcast %111 : vector<8x18x1xf32> to vector<8x18x18xf32>
    %113 = arith.divf %109, %112 : vector<8x18x18xf32>
    %114 = arith.truncf %113 : vector<8x18x18xf32> to vector<8x18x18xbf16>
    "tpu.trace_start"() <{level = 10 : i32, message = "bqk,bkd->bqd"}> : () -> ()
    %cst_31 = arith.constant dense<0.000000e+00> : vector<8x18x8xf32>
    %115 = tpu.matmul %114, %101, %cst_31 {dimension_numbers = #tpu.dot_dimension_numbers<[2], [1], [1], [2], [0, 0, 0, 1, 1, 2], [0], [0]>} : vector<8x18x18xbf16>, vector<8x18x8xbf16>, vector<8x18x8xf32> -> vector<8x18x8xf32>
    "tpu.trace_stop"() : () -> ()
    %116 = vector.extract_strided_slice %115 {offsets = [0, 0, 0], sizes = [1, 18, 8], strides = [1, 1, 1]} : vector<8x18x8xf32> to vector<1x18x8xf32>
    %117 = vector.shape_cast %116 : vector<1x18x8xf32> to vector<18x8xf32>
    %118 = vector.extract_strided_slice %115 {offsets = [1, 0, 0], sizes = [1, 18, 8], strides = [1, 1, 1]} : vector<8x18x8xf32> to vector<1x18x8xf32>
    %119 = vector.shape_cast %118 : vector<1x18x8xf32> to vector<18x8xf32>
    %120 = vector.extract_strided_slice %115 {offsets = [2, 0, 0], sizes = [1, 18, 8], strides = [1, 1, 1]} : vector<8x18x8xf32> to vector<1x18x8xf32>
    %121 = vector.shape_cast %120 : vector<1x18x8xf32> to vector<18x8xf32>
    %122 = vector.extract_strided_slice %115 {offsets = [3, 0, 0], sizes = [1, 18, 8], strides = [1, 1, 1]} : vector<8x18x8xf32> to vector<1x18x8xf32>
    %123 = vector.shape_cast %122 : vector<1x18x8xf32> to vector<18x8xf32>
    %124 = tpu.concatenate %117, %119, %121, %123 in 1 : vector<18x8xf32>, vector<18x8xf32>, vector<18x8xf32>, vector<18x8xf32> -> vector<18x32xf32>
    %125 = vector.extract_strided_slice %115 {offsets = [4, 0, 0], sizes = [1, 18, 8], strides = [1, 1, 1]} : vector<8x18x8xf32> to vector<1x18x8xf32>
    %126 = vector.shape_cast %125 : vector<1x18x8xf32> to vector<18x8xf32>
    %127 = vector.extract_strided_slice %115 {offsets = [5, 0, 0], sizes = [1, 18, 8], strides = [1, 1, 1]} : vector<8x18x8xf32> to vector<1x18x8xf32>
    %128 = vector.shape_cast %127 : vector<1x18x8xf32> to vector<18x8xf32>
    %129 = vector.extract_strided_slice %115 {offsets = [6, 0, 0], sizes = [1, 18, 8], strides = [1, 1, 1]} : vector<8x18x8xf32> to vector<1x18x8xf32>
    %130 = vector.shape_cast %129 : vector<1x18x8xf32> to vector<18x8xf32>
    %131 = vector.extract_strided_slice %115 {offsets = [7, 0, 0], sizes = [1, 18, 8], strides = [1, 1, 1]} : vector<8x18x8xf32> to vector<1x18x8xf32>
    %132 = vector.shape_cast %131 : vector<1x18x8xf32> to vector<18x8xf32>
    %133 = tpu.concatenate %126, %128, %130, %132 in 1 : vector<18x8xf32>, vector<18x8xf32>, vector<18x8xf32>, vector<18x8xf32> -> vector<18x32xf32>
    %134 = tpu.concatenate %124, %133 in 0 : vector<18x32xf32>, vector<18x32xf32> -> vector<36x32xf32>
    %135 = arith.truncf %134 : vector<36x32xf32> to vector<36x32xbf16>
    %c0_32 = arith.constant 0 : index
    %c0_33 = arith.constant 0 : index
    %c0_34 = arith.constant 0 : index
    %136 = vector.load %arg11[%c0_32, %c0_33, %c0_34] : memref<2x32x32xbf16, #tpu.memory_space<vmem>>, vector<1x32x32xbf16>
    %137 = vector.shape_cast %136 : vector<1x32x32xbf16> to vector<32x32xbf16>
    %cst_35 = arith.constant dense<0.000000e+00> : vector<36x32xf32>
    %138 = tpu.matmul %135, %137, %cst_35 {dimension_numbers = #tpu.dot_dimension_numbers<[1], [0], [0], [1], [0, 0, 1, 1], [], []>} : vector<36x32xbf16>, vector<32x32xbf16>, vector<36x32xf32> -> vector<36x32xf32>
    %c0_36 = arith.constant 0 : index
    %c0_37 = arith.constant 0 : index
    %c0_38 = arith.constant 0 : index
    %139 = vector.load %arg12[%c0_36, %c0_37, %c0_38] : memref<2x1x32xf32, #tpu.memory_space<vmem>>, vector<1x1x32xf32>
    %140 = vector.shape_cast %139 : vector<1x1x32xf32> to vector<1x32xf32>
    %141 = vector.broadcast %140 : vector<1x32xf32> to vector<36x32xf32>
    %142 = arith.addf %138, %141 : vector<36x32xf32>
    %143 = arith.addf %13, %142 : vector<36x32xf32>
    %c0_39 = arith.constant 0 : index
    %c0_40 = arith.constant 0 : index
    %c0_41 = arith.constant 0 : index
    %144 = vector.load %arg13[%c0_39, %c0_40, %c0_41] : memref<2x1x32xf32, #tpu.memory_space<vmem>>, vector<1x1x32xf32>
    %145 = vector.shape_cast %144 : vector<1x1x32xf32> to vector<1x32xf32>
    %c0_42 = arith.constant 0 : index
    %c0_43 = arith.constant 0 : index
    %c0_44 = arith.constant 0 : index
    %146 = vector.load %arg14[%c0_42, %c0_43, %c0_44] : memref<2x1x32xf32, #tpu.memory_space<vmem>>, vector<1x1x32xf32>
    %147 = vector.shape_cast %146 : vector<1x1x32xf32> to vector<1x32xf32>
    %cst_45 = arith.constant dense<0.000000e+00> : vector<36xf32>
    %148 = vector.multi_reduction <add>, %143, %cst_45 [1] : vector<36x32xf32> to vector<36xf32>
    %149 = vector.shape_cast %148 : vector<36xf32> to vector<36x1xf32>
    %cst_46 = arith.constant 3.200000e+01 : f32
    %150 = vector.broadcast %cst_46 : f32 to vector<36x1xf32>
    %151 = arith.divf %149, %150 : vector<36x1xf32>
    %152 = vector.broadcast %151 : vector<36x1xf32> to vector<36x32xf32>
    %153 = arith.subf %143, %152 : vector<36x32xf32>
    %154 = arith.mulf %153, %153 : vector<36x32xf32>
    %cst_47 = arith.constant dense<0.000000e+00> : vector<36xf32>
    %155 = vector.multi_reduction <add>, %154, %cst_47 [1] : vector<36x32xf32> to vector<36xf32>
    %156 = vector.shape_cast %155 : vector<36xf32> to vector<36x1xf32>
    %cst_48 = arith.constant 3.200000e+01 : f32
    %157 = vector.broadcast %cst_48 : f32 to vector<36x1xf32>
    %158 = arith.divf %156, %157 : vector<36x1xf32>
    %159 = vector.broadcast %151 : vector<36x1xf32> to vector<36x32xf32>
    %160 = arith.subf %143, %159 : vector<36x32xf32>
    %cst_49 = arith.constant 9.99999974E-6 : f32
    %161 = vector.broadcast %cst_49 : f32 to vector<36x1xf32>
    %162 = arith.addf %158, %161 : vector<36x1xf32>
    %163 = math.rsqrt %162 : vector<36x1xf32>
    %164 = vector.broadcast %163 : vector<36x1xf32> to vector<36x32xf32>
    %165 = arith.mulf %160, %164 : vector<36x32xf32>
    %166 = vector.broadcast %145 : vector<1x32xf32> to vector<36x32xf32>
    %167 = arith.mulf %165, %166 : vector<36x32xf32>
    %168 = vector.broadcast %147 : vector<1x32xf32> to vector<36x32xf32>
    %169 = arith.addf %167, %168 : vector<36x32xf32>
    %170 = arith.truncf %169 : vector<36x32xf32> to vector<36x32xbf16>
    %c0_50 = arith.constant 0 : index
    %c0_51 = arith.constant 0 : index
    %c0_52 = arith.constant 0 : index
    %171 = vector.load %arg15[%c0_50, %c0_51, %c0_52] : memref<2x32x64xbf16, #tpu.memory_space<vmem>>, vector<1x32x64xbf16>
    %172 = vector.shape_cast %171 : vector<1x32x64xbf16> to vector<32x64xbf16>
    %cst_53 = arith.constant dense<0.000000e+00> : vector<36x64xf32>
    %173 = tpu.matmul %170, %172, %cst_53 {dimension_numbers = #tpu.dot_dimension_numbers<[1], [0], [0], [1], [0, 0, 1, 1], [], []>} : vector<36x32xbf16>, vector<32x64xbf16>, vector<36x64xf32> -> vector<36x64xf32>
    %c0_54 = arith.constant 0 : index
    %c0_55 = arith.constant 0 : index
    %c0_56 = arith.constant 0 : index
    %174 = vector.load %arg16[%c0_54, %c0_55, %c0_56] : memref<2x1x64xf32, #tpu.memory_space<vmem>>, vector<1x1x64xf32>
    %175 = vector.shape_cast %174 : vector<1x1x64xf32> to vector<1x64xf32>
    %176 = vector.broadcast %175 : vector<1x64xf32> to vector<36x64xf32>
    %177 = arith.addf %173, %176 : vector<36x64xf32>
    %178 = arith.mulf %177, %177 : vector<36x64xf32>
    %179 = arith.mulf %177, %178 : vector<36x64xf32>
    %cst_57 = arith.constant 4.471500e-02 : f32
    %180 = vector.broadcast %cst_57 : f32 to vector<36x64xf32>
    %181 = arith.mulf %180, %179 : vector<36x64xf32>
    %182 = arith.addf %177, %181 : vector<36x64xf32>
    %cst_58 = arith.constant 0.797884583 : f32
    %183 = vector.broadcast %cst_58 : f32 to vector<36x64xf32>
    %184 = arith.mulf %183, %182 : vector<36x64xf32>
    %185 = math.tanh %184 : vector<36x64xf32>
    %cst_59 = arith.constant 1.000000e+00 : f32
    %186 = vector.broadcast %cst_59 : f32 to vector<36x64xf32>
    %187 = arith.addf %186, %185 : vector<36x64xf32>
    %cst_60 = arith.constant 5.000000e-01 : f32
    %188 = vector.broadcast %cst_60 : f32 to vector<36x64xf32>
    %189 = arith.mulf %188, %187 : vector<36x64xf32>
    %190 = arith.mulf %177, %189 : vector<36x64xf32>
    %191 = arith.truncf %190 : vector<36x64xf32> to vector<36x64xbf16>
    %c0_61 = arith.constant 0 : index
    %c0_62 = arith.constant 0 : index
    %c0_63 = arith.constant 0 : index
    %192 = vector.load %arg17[%c0_61, %c0_62, %c0_63] : memref<2x64x32xbf16, #tpu.memory_space<vmem>>, vector<1x64x32xbf16>
    %193 = vector.shape_cast %192 : vector<1x64x32xbf16> to vector<64x32xbf16>
    %cst_64 = arith.constant dense<0.000000e+00> : vector<36x32xf32>
    %194 = tpu.matmul %191, %193, %cst_64 {dimension_numbers = #tpu.dot_dimension_numbers<[1], [0], [0], [1], [0, 0, 1, 1], [], []>} : vector<36x64xbf16>, vector<64x32xbf16>, vector<36x32xf32> -> vector<36x32xf32>
    %c0_65 = arith.constant 0 : index
    %c0_66 = arith.constant 0 : index
    %c0_67 = arith.constant 0 : index
    %195 = vector.load %arg18[%c0_65, %c0_66, %c0_67] : memref<2x1x32xf32, #tpu.memory_space<vmem>>, vector<1x1x32xf32>
    %196 = vector.shape_cast %195 : vector<1x1x32xf32> to vector<1x32xf32>
    %197 = vector.broadcast %196 : vector<1x32xf32> to vector<36x32xf32>
    %198 = arith.addf %194, %197 : vector<36x32xf32>
    %199 = arith.addf %143, %198 : vector<36x32xf32>
    %c1 = arith.constant 1 : index
    %c0_68 = arith.constant 0 : index
    %c0_69 = arith.constant 0 : index
    %200 = vector.load %arg7[%c1, %c0_68, %c0_69] : memref<2x1x32xf32, #tpu.memory_space<vmem>>, vector<1x1x32xf32>
    %201 = vector.shape_cast %200 : vector<1x1x32xf32> to vector<1x32xf32>
    %c1_70 = arith.constant 1 : index
    %c0_71 = arith.constant 0 : index
    %c0_72 = arith.constant 0 : index
    %202 = vector.load %arg8[%c1_70, %c0_71, %c0_72] : memref<2x1x32xf32, #tpu.memory_space<vmem>>, vector<1x1x32xf32>
    %203 = vector.shape_cast %202 : vector<1x1x32xf32> to vector<1x32xf32>
    %cst_73 = arith.constant dense<0.000000e+00> : vector<36xf32>
    %204 = vector.multi_reduction <add>, %199, %cst_73 [1] : vector<36x32xf32> to vector<36xf32>
    %205 = vector.shape_cast %204 : vector<36xf32> to vector<36x1xf32>
    %cst_74 = arith.constant 3.200000e+01 : f32
    %206 = vector.broadcast %cst_74 : f32 to vector<36x1xf32>
    %207 = arith.divf %205, %206 : vector<36x1xf32>
    %208 = vector.broadcast %207 : vector<36x1xf32> to vector<36x32xf32>
    %209 = arith.subf %199, %208 : vector<36x32xf32>
    %210 = arith.mulf %209, %209 : vector<36x32xf32>
    %cst_75 = arith.constant dense<0.000000e+00> : vector<36xf32>
    %211 = vector.multi_reduction <add>, %210, %cst_75 [1] : vector<36x32xf32> to vector<36xf32>
    %212 = vector.shape_cast %211 : vector<36xf32> to vector<36x1xf32>
    %cst_76 = arith.constant 3.200000e+01 : f32
    %213 = vector.broadcast %cst_76 : f32 to vector<36x1xf32>
    %214 = arith.divf %212, %213 : vector<36x1xf32>
    %215 = vector.broadcast %207 : vector<36x1xf32> to vector<36x32xf32>
    %216 = arith.subf %199, %215 : vector<36x32xf32>
    %cst_77 = arith.constant 9.99999974E-6 : f32
    %217 = vector.broadcast %cst_77 : f32 to vector<36x1xf32>
    %218 = arith.addf %214, %217 : vector<36x1xf32>
    %219 = math.rsqrt %218 : vector<36x1xf32>
    %220 = vector.broadcast %219 : vector<36x1xf32> to vector<36x32xf32>
    %221 = arith.mulf %216, %220 : vector<36x32xf32>
    %222 = vector.broadcast %201 : vector<1x32xf32> to vector<36x32xf32>
    %223 = arith.mulf %221, %222 : vector<36x32xf32>
    %224 = vector.broadcast %203 : vector<1x32xf32> to vector<36x32xf32>
    %225 = arith.addf %223, %224 : vector<36x32xf32>
    %226 = arith.truncf %225 : vector<36x32xf32> to vector<36x32xbf16>
    %c1_78 = arith.constant 1 : index
    %c0_79 = arith.constant 0 : index
    %c0_80 = arith.constant 0 : index
    %227 = vector.load %arg9[%c1_78, %c0_79, %c0_80] : memref<2x32x96xbf16, #tpu.memory_space<vmem>>, vector<1x32x96xbf16>
    %228 = vector.shape_cast %227 : vector<1x32x96xbf16> to vector<32x96xbf16>
    %cst_81 = arith.constant dense<0.000000e+00> : vector<36x96xf32>
    %229 = tpu.matmul %226, %228, %cst_81 {dimension_numbers = #tpu.dot_dimension_numbers<[1], [0], [0], [1], [0, 0, 1, 1], [], []>} : vector<36x32xbf16>, vector<32x96xbf16>, vector<36x96xf32> -> vector<36x96xf32>
    %c1_82 = arith.constant 1 : index
    %c0_83 = arith.constant 0 : index
    %c0_84 = arith.constant 0 : index
    %230 = vector.load %arg10[%c1_82, %c0_83, %c0_84] : memref<2x1x96xf32, #tpu.memory_space<vmem>>, vector<1x1x96xf32>
    %231 = vector.shape_cast %230 : vector<1x1x96xf32> to vector<1x96xf32>
    %232 = vector.broadcast %231 : vector<1x96xf32> to vector<36x96xf32>
    %233 = arith.addf %229, %232 : vector<36x96xf32>
    %234 = vector.extract_strided_slice %233 {offsets = [0, 0], sizes = [18, 8], strides = [1, 1]} : vector<36x96xf32> to vector<18x8xf32>
    %235 = vector.extract_strided_slice %233 {offsets = [0, 32], sizes = [18, 8], strides = [1, 1]} : vector<36x96xf32> to vector<18x8xf32>
    %236 = vector.extract_strided_slice %233 {offsets = [0, 64], sizes = [18, 8], strides = [1, 1]} : vector<36x96xf32> to vector<18x8xf32>
    %237 = vector.extract_strided_slice %233 {offsets = [0, 8], sizes = [18, 8], strides = [1, 1]} : vector<36x96xf32> to vector<18x8xf32>
    %238 = vector.extract_strided_slice %233 {offsets = [0, 40], sizes = [18, 8], strides = [1, 1]} : vector<36x96xf32> to vector<18x8xf32>
    %239 = vector.extract_strided_slice %233 {offsets = [0, 72], sizes = [18, 8], strides = [1, 1]} : vector<36x96xf32> to vector<18x8xf32>
    %240 = vector.extract_strided_slice %233 {offsets = [0, 16], sizes = [18, 8], strides = [1, 1]} : vector<36x96xf32> to vector<18x8xf32>
    %241 = vector.extract_strided_slice %233 {offsets = [0, 48], sizes = [18, 8], strides = [1, 1]} : vector<36x96xf32> to vector<18x8xf32>
    %242 = vector.extract_strided_slice %233 {offsets = [0, 80], sizes = [18, 8], strides = [1, 1]} : vector<36x96xf32> to vector<18x8xf32>
    %243 = vector.extract_strided_slice %233 {offsets = [0, 24], sizes = [18, 8], strides = [1, 1]} : vector<36x96xf32> to vector<18x8xf32>
    %244 = vector.extract_strided_slice %233 {offsets = [0, 56], sizes = [18, 8], strides = [1, 1]} : vector<36x96xf32> to vector<18x8xf32>
    %245 = vector.extract_strided_slice %233 {offsets = [0, 88], sizes = [18, 8], strides = [1, 1]} : vector<36x96xf32> to vector<18x8xf32>
    %246 = vector.extract_strided_slice %233 {offsets = [18, 0], sizes = [18, 8], strides = [1, 1]} : vector<36x96xf32> to vector<18x8xf32>
    %247 = vector.extract_strided_slice %233 {offsets = [18, 32], sizes = [18, 8], strides = [1, 1]} : vector<36x96xf32> to vector<18x8xf32>
    %248 = vector.extract_strided_slice %233 {offsets = [18, 64], sizes = [18, 8], strides = [1, 1]} : vector<36x96xf32> to vector<18x8xf32>
    %249 = vector.extract_strided_slice %233 {offsets = [18, 8], sizes = [18, 8], strides = [1, 1]} : vector<36x96xf32> to vector<18x8xf32>
    %250 = vector.extract_strided_slice %233 {offsets = [18, 40], sizes = [18, 8], strides = [1, 1]} : vector<36x96xf32> to vector<18x8xf32>
    %251 = vector.extract_strided_slice %233 {offsets = [18, 72], sizes = [18, 8], strides = [1, 1]} : vector<36x96xf32> to vector<18x8xf32>
    %252 = vector.extract_strided_slice %233 {offsets = [18, 16], sizes = [18, 8], strides = [1, 1]} : vector<36x96xf32> to vector<18x8xf32>
    %253 = vector.extract_strided_slice %233 {offsets = [18, 48], sizes = [18, 8], strides = [1, 1]} : vector<36x96xf32> to vector<18x8xf32>
    %254 = vector.extract_strided_slice %233 {offsets = [18, 80], sizes = [18, 8], strides = [1, 1]} : vector<36x96xf32> to vector<18x8xf32>
    %255 = vector.extract_strided_slice %233 {offsets = [18, 24], sizes = [18, 8], strides = [1, 1]} : vector<36x96xf32> to vector<18x8xf32>
    %256 = vector.extract_strided_slice %233 {offsets = [18, 56], sizes = [18, 8], strides = [1, 1]} : vector<36x96xf32> to vector<18x8xf32>
    %257 = vector.extract_strided_slice %233 {offsets = [18, 88], sizes = [18, 8], strides = [1, 1]} : vector<36x96xf32> to vector<18x8xf32>
    %258 = vector.shape_cast %234 : vector<18x8xf32> to vector<1x18x8xf32>
    %259 = vector.shape_cast %237 : vector<18x8xf32> to vector<1x18x8xf32>
    %260 = vector.shape_cast %240 : vector<18x8xf32> to vector<1x18x8xf32>
    %261 = vector.shape_cast %243 : vector<18x8xf32> to vector<1x18x8xf32>
    %262 = vector.shape_cast %246 : vector<18x8xf32> to vector<1x18x8xf32>
    %263 = vector.shape_cast %249 : vector<18x8xf32> to vector<1x18x8xf32>
    %264 = vector.shape_cast %252 : vector<18x8xf32> to vector<1x18x8xf32>
    %265 = vector.shape_cast %255 : vector<18x8xf32> to vector<1x18x8xf32>
    %266 = tpu.concatenate %258, %259, %260, %261, %262, %263, %264, %265 in 0 : vector<1x18x8xf32>, vector<1x18x8xf32>, vector<1x18x8xf32>, vector<1x18x8xf32>, vector<1x18x8xf32>, vector<1x18x8xf32>, vector<1x18x8xf32>, vector<1x18x8xf32> -> vector<8x18x8xf32>
    %267 = arith.truncf %266 : vector<8x18x8xf32> to vector<8x18x8xbf16>
    %268 = vector.shape_cast %235 : vector<18x8xf32> to vector<1x18x8xf32>
    %269 = vector.shape_cast %238 : vector<18x8xf32> to vector<1x18x8xf32>
    %270 = vector.shape_cast %241 : vector<18x8xf32> to vector<1x18x8xf32>
    %271 = vector.shape_cast %244 : vector<18x8xf32> to vector<1x18x8xf32>
    %272 = vector.shape_cast %247 : vector<18x8xf32> to vector<1x18x8xf32>
    %273 = vector.shape_cast %250 : vector<18x8xf32> to vector<1x18x8xf32>
    %274 = vector.shape_cast %253 : vector<18x8xf32> to vector<1x18x8xf32>
    %275 = vector.shape_cast %256 : vector<18x8xf32> to vector<1x18x8xf32>
    %276 = tpu.concatenate %268, %269, %270, %271, %272, %273, %274, %275 in 0 : vector<1x18x8xf32>, vector<1x18x8xf32>, vector<1x18x8xf32>, vector<1x18x8xf32>, vector<1x18x8xf32>, vector<1x18x8xf32>, vector<1x18x8xf32>, vector<1x18x8xf32> -> vector<8x18x8xf32>
    %277 = arith.truncf %276 : vector<8x18x8xf32> to vector<8x18x8xbf16>
    %278 = vector.shape_cast %236 : vector<18x8xf32> to vector<1x18x8xf32>
    %279 = vector.shape_cast %239 : vector<18x8xf32> to vector<1x18x8xf32>
    %280 = vector.shape_cast %242 : vector<18x8xf32> to vector<1x18x8xf32>
    %281 = vector.shape_cast %245 : vector<18x8xf32> to vector<1x18x8xf32>
    %282 = vector.shape_cast %248 : vector<18x8xf32> to vector<1x18x8xf32>
    %283 = vector.shape_cast %251 : vector<18x8xf32> to vector<1x18x8xf32>
    %284 = vector.shape_cast %254 : vector<18x8xf32> to vector<1x18x8xf32>
    %285 = vector.shape_cast %257 : vector<18x8xf32> to vector<1x18x8xf32>
    %286 = tpu.concatenate %278, %279, %280, %281, %282, %283, %284, %285 in 0 : vector<1x18x8xf32>, vector<1x18x8xf32>, vector<1x18x8xf32>, vector<1x18x8xf32>, vector<1x18x8xf32>, vector<1x18x8xf32>, vector<1x18x8xf32>, vector<1x18x8xf32> -> vector<8x18x8xf32>
    %287 = arith.truncf %286 : vector<8x18x8xf32> to vector<8x18x8xbf16>
    "tpu.trace_start"() <{level = 10 : i32, message = "bqd,bkd->bqk"}> : () -> ()
    %cst_85 = arith.constant dense<0.000000e+00> : vector<8x18x18xf32>
    %288 = tpu.matmul %267, %277, %cst_85 {dimension_numbers = #tpu.dot_dimension_numbers<[2], [2], [1], [1], [0, 0, 0, 1, 1, 1], [0], [0]>} : vector<8x18x8xbf16>, vector<8x18x8xbf16>, vector<8x18x18xf32> -> vector<8x18x18xf32>
    "tpu.trace_stop"() : () -> ()
    %cst_86 = arith.constant dense<0xFF800000> : vector<8x18xf32>
    %289 = vector.multi_reduction <maximumf>, %288, %cst_86 [2] : vector<8x18x18xf32> to vector<8x18xf32>
    %cst_87 = arith.constant 0xFF800000 : f32
    %290 = vector.broadcast %cst_87 : f32 to vector<8x18xf32>
    %291 = arith.maximumf %290, %289 : vector<8x18xf32>
    %292 = vector.shape_cast %291 : vector<8x18xf32> to vector<8x18x1xf32>
    %293 = vector.broadcast %292 : vector<8x18x1xf32> to vector<8x18x18xf32>
    %294 = arith.subf %288, %293 : vector<8x18x18xf32>
    %295 = math.exp %294 : vector<8x18x18xf32>
    %cst_88 = arith.constant dense<0.000000e+00> : vector<8x18xf32>
    %296 = vector.multi_reduction <add>, %295, %cst_88 [2] : vector<8x18x18xf32> to vector<8x18xf32>
    %297 = vector.shape_cast %296 : vector<8x18xf32> to vector<8x18x1xf32>
    %298 = vector.broadcast %297 : vector<8x18x1xf32> to vector<8x18x18xf32>
    %299 = arith.divf %295, %298 : vector<8x18x18xf32>
    %300 = arith.truncf %299 : vector<8x18x18xf32> to vector<8x18x18xbf16>
    "tpu.trace_start"() <{level = 10 : i32, message = "bqk,bkd->bqd"}> : () -> ()
    %cst_89 = arith.constant dense<0.000000e+00> : vector<8x18x8xf32>
    %301 = tpu.matmul %300, %287, %cst_89 {dimension_numbers = #tpu.dot_dimension_numbers<[2], [1], [1], [2], [0, 0, 0, 1, 1, 2], [0], [0]>} : vector<8x18x18xbf16>, vector<8x18x8xbf16>, vector<8x18x8xf32> -> vector<8x18x8xf32>
    "tpu.trace_stop"() : () -> ()
    %302 = vector.extract_strided_slice %301 {offsets = [0, 0, 0], sizes = [1, 18, 8], strides = [1, 1, 1]} : vector<8x18x8xf32> to vector<1x18x8xf32>
    %303 = vector.shape_cast %302 : vector<1x18x8xf32> to vector<18x8xf32>
    %304 = vector.extract_strided_slice %301 {offsets = [1, 0, 0], sizes = [1, 18, 8], strides = [1, 1, 1]} : vector<8x18x8xf32> to vector<1x18x8xf32>
    %305 = vector.shape_cast %304 : vector<1x18x8xf32> to vector<18x8xf32>
    %306 = vector.extract_strided_slice %301 {offsets = [2, 0, 0], sizes = [1, 18, 8], strides = [1, 1, 1]} : vector<8x18x8xf32> to vector<1x18x8xf32>
    %307 = vector.shape_cast %306 : vector<1x18x8xf32> to vector<18x8xf32>
    %308 = vector.extract_strided_slice %301 {offsets = [3, 0, 0], sizes = [1, 18, 8], strides = [1, 1, 1]} : vector<8x18x8xf32> to vector<1x18x8xf32>
    %309 = vector.shape_cast %308 : vector<1x18x8xf32> to vector<18x8xf32>
    %310 = tpu.concatenate %303, %305, %307, %309 in 1 : vector<18x8xf32>, vector<18x8xf32>, vector<18x8xf32>, vector<18x8xf32> -> vector<18x32xf32>
    %311 = vector.extract_strided_slice %301 {offsets = [4, 0, 0], sizes = [1, 18, 8], strides = [1, 1, 1]} : vector<8x18x8xf32> to vector<1x18x8xf32>
    %312 = vector.shape_cast %311 : vector<1x18x8xf32> to vector<18x8xf32>
    %313 = vector.extract_strided_slice %301 {offsets = [5, 0, 0], sizes = [1, 18, 8], strides = [1, 1, 1]} : vector<8x18x8xf32> to vector<1x18x8xf32>
    %314 = vector.shape_cast %313 : vector<1x18x8xf32> to vector<18x8xf32>
    %315 = vector.extract_strided_slice %301 {offsets = [6, 0, 0], sizes = [1, 18, 8], strides = [1, 1, 1]} : vector<8x18x8xf32> to vector<1x18x8xf32>
    %316 = vector.shape_cast %315 : vector<1x18x8xf32> to vector<18x8xf32>
    %317 = vector.extract_strided_slice %301 {offsets = [7, 0, 0], sizes = [1, 18, 8], strides = [1, 1, 1]} : vector<8x18x8xf32> to vector<1x18x8xf32>
    %318 = vector.shape_cast %317 : vector<1x18x8xf32> to vector<18x8xf32>
    %319 = tpu.concatenate %312, %314, %316, %318 in 1 : vector<18x8xf32>, vector<18x8xf32>, vector<18x8xf32>, vector<18x8xf32> -> vector<18x32xf32>
    %320 = tpu.concatenate %310, %319 in 0 : vector<18x32xf32>, vector<18x32xf32> -> vector<36x32xf32>
    %321 = arith.truncf %320 : vector<36x32xf32> to vector<36x32xbf16>
    %c1_90 = arith.constant 1 : index
    %c0_91 = arith.constant 0 : index
    %c0_92 = arith.constant 0 : index
    %322 = vector.load %arg11[%c1_90, %c0_91, %c0_92] : memref<2x32x32xbf16, #tpu.memory_space<vmem>>, vector<1x32x32xbf16>
    %323 = vector.shape_cast %322 : vector<1x32x32xbf16> to vector<32x32xbf16>
    %cst_93 = arith.constant dense<0.000000e+00> : vector<36x32xf32>
    %324 = tpu.matmul %321, %323, %cst_93 {dimension_numbers = #tpu.dot_dimension_numbers<[1], [0], [0], [1], [0, 0, 1, 1], [], []>} : vector<36x32xbf16>, vector<32x32xbf16>, vector<36x32xf32> -> vector<36x32xf32>
    %c1_94 = arith.constant 1 : index
    %c0_95 = arith.constant 0 : index
    %c0_96 = arith.constant 0 : index
    %325 = vector.load %arg12[%c1_94, %c0_95, %c0_96] : memref<2x1x32xf32, #tpu.memory_space<vmem>>, vector<1x1x32xf32>
    %326 = vector.shape_cast %325 : vector<1x1x32xf32> to vector<1x32xf32>
    %327 = vector.broadcast %326 : vector<1x32xf32> to vector<36x32xf32>
    %328 = arith.addf %324, %327 : vector<36x32xf32>
    %329 = arith.addf %199, %328 : vector<36x32xf32>
    %c1_97 = arith.constant 1 : index
    %c0_98 = arith.constant 0 : index
    %c0_99 = arith.constant 0 : index
    %330 = vector.load %arg13[%c1_97, %c0_98, %c0_99] : memref<2x1x32xf32, #tpu.memory_space<vmem>>, vector<1x1x32xf32>
    %331 = vector.shape_cast %330 : vector<1x1x32xf32> to vector<1x32xf32>
    %c1_100 = arith.constant 1 : index
    %c0_101 = arith.constant 0 : index
    %c0_102 = arith.constant 0 : index
    %332 = vector.load %arg14[%c1_100, %c0_101, %c0_102] : memref<2x1x32xf32, #tpu.memory_space<vmem>>, vector<1x1x32xf32>
    %333 = vector.shape_cast %332 : vector<1x1x32xf32> to vector<1x32xf32>
    %cst_103 = arith.constant dense<0.000000e+00> : vector<36xf32>
    %334 = vector.multi_reduction <add>, %329, %cst_103 [1] : vector<36x32xf32> to vector<36xf32>
    %335 = vector.shape_cast %334 : vector<36xf32> to vector<36x1xf32>
    %cst_104 = arith.constant 3.200000e+01 : f32
    %336 = vector.broadcast %cst_104 : f32 to vector<36x1xf32>
    %337 = arith.divf %335, %336 : vector<36x1xf32>
    %338 = vector.broadcast %337 : vector<36x1xf32> to vector<36x32xf32>
    %339 = arith.subf %329, %338 : vector<36x32xf32>
    %340 = arith.mulf %339, %339 : vector<36x32xf32>
    %cst_105 = arith.constant dense<0.000000e+00> : vector<36xf32>
    %341 = vector.multi_reduction <add>, %340, %cst_105 [1] : vector<36x32xf32> to vector<36xf32>
    %342 = vector.shape_cast %341 : vector<36xf32> to vector<36x1xf32>
    %cst_106 = arith.constant 3.200000e+01 : f32
    %343 = vector.broadcast %cst_106 : f32 to vector<36x1xf32>
    %344 = arith.divf %342, %343 : vector<36x1xf32>
    %345 = vector.broadcast %337 : vector<36x1xf32> to vector<36x32xf32>
    %346 = arith.subf %329, %345 : vector<36x32xf32>
    %cst_107 = arith.constant 9.99999974E-6 : f32
    %347 = vector.broadcast %cst_107 : f32 to vector<36x1xf32>
    %348 = arith.addf %344, %347 : vector<36x1xf32>
    %349 = math.rsqrt %348 : vector<36x1xf32>
    %350 = vector.broadcast %349 : vector<36x1xf32> to vector<36x32xf32>
    %351 = arith.mulf %346, %350 : vector<36x32xf32>
    %352 = vector.broadcast %331 : vector<1x32xf32> to vector<36x32xf32>
    %353 = arith.mulf %351, %352 : vector<36x32xf32>
    %354 = vector.broadcast %333 : vector<1x32xf32> to vector<36x32xf32>
    %355 = arith.addf %353, %354 : vector<36x32xf32>
    %356 = arith.truncf %355 : vector<36x32xf32> to vector<36x32xbf16>
    %c1_108 = arith.constant 1 : index
    %c0_109 = arith.constant 0 : index
    %c0_110 = arith.constant 0 : index
    %357 = vector.load %arg15[%c1_108, %c0_109, %c0_110] : memref<2x32x64xbf16, #tpu.memory_space<vmem>>, vector<1x32x64xbf16>
    %358 = vector.shape_cast %357 : vector<1x32x64xbf16> to vector<32x64xbf16>
    %cst_111 = arith.constant dense<0.000000e+00> : vector<36x64xf32>
    %359 = tpu.matmul %356, %358, %cst_111 {dimension_numbers = #tpu.dot_dimension_numbers<[1], [0], [0], [1], [0, 0, 1, 1], [], []>} : vector<36x32xbf16>, vector<32x64xbf16>, vector<36x64xf32> -> vector<36x64xf32>
    %c1_112 = arith.constant 1 : index
    %c0_113 = arith.constant 0 : index
    %c0_114 = arith.constant 0 : index
    %360 = vector.load %arg16[%c1_112, %c0_113, %c0_114] : memref<2x1x64xf32, #tpu.memory_space<vmem>>, vector<1x1x64xf32>
    %361 = vector.shape_cast %360 : vector<1x1x64xf32> to vector<1x64xf32>
    %362 = vector.broadcast %361 : vector<1x64xf32> to vector<36x64xf32>
    %363 = arith.addf %359, %362 : vector<36x64xf32>
    %364 = arith.mulf %363, %363 : vector<36x64xf32>
    %365 = arith.mulf %363, %364 : vector<36x64xf32>
    %cst_115 = arith.constant 4.471500e-02 : f32
    %366 = vector.broadcast %cst_115 : f32 to vector<36x64xf32>
    %367 = arith.mulf %366, %365 : vector<36x64xf32>
    %368 = arith.addf %363, %367 : vector<36x64xf32>
    %cst_116 = arith.constant 0.797884583 : f32
    %369 = vector.broadcast %cst_116 : f32 to vector<36x64xf32>
    %370 = arith.mulf %369, %368 : vector<36x64xf32>
    %371 = math.tanh %370 : vector<36x64xf32>
    %cst_117 = arith.constant 1.000000e+00 : f32
    %372 = vector.broadcast %cst_117 : f32 to vector<36x64xf32>
    %373 = arith.addf %372, %371 : vector<36x64xf32>
    %cst_118 = arith.constant 5.000000e-01 : f32
    %374 = vector.broadcast %cst_118 : f32 to vector<36x64xf32>
    %375 = arith.mulf %374, %373 : vector<36x64xf32>
    %376 = arith.mulf %363, %375 : vector<36x64xf32>
    %377 = arith.truncf %376 : vector<36x64xf32> to vector<36x64xbf16>
    %c1_119 = arith.constant 1 : index
    %c0_120 = arith.constant 0 : index
    %c0_121 = arith.constant 0 : index
    %378 = vector.load %arg17[%c1_119, %c0_120, %c0_121] : memref<2x64x32xbf16, #tpu.memory_space<vmem>>, vector<1x64x32xbf16>
    %379 = vector.shape_cast %378 : vector<1x64x32xbf16> to vector<64x32xbf16>
    %cst_122 = arith.constant dense<0.000000e+00> : vector<36x32xf32>
    %380 = tpu.matmul %377, %379, %cst_122 {dimension_numbers = #tpu.dot_dimension_numbers<[1], [0], [0], [1], [0, 0, 1, 1], [], []>} : vector<36x64xbf16>, vector<64x32xbf16>, vector<36x32xf32> -> vector<36x32xf32>
    %c1_123 = arith.constant 1 : index
    %c0_124 = arith.constant 0 : index
    %c0_125 = arith.constant 0 : index
    %381 = vector.load %arg18[%c1_123, %c0_124, %c0_125] : memref<2x1x32xf32, #tpu.memory_space<vmem>>, vector<1x1x32xf32>
    %382 = vector.shape_cast %381 : vector<1x1x32xf32> to vector<1x32xf32>
    %383 = vector.broadcast %382 : vector<1x32xf32> to vector<36x32xf32>
    %384 = arith.addf %380, %383 : vector<36x32xf32>
    %385 = arith.addf %329, %384 : vector<36x32xf32>
    %386 = vector.extract_strided_slice %385 {offsets = [0, 0], sizes = [2, 32], strides = [1, 1]} : vector<36x32xf32> to vector<2x32xf32>
    %387 = vector.extract_strided_slice %385 {offsets = [18, 0], sizes = [2, 32], strides = [1, 1]} : vector<36x32xf32> to vector<2x32xf32>
    %388 = tpu.concatenate %386, %387 in 0 : vector<2x32xf32>, vector<2x32xf32> -> vector<4x32xf32>
    %c0_126 = arith.constant 0 : index
    %c0_127 = arith.constant 0 : index
    %389 = vector.load %arg19[%c0_126, %c0_127] : memref<1x32xf32, #tpu.memory_space<vmem>>, vector<1x32xf32>
    %c0_128 = arith.constant 0 : index
    %c0_129 = arith.constant 0 : index
    %390 = vector.load %arg20[%c0_128, %c0_129] : memref<1x32xf32, #tpu.memory_space<vmem>>, vector<1x32xf32>
    %cst_130 = arith.constant dense<0.000000e+00> : vector<4xf32>
    %391 = vector.multi_reduction <add>, %388, %cst_130 [1] : vector<4x32xf32> to vector<4xf32>
    %392 = vector.shape_cast %391 : vector<4xf32> to vector<4x1xf32>
    %cst_131 = arith.constant 3.200000e+01 : f32
    %393 = vector.broadcast %cst_131 : f32 to vector<4x1xf32>
    %394 = arith.divf %392, %393 : vector<4x1xf32>
    %395 = vector.broadcast %394 : vector<4x1xf32> to vector<4x32xf32>
    %396 = arith.subf %388, %395 : vector<4x32xf32>
    %397 = arith.mulf %396, %396 : vector<4x32xf32>
    %cst_132 = arith.constant dense<0.000000e+00> : vector<4xf32>
    %398 = vector.multi_reduction <add>, %397, %cst_132 [1] : vector<4x32xf32> to vector<4xf32>
    %399 = vector.shape_cast %398 : vector<4xf32> to vector<4x1xf32>
    %cst_133 = arith.constant 3.200000e+01 : f32
    %400 = vector.broadcast %cst_133 : f32 to vector<4x1xf32>
    %401 = arith.divf %399, %400 : vector<4x1xf32>
    %402 = vector.broadcast %394 : vector<4x1xf32> to vector<4x32xf32>
    %403 = arith.subf %388, %402 : vector<4x32xf32>
    %cst_134 = arith.constant 9.99999974E-6 : f32
    %404 = vector.broadcast %cst_134 : f32 to vector<4x1xf32>
    %405 = arith.addf %401, %404 : vector<4x1xf32>
    %406 = math.rsqrt %405 : vector<4x1xf32>
    %407 = vector.broadcast %406 : vector<4x1xf32> to vector<4x32xf32>
    %408 = arith.mulf %403, %407 : vector<4x32xf32>
    %409 = vector.broadcast %389 : vector<1x32xf32> to vector<4x32xf32>
    %410 = arith.mulf %408, %409 : vector<4x32xf32>
    %411 = vector.broadcast %390 : vector<1x32xf32> to vector<4x32xf32>
    %412 = arith.addf %410, %411 : vector<4x32xf32>
    %413 = vector.extract_strided_slice %412 {offsets = [0, 0], sizes = [1, 32], strides = [1, 1]} : vector<4x32xf32> to vector<1x32xf32>
    %414 = vector.shape_cast %413 : vector<1x32xf32> to vector<1x32xf32>
    %415 = vector.broadcast %414 : vector<1x32xf32> to vector<8x32xf32>
    %416 = vector.extract_strided_slice %412 {offsets = [2, 0], sizes = [1, 32], strides = [1, 1]} : vector<4x32xf32> to vector<1x32xf32>
    %417 = vector.shape_cast %416 : vector<1x32xf32> to vector<1x32xf32>
    %418 = vector.broadcast %417 : vector<1x32xf32> to vector<8x32xf32>
    %419 = tpu.concatenate %415, %418 in 0 : vector<8x32xf32>, vector<8x32xf32> -> vector<16x32xf32>
    %420 = vector.extract_strided_slice %412 {offsets = [1, 0], sizes = [1, 32], strides = [1, 1]} : vector<4x32xf32> to vector<1x32xf32>
    %421 = vector.shape_cast %420 : vector<1x32xf32> to vector<1x32xf32>
    %422 = vector.broadcast %421 : vector<1x32xf32> to vector<8x32xf32>
    %423 = vector.extract_strided_slice %412 {offsets = [3, 0], sizes = [1, 32], strides = [1, 1]} : vector<4x32xf32> to vector<1x32xf32>
    %424 = vector.shape_cast %423 : vector<1x32xf32> to vector<1x32xf32>
    %425 = vector.broadcast %424 : vector<1x32xf32> to vector<8x32xf32>
    %426 = tpu.concatenate %422, %425 in 0 : vector<8x32xf32>, vector<8x32xf32> -> vector<16x32xf32>
    %c0_135 = arith.constant 0 : index
    %c0_136 = arith.constant 0 : index
    %427 = vector.load %arg1[%c0_135, %c0_136] : memref<16x1xf32, #tpu.memory_space<vmem>>, vector<16x1xf32>
    %c0_137 = arith.constant 0 : index
    %c0_138 = arith.constant 0 : index
    %428 = vector.load %arg2[%c0_137, %c0_138] : memref<1x64xf32, #tpu.memory_space<vmem>>, vector<1x64xf32>
    %429 = vector.broadcast %427 : vector<16x1xf32> to vector<16x64xf32>
    %430 = vector.broadcast %428 : vector<1x64xf32> to vector<16x64xf32>
    %431 = arith.mulf %429, %430 : vector<16x64xf32>
    %432 = math.cos %431 : vector<16x64xf32>
    %433 = arith.truncf %432 : vector<16x64xf32> to vector<16x64xbf16>
    %c0_139 = arith.constant 0 : index
    %c0_140 = arith.constant 0 : index
    %434 = vector.load %arg21[%c0_139, %c0_140] : memref<64x64xbf16, #tpu.memory_space<vmem>>, vector<64x64xbf16>
    %cst_141 = arith.constant dense<0.000000e+00> : vector<16x64xf32>
    %435 = tpu.matmul %433, %434, %cst_141 {dimension_numbers = #tpu.dot_dimension_numbers<[1], [0], [0], [1], [0, 0, 1, 1], [], []>} : vector<16x64xbf16>, vector<64x64xbf16>, vector<16x64xf32> -> vector<16x64xf32>
    %c0_142 = arith.constant 0 : index
    %c0_143 = arith.constant 0 : index
    %436 = vector.load %arg22[%c0_142, %c0_143] : memref<1x64xf32, #tpu.memory_space<vmem>>, vector<1x64xf32>
    %437 = vector.broadcast %436 : vector<1x64xf32> to vector<16x64xf32>
    %438 = arith.addf %435, %437 : vector<16x64xf32>
    %cst_144 = arith.constant 0.000000e+00 : f32
    %439 = vector.broadcast %cst_144 : f32 to vector<16x64xf32>
    %440 = arith.maximumf %438, %439 : vector<16x64xf32>
    %441 = vector.extract_strided_slice %440 {offsets = [0, 0], sizes = [16, 32], strides = [1, 1]} : vector<16x64xf32> to vector<16x32xf32>
    %442 = arith.mulf %419, %441 : vector<16x32xf32>
    %443 = vector.extract_strided_slice %440 {offsets = [0, 32], sizes = [16, 32], strides = [1, 1]} : vector<16x64xf32> to vector<16x32xf32>
    %444 = arith.mulf %426, %443 : vector<16x32xf32>
    %445 = tpu.concatenate %442, %444 in 1 : vector<16x32xf32>, vector<16x32xf32> -> vector<16x64xf32>
    %446 = arith.truncf %445 : vector<16x64xf32> to vector<16x64xbf16>
    %c0_145 = arith.constant 0 : index
    %c0_146 = arith.constant 0 : index
    %447 = vector.load %arg23[%c0_145, %c0_146] : memref<64x128xbf16, #tpu.memory_space<vmem>>, vector<64x128xbf16>
    %cst_147 = arith.constant dense<0.000000e+00> : vector<16x128xf32>
    %448 = tpu.matmul %446, %447, %cst_147 {dimension_numbers = #tpu.dot_dimension_numbers<[1], [0], [0], [1], [0, 0, 1, 1], [], []>} : vector<16x64xbf16>, vector<64x128xbf16>, vector<16x128xf32> -> vector<16x128xf32>
    %c0_148 = arith.constant 0 : index
    %c0_149 = arith.constant 0 : index
    %449 = vector.load %arg24[%c0_148, %c0_149] : memref<1x128xf32, #tpu.memory_space<vmem>>, vector<1x128xf32>
    %450 = vector.broadcast %449 : vector<1x128xf32> to vector<16x128xf32>
    %451 = arith.addf %448, %450 : vector<16x128xf32>
    %cst_150 = arith.constant 0.000000e+00 : f32
    %452 = vector.broadcast %cst_150 : f32 to vector<16x128xf32>
    %453 = arith.maximumf %451, %452 : vector<16x128xf32>
    %454 = arith.truncf %453 : vector<16x128xf32> to vector<16x128xbf16>
    %c0_151 = arith.constant 0 : index
    %c0_152 = arith.constant 0 : index
    %455 = vector.load %arg25[%c0_151, %c0_152] : memref<128x10xbf16, #tpu.memory_space<vmem>>, vector<128x10xbf16>
    %cst_153 = arith.constant dense<0.000000e+00> : vector<16x10xf32>
    %456 = tpu.matmul %454, %455, %cst_153 {dimension_numbers = #tpu.dot_dimension_numbers<[1], [0], [0], [1], [0, 0, 1, 1], [], []>} : vector<16x128xbf16>, vector<128x10xbf16>, vector<16x10xf32> -> vector<16x10xf32>
    %c0_154 = arith.constant 0 : index
    %c0_155 = arith.constant 0 : index
    %457 = vector.load %arg26[%c0_154, %c0_155] : memref<1x10xf32, #tpu.memory_space<vmem>>, vector<1x10xf32>
    %458 = vector.broadcast %457 : vector<1x10xf32> to vector<16x10xf32>
    %459 = arith.addf %456, %458 : vector<16x10xf32>
    %460 = vector.extract_strided_slice %459 {offsets = [0, 0], sizes = [8, 10], strides = [1, 1]} : vector<16x10xf32> to vector<8x10xf32>
    %cst_156 = arith.constant dense<0.000000e+00> : vector<10xf32>
    %461 = vector.multi_reduction <add>, %460, %cst_156 [0] : vector<8x10xf32> to vector<10xf32>
    %462 = vector.shape_cast %461 : vector<10xf32> to vector<1x10xf32>
    %cst_157 = arith.constant 8.000000e+00 : f32
    %463 = vector.broadcast %cst_157 : f32 to vector<1x10xf32>
    %464 = arith.divf %462, %463 : vector<1x10xf32>
    %465 = vector.extract_strided_slice %459 {offsets = [8, 0], sizes = [8, 10], strides = [1, 1]} : vector<16x10xf32> to vector<8x10xf32>
    %cst_158 = arith.constant dense<0.000000e+00> : vector<10xf32>
    %466 = vector.multi_reduction <add>, %465, %cst_158 [0] : vector<8x10xf32> to vector<10xf32>
    %467 = vector.shape_cast %466 : vector<10xf32> to vector<1x10xf32>
    %cst_159 = arith.constant 8.000000e+00 : f32
    %468 = vector.broadcast %cst_159 : f32 to vector<1x10xf32>
    %469 = arith.divf %467, %468 : vector<1x10xf32>
    %470 = tpu.concatenate %464, %469 in 0 : vector<1x10xf32>, vector<1x10xf32> -> vector<2x10xf32>
    %471 = vector.extract_strided_slice %470 {offsets = [0, 0], sizes = [2, 5], strides = [1, 1]} : vector<2x10xf32> to vector<2x5xf32>
    %472 = vector.extract_strided_slice %470 {offsets = [0, 5], sizes = [2, 5], strides = [1, 1]} : vector<2x10xf32> to vector<2x5xf32>
    %473 = arith.subf %471, %472 : vector<2x5xf32>
    %c0_160 = arith.constant 0 : index
    %c0_161 = arith.constant 0 : index
    %474 = vector.load %arg27[%c0_160, %c0_161] : memref<2x5xf32, #tpu.memory_space<vmem>>, vector<2x5xf32>
    tpu.vector_store %arg27[%c0_160, %c0_161], %473 {strides = array<i32>} : memref<2x5xf32, #tpu.memory_space<vmem>>, vector<2x5xf32>,
    return
  }
}

</mosaic_0001>

<bundles_post_ra>
// kernel: _lambda_.1
= control target key start
LH: loop header
LB: loop body
LE: loop exit
PB: predicated region body
PF: predicated region fallthrough
CT: control target
= control target key end

     0   :  { %s7945_s0 = inlined_call_operand.vmem [shape: f32[32,64], index: 0, kind: input, shape index: {}]   ;;  %s7946_s1 = inlined_call_operand.vmem [shape: f32[16,1], index: 1, kind: input, shape index: {}]   ;;  %s7947_s2 = inlined_call_operand.vmem [shape: f32[1,64], index: 2, kind: input, shape index: {}]   ;;  %s7948_s3 = inlined_call_operand.vmem [shape: bf16[64,32], index: 3, kind: input, shape index: {}]   ;;  %s7949_s4 = inlined_call_operand.vmem [shape: f32[1,32], index: 4, kind: input, shape index: {}, may-alias: {4,20}]   ;;  %s7950_s5 = inlined_call_operand.vmem [shape: f32[2,32], index: 5, kind: input, shape index: {}]   ;;  %s7951_s6 = inlined_call_operand.vmem [shape: f32[16,32], index: 6, kind: input, shape index: {}]   ;;  %s7952_s7 = inlined_call_operand.vmem [shape: f32[2,1,32], index: 7, kind: input, shape index: {}, may-alias: {7,13}]   ;;  %s7953_s8 = inlined_call_operand.vmem [shape: f32[2,1,32], index: 8, kind: input, shape index: {}, may-alias: {8,12,14,18}]   ;;  %s7954_s9 = inlined_call_operand.vmem [shape: bf16[2,32,96], index: 9, kind: input, shape index: {}]   ;;  %s7955_s10 = inlined_call_operand.vmem [shape: f32[2,1,96], index: 10, kind: input, shape index: {}]   ;;  %s7956_s11 = inlined_call_operand.vmem [shape: bf16[2,32,32], index: 11, kind: input, shape index: {}]   ;;  %s7957_s12 = inlined_call_operand.vmem [shape: f32[2,1,32], index: 12, kind: input, shape index: {}, may-alias: {8,12,14,18}]   ;;  %s7958_s13 = inlined_call_operand.vmem [shape: f32[2,1,32], index: 13, kind: input, shape index: {}, may-alias: {7,13}]   ;;  %s7959_s14 = inlined_call_operand.vmem [shape: f32[2,1,32], index: 14, kind: input, shape index: {}, may-alias: {8,12,14,18}]   ;;  %s7960_s15 = inlined_call_operand.vmem [shape: bf16[2,32,64], index: 15, kind: input, shape index: {}]   ;;  %s7961_s16 = inlined_call_operand.vmem [shape: f32[2,1,64], index: 16, kind: input, shape index: {}]   ;;  %s7962_s17 = inlined_call_operand.vmem [shape: bf16[2,64,32], index: 17, kind: input, shape index: {}]   ;;  %s7963_s18 = inlined_call_operand.vmem [shape: f32[2,1,32], index: 18, kind: input, shape index: {}, may-alias: {8,12,14,18}]   ;;  %s7964_s19 = inlined_call_operand.vmem [shape: f32[1,32], index: 19, kind: input, shape index: {}]   ;;  %s7965_s20 = inlined_call_operand.vmem [shape: f32[1,32], index: 20, kind: input, shape index: {}, may-alias: {4,20}]   ;;  %s7966_s21 = inlined_call_operand.vmem [shape: bf16[64,64], index: 21, kind: input, shape index: {}]   ;;  %s7967_s22 = inlined_call_operand.vmem [shape: f32[1,64], index: 22, kind: input, shape index: {}]   ;;  %s7968_s23 = inlined_call_operand.vmem [shape: bf16[64,128], index: 23, kind: input, shape index: {}]   ;;  %s7969_s24 = inlined_call_operand.vmem [shape: f32[1,128], index: 24, kind: input, shape index: {}]   ;;  %s7970_s25 = inlined_call_operand.vmem [shape: bf16[128,10], index: 25, kind: input, shape index: {}]   ;;  %s7971_s26 = inlined_call_operand.vmem [shape: f32[1,10], index: 26, kind: input, shape index: {}]   ;;  %s7972_s27 = inlined_call_operand.hbm [shape: f32[2,5], index: 27, kind: output, shape index: {}]  }
   0x1   :  { %8008 = sst [smem:[#allocation12_spill]] %s7945_s0 }
   0x2   :  { %8009 = sst [smem:[#allocation13_spill]] %s7946_s1 }
   0x3   :  { %8010 = sst [smem:[#allocation14_spill]] %s7947_s2 }
   0x4   :  { %8011 = sst [smem:[#allocation15_spill]] %s7948_s3 }
   0x5   :  { %8012 = sst [smem:[#allocation16_spill]] %s7949_s4 }
   0x6   :  { %8013 = sst [smem:[#allocation17_spill]] %s7950_s5 }
   0x7   :  { %8014 = sst [smem:[#allocation18_spill]] %s7951_s6 }
   0x8   :  { %8015 = sst [smem:[#allocation19_spill]] %s7952_s7 }
   0x9   :  { %8016 = sst [smem:[#allocation20_spill]] %s7953_s8 }
   0xa   :  { %8017 = sst [smem:[#allocation21_spill]] %s7954_s9 }
   0xb   :  { %8018 = sst [smem:[#allocation22_spill]] %s7955_s10 }
   0xc   :  { %8019 = sst [smem:[#allocation23_spill]] %s7956_s11 }
   0xd   :  { %s8020_s8 = sld [smem:[#allocation15_spill]] }
   0xe   :  { %s8021_s6 = sld [smem:[#allocation12_spill]] }
  0x13   :  { %v5118_v0 = vld [vmem:[%s8020_s8 + $0x18] sm:$0xff]  ;;  %v5117_v1 = vld [vmem:[%s8020_s8 + $0x10] sm:$0xff]  ;;  %v5116_v2 = vld [vmem:[%s8020_s8 + $0x8] sm:$0xff] }
  0x14   :  { %141 = vmatpush.bf16.msra.mxu0 %v5118_v0  ;;  %v5115_v3 = vld [vmem:[%s8020_s8] sm:$0xff]  ;;  %v89_v5 = vld [vmem:[%s8021_s6 + $0x8] sm:$0xff] }
  0x15   :  { %v88_v4 = vld [vmem:[%s8021_s6] sm:$0xff] }
  0x18   :  { %142 = vmatpush.bf16.msra.mxu0 %v5117_v1 }
  0x1c   :  { %143 = vmatpush.bf16.msra.mxu0 %v5116_v2 }
  0x1d   :  { %32 = vsyncpa [#allocation3], 0  ;;  %v92_v6 = vpack.c.bf16 %v89_v5, %v88_v4  ;;  %vm7990_vm0 = vcmask 523264   ;;  %v90_v7 = vld [vmem:[%s8021_s6 + $0x10] sm:$0xff]  ;;  %v91_v8 = vld [vmem:[%s8021_s6 + $0x18] sm:$0xff]  ;;  %s8022_s5 = sld [smem:[#allocation16_spill]] }
  0x1e   :  { %v93_v9 = vpack.c.bf16 %v91_v8, %v90_v7  ;;  %s8023_s10 = sld [smem:[#allocation18_spill]]  ;;  %vm7993_vm1 = vcmask 1041408   ;;  %vm7994_vm2 = vcmask 261120   ;;  %vm177_vm3 = vcmask 1043456   ;;  %s5616_s2 = smov 104  }
  0x1f   :  { %s8024_s11 = sld [smem:[#allocation17_spill]]  ;;  %vm7992_vm4 = vcmask 257024   ;;  %v5615_v41 = vmov 32.0   ;;  %s8005_s3 = smov 120  }
  0x20   :  { %144 = vmatpush.bf16.msra.mxu0 %v5115_v3  ;;  %5327 = vrcp.f32 %v5615_v41  ;;  %s8031_s4 = sld [smem:[#allocation21_spill]]  ;;  %s7997_s7 = smov 96  }
  0x21   :  { %s8032_s28 = sld [smem:[#allocation19_spill]]  ;;  %s5619_s8 = smov 112  }
  0x22   :  { %s8033_s29 = sld [smem:[#allocation20_spill]]  ;;  %s7995_s30 = smov 64  }
  0x23   :  { %4845 = vmatmul.msk.bf16.vlgmr.msra.gmra.mxu0 %vm7990_vm0, %v92_v6  ;;  %v5304_v10 = vld [vmem:[%s8022_s5] ss:$0 sm:$0xff]  ;;  %s8034_s6 = sld [smem:[#allocation22_spill]]  ;;  %s7999_s9 = smov 16  }
  0x24   :  { %v157_v12 = vld [vmem:[%s8023_s10] sm:$0xff]  ;;  %v158_v19 = vld [vmem:[%s8023_s10 + $0x8] sm:$0xff]  ;;  %s8003_s5 = smov 8   ;;  %s8001_s0 = smov 24  }
  0x25   :  { %v156_v15 = vld [vmem:[%s8024_s11] sm:$0x3]  ;;  %s8060_s11 = sld [smem:[#allocation23_spill]] }
  0x26   :  { %v173_v28 = vrot.slane %v156_v15, 6  ;;  %v5328_v42 = vpop.eup %5327 }
  0x27   :  { %v207_v43 = vmul.f32 32.0, %v5328_v42  ;;  %vm211_vm5 = vweird.f32 %v5328_v42 }
  0x29   :  { %v208_v44 = vsub.f32 1.0, %v207_v43 }
  0x2b   :  { %v209_v45 = vmul.f32 %v5328_v42, %v208_v44 }
  0x2d   :  { %v210_v46 = vadd.f32 %v5328_v42, %v209_v45  ;;  %v5305_v45 = vld [vmem:[%s8032_s28] ss:$0 sm:$0xff] }
  0x2f   :  { %v5837_v47 = vsel %vm211_vm5, %v5328_v42, %v210_v46 }
  0x30   :  { %8030 = vst [vmem:[#allocation10_spill] sm:$0xff] %v5837_v47 }
  0x33   :  { %4846 = vmatmul.msk.bf16.gmra.mxu0 %vm7990_vm0, %v93_v9  ;;  %v5120_v9 = vld [vmem:[%s8031_s4 + $0x8] sm:$0xff] }
  0x34   :  { %362 = vmatpush.bf16.msra.mxu1 %v5120_v9 }
  0xa0   :  { %v146_v11 = vpop.f32.mrf.mxu0 }
  0xa1   :  { %v147_v13 = vadd.f32 %v5304_v10, %v146_v11 }
  0xa3   :  { %v159_v14 = vadd.f32 %v157_v12, %v147_v13  ;;  %v5119_v13 = vld [vmem:[%s8031_s4] sm:$0xff] }
  0xa4   :  { %363 = vmatpush.bf16.msra.mxu1 %v5119_v13 }
  0xa5   :  { %v166_v16 = vrot.slane %v159_v14, 6 }
  0xa7   :  { %v5811_v17 = vsel %vm7993_vm1, %v156_v15, %v166_v16 }
  0xa8   :  { %8025 = vst [vmem:[#allocation5_spill] sm:$0xff] %v5811_v17  ;;  %v148_v18 = vpop.f32.mrf.mxu0  ;;  %v190_v20 = vsel %vm7994_vm2, %v5811_v17, 0.0 }
  0xa9   :  { %v149_v21 = vadd.f32 %v5304_v10, %v148_v18  ;;  %191 = vadd.xlane.f32.xlu0 %v190_v20 }
  0xab   :  { %v160_v22 = vadd.f32 %v158_v19, %v149_v21 }
  0xad   :  { %v167_v23 = vrot.slane %v160_v22, 6 }
  0xaf   :  { %v5819_v24 = vsel %vm7993_vm1, %v166_v16, %v167_v23  ;;  %v185_v31 = vsel %vm7993_vm1, %v167_v23, %v173_v28 }
  0xb0   :  { %8026 = vst [vmem:[#allocation6_spill] sm:$0xff] %v5819_v24  ;;  %v151_v25 = vpop.f32.mrf.mxu0  ;;  %v193_v26 = vsel %vm7994_vm2, %v5819_v24, 0.0 }
  0xb1   :  { %v152_v27 = vadd.f32 %v5304_v10, %v151_v25  ;;  %194 = vadd.xlane.f32.xlu0 %v193_v26 }
  0xb3   :  { %v161_v29 = vadd.f32 %v157_v12, %v152_v27 }
  0xb5   :  { %v178_v30 = vrot.slane %v161_v29, 4 }
  0xb7   :  { %v5824_v32 = vsel %vm177_vm3, %v185_v31, %v178_v30 }
  0xb8   :  { %8027 = vst [vmem:[#allocation7_spill] sm:$0xff] %v5824_v32  ;;  %v153_v33 = vpop.f32.mrf.mxu0  ;;  %v196_v34 = vsel %vm7994_vm2, %v5824_v32, 0.0 }
  0xb9   :  { %v154_v35 = vadd.f32 %v5304_v10, %v153_v33  ;;  %197 = vadd.xlane.f32.xlu1 %v196_v34 }
  0xbb   :  { %v162_v36 = vadd.f32 %v158_v19, %v154_v35 }
  0xbd   :  { %v5828_v37 = vrot.slane %v162_v36, 4 }
  0xbf   :  { %8028 = vst [vmem:[#allocation8_spill] sm:$0xff] %v5828_v37  ;;  %v203_v38 = vsel %vm7992_vm4, %v5828_v37, 0.0  ;;  %v5833_v39 = vsel %vm177_vm3, %v178_v30, %v5828_v37 }
  0xc0   :  { %8029 = vst [vmem:[#allocation9_spill] sm:$0xff] %v5833_v39  ;;  %204 = vadd.xlane.f32.xlu2 %v203_v38  ;;  %v199_v40 = vsel %vm7994_vm2, %v5833_v39, 0.0 }
  0xc1   :  { %200 = vadd.xlane.f32.xlu1 %v199_v40 }
 0x11c   :  { %v192_v48 = vpop.xlane.xlu0 %191 }
 0x11d   :  { %v213_v49 = vmul.f32 %v5837_v47, %v192_v48 }
 0x11f   :  { %v5841_v50 = vsub.f32 %v5811_v17, %v213_v49 }
 0x121   :  { %v223_v51 = vmul.f32 %v5841_v50, %v5841_v50 }
 0x123   :  { %v228_v52 = vsel %vm7994_vm2, %v223_v51, 0.0 }
 0x124   :  { %229 = vadd.xlane.f32.xlu2 %v228_v52  ;;  %v195_v53 = vpop.xlane.xlu0 %194 }
 0x125   :  { %v214_v54 = vmul.f32 %v5837_v47, %v195_v53 }
 0x127   :  { %v5848_v55 = vsub.f32 %v5819_v24, %v214_v54  ;;  %v5306_v54 = vld [vmem:[%s8033_s29] ss:$0 sm:$0xff] }
 0x129   :  { %v224_v56 = vmul.f32 %v5848_v55, %v5848_v55 }
 0x12b   :  { %v231_v57 = vsel %vm7994_vm2, %v224_v56, 0.0 }
 0x12c   :  { %v198_v58 = vpop.xlane.xlu1 %197  ;;  %232 = vadd.xlane.f32.xlu0 %v231_v57 }
 0x12d   :  { %v215_v59 = vmul.f32 %v5837_v47, %v198_v58 }
 0x12f   :  { %v5855_v60 = vsub.f32 %v5824_v32, %v215_v59 }
 0x131   :  { %v225_v61 = vmul.f32 %v5855_v60, %v5855_v60 }
 0x133   :  { %v205_v62 = vpop.xlane.xlu2 %204  ;;  %v234_v63 = vsel %vm7994_vm2, %v225_v61, 0.0 }
 0x134   :  { %v217_v0 = vmul.f32 %v5837_v47, %v205_v62  ;;  %235 = vadd.xlane.f32.xlu1 %v234_v63  ;;  %v201_v1 = vpop.xlane.xlu1 %200 }
 0x135   :  { %v216_v2 = vmul.f32 %v5837_v47, %v201_v1 }
 0x136   :  { %v5863_v3 = vsub.f32 %v5828_v37, %v217_v0 }
 0x137   :  { %v5866_v4 = vsub.f32 %v5833_v39, %v216_v2 }
 0x138   :  { %v227_v5 = vmul.f32 %v5863_v3, %v5863_v3 }
 0x139   :  { %v226_v6 = vmul.f32 %v5866_v4, %v5866_v4 }
 0x13a   :  { %v240_v7 = vsel %vm7992_vm4, %v227_v5, 0.0 }
 0x13b   :  { %241 = vadd.xlane.f32.xlu0 %v240_v7  ;;  %v237_v8 = vsel %vm7994_vm2, %v226_v6, 0.0 }
 0x13c   :  { %238 = vadd.xlane.f32.xlu2 %v237_v8 }
 0x197   :  { %v230_v10 = vpop.xlane.xlu2 %229 }
 0x198   :  { %v243_v11 = vmul.f32 %v230_v10, %v5837_v47 }
 0x19a   :  { %v248_v12 = vadd.f32 1e-05, %v243_v11 }
 0x19c   :  { %5329 = vrsqrt.f32 %v248_v12  ;;  %vm259_vm7 = vweird.f32 %v248_v12 }
 0x19f   :  { %v233_v14 = vpop.xlane.xlu0 %232 }
 0x1a0   :  { %v244_v15 = vmul.f32 %v233_v14, %v5837_v47 }
 0x1a2   :  { %v5330_v16 = vpop.eup %5329  ;;  %v249_v18 = vadd.f32 1e-05, %v244_v15 }
 0x1a3   :  { %v254_v19 = vmul.f32 %v5330_v16, %v248_v12  ;;  %vm260_vm6 = vweird.f32 %v5330_v16 }
 0x1a4   :  { %5331 = vrsqrt.f32 %v249_v18  ;;  %vm261_vm8 = vmor %vm259_vm7, %vm260_vm6  ;;  %vm269_vm10 = vweird.f32 %v249_v18 }
 0x1a5   :  { %v255_v20 = vmul.f32 %v5330_v16, %v254_v19 }
 0x1a7   :  { %v256_v21 = vmul.f32 0.5, %v255_v20  ;;  %v236_v22 = vpop.xlane.xlu1 %235 }
 0x1a8   :  { %v245_v23 = vmul.f32 %v236_v22, %v5837_v47 }
 0x1a9   :  { %v257_v25 = vsub.f32 1.5, %v256_v21 }
 0x1aa   :  { %v5332_v26 = vpop.eup %5331  ;;  %v250_v27 = vadd.f32 1e-05, %v245_v23 }
 0x1ab   :  { %v258_v28 = vmul.f32 %v5330_v16, %v257_v25  ;;  %v264_v29 = vmul.f32 %v5332_v26, %v249_v18  ;;  %vm270_vm9 = vweird.f32 %v5332_v26 }
 0x1ac   :  { %5333 = vrsqrt.f32 %v250_v27  ;;  %vm271_vm11 = vmor %vm269_vm10, %vm270_vm9  ;;  %vm279_vm13 = vweird.f32 %v250_v27  ;;  %vm7989_vm9 = vcmask 1045504   ;;  %vm483_vm10 = vcmask 64512  }
 0x1ad   :  { %v265_v30 = vmul.f32 %v5332_v26, %v264_v29  ;;  %v262_v33 = vsel %vm261_vm8, %v5330_v16, %v258_v28 }
 0x1ae   :  { %v242_v31 = vpop.xlane.xlu0 %241  ;;  %v303_v44 = vmul.f32 %v262_v33, %v5841_v50 }
 0x1af   :  { %v266_v34 = vmul.f32 0.5, %v265_v30  ;;  %v247_v35 = vmul.f32 %v242_v31, %v5837_v47  ;;  %v239_v36 = vpop.xlane.xlu2 %238 }
 0x1b0   :  { %v246_v38 = vmul.f32 %v239_v36, %v5837_v47  ;;  %v311_v53 = vmul.f32 %v5305_v45, %v303_v44 }
 0x1b1   :  { %v267_v40 = vsub.f32 1.5, %v266_v34  ;;  %v252_v41 = vadd.f32 1e-05, %v247_v35 }
 0x1b2   :  { %v5334_v42 = vpop.eup %5333  ;;  %v251_v43 = vadd.f32 1e-05, %v246_v38  ;;  %v319_v62 = vadd.f32 %v5306_v54, %v311_v53 }
 0x1b3   :  { %v268_v46 = vmul.f32 %v5332_v26, %v267_v40  ;;  %v274_v48 = vmul.f32 %v5334_v42, %v250_v27  ;;  %5335 = vrsqrt.f32 %v252_v41  ;;  %vm280_vm12 = vweird.f32 %v5334_v42  ;;  %v5307_v27 = vld [vmem:[%s8034_s6] ss:$0 sm:$0xff] }
 0x1b4   :  { %5337 = vrsqrt.f32 %v251_v43  ;;  %vm281_vm14 = vmor %vm279_vm13, %vm280_vm12  ;;  %vm289_vm3 = vweird.f32 %v251_v43  ;;  %vm299_vm7 = vweird.f32 %v252_v41  ;;  %vm1429_vm12 = vcmask 1040384  }
 0x1b5   :  { %v272_v49 = vsel %vm271_vm11, %v5332_v26, %v268_v46  ;;  %v275_v51 = vmul.f32 %v5334_v42, %v274_v48  ;;  %vm808_vm11 = vcmask 146432   ;;  %vm815_vm13 = vcmask 140288  }
 0x1b6   :  { %v304_v52 = vmul.f32 %v272_v49, %v5848_v55 }
 0x1b7   :  { %v276_v50 = vmul.f32 0.5, %v275_v51 }
 0x1b8   :  { %v312_v56 = vmul.f32 %v5305_v45, %v304_v52 }
 0x1b9   :  { %v5336_v57 = vpop.eup %5335  ;;  %v277_v58 = vsub.f32 1.5, %v276_v50 }
 0x1ba   :  { %v5338_v59 = vpop.eup %5337  ;;  %v294_v61 = vmul.f32 %v5336_v57, %v252_v41  ;;  %v320_v63 = vadd.f32 %v5306_v54, %v312_v56  ;;  %vm300_vm6 = vweird.f32 %v5336_v57 }
 0x1bb   :  { %v278_v0 = vmul.f32 %v5334_v42, %v277_v58  ;;  %v284_v1 = vmul.f32 %v5338_v59, %v251_v43  ;;  %vm290_vm15 = vweird.f32 %v5338_v59  ;;  %vm301_vm8 = vmor %vm299_vm7, %vm300_vm6 }
 0x1bc   :  { %v324_v2 = vpack.c.bf16 %v320_v63, %v319_v62  ;;  %v295_v5 = vmul.f32 %v5336_v57, %v294_v61  ;;  %vm291_vm5 = vmor %vm289_vm3, %vm290_vm15 }
 0x1bd   :  { %v285_v55 = vmul.f32 %v5338_v59, %v284_v1  ;;  %v282_v6 = vsel %vm281_vm14, %v5334_v42, %v278_v0 }
 0x1be   :  { %4855 = vmatmul.msk.bf16.vlgmr.msra.gmra.mxu1 %vm7994_vm2, %v324_v2  ;;  %v296_v8 = vmul.f32 0.5, %v295_v5  ;;  %v305_v10 = vmul.f32 %v282_v6, %v5855_v60 }
 0x1bf   :  { %v286_v7 = vmul.f32 0.5, %v285_v55 }
 0x1c0   :  { %v297_v12 = vsub.f32 1.5, %v296_v8  ;;  %v313_v15 = vmul.f32 %v5305_v45, %v305_v10 }
 0x1c1   :  { %v287_v9 = vsub.f32 1.5, %v286_v7 }
 0x1c2   :  { %v298_v18 = vmul.f32 %v5336_v57, %v297_v12  ;;  %v321_v19 = vadd.f32 %v5306_v54, %v313_v15 }
 0x1c3   :  { %v288_v11 = vmul.f32 %v5338_v59, %v287_v9 }
 0x1c4   :  { %v302_v22 = vsel %vm301_vm8, %v5336_v57, %v298_v18 }
 0x1c5   :  { %v292_v13 = vsel %vm291_vm5, %v5338_v59, %v288_v11  ;;  %v307_v60 = vmul.f32 %v302_v22, %v5863_v3 }
 0x1c6   :  { %v306_v14 = vmul.f32 %v292_v13, %v5866_v4 }
 0x1c7   :  { %v315_v23 = vmul.f32 %v5305_v45, %v307_v60 }
 0x1c8   :  { %v314_v16 = vmul.f32 %v5305_v45, %v306_v14 }
 0x1c9   :  { %v323_v25 = vadd.f32 %v5306_v54, %v315_v23 }
 0x1ca   :  { %v322_v20 = vadd.f32 %v5306_v54, %v314_v16 }
 0x1cb   :  { %v326_v26 = vpack.c.bf16 %v323_v25, %v323_v25 }
 0x1cc   :  { %v325_v21 = vpack.c.bf16 %v322_v20, %v321_v19 }
 0x1ce   :  { %4856 = vmatmul.msk.bf16.gmra.mxu1 %vm7994_vm2, %v325_v21 }
 0x1de   :  { %4857 = vmatmul.msk.bf16.gmra.mxu1 %vm7994_vm2, %v326_v26 }
 0x23b   :  { %v365_v4 = vpop.f32.mrf.mxu1 }
 0x23c   :  { %v366_v31 = vadd.f32 %v5307_v27, %v365_v4 }
 0x23e   :  { %v447_v42 = vpack.c.bf16 %v366_v31, %v366_v31 }
 0x240   :  { %v474_v48 = vunpack.c.l.b16 %v447_v42 }
 0x243   :  { %v367_v28 = vpop.f32.mrf.mxu1 }
 0x244   :  { %v368_v29 = vadd.f32 %v5307_v27, %v367_v28 }
 0x246   :  { %402 = vrot.lane.b32.xlu0 %v368_v29, %s5616_s2  ;;  %v448_v40 = vpack.c.bf16 %v368_v29, %v368_v29 }
 0x248   :  { %v475_v43 = vunpack.c.l.b16 %v448_v40 }
 0x24a   :  { %v5913_v52 = vpack.c.b16 %v475_v43, %v474_v48 }
 0x24b   :  { %v370_v30 = vpop.f32.mrf.mxu1 }
 0x24c   :  { %v371_v33 = vadd.f32 %v5307_v27, %v370_v30 }
 0x24e   :  { %v5182_v34 = vpack.i.bf16 %v366_v31, %v371_v33  ;;  %v449_v3 = vpack.c.bf16 %v371_v33, %v371_v33  ;;  %v412_v49 = vrot.slane %v371_v33, 2 }
 0x250   :  { %5183 = vrot.lane.b32.xlu2 %v5182_v34, %s8005_s3  ;;  %5178 = vrot.lane.b32.xlu1 %v5182_v34, %s5616_s2  ;;  %v476_v35 = vunpack.c.l.b16 %v449_v3 }
 0x252   :  { %v5905_v36 = vpack.c.b16 %v476_v35, %v476_v35 }
 0x253   :  { %v372_v38 = vpop.f32.mrf.mxu1 }
 0x254   :  { %481 = vrot.lane.b32.xlu0 %v5905_v36, %s7997_s7  ;;  %v373_v41 = vadd.f32 %v5307_v27, %v372_v38 }
 0x256   :  { %v413_v44 = vrot.slane %v373_v41, 2 }
 0x258   :  { %5188 = vrot.lane.b32.xlu2 %v5182_v34, %s5619_s8  ;;  %384 = vrot.lane.b32.xlu1 %v368_v29, %s8005_s3  ;;  %v5916_v53 = vsel %vm7989_vm9, %v412_v49, %v413_v44 }
 0x25b   :  { %v375_v45 = vpop.f32.mrf.mxu1 }
 0x25c   :  { %v376_v46 = vadd.f32 %v5307_v27, %v375_v45 }
 0x25e   :  { %v5911_v51 = vrot.slane %v376_v46, 2 }
 0x260   :  { %393 = vrot.lane.b32.xlu2 %v368_v29, %s5619_s8  ;;  %479 = vrot.lane.b32.xlu1 %v5913_v52, %s7997_s7  ;;  %v5192_v54 = vpack.i.bf16 %v5916_v53, %v5911_v51  ;;  %v5926_v56 = vsel %vm7989_vm9, %v413_v44, %v5911_v51 }
 0x262   :  { %5193 = vrot.lane.b32.xlu0 %v5192_v54, %s5616_s2 }
 0x263   :  { %v377_v50 = vpop.f32.mrf.mxu1 }
 0x268   :  { %5198 = vrot.lane.b32.xlu1 %v5192_v54, %s8005_s3  ;;  %440 = vrot.lane.b32.xlu2 %v5926_v56, %s5616_s2 }
 0x26a   :  { %5203 = vrot.lane.b32.xlu0 %v5192_v54, %s5619_s8 }
 0x272   :  { %422 = vrot.lane.b32.xlu0 %v5926_v56, %s8005_s3 }
 0x2aa   :  { %v5184_v57 = vpop.permute.xlu2 %5183 }
 0x2ab   :  { %v5185_v58 = vunpack.i.l.bf16 %v5184_v57  ;;  %v5186_v26 = vunpack.i.h.bf16 %v5184_v57 }
 0x2ad   :  { %v452_v59 = vpack.c.bf16 %v5185_v58, %v5185_v58  ;;  %v450_v30 = vpack.c.bf16 %v5186_v26, %v5186_v26 }
 0x2af   :  { %v519_v61 = vunpack.c.l.b16 %v452_v59  ;;  %v517_v38 = vunpack.c.l.b16 %v450_v30 }
 0x2b1   :  { %v5934_v62 = vpack.c.b16 %v519_v61, %v519_v61 }
 0x2b2   :  { %v5189_v63 = vpop.permute.xlu2 %5188 }
 0x2b3   :  { %v5190_v0 = vunpack.i.l.bf16 %v5189_v63  ;;  %524 = vrot.lane.b32.xlu1 %v5934_v62, %s7997_s7  ;;  %v5191_v12 = vunpack.i.h.bf16 %v5189_v63 }
 0x2b5   :  { %v455_v1 = vpack.c.bf16 %v5190_v0, %v5190_v0  ;;  %v453_v23 = vpack.c.bf16 %v5191_v12, %v5191_v12 }
 0x2b7   :  { %v561_v2 = vunpack.c.l.b16 %v455_v1  ;;  %v559_v4 = vunpack.c.l.b16 %v453_v23 }
 0x2b8   :  { %v403_v55 = vpop.permute.xlu0 %402 }
 0x2b9   :  { %v5938_v5 = vpack.c.b16 %v561_v2, %v561_v2  ;;  %v457_v7 = vpack.c.bf16 %v403_v55, %v403_v55 }
 0x2ba   :  { %v394_v13 = vpop.permute.xlu2 %393 }
 0x2bb   :  { %566 = vrot.lane.b32.xlu0 %v5938_v5, %s7997_s7  ;;  %v602_v15 = vunpack.c.l.b16 %v457_v7  ;;  %v454_v20 = vpack.c.bf16 %v394_v13, %v394_v13 }
 0x2bd   :  { %v560_v25 = vunpack.c.l.b16 %v454_v20 }
 0x2bf   :  { %v5951_v28 = vpack.c.b16 %v560_v25, %v559_v4 }
 0x2c2   :  { %v5179_v6 = vpop.permute.xlu1 %5178  ;;  %v441_v41 = vpop.permute.xlu2 %440 }
 0x2c3   :  { %v5181_v8 = vunpack.i.h.bf16 %v5179_v6  ;;  %v5180_v9 = vunpack.i.l.bf16 %v5179_v6  ;;  %v469_v46 = vpack.c.bf16 %v441_v41, %v441_v41 }
 0x2c5   :  { %v456_v10 = vpack.c.bf16 %v5181_v8, %v5181_v8  ;;  %v458_v11 = vpack.c.bf16 %v5180_v9, %v5180_v9  ;;  %v770_v59 = vunpack.c.l.b16 %v469_v46  ;;  %v461_v8 = vpack.c.bf16 %v5911_v51, %v5911_v51 }
 0x2c6   :  { %v482_v14 = vpop.permute.xlu0 %481 }
 0x2c7   :  { %v601_v16 = vunpack.c.l.b16 %v456_v10  ;;  %v494_v18 = vsel %vm483_vm10, %v482_v14, 0  ;;  %v603_v19 = vunpack.c.l.b16 %v458_v11  ;;  %v645_v13 = vunpack.c.l.b16 %v461_v8 }
 0x2c8   :  { %502 = vmatpush.bf16.xpose.msra.mxu2 %v494_v18 }
 0x2c9   :  { %v5943_v21 = vpack.c.b16 %v603_v19, %v603_v19  ;;  %v5945_v22 = vpack.c.b16 %v602_v15, %v601_v16  ;;  %v460_v15 = vpack.c.bf16 %v5926_v56, %v5926_v56  ;;  %v5990_v51 = vpack.c.b16 %v645_v13, %v645_v13 }
 0x2ca   :  { %v385_v60 = vpop.permute.xlu1 %384  ;;  %v459_v16 = vpack.c.bf16 %v5916_v53, %v5916_v53 }
 0x2cb   :  { %608 = vrot.lane.b32.xlu2 %v5943_v21, %s7997_s7  ;;  %606 = vrot.lane.b32.xlu1 %v5945_v22, %s7997_s7  ;;  %v451_v27 = vpack.c.bf16 %v385_v60, %v385_v60  ;;  %v644_v18 = vunpack.c.l.b16 %v460_v15 }
 0x2cc   :  { %v643_v19 = vunpack.c.l.b16 %v459_v16 }
 0x2cd   :  { %v518_v34 = vunpack.c.l.b16 %v451_v27 }
 0x2ce   :  { %v5996_v20 = vpack.c.b16 %v644_v18, %v643_v19 }
 0x2cf   :  { %v5958_v43 = vpack.c.b16 %v518_v34, %v517_v38 }
 0x2d2   :  { %v480_v29 = vpop.permute.xlu1 %479 }
 0x2d3   :  { %431 = vrot.lane.b32.xlu2 %v5926_v56, %s5619_s8  ;;  %564 = vrot.lane.b32.xlu1 %v5951_v28, %s7997_s7  ;;  %v491_v31 = vsel %vm483_vm10, %v480_v29, 0 }
 0x2d4   :  { %503 = vmatpush.bf16.xpose.msra.mxu2 %v491_v31  ;;  %v5194_v33 = vpop.permute.xlu0 %5193 }
 0x2d5   :  { %v5196_v3 = vunpack.i.h.bf16 %v5194_v33  ;;  %v5195_v35 = vunpack.i.l.bf16 %v5194_v33 }
 0x2d7   :  { %v470_v40 = vpack.c.bf16 %v5195_v35, %v5195_v35  ;;  %v468_v42 = vpack.c.bf16 %v5196_v3, %v5196_v3 }
 0x2d9   :  { %v771_v44 = vunpack.c.l.b16 %v470_v40  ;;  %v769_v50 = vunpack.c.l.b16 %v468_v42 }
 0x2da   :  { %v5199_v45 = vpop.permute.xlu1 %5198 }
 0x2db   :  { %v5200_v48 = vunpack.i.l.bf16 %v5199_v45  ;;  %522 = vrot.lane.b32.xlu2 %v5958_v43, %s7997_s7  ;;  %4858 = vmatmul.msk.bf16.vlgmr.msra.gmra.mxu2 %vm483_vm10, %v5913_v52  ;;  %v5964_v49 = vpack.c.b16 %v771_v44, %v771_v44  ;;  %v5201_v61 = vunpack.i.h.bf16 %v5199_v45  ;;  %v5970_v2 = vpack.c.b16 %v770_v59, %v769_v50 }
 0x2dc   :  { %v5204_v54 = vpop.permute.xlu0 %5203 }
 0x2dd   :  { %v464_v57 = vpack.c.bf16 %v5200_v48, %v5200_v48  ;;  %v5205_v58 = vunpack.i.l.bf16 %v5204_v54  ;;  %776 = vrot.lane.b32.xlu0 %v5964_v49, %s7997_s7  ;;  %v462_v6 = vpack.c.bf16 %v5201_v61, %v5201_v61  ;;  %v5206_v25 = vunpack.i.h.bf16 %v5204_v54 }
 0x2df   :  { %v467_v63 = vpack.c.bf16 %v5205_v58, %v5205_v58  ;;  %v687_v0 = vunpack.c.l.b16 %v464_v57  ;;  %v685_v11 = vunpack.c.l.b16 %v462_v6  ;;  %v465_v26 = vpack.c.bf16 %v5206_v25, %v5206_v25 }
 0x2e1   :  { %v5968_v1 = vpack.c.b16 %v687_v0, %v687_v0  ;;  %v729_v55 = vunpack.c.l.b16 %v467_v63  ;;  %v727_v30 = vunpack.c.l.b16 %v465_v26 }
 0x2e3   :  { %692 = vrot.lane.b32.xlu1 %v5968_v1, %s7997_s7  ;;  %774 = vrot.lane.b32.xlu2 %v5970_v2, %s7997_s7  ;;  %v5976_v7 = vpack.c.b16 %v729_v55, %v729_v55 }
 0x2e4   :  { %v423_v9 = vpop.permute.xlu0 %422 }
 0x2e5   :  { %v463_v10 = vpack.c.bf16 %v423_v9, %v423_v9  ;;  %734 = vrot.lane.b32.xlu0 %v5976_v7, %s7997_s7 }
 0x2e7   :  { %v686_v12 = vunpack.c.l.b16 %v463_v10 }
 0x2e9   :  { %v5982_v14 = vpack.c.b16 %v686_v12, %v685_v11 }
 0x2eb   :  { %4859 = vmatmul.msk.bf16.gmra.mxu2 %vm483_vm10, %v5905_v36  ;;  %690 = vrot.lane.b32.xlu2 %v5982_v14, %s7997_s7 }
 0x2ed   :  { %650 = vrot.lane.b32.xlu0 %v5990_v51, %s7997_s7 }
 0x2f3   :  { %648 = vrot.lane.b32.xlu2 %v5996_v20, %s7997_s7 }
 0x2f5   :  { %1461 = vrot.lane.b32.xlu0 %v5934_v62, %s7995_s30 }
 0x2fb   :  { %1501 = vrot.lane.b32.xlu2 %v5938_v5, %s7995_s30 }
 0x2fd   :  { %1459 = vrot.lane.b32.xlu0 %v5958_v43, %s7995_s30 }
 0x303   :  { %1420 = vrot.lane.b32.xlu2 %v5905_v36, %s7995_s30 }
 0x305   :  { %1621 = vrot.lane.b32.xlu0 %v5968_v1, %s7995_s30 }
 0x30d   :  { %1699 = vrot.lane.b32.xlu0 %v5970_v2, %s7995_s30 }
 0x325   :  { %v525_v53 = vpop.permute.xlu1 %524  ;;  %v609_v56 = vpop.permute.xlu2 %608 }
 0x326   :  { %v536_v60 = vsel %vm483_vm10, %v525_v53, 0  ;;  %v620_v23 = vsel %vm483_vm10, %v609_v56, 0 }
 0x327   :  { %544 = vmatpush.bf16.xpose.msra.mxu3 %v536_v60  ;;  %628 = vmatpush.bf16.xpose.msrb.mxu2 %v620_v23 }
 0x32d   :  { %v432_v4 = vpop.permute.xlu2 %431  ;;  %v567_v27 = vpop.permute.xlu0 %566 }
 0x32e   :  { %v466_v29 = vpack.c.bf16 %v432_v4, %v432_v4  ;;  %v578_v36 = vsel %vm483_vm10, %v567_v27, 0 }
 0x32f   :  { %586 = vmatpush.bf16.xpose.msrb.mxu0 %v578_v36  ;;  %5155 = vmatpush.bf16.xpose.msrb.mxu1 %v578_v36 }
 0x330   :  { %v728_v31 = vunpack.c.l.b16 %v466_v29 }
 0x332   :  { %v6015_v33 = vpack.c.b16 %v728_v31, %v727_v30 }
 0x334   :  { %732 = vrot.lane.b32.xlu1 %v6015_v33, %s7997_s7 }
 0x335   :  { %v523_v34 = vpop.permute.xlu2 %522 }
 0x336   :  { %v533_v3 = vsel %vm483_vm10, %v523_v34, 0 }
 0x337   :  { %545 = vmatpush.bf16.xpose.msra.mxu3 %v533_v3 }
 0x33c   :  { %1541 = vrot.lane.b32.xlu1 %v5943_v21, %s7995_s30 }
 0x33d   :  { %v607_v35 = vpop.permute.xlu1 %606  ;;  %v775_v38 = vpop.permute.xlu2 %774 }
 0x33e   :  { %4860 = vmatmul.msk.bf16.vlgmr.msra.gmra.mxu3 %vm483_vm10, %v5958_v43  ;;  %v617_v40 = vsel %vm483_vm10, %v607_v35, 0 }
 0x33f   :  { %629 = vmatpush.bf16.xpose.msrb.mxu2 %v617_v40 }
 0x344   :  { %1539 = vrot.lane.b32.xlu1 %v5945_v22, %s7995_s30 }
 0x345   :  { %v565_v41 = vpop.permute.xlu1 %564  ;;  %v691_v44 = vpop.permute.xlu2 %690 }
 0x346   :  { %4864 = vmatmul.msk.bf16.vlgmr.msrb.gmra.mxu2 %vm483_vm10, %v5945_v22  ;;  %v575_v42 = vsel %vm483_vm10, %v565_v41, 0  ;;  %v701_v57 = vsel %vm483_vm10, %v691_v44, 0 }
 0x347   :  { %587 = vmatpush.bf16.xpose.msrb.mxu0 %v575_v42  ;;  %5156 = vmatpush.bf16.xpose.msrb.mxu1 %v575_v42 }
 0x34c   :  { %1499 = vrot.lane.b32.xlu1 %v5951_v28, %s7995_s30 }
 0x34d   :  { %v649_v45 = vpop.permute.xlu2 %648 }
 0x34e   :  { %4861 = vmatmul.msk.bf16.gmra.mxu3 %vm483_vm10, %v5934_v62  ;;  %4862 = vmatmul.msk.bf16.vlgmr.msrb.gmra.mxu0 %vm483_vm10, %v5951_v28  ;;  %v659_v8 = vsel %vm483_vm10, %v649_v45, 0 }
 0x34f   :  { %4863 = vmatmul.msk.bf16.vlgmr.msrb.gmra.mxu1 %vm483_vm10, %v5938_v5  ;;  %v777_v43 = vpop.permute.xlu0 %776  ;;  %v785_v5 = vsel %vm483_vm10, %v775_v38, 0 }
 0x350   :  { %v788_v22 = vsel %vm483_vm10, %v777_v43, 0 }
 0x351   :  { %796 = vmatpush.bf16.xpose.msra.mxu2 %v788_v22 }
 0x354   :  { %1701 = vrot.lane.b32.xlu1 %v5964_v49, %s7995_s30 }
 0x355   :  { %v693_v46 = vpop.permute.xlu1 %692  ;;  %v1502_v54 = vpop.permute.xlu2 %1501 }
 0x356   :  { %v704_v48 = vsel %vm483_vm10, %v693_v46, 0  ;;  %4865 = vmatmul.msk.bf16.gmra.mxu2 %vm483_vm10, %v5943_v21  ;;  %v1511_v19 = vsel %vm1429_vm12, %v1502_v54, 0 }
 0x357   :  { %712 = vmatpush.bf16.xpose.msra.mxu1 %v704_v48  ;;  %v735_v62 = vpop.permute.xlu0 %734 }
 0x358   :  { %v746_v28 = vsel %vm483_vm10, %v735_v62, 0 }
 0x359   :  { %754 = vmatpush.bf16.xpose.msra.mxu0 %v746_v28  ;;  %797 = vmatpush.bf16.xpose.msra.mxu2 %v785_v5 }
 0x35c   :  { %1661 = vrot.lane.b32.xlu1 %v5976_v7, %s7995_s30 }
 0x35d   :  { %v1421_v61 = vpop.permute.xlu2 %1420 }
 0x35e   :  { %v6048_v50 = vpop.f32.mrf.mxu2  ;;  %v1431_v9 = vsel %vm1429_vm12, %v1421_v61, 0 }
 0x35f   :  { %713 = vmatpush.bf16.xpose.msra.mxu1 %v701_v57  ;;  %v651_v58 = vpop.permute.xlu0 %650  ;;  %v809_v21 = vsel %vm808_vm11, %v6048_v50, -inf }
 0x360   :  { %810 = vmax.xlane.f32.xlu0 %v809_v21  ;;  %v662_v59 = vsel %vm483_vm10, %v651_v58, 0 }
 0x361   :  { %670 = vmatpush.bf16.xpose.msrb.mxu3 %v662_v59 }
 0x366   :  { %v6054_v63 = vpop.f32.mrf.mxu2  ;;  %4868 = vmatmul.msk.bf16.vlgmr.msra.gmra.mxu1 %vm483_vm10, %v5982_v14  ;;  %4872 = vmatmul.msk.bf16.vlgmr.msra.gmra.mxu2 %vm483_vm10, %v5970_v2 }
 0x367   :  { %v1462_v0 = vpop.permute.xlu0 %1461  ;;  %v812_v55 = vsel %vm808_vm11, %v6054_v63, -inf }
 0x368   :  { %v1471_v6 = vsel %vm1429_vm12, %v1462_v0, 0  ;;  %813 = vmax.xlane.f32.xlu2 %v812_v55 }
 0x369   :  { %671 = vmatpush.bf16.xpose.msrb.mxu3 %v659_v8  ;;  %1479 = vmatpush.bf16.msrb.mxu1 %v1471_v6 }
 0x36e   :  { %v6065_v10 = vpop.f32.mrf.mxu2 }
 0x36f   :  { %v1460_v11 = vpop.permute.xlu0 %1459  ;;  %v816_v2 = vsel %vm815_vm13, %v6065_v10, -inf }
 0x370   :  { %817 = vmax.xlane.f32.xlu0 %v816_v2  ;;  %4866 = vmatmul.msk.bf16.vlgmr.msrb.gmra.mxu3 %vm483_vm10, %v5996_v20 }
 0x371   :  { %1439 = vmatpush.bf16.msra.mxu3 %v1431_v9  ;;  %1480 = vmatpush.bf16.msrb.mxu1 %v1460_v11 }
 0x376   :  { %v512_v12 = vpop.f32.mrf.mxu2  ;;  %4869 = vmatmul.msk.bf16.gmra.mxu1 %vm483_vm10, %v5968_v1  ;;  %4873 = vmatmul.msk.bf16.gmra.mxu2 %vm483_vm10, %v5964_v49 }
 0x377   :  { %v1622_v13 = vpop.permute.xlu0 %1621 }
 0x378   :  { %v1631_v15 = vsel %vm1429_vm12, %v1622_v13, 0 }
 0x379   :  { %1639 = vmatpush.bf16.msra.mxu1 %v1631_v15 }
 0x37f   :  { %v1700_v29 = vpop.permute.xlu0 %1699 }
 0x380   :  { %4867 = vmatmul.msk.bf16.gmra.mxu3 %vm483_vm10, %v5990_v51 }
 0x3a6   :  { %v733_v16 = vpop.permute.xlu1 %732 }
 0x3a7   :  { %v743_v18 = vsel %vm483_vm10, %v733_v16, 0 }
 0x3a8   :  { %755 = vmatpush.bf16.xpose.msra.mxu0 %v743_v18 }
 0x3ae   :  { %v1542_v53 = vpop.permute.xlu1 %1541 }
 0x3af   :  { %v1551_v1 = vsel %vm1429_vm12, %v1542_v53, 0  ;;  %4870 = vmatmul.msk.bf16.vlgmr.msra.gmra.mxu0 %vm483_vm10, %v6015_v33 }
 0x3b0   :  { %1519 = vmatpush.bf16.msrb.mxu0 %v1511_v19  ;;  %1559 = vmatpush.bf16.msrb.mxu2 %v1551_v1 }
 0x3b6   :  { %v1540_v49 = vpop.permute.xlu1 %1539 }
 0x3b7   :  { %1560 = vmatpush.bf16.msrb.mxu2 %v1540_v49 }
 0x3be   :  { %v1500_v56 = vpop.permute.xlu1 %1499 }
 0x3bf   :  { %4871 = vmatmul.msk.bf16.gmra.mxu0 %vm483_vm10, %v5976_v7 }
 0x3c0   :  { %1520 = vmatpush.bf16.msrb.mxu0 %v1500_v56 }
 0x3c1   :  { %v6085_v60 = vpop.f32.mrf.mxu3 }
 0x3c2   :  { %v819_v22 = vsel %vm808_vm11, %v6085_v60, -inf }
 0x3c6   :  { %v1702_v23 = vpop.permute.xlu1 %1701 }
 0x3c7   :  { %v1711_v25 = vsel %vm1429_vm12, %v1702_v23, 0 }
 0x3c8   :  { %1719 = vmatpush.bf16.msra.mxu2 %v1711_v25 }
 0x3c9   :  { %v6088_v26 = vpop.f32.mrf.mxu3  ;;  %v6090_v4 = vpop.f32.mrf.mxu2 }
 0x3ca   :  { %v837_v27 = vsel %vm808_vm11, %v6090_v4, -inf  ;;  %v822_v40 = vsel %vm808_vm11, %v6088_v26, -inf }
 0x3cb   :  { %v6094_v36 = vpop.f32.mrf.mxu0  ;;  %838 = vmax.xlane.f32.xlu1 %v837_v27 }
 0x3cc   :  { %v6096_v30 = vpop.f32.mrf.mxu1  ;;  %1720 = vmatpush.bf16.msra.mxu2 %v1700_v29  ;;  %v828_v7 = vsel %vm808_vm11, %v6094_v36, -inf }
 0x3cd   :  { %v834_v31 = vsel %vm815_vm13, %v6096_v30, -inf  ;;  %829 = vmax.xlane.f32.xlu0 %v828_v7 }
 0x3ce   :  { %835 = vmax.xlane.f32.xlu2 %v834_v31  ;;  %v1662_v34 = vpop.permute.xlu1 %1661 }
 0x3cf   :  { %v1671_v3 = vsel %vm1429_vm12, %v1662_v34, 0 }
 0x3d0   :  { %1679 = vmatpush.bf16.msra.mxu0 %v1671_v3 }
 0x3d1   :  { %v6103_v35 = vpop.f32.mrf.mxu3  ;;  %v6105_v38 = vpop.f32.mrf.mxu2 }
 0x3d2   :  { %v840_v43 = vsel %vm808_vm11, %v6105_v38, -inf  ;;  %v825_v21 = vsel %vm815_vm13, %v6103_v35, -inf }
 0x3d3   :  { %823 = vmax.xlane.f32.xlu1 %v822_v40  ;;  %v811_v41 = vpop.xlane.xlu0 %810  ;;  %v6116_v62 = vpop.f32.mrf.mxu0 }
 0x3d4   :  { %v596_v42 = vpop.f32.mrf.mxu1  ;;  %v882_v44 = vsub.f32 %v6048_v50, %v811_v41  ;;  %v831_v28 = vsel %vm808_vm11, %v6116_v62, -inf }
 0x3d5   :  { %841 = vmax.xlane.f32.xlu0 %v840_v43 }
 0x3d6   :  { %v906_v45 = vmul.f32 1.442695, %v882_v44  ;;  %820 = vmax.xlane.f32.xlu2 %v819_v22 }
 0x3d8   :  { %5339 = vpow2.f32 %v906_v45 }
 0x3d9   :  { %v554_v46 = vpop.f32.mrf.mxu3  ;;  %v6114_v48 = vpop.f32.mrf.mxu2 }
 0x3da   :  { %v843_v29 = vsel %vm815_vm13, %v6114_v48, -inf }
 0x3db   :  { %v814_v23 = vpop.xlane.xlu2 %813 }
 0x3dc   :  { %v883_v25 = vsub.f32 %v6054_v63, %v814_v23 }
 0x3de   :  { %v6120_v5 = vpop.eup %5339  ;;  %832 = vmax.xlane.f32.xlu2 %v831_v28  ;;  %v908_v31 = vmul.f32 1.442695, %v883_v25 }
 0x3df   :  { %v954_v54 = vsel %vm808_vm11, %v6120_v5, 0.0 }
 0x3e0   :  { %955 = vadd.xlane.f32.xlu0 %v954_v54 }
 0x3e1   :  { %v638_v50 = vpop.f32.mrf.mxu2 }
 0x3e3   :  { %v6124_v57 = vpop.f32.mrf.mxu1  ;;  %v818_v59 = vpop.xlane.xlu0 %817 }
 0x3e4   :  { %v855_v58 = vsel %vm808_vm11, %v6124_v57, -inf  ;;  %v884_v0 = vsub.f32 %v6065_v10, %v818_v59 }
 0x3e6   :  { %856 = vmax.xlane.f32.xlu2 %v855_v58  ;;  %v910_v6 = vmul.f32 1.442695, %v884_v0 }
 0x3e8   :  { %826 = vmax.xlane.f32.xlu0 %v825_v21  ;;  %5341 = vpow2.f32 %v910_v6 }
 0x3e9   :  { %v6130_v61 = vpop.f32.mrf.mxu2  ;;  %5343 = vpow2.f32 %v908_v31 }
 0x3eb   :  { %v6133_v55 = vpop.f32.mrf.mxu1 }
 0x3ec   :  { %v858_v3 = vsel %vm808_vm11, %v6133_v55, -inf }
 0x3ee   :  { %v6143_v12 = vpop.eup %5341 }
 0x3ef   :  { %8035 = vst [vmem:[#allocation11_spill] sm:$0xff] %v6143_v12  ;;  %v960_v16 = vsel %vm815_vm13, %v6143_v12, 0.0  ;;  %v6172_v44 = vpop.eup %5343 }
 0x3f0   :  { %v957_v54 = vsel %vm808_vm11, %v6172_v44, 0.0 }
 0x3f1   :  { %v6135_v8 = vpop.f32.mrf.mxu2 }
 0x3f3   :  { %v6137_v9 = vpop.f32.mrf.mxu3  ;;  %v6139_v11 = vpop.f32.mrf.mxu1 }
 0x3f4   :  { %v861_v2 = vsel %vm815_vm13, %v6139_v11, -inf  ;;  %v846_v50 = vsel %vm808_vm11, %v6137_v9, -inf }
 0x3f5   :  { %862 = vmax.xlane.f32.xlu2 %v861_v2  ;;  %v873_v2 = vsel %vm808_vm11, %v6130_v61, -inf }
 0x3f9   :  { %v6145_v13 = vpop.f32.mrf.mxu2 }
 0x3fb   :  { %v6147_v15 = vpop.f32.mrf.mxu3  ;;  %v722_v10 = vpop.f32.mrf.mxu1 }
 0x3fc   :  { %v849_v53 = vsel %vm808_vm11, %v6147_v15, -inf  ;;  %v876_v10 = vsel %vm808_vm11, %v6135_v8, -inf }
 0x3fd   :  { %961 = vadd.xlane.f32.xlu2 %v960_v16 }
 0x401   :  { %v806_v18 = vpop.f32.mrf.mxu2 }
 0x403   :  { %v6151_v19 = vpop.f32.mrf.mxu3 }
 0x405   :  { %850 = vmax.xlane.f32.xlu2 %v849_v53 }
 0x40b   :  { %v680_v1 = vpop.f32.mrf.mxu3 }
 0x42c   :  { %v6155_v49 = vpop.f32.mrf.mxu0 }
 0x42d   :  { %v864_v56 = vsel %vm808_vm11, %v6155_v49, -inf }
 0x42e   :  { %865 = vmax.xlane.f32.xlu1 %v864_v56 }
 0x434   :  { %v6160_v27 = vpop.f32.mrf.mxu0 }
 0x435   :  { %v867_v7 = vsel %vm808_vm11, %v6160_v27, -inf }
 0x436   :  { %844 = vmax.xlane.f32.xlu1 %v843_v29  ;;  %868 = vmax.xlane.f32.xlu0 %v867_v7  ;;  %v879_v7 = vsel %vm815_vm13, %v6145_v13, -inf }
 0x43c   :  { %v6166_v34 = vpop.f32.mrf.mxu0 }
 0x43d   :  { %v870_v63 = vsel %vm815_vm13, %v6166_v34, -inf }
 0x43e   :  { %859 = vmax.xlane.f32.xlu1 %v858_v3  ;;  %871 = vmax.xlane.f32.xlu0 %v870_v63  ;;  %v839_v41 = vpop.xlane.xlu1 %838 }
 0x43f   :  { %v891_v22 = vsub.f32 %v6090_v4, %v839_v41 }
 0x440   :  { %v830_v40 = vpop.xlane.xlu0 %829 }
 0x441   :  { %v836_v42 = vpop.xlane.xlu2 %835  ;;  %v888_v28 = vsub.f32 %v6094_v36, %v830_v40  ;;  %v924_v58 = vmul.f32 1.442695, %v891_v22 }
 0x442   :  { %v890_v43 = vsub.f32 %v6096_v30, %v836_v42 }
 0x443   :  { %v918_v59 = vmul.f32 1.442695, %v888_v28 }
 0x444   :  { %v922_v45 = vmul.f32 1.442695, %v890_v43  ;;  %v764_v46 = vpop.f32.mrf.mxu0 }
 0x446   :  { %5345 = vpow2.f32 %v922_v45  ;;  %958 = vadd.xlane.f32.xlu1 %v957_v54  ;;  %847 = vmax.xlane.f32.xlu0 %v846_v50 }
 0x447   :  { %5347 = vpow2.f32 %v924_v58 }
 0x448   :  { %v842_v21 = vpop.xlane.xlu0 %841  ;;  %5349 = vpow2.f32 %v918_v59 }
 0x449   :  { %v821_v0 = vpop.xlane.xlu2 %820  ;;  %v892_v30 = vsub.f32 %v6105_v38, %v842_v21  ;;  %v824_v38 = vpop.xlane.xlu1 %823 }
 0x44a   :  { %v885_v36 = vsub.f32 %v6085_v60, %v821_v0  ;;  %v886_v56 = vsub.f32 %v6088_v26, %v824_v38 }
 0x44b   :  { %v926_v16 = vmul.f32 1.442695, %v892_v30 }
 0x44c   :  { %v6182_v4 = vpop.eup %5345  ;;  %v912_v18 = vmul.f32 1.442695, %v885_v36  ;;  %v914_v3 = vmul.f32 1.442695, %v886_v56 }
 0x44d   :  { %v978_v6 = vsel %vm815_vm13, %v6182_v4, 0.0  ;;  %v6191_v1 = vpop.eup %5347  ;;  %5351 = vpow2.f32 %v926_v16 }
 0x44e   :  { %979 = vadd.xlane.f32.xlu2 %v978_v6  ;;  %874 = vmax.xlane.f32.xlu1 %v873_v2  ;;  %v6193_v60 = vpop.eup %5349  ;;  %5353 = vpow2.f32 %v912_v18  ;;  %v981_v29 = vsel %vm808_vm11, %v6191_v1, 0.0 }
 0x44f   :  { %877 = vmax.xlane.f32.xlu0 %v876_v10  ;;  %v972_v31 = vsel %vm808_vm11, %v6193_v60, 0.0  ;;  %5355 = vpow2.f32 %v914_v3 }
 0x451   :  { %v833_v53 = vpop.xlane.xlu2 %832 }
 0x452   :  { %v889_v25 = vsub.f32 %v6116_v62, %v833_v53 }
 0x453   :  { %v6196_v23 = vpop.xlane.xlu0 %955  ;;  %v6205_v63 = vpop.eup %5351 }
 0x454   :  { %v920_v26 = vmul.f32 1.442695, %v889_v25  ;;  %v6207_v41 = vpop.eup %5353  ;;  %v984_v45 = vsel %vm808_vm11, %v6205_v63, 0.0  ;;  %vm1031_vm1 = vweird.f32 %v6196_v23 }
 0x455   :  { %v963_v22 = vsel %vm808_vm11, %v6207_v41, 0.0  ;;  %v6215_v54 = vpop.eup %5355 }
 0x456   :  { %982 = vadd.xlane.f32.xlu2 %v981_v29  ;;  %880 = vmax.xlane.f32.xlu1 %v879_v7  ;;  %5357 = vpow2.f32 %v920_v26 }
 0x457   :  { %973 = vadd.xlane.f32.xlu0 %v972_v31 }
 0x459   :  { %v857_v40 = vpop.xlane.xlu2 %856 }
 0x45a   :  { %v897_v42 = vsub.f32 %v6124_v57, %v857_v40 }
 0x45b   :  { %v827_v62 = vpop.xlane.xlu0 %826 }
 0x45c   :  { %v887_v43 = vsub.f32 %v6103_v35, %v827_v62  ;;  %v936_v28 = vmul.f32 1.442695, %v897_v42  ;;  %v6217_v50 = vpop.eup %5357  ;;  %v966_v35 = vsel %vm808_vm11, %v6215_v54, 0.0 }
 0x45d   :  { %v975_v57 = vsel %vm808_vm11, %v6217_v50, 0.0 }
 0x45e   :  { %v916_v46 = vmul.f32 1.442695, %v887_v43  ;;  %964 = vadd.xlane.f32.xlu2 %v963_v22  ;;  %985 = vadd.xlane.f32.xlu1 %v984_v45 }
 0x460   :  { %5359 = vpow2.f32 %v916_v46 }
 0x461   :  { %5361 = vpow2.f32 %v936_v28 }
 0x466   :  { %v6223_v58 = vpop.eup %5359  ;;  %976 = vadd.xlane.f32.xlu2 %v975_v57  ;;  %967 = vadd.xlane.f32.xlu1 %v966_v35 }
 0x467   :  { %v969_v21 = vsel %vm815_vm13, %v6223_v58, 0.0  ;;  %v6227_v59 = vpop.eup %5361 }
 0x468   :  { %970 = vadd.xlane.f32.xlu0 %v969_v21  ;;  %v999_v0 = vsel %vm808_vm11, %v6227_v59, 0.0  ;;  %v6232_v6 = vpop.xlane.xlu2 %862 }
 0x46e   :  { %1000 = vadd.xlane.f32.xlu1 %v999_v0 }
 0x470   :  { %v6240_v7 = vpop.xlane.xlu2 %961 }
 0x478   :  { %v6253_v42 = vpop.xlane.xlu2 %850 }
 0x4a1   :  { %v866_v30 = vpop.xlane.xlu1 %865 }
 0x4a2   :  { %v900_v36 = vsub.f32 %v6155_v49, %v866_v30 }
 0x4a4   :  { %v942_v2 = vmul.f32 1.442695, %v900_v36 }
 0x4a6   :  { %5363 = vpow2.f32 %v942_v2 }
 0x4a9   :  { %v845_v10 = vpop.xlane.xlu1 %844  ;;  %v869_v16 = vpop.xlane.xlu0 %868 }
 0x4aa   :  { %v893_v38 = vsub.f32 %v6114_v48, %v845_v10  ;;  %v901_v18 = vsub.f32 %v6160_v27, %v869_v16 }
 0x4ac   :  { %v6236_v53 = vpop.eup %5363  ;;  %v928_v56 = vmul.f32 1.442695, %v893_v38  ;;  %v944_v25 = vmul.f32 1.442695, %v901_v18 }
 0x4ad   :  { %v1008_v29 = vsel %vm808_vm11, %v6236_v53, 0.0 }
 0x4ae   :  { %5365 = vpow2.f32 %v928_v56  ;;  %1009 = vadd.xlane.f32.xlu2 %v1008_v29 }
 0x4af   :  { %5367 = vpow2.f32 %v944_v25 }
 0x4b1   :  { %v860_v49 = vpop.xlane.xlu1 %859  ;;  %v6242_v31 = vpop.xlane.xlu0 %871 }
 0x4b2   :  { %v898_v3 = vsub.f32 %v6133_v55, %v860_v49 }
 0x4b4   :  { %v6245_v48 = vpop.eup %5365  ;;  %v938_v27 = vmul.f32 1.442695, %v898_v3 }
 0x4b5   :  { %v6247_v26 = vpop.eup %5367  ;;  %v987_v40 = vsel %vm815_vm13, %v6245_v48, 0.0 }
 0x4b6   :  { %5369 = vpow2.f32 %v938_v27  ;;  %988 = vadd.xlane.f32.xlu1 %v987_v40  ;;  %v1011_v62 = vsel %vm808_vm11, %v6247_v26, 0.0 }
 0x4b7   :  { %1012 = vadd.xlane.f32.xlu0 %v1011_v62 }
 0x4b9   :  { %v6255_v43 = vpop.xlane.xlu1 %958  ;;  %v848_v22 = vpop.xlane.xlu0 %847 }
 0x4bc   :  { %v6257_v55 = vpop.eup %5369 }
 0x4bd   :  { %v1002_v45 = vsel %vm808_vm11, %v6257_v55, 0.0 }
 0x4be   :  { %1003 = vadd.xlane.f32.xlu2 %v1002_v45  ;;  %v894_v45 = vsub.f32 %v6137_v9, %v848_v22 }
 0x4c1   :  { %v6261_v46 = vpop.xlane.xlu2 %979  ;;  %v875_v28 = vpop.xlane.xlu1 %874 }
 0x4c2   :  { %v903_v57 = vsub.f32 %v6130_v61, %v875_v28  ;;  %v878_v35 = vpop.xlane.xlu0 %877 }
 0x4c3   :  { %v904_v21 = vsub.f32 %v6135_v8, %v878_v35 }
 0x4c4   :  { %v948_v0 = vmul.f32 1.442695, %v903_v57 }
 0x4c5   :  { %v950_v30 = vmul.f32 1.442695, %v904_v21 }
 0x4c6   :  { %5371 = vpow2.f32 %v948_v0 }
 0x4c7   :  { %5373 = vpow2.f32 %v950_v30 }
 0x4c8   :  { %5375 = vrcp.f32 %v6261_v46 }
 0x4c9   :  { %v983_v36 = vpop.xlane.xlu2 %982  ;;  %v6266_v2 = vpop.xlane.xlu1 %880 }
 0x4ca   :  { %5377 = vrcp.f32 %v983_v36  ;;  %v6268_v10 = vpop.xlane.xlu0 %973  ;;  %v1170_v57 = vand.u32 2147483647, %v983_v36  ;;  %v1172_v21 = vand.u32 2147483648, %v983_v36  ;;  %vm1166_vm15 = vweird.f32 %v983_v36 }
 0x4cb   :  { %5379 = vrcp.f32 %v6268_v10  ;;  %v1125_v37 = vand.u32 2147483647, %v6268_v10  ;;  %vm1121_vm5 = vweird.f32 %v6268_v10  ;;  %v1127_v22 = vand.u32 2147483648, %v6268_v10 }
 0x4cc   :  { %v6271_v16 = vpop.eup %5371  ;;  %vm6300_vm3 = vcmp.eq.f32.partialorder %v1170_v57, 8.507059e+37 }
 0x4cd   :  { %v6273_v61 = vpop.eup %5373  ;;  %v1017_v8 = vsel %vm808_vm11, %v6271_v16, 0.0  ;;  %vm6327_vm8 = vcmp.eq.f32.partialorder %v1125_v37, 8.507059e+37 }
 0x4ce   :  { %1018 = vadd.xlane.f32.xlu2 %v1017_v8  ;;  %v1020_v38 = vsel %vm808_vm11, %v6273_v61, 0.0  ;;  %v6279_v18 = vpop.eup %5375 }
 0x4cf   :  { %1021 = vadd.xlane.f32.xlu0 %v1020_v38  ;;  %1619 = vrot.lane.b32.xlu1 %v5982_v14, %s7995_s30  ;;  %v1147_v27 = vmul.f32 %v6279_v18, %v6261_v46  ;;  %v6296_v38 = vmul.f32 1.442695, %v894_v45 }
 0x4d0   :  { %v5378_v56 = vpop.eup %5377 }
 0x4d1   :  { %v6283_v25 = vpop.eup %5379  ;;  %v1162_v29 = vmul.f32 %v5378_v56, %v983_v36  ;;  %v6285_v49 = vpop.xlane.xlu2 %964  ;;  %v1148_v35 = vsub.f32 1.0, %v1147_v27  ;;  %vm1167_vm14 = vweird.f32 %v5378_v56 }
 0x4d2   :  { %v986_v3 = vpop.xlane.xlu1 %985  ;;  %v1117_v40 = vmul.f32 %v6283_v25, %v6268_v10  ;;  %5381 = vrcp.f32 %v6285_v49  ;;  %vm6316_vm6 = vmor %vm1166_vm15, %vm1167_vm14  ;;  %vm1122_vm7 = vweird.f32 %v6283_v25  ;;  %v1080_v24 = vand.u32 2147483647, %v6285_v49 }
 0x4d3   :  { %v1163_v62 = vsub.f32 1.0, %v1162_v29  ;;  %5383 = vrcp.f32 %v986_v3  ;;  %v6313_v36 = vmul.f32 %v6279_v18, %v1148_v35  ;;  %vm6341_vm14 = vmor %vm1121_vm5, %vm1122_vm7  ;;  %vm1181_vm5 = vweird.f32 %v986_v3 }
 0x4d4   :  { %v1118_v14 = vsub.f32 1.0, %v1117_v40  ;;  %vm6352_vm9 = vcmp.eq.f32.partialorder %v1080_v24, 8.507059e+37 }
 0x4d5   :  { %v1164_v28 = vmul.f32 %v5378_v56, %v1163_v62 }
 0x4d6   :  { %v1119_v30 = vmul.f32 %v6283_v25, %v1118_v14  ;;  %v1173_v14 = vor.u32 1.1754944e-38, %v1172_v21 }
 0x4d7   :  { %v1165_v0 = vadd.f32 %v5378_v56, %v1164_v28 }
 0x4d8   :  { %v6294_v8 = vpop.eup %5381  ;;  %v1120_v29 = vadd.f32 %v6283_v25, %v1119_v30  ;;  %v1187_v30 = vand.u32 2147483648, %v986_v3 }
 0x4d9   :  { %v5384_v47 = vpop.eup %5383  ;;  %v1072_v27 = vmul.f32 %v6294_v8, %v6285_v49  ;;  %v6308_v40 = vpop.xlane.xlu2 %976  ;;  %v1169_v57 = vsel %vm6316_vm6, %v5378_v56, %v1165_v0  ;;  %v1082_v56 = vand.u32 2147483648, %v6285_v49  ;;  %v1185_v0 = vand.u32 2147483647, %v986_v3 }
 0x4da   :  { %v6310_v62 = vpop.xlane.xlu1 %967  ;;  %v1177_v28 = vmul.f32 %v5384_v47, %v986_v3  ;;  %5385 = vrcp.f32 %v6308_v40  ;;  %vm1182_vm15 = vweird.f32 %v5384_v47  ;;  %vm1076_vm6 = vweird.f32 %v6285_v49 }
 0x4db   :  { %v1073_v39 = vsub.f32 1.0, %v1072_v27  ;;  %v6325_v32 = vpop.xlane.xlu0 %970  ;;  %5387 = vrcp.f32 %v6310_v62  ;;  %v1174_v27 = vsel %vm6300_vm3, %v1173_v14, %v1169_v57  ;;  %vm1077_vm3 = vweird.f32 %v6294_v8  ;;  %vm1183_vm7 = vmor %vm1181_vm5, %vm1182_vm15 }
 0x4dc   :  { %v1178_v21 = vsub.f32 1.0, %v1177_v28  ;;  %5389 = vrcp.f32 %v6325_v32  ;;  %v1128_v28 = vor.u32 1.1754944e-38, %v1127_v22  ;;  %vm1186_vm0 = vcmp.eq.f32.partialorder %v1185_v0, 8.507059e+37 }
 0x4dd   :  { %v1074_v17 = vmul.f32 %v6294_v8, %v1073_v39  ;;  %v1124_v39 = vsel %vm6341_vm14, %v6283_v25, %v1120_v29  ;;  %v1188_v12 = vor.u32 1.1754944e-38, %v1187_v30  ;;  %v1175_v25 = vmul.f32 %v6191_v1, %v1174_v27  ;;  %vm6359_vm14 = vmor %vm1076_vm6, %vm1077_vm3 }
 0x4de   :  { %v1179_v45 = vmul.f32 %v5384_v47, %v1178_v21  ;;  %v1083_v21 = vor.u32 1.1754944e-38, %v1082_v56  ;;  %vm1136_vm4 = vweird.f32 %v6308_v40  ;;  %v1140_v1 = vand.u32 2147483647, %v6308_v40 }
 0x4df   :  { %v1075_v9 = vadd.f32 %v6294_v8, %v1074_v17  ;;  %v1129_v17 = vsel %vm6327_vm8, %v1128_v28, %v1124_v39  ;;  %vm1091_vm8 = vweird.f32 %v6310_v62  ;;  %v1095_v27 = vand.u32 2147483647, %v6310_v62 }
 0x4e0   :  { %v1180_v14 = vadd.f32 %v5384_v47, %v1179_v45  ;;  %v5386_v57 = vpop.eup %5385  ;;  %v1395_v45 = vpack.c.bf16 %v1175_v25, %v1175_v25  ;;  %v1097_v28 = vand.u32 2147483648, %v6310_v62  ;;  %vm1152_vm5 = vweird.f32 %v6279_v18 }
 0x4e1   :  { %v5388_v29 = vpop.eup %5387  ;;  %v1132_v49 = vmul.f32 %v5386_v57, %v6308_v40  ;;  %v1079_v3 = vsel %vm6359_vm14, %v6294_v8, %v1075_v9  ;;  %vm1151_vm14 = vweird.f32 %v6261_v46  ;;  %5391 = vpow2.f32 %v6296_v38 }
 0x4e2   :  { %v1184_v24 = vsel %vm1183_vm7, %v5384_v47, %v1180_v14  ;;  %v1087_v0 = vmul.f32 %v5388_v29, %v6310_v62  ;;  %v6372_v35 = vpop.eup %5389  ;;  %v1142_v47 = vand.u32 2147483648, %v6308_v40  ;;  %v1084_v39 = vsel %vm6352_vm9, %v1083_v21, %v1079_v3 }
 0x4e3   :  { %v1189_v56 = vsel %vm1186_vm0, %v1188_v12, %v1184_v24  ;;  %1418 = vrot.lane.b32.xlu0 %v5913_v52, %s7995_s30  ;;  %v1133_v30 = vsub.f32 1.0, %v1132_v49  ;;  %v1102_v12 = vmul.f32 %v6372_v35, %v6325_v32  ;;  %vm1137_vm0 = vweird.f32 %v5386_v57 }
 0x4e4   :  { %v1088_v37 = vsub.f32 1.0, %v1087_v0  ;;  %v1190_v8 = vmul.f32 %v6205_v63, %v1189_v56  ;;  %vm1092_vm15 = vweird.f32 %v5388_v29  ;;  %v1143_v49 = vor.u32 1.1754944e-38, %v1142_v47  ;;  %vm1138_vm3 = vmor %vm1136_vm4, %vm1137_vm0 }
 0x4e5   :  { %v1134_v52 = vmul.f32 %v5386_v57, %v1133_v30  ;;  %v1103_v14 = vsub.f32 1.0, %v1102_v12  ;;  %v1534_v0 = vunpack.c.l.b16 %v1395_v45  ;;  %v1130_v63 = vmul.f32 %v6193_v60, %v1129_v17  ;;  %vm1093_vm6 = vmor %vm1091_vm8, %vm1092_vm15 }
 0x4e6   :  { %1659 = vrot.lane.b32.xlu2 %v6015_v33, %s7995_s30  ;;  %v1089_v9 = vmul.f32 %v5388_v29, %v1088_v37  ;;  %v1396_v22 = vpack.c.bf16 %v1190_v8, %v1190_v8  ;;  %v1085_v3 = vmul.f32 %v6207_v41, %v1084_v39  ;;  %vm1141_vm9 = vcmp.eq.f32.partialorder %v1140_v1, 8.507059e+37  ;;  %vm1153_vm0 = vmor %vm1151_vm14, %vm1152_vm5 }
 0x4e7   :  { %v1135_v24 = vadd.f32 %v5386_v57, %v1134_v52  ;;  %v1104_v21 = vmul.f32 %v6372_v35, %v1103_v14  ;;  %v1098_v33 = vor.u32 1.1754944e-38, %v1097_v28  ;;  %vm1096_vm7 = vcmp.eq.f32.partialorder %v1095_v27, 8.507059e+37 }
 0x4e8   :  { %v1090_v10 = vadd.f32 %v5388_v29, %v1089_v9  ;;  %v1535_v25 = vunpack.c.l.b16 %v1396_v22  ;;  %v1392_v37 = vpack.c.bf16 %v1130_v63, %v1130_v63  ;;  %v1150_v12 = vadd.f32 %v6279_v18, %v6313_v36 }
 0x4e9   :  { %v1139_v56 = vsel %vm1138_vm3, %v5386_v57, %v1135_v24  ;;  %v1389_v62 = vpack.c.bf16 %v1085_v3, %v1085_v3  ;;  %v1105_v57 = vadd.f32 %v6372_v35, %v1104_v21  ;;  %vm1107_vm4 = vweird.f32 %v6372_v35 }
 0x4ea   :  { %v1144_v30 = vsel %vm1141_vm9, %v1143_v49, %v1139_v56  ;;  %v1094_v47 = vsel %vm1093_vm6, %v5388_v29, %v1090_v10  ;;  %v1537_v60 = vpack.c.b16 %v1535_v25, %v1534_v0  ;;  %v1155_v1 = vand.u32 2147483647, %v6261_v46  ;;  %v6413_v0 = vpop.eup %5391 }
 0x4eb   :  { %v1099_v40 = vsel %vm1096_vm7, %v1098_v33, %v1094_v47  ;;  %v1145_v17 = vmul.f32 %v6217_v50, %v1144_v30  ;;  %v1112_v50 = vand.u32 2147483648, %v6325_v32  ;;  %vm1106_vm8 = vweird.f32 %v6325_v32 }
 0x4ec   :  { %4880 = vmatmul.msk.bf16.vlgmr.msrb.gmra.mxu2 %vm808_vm11, %v1537_v60  ;;  %v1100_v41 = vmul.f32 %v6215_v54, %v1099_v40  ;;  %v1110_v54 = vand.u32 2147483647, %v6325_v32  ;;  %v1494_v27 = vunpack.c.l.b16 %v1392_v37  ;;  %v1154_v45 = vsel %vm1153_vm0, %v6279_v18, %v1150_v12  ;;  %vm1108_vm15 = vmor %vm1106_vm8, %vm1107_vm4 }
 0x4ed   :  { %v1393_v29 = vpack.c.bf16 %v1145_v17, %v1145_v17  ;;  %v1454_v39 = vunpack.c.l.b16 %v1389_v62  ;;  %v8048_v28 = vand.u32 2147483648, %v6261_v46  ;;  %v1109_v38 = vsel %vm1108_vm15, %v6372_v35, %v1105_v57 }
 0x4ee   :  { %v1390_v36 = vpack.c.bf16 %v1100_v41, %v1100_v41  ;;  %vm1156_vm3 = vcmp.eq.f32.partialorder %v1155_v1, 8.507059e+37  ;;  %v1113_v22 = vor.u32 1.1754944e-38, %v1112_v50  ;;  %vm1111_vm9 = vcmp.eq.f32.partialorder %v1110_v54, 8.507059e+37 }
 0x4ef   :  { %v1495_v8 = vunpack.c.l.b16 %v1393_v29  ;;  %v1158_v9 = vor.u32 1.1754944e-38, %v8048_v28  ;;  %v990_v35 = vsel %vm808_vm11, %v6413_v0, 0.0  ;;  %v895_v10 = vsub.f32 %v6147_v15, %v6253_v42 }
 0x4f0   :  { %v1455_v52 = vunpack.c.l.b16 %v1390_v36  ;;  %v1114_v32 = vsel %vm1111_vm9, %v1113_v22, %v1109_v38  ;;  %v905_v42 = vsub.f32 %v6145_v13, %v6266_v2  ;;  %v852_v60 = vsel %vm815_vm13, %v6151_v19, -inf  ;;  %v1001_v13 = vpop.xlane.xlu1 %1000 }
 0x4f1   :  { %v1497_v14 = vpack.c.b16 %v1495_v8, %v1494_v27  ;;  %v1159_v49 = vsel %vm1156_vm3, %v1158_v9, %v1154_v45  ;;  %v1115_v46 = vmul.f32 %v6223_v58, %v1114_v32  ;;  %v932_v3 = vmul.f32 1.442695, %v895_v10 }
 0x4f2   :  { %v1457_v24 = vpack.c.b16 %v1455_v52, %v1454_v39  ;;  %v1160_v18 = vmul.f32 %v6182_v4, %v1159_v49  ;;  %v899_v4 = vsub.f32 %v6139_v11, %v6232_v6  ;;  %v952_v40 = vmul.f32 1.442695, %v905_v42 }
 0x4f3   :  { %4878 = vmatmul.msk.bf16.vlgmr.msrb.gmra.mxu0 %vm808_vm11, %v1497_v14  ;;  %v1391_v21 = vpack.c.bf16 %v1115_v46, %v1115_v46  ;;  %5393 = vpow2.f32 %v932_v3  ;;  %v902_v6 = vsub.f32 %v6166_v34, %v6242_v31  ;;  %v1260_v28 = vand.u32 2147483647, %v1001_v13 }
 0x4f4   :  { %4876 = vmatmul.msk.bf16.vlgmr.msrb.gmra.mxu1 %vm808_vm11, %v1457_v24  ;;  %v1394_v63 = vpack.c.bf16 %v1160_v18, %v1160_v18  ;;  %v940_v47 = vmul.f32 1.442695, %v899_v4  ;;  %v1262_v22 = vand.u32 2147483648, %v1001_v13  ;;  %vm1256_vm5 = vweird.f32 %v1001_v13 }
 0x4f5   :  { %v1456_v56 = vunpack.c.l.b16 %v1391_v21  ;;  %v946_v2 = vmul.f32 1.442695, %v902_v6  ;;  %vm6485_vm4 = vcmp.eq.f32.partialorder %v1260_v28, 8.507059e+37 }
 0x4f6   :  { %v1496_v25 = vunpack.c.l.b16 %v1394_v63  ;;  %5395 = vpow2.f32 %v940_v47 }
 0x4f7   :  { %v1458_v30 = vpack.c.b16 %v1456_v56, %v1456_v56  ;;  %5397 = vpow2.f32 %v952_v40  ;;  %v1263_v56 = vor.u32 1.1754944e-38, %v1262_v22 }
 0x4f8   :  { %v1498_v33 = vpack.c.b16 %v1496_v25, %v1496_v25  ;;  %5399 = vrcp.f32 %v1001_v13 }
 0x4f9   :  { %991 = vadd.xlane.f32.xlu1 %v990_v35  ;;  %v6426_v58 = vpop.eup %5393  ;;  %5401 = vpow2.f32 %v946_v2 }
 0x4fa   :  { %v993_v15 = vsel %vm808_vm11, %v6426_v58, 0.0  ;;  %5403 = vrcp.f32 %v6196_v23 }
 0x4fb   :  { %5405 = vrcp.f32 %v6255_v43 }
 0x4fc   :  { %v6436_v11 = vpop.eup %5395 }
 0x4fd   :  { %v1005_v17 = vsel %vm815_vm13, %v6436_v11, 0.0  ;;  %v6442_v37 = vpop.eup %5397 }
 0x4fe   :  { %v1023_v12 = vsel %vm815_vm13, %v6442_v37, 0.0 }
 0x503   :  { %4879 = vmatmul.msk.bf16.gmra.mxu0 %vm808_vm11, %v1498_v33 }
 0x504   :  { %4877 = vmatmul.msk.bf16.gmra.mxu1 %vm808_vm11, %v1458_v30 }
 0x50d   :  { %994 = vadd.xlane.f32.xlu0 %v993_v15 }
 0x50f   :  { %853 = vmax.xlane.f32.xlu2 %v852_v60 }
 0x512   :  { %1581 = vrot.lane.b32.xlu1 %v5990_v51, %s7995_s30  ;;  %v6447_v51 = vpop.eup %5399 }
 0x513   :  { %v6455_v31 = vpop.eup %5401  ;;  %v1252_v41 = vmul.f32 %v6447_v51, %v1001_v13  ;;  %vm1257_vm6 = vweird.f32 %v6447_v51 }
 0x514   :  { %v6458_v62 = vpop.eup %5403  ;;  %v1014_v57 = vsel %vm815_vm13, %v6455_v31, 0.0  ;;  %vm6481_vm7 = vmor %vm1256_vm5, %vm1257_vm6 }
 0x515   :  { %v6462_v29 = vpop.eup %5405  ;;  %v1253_v50 = vsub.f32 1.0, %v1252_v41  ;;  %v1027_v36 = vmul.f32 %v6458_v62, %v6196_v23 }
 0x516   :  { %v1042_v27 = vmul.f32 %v6462_v29, %v6255_v43 }
 0x517   :  { %1006 = vadd.xlane.f32.xlu2 %v1005_v17  ;;  %v1254_v45 = vmul.f32 %v6447_v51, %v1253_v50  ;;  %v1028_v39 = vsub.f32 1.0, %v1027_v36 }
 0x518   :  { %v1043_v52 = vsub.f32 1.0, %v1042_v27 }
 0x519   :  { %v1255_v14 = vadd.f32 %v6447_v51, %v1254_v45  ;;  %v1029_v18 = vmul.f32 %v6458_v62, %v1028_v39 }
 0x51a   :  { %v1044_v35 = vmul.f32 %v6462_v29, %v1043_v52 }
 0x51b   :  { %v1259_v3 = vsel %vm6481_vm7, %v6447_v51, %v1255_v14 }
 0x51f   :  { %1024 = vadd.xlane.f32.xlu2 %v1023_v12 }
 0x521   :  { %1579 = vrot.lane.b32.xlu0 %v5996_v20, %s7995_s30  ;;  %v6452_v34 = vpop.xlane.xlu2 %1009 }
 0x522   :  { %5407 = vrcp.f32 %v6452_v34  ;;  %v1305_v4 = vand.u32 2147483647, %v6452_v34  ;;  %v1307_v12 = vand.u32 2147483648, %v6452_v34  ;;  %vm1301_vm6 = vweird.f32 %v6452_v34 }
 0x524   :  { %v1308_v28 = vor.u32 1.1754944e-38, %v1307_v12 }
 0x527   :  { %1015 = vadd.xlane.f32.xlu2 %v1014_v57 }
 0x528   :  { %v6464_v1 = vpop.eup %5407 }
 0x529   :  { %v989_v20 = vpop.xlane.xlu1 %988  ;;  %v1297_v8 = vmul.f32 %v6464_v1, %v6452_v34  ;;  %vm1302_vm8 = vweird.f32 %v6464_v1 }
 0x52a   :  { %5409 = vrcp.f32 %v989_v20  ;;  %v1013_v54 = vpop.xlane.xlu0 %1012  ;;  %v1202_v30 = vand.u32 2147483648, %v989_v20  ;;  %v1200_v15 = vand.u32 2147483647, %v989_v20  ;;  %vm1196_vm15 = vweird.f32 %v989_v20  ;;  %vm6511_vm2 = vmor %vm1301_vm6, %vm1302_vm8 }
 0x52b   :  { %5411 = vrcp.f32 %v1013_v54  ;;  %v1298_v9 = vsub.f32 1.0, %v1297_v8  ;;  %v1322_v60 = vand.u32 2147483648, %v1013_v54  ;;  %v1320_v17 = vand.u32 2147483647, %v1013_v54 }
 0x52c   :  { %5413 = vrcp.f32 %v6240_v7  ;;  %vm1316_vm3 = vweird.f32 %v1013_v54  ;;  %v1203_v41 = vor.u32 1.1754944e-38, %v1202_v30  ;;  %vm1201_vm7 = vcmp.eq.f32.partialorder %v1200_v15, 8.507059e+37 }
 0x52d   :  { %v1299_v21 = vmul.f32 %v6464_v1, %v1298_v9  ;;  %v1323_v27 = vor.u32 1.1754944e-38, %v1322_v60 }
 0x52f   :  { %v1300_v6 = vadd.f32 %v6464_v1, %v1299_v21  ;;  %v1045_v21 = vadd.f32 %v6462_v29, %v1044_v35 }
 0x530   :  { %v5410_v38 = vpop.eup %5409 }
 0x531   :  { %v5412_v24 = vpop.eup %5411  ;;  %v1192_v49 = vmul.f32 %v5410_v38, %v989_v20  ;;  %v6476_v32 = vpop.xlane.xlu2 %1003  ;;  %vm1197_vm14 = vweird.f32 %v5410_v38  ;;  %v1264_v20 = vsel %vm6485_vm4, %v1263_v56, %v1259_v3  ;;  %v1304_v45 = vsel %vm6511_vm2, %v6464_v1, %v1300_v6 }
 0x532   :  { %v1312_v46 = vmul.f32 %v5412_v24, %v1013_v54  ;;  %5415 = vrcp.f32 %v6476_v32  ;;  %vm1317_vm0 = vweird.f32 %v5412_v24  ;;  %v6495_v40 = vpop.eup %5413  ;;  %vm1198_vm9 = vmor %vm1196_vm15, %vm1197_vm14  ;;  %vm1321_vm14 = vcmp.eq.f32.partialorder %v1320_v17, 8.507059e+37 }
 0x533   :  { %v1193_v25 = vsub.f32 1.0, %v1192_v49  ;;  %vm6501_vm5 = vmor %vm1316_vm3, %vm1317_vm0  ;;  %vm1306_vm4 = vcmp.eq.f32.partialorder %v1305_v4, 8.507059e+37  ;;  %v1275_v22 = vand.u32 2147483647, %v6476_v32  ;;  %v1030_v49 = vadd.f32 %v6458_v62, %v1029_v18 }
 0x534   :  { %v1313_v33 = vsub.f32 1.0, %v1312_v46  ;;  %vm1032_vm0 = vweird.f32 %v6458_v62  ;;  %v1037_v1 = vand.u32 2147483648, %v6196_v23  ;;  %v1309_v46 = vsel %vm1306_vm4, %v1308_v28, %v1304_v45 }
 0x535   :  { %v1194_v47 = vmul.f32 %v5410_v38, %v1193_v25  ;;  %vm1271_vm2 = vweird.f32 %v6476_v32  ;;  %vm1047_vm15 = vweird.f32 %v6462_v29  ;;  %v1265_v3 = vmul.f32 %v6227_v59, %v1264_v20  ;;  %vm6543_vm6 = vmor %vm1031_vm1, %vm1032_vm0 }
 0x536   :  { %v1314_v42 = vmul.f32 %v5412_v24, %v1313_v33  ;;  %v1310_v4 = vmul.f32 %v6236_v53, %v1309_v46  ;;  %v1050_v53 = vand.u32 2147483647, %v6255_v43  ;;  %v1038_v17 = vor.u32 1.1754944e-38, %v1037_v1 }
 0x537   :  { %v1195_v13 = vadd.f32 %v5410_v38, %v1194_v47  ;;  %v1401_v6 = vpack.c.bf16 %v1265_v3, %v1265_v3  ;;  %vm1061_vm0 = vweird.f32 %v6240_v7 }
 0x538   :  { %v5416_v2 = vpop.eup %5415  ;;  %v1315_v51 = vadd.f32 %v5412_v24, %v1314_v42  ;;  %v1034_v42 = vsel %vm6543_vm6, %v6458_v62, %v1030_v49 }
 0x539   :  { %v1267_v50 = vmul.f32 %v5416_v2, %v6476_v32  ;;  %v1199_v36 = vsel %vm1198_vm9, %v5410_v38, %v1195_v13  ;;  %v1277_v38 = vand.u32 2147483648, %v6476_v32  ;;  %vm1272_vm8 = vweird.f32 %v5416_v2 }
 0x53a   :  { %v1319_v34 = vsel %vm6501_vm5, %v5412_v24, %v1315_v51  ;;  %v1204_v8 = vsel %vm1201_vm7, %v1203_v41, %v1199_v36  ;;  %vm1273_vm3 = vmor %vm1271_vm2, %vm1272_vm8  ;;  %vm1276_vm9 = vcmp.eq.f32.partialorder %v1275_v22, 8.507059e+37  ;;  %v1035_v32 = vand.u32 2147483647, %v6196_v23 }
 0x53b   :  { %v1268_v39 = vsub.f32 1.0, %v1267_v50  ;;  %v1205_v52 = vmul.f32 %v6245_v48, %v1204_v8  ;;  %v1324_v9 = vsel %vm1321_vm14, %v1323_v27, %v1319_v34  ;;  %v1278_v25 = vor.u32 1.1754944e-38, %v1277_v38 }
 0x53c   :  { %v1325_v10 = vmul.f32 %v6247_v26, %v1324_v9  ;;  %v1052_v26 = vand.u32 2147483648, %v6255_v43  ;;  %vm1046_vm5 = vweird.f32 %v6255_v43  ;;  %v1057_v23 = vmul.f32 %v6495_v40, %v6240_v7 }
 0x53d   :  { %v1269_v14 = vmul.f32 %v5416_v2, %v1268_v39  ;;  %v1397_v24 = vpack.c.bf16 %v1205_v52, %v1205_v52  ;;  %vm1048_vm1 = vmor %vm1046_vm5, %vm1047_vm15  ;;  %v1404_v13 = vpack.c.bf16 %v1310_v4, %v1310_v4  ;;  %vm1036_vm7 = vcmp.eq.f32.partialorder %v1035_v32, 8.507059e+37 }
 0x53e   :  { %v1405_v15 = vpack.c.bf16 %v1325_v10, %v1325_v10  ;;  %v1049_v43 = vsel %vm1048_vm1, %v6462_v29, %v1045_v21  ;;  %v1039_v51 = vsel %vm1036_vm7, %v1038_v17, %v1034_v42  ;;  %vm1051_vm14 = vcmp.eq.f32.partialorder %v1050_v53, 8.507059e+37 }
 0x53f   :  { %v1270_v63 = vadd.f32 %v5416_v2, %v1269_v14  ;;  %v1536_v48 = vunpack.c.l.b16 %v1397_v24  ;;  %v1058_v57 = vsub.f32 1.0, %v1057_v23  ;;  %v1614_v36 = vunpack.c.l.b16 %v1401_v6 }
 0x540   :  { %v1655_v41 = vunpack.c.l.b16 %v1405_v15  ;;  %v1654_v27 = vunpack.c.l.b16 %v1404_v13  ;;  %v1040_v45 = vmul.f32 %v6120_v5, %v1039_v51 }
 0x541   :  { %v1274_v18 = vsel %vm1273_vm3, %v5416_v2, %v1270_v63  ;;  %v6531_v56 = vpop.xlane.xlu2 %1018  ;;  %v1620_v33 = vpop.permute.xlu1 %1619  ;;  %v1538_v30 = vpack.c.b16 %v1536_v48, %v1536_v48  ;;  %v1053_v2 = vor.u32 1.1754944e-38, %v1052_v26  ;;  %v1059_v9 = vmul.f32 %v6495_v40, %v1058_v57 }
 0x542   :  { %v1279_v47 = vsel %vm1276_vm9, %v1278_v25, %v1274_v18  ;;  %5417 = vrcp.f32 %v6531_v56  ;;  %v6537_v35 = vpop.xlane.xlu0 %1021  ;;  %1640 = vmatpush.bf16.msra.mxu1 %v1620_v33  ;;  %v1657_v52 = vpack.c.b16 %v1655_v41, %v1654_v27  ;;  %v1352_v38 = vand.u32 2147483648, %v6531_v56 }
 0x543   :  { %5419 = vrcp.f32 %v6537_v35  ;;  %4881 = vmatmul.msk.bf16.gmra.mxu2 %vm808_vm11, %v1538_v30  ;;  %v1280_v60 = vmul.f32 %v6257_v55, %v1279_v47  ;;  %v1054_v50 = vsel %vm1051_vm14, %v1053_v2, %v1049_v43  ;;  %v1350_v24 = vand.u32 2147483647, %v6531_v56  ;;  %v8059_v43 = vld [vmem:[#allocation11_spill] sm:$0xff] }
 0x544   :  { %v1055_v28 = vmul.f32 %v6172_v44, %v1054_v50  ;;  %v1367_v49 = vand.u32 2147483648, %v6537_v35  ;;  %v1365_v1 = vand.u32 2147483647, %v6537_v35  ;;  %v1386_v44 = vpack.c.bf16 %v1040_v45, %v1040_v45 }
 0x545   :  { %v1402_v12 = vpack.c.bf16 %v1280_v60, %v1280_v60  ;;  %vm1346_vm2 = vweird.f32 %v6531_v56  ;;  %v1353_v48 = vor.u32 1.1754944e-38, %v1352_v38  ;;  %vm1361_vm3 = vweird.f32 %v6537_v35 }
 0x546   :  { %v1387_v63 = vpack.c.bf16 %v1055_v28, %v1055_v28  ;;  %vm1062_vm9 = vweird.f32 %v6495_v40  ;;  %vm1351_vm6 = vcmp.eq.f32.partialorder %v1350_v24, 8.507059e+37  ;;  %v1368_v25 = vor.u32 1.1754944e-38, %v1367_v49 }
 0x547   :  { %v1615_v20 = vunpack.c.l.b16 %v1402_v12  ;;  %v1060_v3 = vadd.f32 %v6495_v40, %v1059_v9  ;;  %vm1366_vm1 = vcmp.eq.f32.partialorder %v1365_v1, 8.507059e+37  ;;  %v1067_v30 = vand.u32 2147483648, %v6240_v7  ;;  %vm1063_vm7 = vmor %vm1061_vm0, %vm1062_vm9 }
 0x548   :  { %v5418_v62 = vpop.eup %5417  ;;  %v1414_v4 = vunpack.c.l.b16 %v1387_v63  ;;  %v1065_v26 = vand.u32 2147483647, %v6240_v7  ;;  %v1413_v59 = vunpack.c.l.b16 %v1386_v44 }
 0x549   :  { %v5420_v54 = vpop.eup %5419  ;;  %v1342_v34 = vmul.f32 %v5418_v62, %v6531_v56  ;;  %v1660_v55 = vpop.permute.xlu2 %1659  ;;  %v1617_v29 = vpack.c.b16 %v1615_v20, %v1614_v36  ;;  %vm1347_vm4 = vweird.f32 %v5418_v62  ;;  %v1064_v15 = vsel %vm1063_vm7, %v6495_v40, %v1060_v3 }
 0x54a   :  { %v1357_v8 = vmul.f32 %v5420_v54, %v6537_v35  ;;  %1680 = vmatpush.bf16.msra.mxu0 %v1660_v55  ;;  %vm1362_vm8 = vweird.f32 %v5420_v54  ;;  %vm1348_vm15 = vmor %vm1346_vm2, %vm1347_vm4  ;;  %v1068_v23 = vor.u32 1.1754944e-38, %v1067_v30  ;;  %v1416_v60 = vpack.c.b16 %v1414_v4, %v1413_v59 }
 0x54b   :  { %v1343_v39 = vsub.f32 1.0, %v1342_v34  ;;  %4884 = vmatmul.msk.bf16.vlgmr.msra.gmra.mxu1 %vm808_vm11, %v1617_v29  ;;  %vm1363_vm5 = vmor %vm1361_vm3, %vm1362_vm8  ;;  %vm1066_vm14 = vcmp.eq.f32.partialorder %v1065_v26, 8.507059e+37 }
 0x54c   :  { %v1358_v14 = vsub.f32 1.0, %v1357_v8  ;;  %v1069_v17 = vsel %vm1066_vm14, %v1068_v23, %v1064_v15 }
 0x54d   :  { %v1344_v22 = vmul.f32 %v5418_v62, %v1343_v39  ;;  %4886 = vmatmul.msk.bf16.vlgmr.msra.gmra.mxu0 %vm808_vm11, %v1657_v52  ;;  %v1070_v13 = vmul.f32 %v8059_v43, %v1069_v17 }
 0x54e   :  { %v1359_v5 = vmul.f32 %v5420_v54, %v1358_v14 }
 0x54f   :  { %v1345_v46 = vadd.f32 %v5418_v62, %v1344_v22  ;;  %v1388_v7 = vpack.c.bf16 %v1070_v13, %v1070_v13 }
 0x550   :  { %v1360_v10 = vadd.f32 %v5420_v54, %v1359_v5 }
 0x551   :  { %v1349_v21 = vsel %vm1348_vm15, %v5418_v62, %v1345_v46  ;;  %v1415_v2 = vunpack.c.l.b16 %v1388_v7 }
 0x552   :  { %v1354_v18 = vsel %vm1351_vm6, %v1353_v48, %v1349_v21  ;;  %v1364_v33 = vsel %vm1363_vm5, %v5420_v54, %v1360_v10 }
 0x553   :  { %v1369_v56 = vsel %vm1366_vm1, %v1368_v25, %v1364_v33  ;;  %v1355_v32 = vmul.f32 %v6271_v16, %v1354_v18  ;;  %v1417_v12 = vpack.c.b16 %v1415_v2, %v1415_v2 }
 0x554   :  { %v1370_v47 = vmul.f32 %v6273_v61, %v1369_v56 }
 0x555   :  { %v1419_v35 = vpop.permute.xlu0 %1418  ;;  %v1407_v53 = vpack.c.bf16 %v1355_v32, %v1355_v32 }
 0x556   :  { %1440 = vmatpush.bf16.msra.mxu3 %v1419_v35  ;;  %v1408_v42 = vpack.c.bf16 %v1370_v47, %v1370_v47 }
 0x557   :  { %v1694_v6 = vunpack.c.l.b16 %v1407_v53 }
 0x558   :  { %v1695_v16 = vunpack.c.l.b16 %v1408_v42 }
 0x559   :  { %4874 = vmatmul.msk.bf16.vlgmr.msra.gmra.mxu3 %vm808_vm11, %v1416_v60 }
 0x55a   :  { %v1697_v61 = vpack.c.b16 %v1695_v16, %v1694_v6 }
 0x55c   :  { %4888 = vmatmul.msk.bf16.vlgmr.msra.gmra.mxu2 %vm808_vm11, %v1697_v61 }
 0x569   :  { %4875 = vmatmul.msk.bf16.gmra.mxu3 %vm808_vm11, %v1417_v12 }
 0x56c   :  { %v992_v40 = vpop.xlane.xlu1 %991 }
 0x56d   :  { %5421 = vrcp.f32 %v992_v40  ;;  %v1217_v14 = vand.u32 2147483648, %v992_v40  ;;  %vm1211_vm8 = vweird.f32 %v992_v40  ;;  %v1215_v24 = vand.u32 2147483647, %v992_v40 }
 0x56f   :  { %v1562_v57 = vpop.f32.mrf.mxu2  ;;  %v1218_v46 = vor.u32 1.1754944e-38, %v1217_v14  ;;  %vm1216_vm2 = vcmp.eq.f32.partialorder %v1215_v24, 8.507059e+37 }
 0x570   :  { %v1522_v51 = vpop.f32.mrf.mxu0 }
 0x571   :  { %v1482_v41 = vpop.f32.mrf.mxu1 }
 0x573   :  { %v5422_v62 = vpop.eup %5421 }
 0x574   :  { %v1207_v50 = vmul.f32 %v5422_v62, %v992_v40  ;;  %vm1212_vm4 = vweird.f32 %v5422_v62 }
 0x575   :  { %vm1213_vm0 = vmor %vm1211_vm8, %vm1212_vm4 }
 0x576   :  { %v1208_v34 = vsub.f32 1.0, %v1207_v50 }
 0x577   :  { %v1564_v8 = vpop.f32.mrf.mxu2 }
 0x578   :  { %v1524_v36 = vpop.f32.mrf.mxu0  ;;  %v1209_v27 = vmul.f32 %v5422_v62, %v1208_v34  ;;  %v5217_v9 = vpack.i.bf16 %v1564_v8, %v1562_v57 }
 0x579   :  { %v5207_v20 = vpack.i.bf16 %v1524_v36, %v1522_v51  ;;  %v1484_v54 = vpop.f32.mrf.mxu1 }
 0x57a   :  { %v5212_v55 = vpack.i.bf16 %v1484_v54, %v1482_v41  ;;  %v1210_v28 = vadd.f32 %v5422_v62, %v1209_v27 }
 0x57b   :  { %5208 = vrot.lane.b32.xlu2 %v5207_v20, %s7999_s9 }
 0x57c   :  { %5213 = vrot.lane.b32.xlu1 %v5212_v55, %s8003_s5  ;;  %v1214_v44 = vsel %vm1213_vm0, %v5422_v62, %v1210_v28 }
 0x57d   :  { %v1219_v48 = vsel %vm1216_vm2, %v1218_v46, %v1214_v44 }
 0x57e   :  { %v1220_v56 = vmul.f32 %v6413_v0, %v1219_v48 }
 0x580   :  { %v995_v29 = vpop.xlane.xlu0 %994  ;;  %v1527_v45 = vpop.f32.mrf.mxu0  ;;  %v1398_v53 = vpack.c.bf16 %v1220_v56, %v1220_v56 }
 0x581   :  { %5423 = vrcp.f32 %v995_v29  ;;  %v1487_v39 = vpop.f32.mrf.mxu1  ;;  %v1232_v3 = vand.u32 2147483648, %v995_v29  ;;  %v1230_v33 = vand.u32 2147483647, %v995_v29  ;;  %vm1226_vm3 = vweird.f32 %v995_v29 }
 0x582   :  { %v854_v52 = vpop.xlane.xlu2 %853  ;;  %v1574_v16 = vunpack.c.l.b16 %v1398_v53 }
 0x583   :  { %v896_v38 = vsub.f32 %v6151_v19, %v854_v52  ;;  %1738 = vrot.lane.b32.xlu2 %v1487_v39, %s8003_s5  ;;  %v1233_v26 = vor.u32 1.1754944e-38, %v1232_v3  ;;  %vm1231_vm6 = vcmp.eq.f32.partialorder %v1230_v33, 8.507059e+37 }
 0x584   :  { %v1582_v22 = vpop.permute.xlu1 %1581  ;;  %5218 = vrot.lane.b32.xlu1 %v5217_v9, %s8001_s0 }
 0x585   :  { %v934_v49 = vmul.f32 1.442695, %v896_v38  ;;  %v1591_v5 = vsel %vm1429_vm12, %v1582_v22, 0 }
 0x586   :  { %1599 = vmatpush.bf16.msrb.mxu3 %v1591_v5 }
 0x587   :  { %v5424_v1 = vpop.eup %5423  ;;  %5425 = vpow2.f32 %v934_v49 }
 0x588   :  { %v1222_v63 = vmul.f32 %v5424_v1, %v995_v29  ;;  %v1529_v19 = vpop.f32.mrf.mxu0  ;;  %vm1227_vm15 = vweird.f32 %v5424_v1 }
 0x589   :  { %v1489_v21 = vpop.f32.mrf.mxu1  ;;  %vm1228_vm9 = vmor %vm1226_vm3, %vm1227_vm15 }
 0x58a   :  { %v1223_v10 = vsub.f32 1.0, %v1222_v63  ;;  %v1007_v25 = vpop.xlane.xlu2 %1006 }
 0x58b   :  { %5427 = vrcp.f32 %v1007_v25  ;;  %1750 = vrot.lane.b32.xlu2 %v1527_v45, %s7999_s9  ;;  %v1292_v17 = vand.u32 2147483648, %v1007_v25  ;;  %v1290_v13 = vand.u32 2147483647, %v1007_v25  ;;  %vm1286_vm1 = vweird.f32 %v1007_v25 }
 0x58c   :  { %v1224_v18 = vmul.f32 %v5424_v1, %v1223_v10 }
 0x58d   :  { %v6596_v30 = vpop.eup %5425  ;;  %v1293_v40 = vor.u32 1.1754944e-38, %v1292_v17  ;;  %vm1291_vm14 = vcmp.eq.f32.partialorder %v1290_v13, 8.507059e+37 }
 0x58e   :  { %v1225_v4 = vadd.f32 %v5424_v1, %v1224_v18  ;;  %v996_v32 = vsel %vm815_vm13, %v6596_v30, 0.0 }
 0x58f   :  { %997 = vadd.xlane.f32.xlu0 %v996_v32 }
 0x590   :  { %v1229_v47 = vsel %vm1228_vm9, %v5424_v1, %v1225_v4 }
 0x591   :  { %v5428_v35 = vpop.eup %5427  ;;  %v1234_v59 = vsel %vm1231_vm6, %v1233_v26, %v1229_v47 }
 0x592   :  { %v1282_v15 = vmul.f32 %v5428_v35, %v1007_v25  ;;  %v1025_v42 = vpop.xlane.xlu2 %1024  ;;  %v1235_v23 = vmul.f32 %v6426_v58, %v1234_v59  ;;  %vm1287_vm5 = vweird.f32 %v5428_v35 }
 0x593   :  { %5429 = vrcp.f32 %v1025_v42  ;;  %v1580_v60 = vpop.permute.xlu0 %1579  ;;  %vm1288_vm7 = vmor %vm1286_vm1, %vm1287_vm5  ;;  %v1382_v36 = vand.u32 2147483648, %v1025_v42  ;;  %v1380_v34 = vand.u32 2147483647, %v1025_v42  ;;  %vm1376_vm8 = vweird.f32 %v1025_v42 }
 0x594   :  { %v1283_v0 = vsub.f32 1.0, %v1282_v15  ;;  %1600 = vmatpush.bf16.msrb.mxu3 %v1580_v60  ;;  %v1399_v6 = vpack.c.bf16 %v1235_v23, %v1235_v23  ;;  %v5122_v23 = vld [vmem:[%s8060_s11 + $0x8] sm:$0xff] }
 0x595   :  { %v1383_v29 = vor.u32 1.1754944e-38, %v1382_v36  ;;  %vm1381_vm2 = vcmp.eq.f32.partialorder %v1380_v34, 8.507059e+37 }
 0x596   :  { %v1284_v61 = vmul.f32 %v5428_v35, %v1283_v0  ;;  %v1575_v43 = vunpack.c.l.b16 %v1399_v6  ;;  %v5121_v0 = vld [vmem:[%s8060_s11] sm:$0xff] }
 0x598   :  { %v1577_v7 = vpack.c.b16 %v1575_v43, %v1574_v16  ;;  %v1285_v2 = vadd.f32 %v5428_v35, %v1284_v61  ;;  %1873 = vmatpush.bf16.msra.mxu3 %v5122_v23 }
 0x599   :  { %v5430_v12 = vpop.eup %5429 }
 0x59a   :  { %v1372_v51 = vmul.f32 %v5430_v12, %v1025_v42  ;;  %4882 = vmatmul.msk.bf16.vlgmr.msrb.gmra.mxu3 %vm808_vm11, %v1577_v7  ;;  %v1016_v58 = vpop.xlane.xlu2 %1015  ;;  %v1289_v41 = vsel %vm1288_vm7, %v5428_v35, %v1285_v2  ;;  %vm1377_vm4 = vweird.f32 %v5430_v12 }
 0x59b   :  { %5431 = vrcp.f32 %v1016_v58  ;;  %v1294_v62 = vsel %vm1291_vm14, %v1293_v40, %v1289_v41  ;;  %vm1378_vm0 = vmor %vm1376_vm8, %vm1377_vm4  ;;  %v1337_v38 = vand.u32 2147483648, %v1016_v58  ;;  %v1335_v24 = vand.u32 2147483647, %v1016_v58 }
 0x59c   :  { %v1373_v57 = vsub.f32 1.0, %v1372_v51  ;;  %v1295_v50 = vmul.f32 %v6436_v11, %v1294_v62  ;;  %vm1331_vm3 = vweird.f32 %v1016_v58  ;;  %1874 = vmatpush.bf16.msra.mxu3 %v5121_v0  ;;  %vm8007_vm4 = vcmask 195584  }
 0x59d   :  { %v1338_v1 = vor.u32 1.1754944e-38, %v1337_v38  ;;  %vm1336_vm6 = vcmp.eq.f32.partialorder %v1335_v24, 8.507059e+37  ;;  %vm1770_vm8 = vcmask 130048  }
 0x59e   :  { %v1374_v20 = vmul.f32 %v5430_v12, %v1373_v57  ;;  %v1403_v54 = vpack.c.bf16 %v1295_v50, %v1295_v50 }
 0x5a0   :  { %v1616_v55 = vunpack.c.l.b16 %v1403_v54  ;;  %v1375_v27 = vadd.f32 %v5430_v12, %v1374_v20 }
 0x5a1   :  { %v5432_v8 = vpop.eup %5431 }
 0x5a2   :  { %v1327_v45 = vmul.f32 %v5432_v8, %v1016_v58  ;;  %v1618_v39 = vpack.c.b16 %v1616_v55, %v1616_v55  ;;  %v1379_v52 = vsel %vm1378_vm0, %v5430_v12, %v1375_v27  ;;  %vm1332_vm15 = vweird.f32 %v5432_v8 }
 0x5a3   :  { %v1384_v28 = vsel %vm1381_vm2, %v1383_v29, %v1379_v52  ;;  %vm1333_vm9 = vmor %vm1331_vm3, %vm1332_vm15  ;;  %vm8061_vm0 = vcmask 261120   ;;  %vm8062_vm2 = vcmask 1041408  }
 0x5a4   :  { %v1328_v9 = vsub.f32 1.0, %v1327_v45  ;;  %4885 = vmatmul.msk.bf16.gmra.mxu1 %vm808_vm11, %v1618_v39  ;;  %v1385_v11 = vmul.f32 %v6442_v37, %v1384_v28  ;;  %vm8063_vm15 = vmmov %vm8062_vm2 }
 0x5a5   :  { %vm8064_vm3 = vmmov %vm8061_vm0 }
 0x5a6   :  { %v1329_v14 = vmul.f32 %v5432_v8, %v1328_v9  ;;  %v1409_v22 = vpack.c.bf16 %v1385_v11, %v1385_v11 }
 0x5a8   :  { %v1696_v49 = vunpack.c.l.b16 %v1409_v22  ;;  %v1330_v5 = vadd.f32 %v5432_v8, %v1329_v14 }
 0x5aa   :  { %v1698_v44 = vpack.c.b16 %v1696_v49, %v1696_v49  ;;  %v1334_v46 = vsel %vm1333_vm9, %v5432_v8, %v1330_v5  ;;  %vm8065_vm9 = vmmov %vm8062_vm2 }
 0x5ab   :  { %v1339_v63 = vsel %vm1336_vm6, %v1338_v1, %v1334_v46  ;;  %vm8066_vm6 = vmmov %vm8061_vm0 }
 0x5ac   :  { %4889 = vmatmul.msk.bf16.gmra.mxu2 %vm808_vm11, %v1698_v44  ;;  %v1340_v19 = vmul.f32 %v6455_v31, %v1339_v63 }
 0x5ae   :  { %v1406_v48 = vpack.c.bf16 %v1340_v19, %v1340_v19 }
 0x5b0   :  { %v1656_v37 = vunpack.c.l.b16 %v1406_v48 }
 0x5b2   :  { %v1658_v10 = vpack.c.b16 %v1656_v37, %v1656_v37 }
 0x5b4   :  { %4887 = vmatmul.msk.bf16.gmra.mxu0 %vm808_vm11, %v1658_v10 }
 0x5c6   :  { %v1567_v21 = vpop.f32.mrf.mxu2 }
 0x5c7   :  { %1762 = vrot.lane.b32.xlu0 %v1567_v21, %s8001_s0 }
 0x5c8   :  { %v1642_v3 = vpop.f32.mrf.mxu1 }
 0x5ca   :  { %v1682_v25 = vpop.f32.mrf.mxu0 }
 0x5ce   :  { %v1569_v18 = vpop.f32.mrf.mxu2 }
 0x5d0   :  { %v1644_v4 = vpop.f32.mrf.mxu1 }
 0x5d1   :  { %v5227_v32 = vpack.i.bf16 %v1644_v4, %v1642_v3 }
 0x5d2   :  { %v1684_v33 = vpop.f32.mrf.mxu0 }
 0x5d3   :  { %v5222_v56 = vpack.i.bf16 %v1684_v33, %v1682_v25 }
 0x5d5   :  { %5223 = vrot.lane.b32.xlu1 %v5222_v56, %s7999_s9  ;;  %v5209_v20 = vpop.permute.xlu2 %5208 }
 0x5d6   :  { %v5210_v29 = vunpack.i.l.bf16 %v5209_v20 }
 0x5dc   :  { %v1442_v26 = vpop.f32.mrf.mxu3 }
 0x5dd   :  { %5228 = vrot.lane.b32.xlu1 %v5227_v32, %s8003_s5  ;;  %v1739_v44 = vpop.permute.xlu2 %1738 }
 0x5df   :  { %v1722_v31 = vpop.f32.mrf.mxu2 }
 0x5e4   :  { %v1444_v47 = vpop.f32.mrf.mxu3 }
 0x5e7   :  { %v1724_v35 = vpop.f32.mrf.mxu2 }
 0x5e8   :  { %v5232_v59 = vpack.i.bf16 %v1724_v35, %v1722_v31 }
 0x5ea   :  { %5233 = vrot.lane.b32.xlu1 %v5232_v59, %s8001_s0 }
 0x5ec   :  { %v6613_v53 = vpop.f32.mrf.mxu3 }
 0x5ed   :  { %v1769_v3 = vsel %vm483_vm10, %v6613_v53, %v1739_v44  ;;  %v8076_v44 = vld [vmem:[#allocation8_spill] sm:$0xff] }
 0x5ee   :  { %v5214_v51 = vpop.permute.xlu1 %5213 }
 0x5ef   :  { %v5216_v57 = vunpack.i.h.bf16 %v5214_v51  ;;  %v5215_v50 = vunpack.i.l.bf16 %v5214_v51  ;;  %v5308_v51 = vld [vmem:[%s7957_s12] ss:$0 sm:$0xff] }
 0x5f1   :  { %v1767_v34 = vsel %vm483_vm10, %v1442_v26, %v5215_v50  ;;  %v1768_v55 = vsel %vm483_vm10, %v1444_v47, %v5216_v57  ;;  %v1751_v26 = vpop.permute.xlu2 %1750 }
 0x5f2   :  { %v1771_v45 = vsel %vm1770_vm8, %v1767_v34, %v5210_v29  ;;  %v1773_v35 = vsel %vm1770_vm8, %v1769_v3, %v1751_v26 }
 0x5f4   :  { %v1449_v15 = vpop.f32.mrf.mxu3 }
 0x5f6   :  { %v5219_v36 = vpop.permute.xlu1 %5218 }
 0x5f7   :  { %v5221_v27 = vunpack.i.h.bf16 %v5219_v36  ;;  %v5220_v8 = vunpack.i.l.bf16 %v5219_v36 }
 0x5f9   :  { %v1775_v52 = vsel %vm8007_vm4, %v1771_v45, %v5220_v8 }
 0x602   :  { %v998_v42 = vpop.xlane.xlu0 %997 }
 0x603   :  { %5433 = vrcp.f32 %v998_v42  ;;  %v1247_v17 = vand.u32 2147483648, %v998_v42  ;;  %v1245_v43 = vand.u32 2147483647, %v998_v42  ;;  %vm1241_vm1 = vweird.f32 %v998_v42 }
 0x605   :  { %v1248_v7 = vor.u32 1.1754944e-38, %v1247_v17  ;;  %vm1246_vm14 = vcmp.eq.f32.partialorder %v1245_v43, 8.507059e+37 }
 0x609   :  { %v5434_v60 = vpop.eup %5433 }
 0x60a   :  { %v1237_v6 = vmul.f32 %v5434_v60, %v998_v42  ;;  %vm1242_vm5 = vweird.f32 %v5434_v60 }
 0x60b   :  { %vm1243_vm7 = vmor %vm1241_vm1, %vm1242_vm5 }
 0x60c   :  { %v1238_v16 = vsub.f32 1.0, %v1237_v6  ;;  %vm8068_vm5 = vmmov %vm8061_vm0 }
 0x60d   :  { %vm8070_vm1 = vmmov %vm8061_vm0 }
 0x60e   :  { %v1239_v61 = vmul.f32 %v5434_v60, %v1238_v16 }
 0x610   :  { %v1240_v13 = vadd.f32 %v5434_v60, %v1239_v61 }
 0x612   :  { %v1244_v2 = vsel %vm1243_vm7, %v5434_v60, %v1240_v13  ;;  %vm8072_vm7 = vmmov %vm8061_vm0 }
 0x613   :  { %v1249_v12 = vsel %vm1246_vm14, %v1248_v7, %v1244_v2  ;;  %vm8074_vm14 = vmmov %vm8061_vm0 }
 0x614   :  { %v1250_v40 = vmul.f32 %v6596_v30, %v1249_v12  ;;  %v5211_v30 = vunpack.i.h.bf16 %v5209_v20 }
 0x616   :  { %v1400_v58 = vpack.c.bf16 %v1250_v40, %v1250_v40  ;;  %v1772_v39 = vsel %vm1770_vm8, %v1768_v55, %v5211_v30  ;;  %v8071_v30 = vld [vmem:[#allocation7_spill] sm:$0xff] }
 0x617   :  { %v1776_v28 = vsel %vm8007_vm4, %v1772_v39, %v5221_v27 }
 0x618   :  { %v1576_v41 = vunpack.c.l.b16 %v1400_v58  ;;  %v1835_v11 = vpack.c.bf16 %v1776_v28, %v1775_v52  ;;  %v8073_v28 = vld [vmem:[#allocation9_spill] sm:$0xff] }
 0x61a   :  { %v1578_v62 = vpack.c.b16 %v1576_v41, %v1576_v41 }
 0x61c   :  { %4883 = vmatmul.msk.bf16.gmra.mxu3 %vm808_vm11, %v1578_v62  ;;  %v8067_v62 = vld [vmem:[#allocation5_spill] sm:$0xff] }
 0x61d   :  { %v1602_v5 = vpop.f32.mrf.mxu3 }
 0x621   :  { %v1647_v54 = vpop.f32.mrf.mxu1 }
 0x622   :  { %1785 = vrot.lane.b32.xlu1 %v1647_v54, %s8003_s5  ;;  %v8069_v54 = vld [vmem:[#allocation6_spill] sm:$0xff]  ;;  %s8122_s5 = smov 24  }
 0x625   :  { %v1604_v19 = vpop.f32.mrf.mxu3 }
 0x629   :  { %v1649_v9 = vpop.f32.mrf.mxu1 }
 0x62c   :  { %4898 = vmatmul.msk.bf16.vlgmr.msra.gmra.mxu3 %vm8061_vm0, %v1835_v11 }
 0x62f   :  { %v1727_v38 = vpop.f32.mrf.mxu2 }
 0x630   :  { %1809 = vrot.lane.b32.xlu1 %v1727_v38, %s8001_s0  ;;  %s8123_s0 = smov 16  }
 0x631   :  { %v1687_v14 = vpop.f32.mrf.mxu0 }
 0x632   :  { %1797 = vrot.lane.b32.xlu2 %v1687_v14, %s7999_s9  ;;  %v8075_v14 = vld [vmem:[#allocation10_spill] sm:$0xff]  ;;  %s8121_s9 = smov 8  }
 0x637   :  { %v1729_v22 = vpop.f32.mrf.mxu2 }
 0x639   :  { %v1689_v24 = vpop.f32.mrf.mxu0  ;;  %v1763_v56 = vpop.permute.xlu0 %1762 }
 0x63a   :  { %v1777_v42 = vsel %vm8007_vm4, %v1773_v35, %v1763_v56 }
 0x647   :  { %v5224_v49 = vpop.permute.xlu1 %5223 }
 0x648   :  { %v5226_v10 = vunpack.i.h.bf16 %v5224_v49  ;;  %v5225_v21 = vunpack.i.l.bf16 %v5224_v49 }
 0x64f   :  { %v5229_v1 = vpop.permute.xlu1 %5228 }
 0x650   :  { %v5231_v46 = vunpack.i.h.bf16 %v5229_v1  ;;  %v5230_v63 = vunpack.i.l.bf16 %v5229_v1 }
 0x652   :  { %v1814_v48 = vsel %vm483_vm10, %v1602_v5, %v5230_v63  ;;  %v1815_v37 = vsel %vm483_vm10, %v1604_v19, %v5231_v46 }
 0x653   :  { %v1817_v4 = vsel %vm1770_vm8, %v1814_v48, %v5225_v21  ;;  %v1818_v32 = vsel %vm1770_vm8, %v1815_v37, %v5226_v10 }
 0x65c   :  { %v5234_v25 = vpop.permute.xlu1 %5233 }
 0x65d   :  { %v5236_v18 = vunpack.i.h.bf16 %v5234_v25  ;;  %v5235_v33 = vunpack.i.l.bf16 %v5234_v25 }
 0x65f   :  { %v1820_v31 = vsel %vm8007_vm4, %v1817_v4, %v5235_v33  ;;  %v1821_v47 = vsel %vm8007_vm4, %v1818_v32, %v5236_v18 }
 0x660   :  { %v1826_v59 = vrot.slane %v1820_v31, 6  ;;  %v1827_v15 = vrot.slane %v1821_v47, 6 }
 0x662   :  { %v1828_v53 = vsel %vm8062_vm2, %v1826_v59, %v1827_v15  ;;  %v1834_v23 = vsel %vm8063_vm15, %v1777_v42, %v1826_v59  ;;  %vm8077_vm2 = vcmask 257024   ;;  %vm8078_vm15 = vmmov %vm8061_vm0 }
 0x663   :  { %v1836_v60 = vpack.c.bf16 %v1828_v53, %v1834_v23 }
 0x665   :  { %4899 = vmatmul.msk.bf16.gmra.mxu3 %vm8064_vm3, %v1836_v60  ;;  %vm8079_vm3 = vmmov %vm8061_vm0 }
 0x68c   :  { %v1798_v16 = vpop.permute.xlu2 %1797 }
 0x694   :  { %v1786_v0 = vpop.permute.xlu1 %1785 }
 0x69f   :  { %v1607_v6 = vpop.f32.mrf.mxu3 }
 0x6a0   :  { %v1816_v17 = vsel %vm483_vm10, %v1607_v6, %v1786_v0  ;;  %v5124_v0 = vld [vmem:[%s7960_s15 + $0x8] sm:$0xff] }
 0x6a1   :  { %v1819_v61 = vsel %vm1770_vm8, %v1816_v17, %v1798_v16  ;;  %2061 = vmatpush.bf16.msrb.mxu1 %v5124_v0  ;;  %v5123_v16 = vld [vmem:[%s7960_s15] sm:$0xff] }
 0x6a2   :  { %v1810_v43 = vpop.permute.xlu1 %1809 }
 0x6a3   :  { %v1822_v13 = vsel %vm8007_vm4, %v1819_v61, %v1810_v43 }
 0x6a4   :  { %v1829_v7 = vrot.slane %v1822_v13, 6 }
 0x6a5   :  { %2062 = vmatpush.bf16.msrb.mxu1 %v5123_v16 }
 0x6a6   :  { %v1830_v2 = vsel %vm8065_vm9, %v1827_v15, %v1829_v7  ;;  %vm8080_vm9 = vmmov %vm8061_vm0 }
 0x6a7   :  { %v1609_v12 = vpop.f32.mrf.mxu3  ;;  %v1837_v40 = vpack.c.bf16 %v1830_v2, %v1830_v2 }
 0x6a9   :  { %4900 = vmatmul.msk.bf16.gmra.mxu3 %vm8066_vm6, %v1837_v40  ;;  %vm8081_vm6 = vmmov %vm8077_vm2 }
 0x6af   :  { %v1876_v58 = vpop.f32.mrf.mxu3 }
 0x6b0   :  { %v1877_v41 = vadd.f32 %v5308_v51, %v1876_v58 }
 0x6b2   :  { %v6655_v57 = vadd.f32 %v1877_v41, %v8067_v62 }
 0x6b4   :  { %v1897_v50 = vsel %vm8068_vm5, %v6655_v57, 0.0 }
 0x6b5   :  { %1898 = vadd.xlane.f32.xlu2 %v1897_v50 }
 0x6b7   :  { %v1878_v36 = vpop.f32.mrf.mxu3 }
 0x6b8   :  { %v1879_v20 = vadd.f32 %v5308_v51, %v1878_v36 }
 0x6ba   :  { %v6660_v34 = vadd.f32 %v1879_v20, %v8069_v54 }
 0x6bc   :  { %v1900_v55 = vsel %vm8070_vm1, %v6660_v34, 0.0 }
 0x6bd   :  { %1901 = vadd.xlane.f32.xlu1 %v1900_v55 }
 0x6e8   :  { %v1881_v27 = vpop.f32.mrf.mxu3 }
 0x6e9   :  { %v1882_v8 = vadd.f32 %v5308_v51, %v1881_v27  ;;  %v6721_v27 = vld [vmem:[%s7958_s13] ss:$0 sm:$0xff] }
 0x6eb   :  { %v6665_v29 = vadd.f32 %v1882_v8, %v8071_v30 }
 0x6ed   :  { %v1903_v45 = vsel %vm8072_vm7, %v6665_v29, 0.0 }
 0x6ee   :  { %1904 = vadd.xlane.f32.xlu0 %v1903_v45 }
 0x6f0   :  { %v1883_v39 = vpop.f32.mrf.mxu3 }
 0x6f1   :  { %v1884_v52 = vadd.f32 %v5308_v51, %v1883_v39  ;;  %v5310_v39 = vld [vmem:[%s7959_s14] ss:$0 sm:$0xff] }
 0x6f3   :  { %v6670_v9 = vadd.f32 %v1884_v52, %v8073_v28 }
 0x6f5   :  { %v1906_v11 = vsel %vm8074_vm14, %v6670_v9, 0.0 }
 0x6f6   :  { %1907 = vadd.xlane.f32.xlu2 %v1906_v11 }
 0x728   :  { %v1899_v38 = vpop.xlane.xlu2 %1898 }
 0x729   :  { %v1912_v22 = vmul.f32 %v1899_v38, %v8075_v14 }
 0x72b   :  { %v6676_v24 = vsub.f32 %v6655_v57, %v1912_v22 }
 0x72c   :  { %v1886_v49 = vpop.f32.mrf.mxu3 }
 0x72d   :  { %v1887_v5 = vadd.f32 %v5308_v51, %v1886_v49  ;;  %v1922_v1 = vmul.f32 %v6676_v24, %v6676_v24 }
 0x72f   :  { %v6681_v46 = vadd.f32 %v1887_v5, %v8076_v44  ;;  %v1927_v63 = vsel %vm8061_vm0, %v1922_v1, 0.0 }
 0x730   :  { %v1902_v19 = vpop.xlane.xlu1 %1901  ;;  %1928 = vadd.xlane.f32.xlu1 %v1927_v63 }
 0x731   :  { %v1913_v48 = vmul.f32 %v1902_v19, %v8075_v14  ;;  %v1909_v37 = vsel %vm8077_vm2, %v6681_v46, 0.0 }
 0x732   :  { %1910 = vadd.xlane.f32.xlu0 %v1909_v37 }
 0x733   :  { %v1918_v10 = vsub.f32 %v6660_v34, %v1913_v48 }
 0x734   :  { %v1888_v21 = vpop.f32.mrf.mxu3 }
 0x735   :  { %v1923_v25 = vmul.f32 %v1918_v10, %v1918_v10 }
 0x737   :  { %v1930_v3 = vsel %vm8078_vm15, %v1923_v25, 0.0  ;;  %vm8082_vm15 = vmmov %vm8079_vm3 }
 0x738   :  { %1931 = vadd.xlane.f32.xlu2 %v1930_v3 }
 0x761   :  { %v1905_v18 = vpop.xlane.xlu0 %1904 }
 0x762   :  { %v1914_v33 = vmul.f32 %v1905_v18, %v8075_v14 }
 0x764   :  { %v6691_v56 = vsub.f32 %v6665_v29, %v1914_v33 }
 0x766   :  { %v1924_v4 = vmul.f32 %v6691_v56, %v6691_v56 }
 0x768   :  { %v1933_v32 = vsel %vm8079_vm3, %v1924_v4, 0.0 }
 0x769   :  { %v1908_v26 = vpop.xlane.xlu2 %1907  ;;  %1934 = vadd.xlane.f32.xlu1 %v1933_v32 }
 0x76a   :  { %v1915_v31 = vmul.f32 %v1908_v26, %v8075_v14 }
 0x76c   :  { %v6698_v47 = vsub.f32 %v6670_v9, %v1915_v31 }
 0x76e   :  { %v1925_v35 = vmul.f32 %v6698_v47, %v6698_v47 }
 0x770   :  { %v1936_v59 = vsel %vm8080_vm9, %v1925_v35, 0.0 }
 0x771   :  { %1937 = vadd.xlane.f32.xlu2 %v1936_v59 }
 0x7a3   :  { %v1929_v15 = vpop.xlane.xlu1 %1928 }
 0x7a4   :  { %v1942_v42 = vmul.f32 %v1929_v15, %v8075_v14 }
 0x7a5   :  { %v1911_v53 = vpop.xlane.xlu0 %1910 }
 0x7a6   :  { %v1947_v23 = vadd.f32 1e-05, %v1942_v42  ;;  %v1916_v60 = vmul.f32 %v1911_v53, %v8075_v14 }
 0x7a8   :  { %5435 = vrsqrt.f32 %v1947_v23  ;;  %v6709_v6 = vsub.f32 %v6681_v46, %v1916_v60  ;;  %vm1958_vm1 = vweird.f32 %v1947_v23 }
 0x7aa   :  { %v1926_v17 = vmul.f32 %v6709_v6, %v6709_v6 }
 0x7ab   :  { %v1932_v61 = vpop.xlane.xlu2 %1931 }
 0x7ac   :  { %v1943_v43 = vmul.f32 %v1932_v61, %v8075_v14  ;;  %v1939_v13 = vsel %vm8081_vm6, %v1926_v17, 0.0 }
 0x7ad   :  { %1940 = vadd.xlane.f32.xlu0 %v1939_v13 }
 0x7ae   :  { %v5436_v7 = vpop.eup %5435  ;;  %v1948_v2 = vadd.f32 1e-05, %v1943_v43 }
 0x7af   :  { %v1953_v12 = vmul.f32 %v5436_v7, %v1947_v23  ;;  %vm1959_vm5 = vweird.f32 %v5436_v7 }
 0x7b0   :  { %5437 = vrsqrt.f32 %v1948_v2  ;;  %vm1960_vm7 = vmor %vm1958_vm1, %vm1959_vm5  ;;  %vm1968_vm0 = vweird.f32 %v1948_v2 }
 0x7b1   :  { %v1954_v40 = vmul.f32 %v5436_v7, %v1953_v12 }
 0x7b3   :  { %v1955_v51 = vmul.f32 0.5, %v1954_v40 }
 0x7b5   :  { %v1956_v58 = vsub.f32 1.5, %v1955_v51 }
 0x7b6   :  { %v5438_v41 = vpop.eup %5437 }
 0x7b7   :  { %v1957_v62 = vmul.f32 %v5436_v7, %v1956_v58  ;;  %v1963_v50 = vmul.f32 %v5438_v41, %v1948_v2  ;;  %vm1969_vm14 = vweird.f32 %v5438_v41 }
 0x7b8   :  { %vm1970_vm2 = vmor %vm1968_vm0, %vm1969_vm14 }
 0x7b9   :  { %v1964_v36 = vmul.f32 %v5438_v41, %v1963_v50  ;;  %v1961_v20 = vsel %vm1960_vm7, %v5436_v7, %v1957_v62  ;;  %vm8083_vm14 = vmmov %vm8082_vm15  ;;  %v5311_v50 = vld [vmem:[%s7961_s16] ss:$0 sm:$0xff] }
 0x7ba   :  { %v2002_v8 = vmul.f32 %v1961_v20, %v6676_v24 }
 0x7bb   :  { %v1965_v54 = vmul.f32 0.5, %v1964_v36 }
 0x7bc   :  { %v2010_v52 = vmul.f32 %v6721_v27, %v2002_v8 }
 0x7bd   :  { %v1966_v55 = vsub.f32 1.5, %v1965_v54  ;;  %v5128_v54 = vld [vmem:[%s7962_s17 + $0x18] sm:$0xff] }
 0x7be   :  { %v2018_v38 = vadd.f32 %v5310_v39, %v2010_v52  ;;  %2175 = vmatpush.bf16.msrb.mxu0 %v5128_v54 }
 0x7bf   :  { %v1967_v30 = vmul.f32 %v5438_v41, %v1966_v55 }
 0x7c1   :  { %v1971_v45 = vsel %vm1970_vm2, %v5438_v41, %v1967_v30 }
 0x7c2   :  { %v2003_v28 = vmul.f32 %v1971_v45, %v1918_v10  ;;  %v5126_v45 = vld [vmem:[%s7962_s17 + $0x8] sm:$0xff] }
 0x7c4   :  { %v2011_v11 = vmul.f32 %v6721_v27, %v2003_v28 }
 0x7c6   :  { %v2019_v22 = vadd.f32 %v5310_v39, %v2011_v11 }
 0x7c8   :  { %v2023_v49 = vpack.c.bf16 %v2019_v22, %v2018_v38  ;;  %v5125_v38 = vld [vmem:[%s7962_s17] sm:$0xff] }
 0x7ca   :  { %4909 = vmatmul.msk.bf16.vlgmr.msrb.gmra.mxu1 %vm8082_vm15, %v2023_v49 }
 0x7dc   :  { %v1935_v5 = vpop.xlane.xlu1 %1934 }
 0x7dd   :  { %v1944_v24 = vmul.f32 %v1935_v5, %v8075_v14 }
 0x7df   :  { %v1949_v1 = vadd.f32 1e-05, %v1944_v24 }
 0x7e1   :  { %5439 = vrsqrt.f32 %v1949_v1  ;;  %vm1978_vm9 = vweird.f32 %v1949_v1 }
 0x7e4   :  { %v1938_v44 = vpop.xlane.xlu2 %1937 }
 0x7e5   :  { %v1945_v63 = vmul.f32 %v1938_v44, %v8075_v14 }
 0x7e7   :  { %v5440_v19 = vpop.eup %5439  ;;  %v1950_v48 = vadd.f32 1e-05, %v1945_v63 }
 0x7e8   :  { %v1973_v37 = vmul.f32 %v5440_v19, %v1949_v1  ;;  %vm1979_vm3 = vweird.f32 %v5440_v19 }
 0x7e9   :  { %5441 = vrsqrt.f32 %v1950_v48  ;;  %vm1980_vm6 = vmor %vm1978_vm9, %vm1979_vm3  ;;  %vm1988_vm1 = vweird.f32 %v1950_v48  ;;  %vm8085_vm9 = vcmask 523264  }
 0x7ea   :  { %v1974_v10 = vmul.f32 %v5440_v19, %v1973_v37  ;;  %vm8084_vm3 = vmmov %vm8083_vm14 }
 0x7ec   :  { %v1975_v21 = vmul.f32 0.5, %v1974_v10 }
 0x7ee   :  { %v1976_v25 = vsub.f32 1.5, %v1975_v21 }
 0x7ef   :  { %v5442_v3 = vpop.eup %5441 }
 0x7f0   :  { %v1977_v18 = vmul.f32 %v5440_v19, %v1976_v25  ;;  %v1983_v33 = vmul.f32 %v5442_v3, %v1950_v48  ;;  %vm1989_vm5 = vweird.f32 %v5442_v3 }
 0x7f1   :  { %vm1990_vm7 = vmor %vm1988_vm1, %vm1989_vm5 }
 0x7f2   :  { %v1984_v4 = vmul.f32 %v5442_v3, %v1983_v33  ;;  %v1981_v32 = vsel %vm1980_vm6, %v5440_v19, %v1977_v18  ;;  %vm8086_vm6 = vmmov %vm8085_vm9 }
 0x7f3   :  { %v2004_v35 = vmul.f32 %v1981_v32, %v6691_v56  ;;  %vm8087_vm5 = vmmov %vm8086_vm6 }
 0x7f4   :  { %v1985_v26 = vmul.f32 0.5, %v1984_v4  ;;  %vm8088_vm1 = vmmov %vm8084_vm3 }
 0x7f5   :  { %v2012_v53 = vmul.f32 %v6721_v27, %v2004_v35 }
 0x7f6   :  { %v1986_v31 = vsub.f32 1.5, %v1985_v26 }
 0x7f7   :  { %v2020_v60 = vadd.f32 %v5310_v39, %v2012_v53 }
 0x7f8   :  { %v1987_v59 = vmul.f32 %v5442_v3, %v1986_v31 }
 0x7fa   :  { %v1991_v15 = vsel %vm1990_vm7, %v5442_v3, %v1987_v59  ;;  %vm8089_vm7 = vmmov %vm8088_vm1 }
 0x7fb   :  { %v2005_v42 = vmul.f32 %v1991_v15, %v6698_v47 }
 0x7fd   :  { %v2013_v23 = vmul.f32 %v6721_v27, %v2005_v42 }
 0x7ff   :  { %v2021_v0 = vadd.f32 %v5310_v39, %v2013_v23 }
 0x801   :  { %v2024_v16 = vpack.c.bf16 %v2021_v0, %v2020_v60 }
 0x803   :  { %4910 = vmatmul.msk.bf16.gmra.mxu1 %vm8083_vm14, %v2024_v16  ;;  %vm8090_vm14 = vmmov %vm8088_vm1 }
 0x820   :  { %v1941_v17 = vpop.xlane.xlu0 %1940 }
 0x821   :  { %v1946_v61 = vmul.f32 %v1941_v17, %v8075_v14 }
 0x823   :  { %v1951_v43 = vadd.f32 1e-05, %v1946_v61 }
 0x825   :  { %5443 = vrsqrt.f32 %v1951_v43  ;;  %vm1998_vm2 = vweird.f32 %v1951_v43 }
 0x82b   :  { %v5444_v56 = vpop.eup %5443 }
 0x82c   :  { %v1993_v13 = vmul.f32 %v5444_v56, %v1951_v43  ;;  %vm1999_vm0 = vweird.f32 %v5444_v56 }
 0x82d   :  { %vm2000_vm15 = vmor %vm1998_vm2, %vm1999_vm0  ;;  %vm8092_vm2 = vcmask 257024  }
 0x82e   :  { %v1994_v7 = vmul.f32 %v5444_v56, %v1993_v13  ;;  %vm8091_vm0 = vmmov %vm8088_vm1 }
 0x830   :  { %v1995_v2 = vmul.f32 0.5, %v1994_v7 }
 0x832   :  { %v1996_v12 = vsub.f32 1.5, %v1995_v2 }
 0x834   :  { %v1997_v47 = vmul.f32 %v5444_v56, %v1996_v12 }
 0x836   :  { %v2001_v40 = vsel %vm2000_vm15, %v5444_v56, %v1997_v47  ;;  %vm8093_vm15 = vmmov %vm8091_vm0 }
 0x837   :  { %v2006_v51 = vmul.f32 %v2001_v40, %v6709_v6  ;;  %v5127_v6 = vld [vmem:[%s7962_s17 + $0x10] sm:$0xff] }
 0x838   :  { %2176 = vmatpush.bf16.msrb.mxu0 %v5127_v6 }
 0x839   :  { %v2014_v58 = vmul.f32 %v6721_v27, %v2006_v51 }
 0x83b   :  { %v2022_v41 = vadd.f32 %v5310_v39, %v2014_v58 }
 0x83c   :  { %2177 = vmatpush.bf16.msrb.mxu0 %v5126_v45 }
 0x83d   :  { %v2025_v62 = vpack.c.bf16 %v2022_v41, %v2022_v41 }
 0x83f   :  { %4911 = vmatmul.msk.bf16.gmra.mxu1 %vm8084_vm3, %v2025_v62  ;;  %vm8094_vm3 = vmmov %vm8091_vm0 }
 0x840   :  { %2178 = vmatpush.bf16.msrb.mxu0 %v5125_v38 }
 0x847   :  { %v2064_v36 = vpop.f32.mrf.mxu1 }
 0x848   :  { %v2065_v20 = vadd.f32 %v5311_v50, %v2064_v36 }
 0x84a   :  { %v2078_v55 = vmul.f32 %v2065_v20, %v2065_v20 }
 0x84c   :  { %v2083_v27 = vmul.f32 %v2078_v55, %v2065_v20 }
 0x84e   :  { %v2088_v8 = vmul.f32 0.044715, %v2083_v27 }
 0x84f   :  { %v2066_v30 = vpop.f32.mrf.mxu1 }
 0x850   :  { %v2093_v39 = vadd.f32 %v2088_v8, %v2065_v20  ;;  %v2067_v52 = vadd.f32 %v5311_v50, %v2066_v30  ;;  %v5312_v8 = vld [vmem:[%s7963_s18] ss:$0 sm:$0xff] }
 0x852   :  { %v2098_v28 = vmul.f32 0.7978846, %v2093_v39  ;;  %v2079_v11 = vmul.f32 %v2067_v52, %v2067_v52 }
 0x854   :  { %v2084_v22 = vmul.f32 %v2079_v11, %v2067_v52  ;;  %5445 = vtanh.f32 %v2098_v28 }
 0x856   :  { %v2089_v49 = vmul.f32 0.044715, %v2084_v22 }
 0x858   :  { %v2094_v5 = vadd.f32 %v2089_v49, %v2067_v52 }
 0x85a   :  { %v2099_v24 = vmul.f32 0.7978846, %v2094_v5  ;;  %v5446_v1 = vpop.eup %5445 }
 0x85b   :  { %v2108_v44 = vadd.f32 1.0, %v5446_v1 }
 0x85c   :  { %5447 = vtanh.f32 %v2099_v24 }
 0x85d   :  { %v2113_v19 = vmul.f32 0.5, %v2108_v44 }
 0x85f   :  { %v2118_v10 = vmul.f32 %v2113_v19, %v2065_v20 }
 0x862   :  { %v5448_v63 = vpop.eup %5447 }
 0x863   :  { %v2109_v48 = vadd.f32 1.0, %v5448_v63 }
 0x865   :  { %v2114_v37 = vmul.f32 0.5, %v2109_v48 }
 0x867   :  { %v2119_v21 = vmul.f32 %v2114_v37, %v2067_v52 }
 0x869   :  { %v2123_v25 = vpack.c.bf16 %v2119_v21, %v2118_v10 }
 0x86b   :  { %4928 = vmatmul.msk.bf16.vlgmr.msrb.gmra.mxu0 %vm8085_vm9, %v2123_v25  ;;  %vm8095_vm9 = vmmov %vm8091_vm0 }
 0x880   :  { %v2069_v3 = vpop.f32.mrf.mxu1 }
 0x881   :  { %v2070_v18 = vadd.f32 %v5311_v50, %v2069_v3 }
 0x883   :  { %v2080_v33 = vmul.f32 %v2070_v18, %v2070_v18 }
 0x885   :  { %v2085_v4 = vmul.f32 %v2080_v33, %v2070_v18 }
 0x887   :  { %v2090_v32 = vmul.f32 0.044715, %v2085_v4 }
 0x888   :  { %v2071_v26 = vpop.f32.mrf.mxu1 }
 0x889   :  { %v2095_v31 = vadd.f32 %v2090_v32, %v2070_v18  ;;  %v2072_v35 = vadd.f32 %v5311_v50, %v2071_v26 }
 0x88b   :  { %v2100_v59 = vmul.f32 0.7978846, %v2095_v31  ;;  %v2081_v15 = vmul.f32 %v2072_v35, %v2072_v35 }
 0x88d   :  { %v2086_v42 = vmul.f32 %v2081_v15, %v2072_v35  ;;  %5449 = vtanh.f32 %v2100_v59 }
 0x88f   :  { %v2091_v53 = vmul.f32 0.044715, %v2086_v42 }
 0x891   :  { %v2096_v23 = vadd.f32 %v2091_v53, %v2072_v35 }
 0x893   :  { %v2101_v60 = vmul.f32 0.7978846, %v2096_v23  ;;  %v5450_v0 = vpop.eup %5449 }
 0x894   :  { %v2110_v16 = vadd.f32 1.0, %v5450_v0 }
 0x895   :  { %5451 = vtanh.f32 %v2101_v60 }
 0x896   :  { %v2115_v43 = vmul.f32 0.5, %v2110_v16 }
 0x898   :  { %v2120_v13 = vmul.f32 %v2115_v43, %v2070_v18 }
 0x89b   :  { %v5452_v17 = vpop.eup %5451 }
 0x89c   :  { %v2111_v61 = vadd.f32 1.0, %v5452_v17 }
 0x89e   :  { %v2116_v56 = vmul.f32 0.5, %v2111_v61 }
 0x8a0   :  { %v2121_v7 = vmul.f32 %v2116_v56, %v2072_v35 }
 0x8a2   :  { %v2124_v2 = vpack.c.bf16 %v2121_v7, %v2120_v13 }
 0x8a4   :  { %4929 = vmatmul.msk.bf16.gmra.mxu0 %vm8086_vm6, %v2124_v2  ;;  %vm8096_vm6 = vmmov %vm8091_vm0 }
 0x8bc   :  { %v2074_v12 = vpop.f32.mrf.mxu1 }
 0x8bd   :  { %v2075_v47 = vadd.f32 %v5311_v50, %v2074_v12  ;;  %v5130_v12 = vld [vmem:[%s8031_s4 + $0x18] sm:$0xff] }
 0x8be   :  { %2369 = vmatpush.bf16.msrb.mxu2 %v5130_v12 }
 0x8bf   :  { %v2082_v40 = vmul.f32 %v2075_v47, %v2075_v47 }
 0x8c1   :  { %v2087_v51 = vmul.f32 %v2082_v40, %v2075_v47 }
 0x8c3   :  { %v2092_v58 = vmul.f32 0.044715, %v2087_v51 }
 0x8c4   :  { %v2076_v41 = vpop.f32.mrf.mxu1 }
 0x8c5   :  { %v2097_v62 = vadd.f32 %v2092_v58, %v2075_v47 }
 0x8c7   :  { %v2102_v36 = vmul.f32 0.7978846, %v2097_v62 }
 0x8c9   :  { %5453 = vtanh.f32 %v2102_v36 }
 0x8cf   :  { %v5454_v20 = vpop.eup %5453 }
 0x8d0   :  { %v2112_v54 = vadd.f32 1.0, %v5454_v20 }
 0x8d2   :  { %v2117_v55 = vmul.f32 0.5, %v2112_v54 }
 0x8d4   :  { %v2122_v6 = vmul.f32 %v2117_v55, %v2075_v47  ;;  %v5129_v47 = vld [vmem:[%s8031_s4 + $0x10] sm:$0xff] }
 0x8d5   :  { %2370 = vmatpush.bf16.msrb.mxu2 %v5129_v47 }
 0x8d6   :  { %v2125_v27 = vpack.c.bf16 %v2122_v6, %v2122_v6 }
 0x8d8   :  { %4930 = vmatmul.msk.bf16.gmra.mxu0 %vm8087_vm5, %v2125_v27  ;;  %vm8097_vm5 = vmmov %vm8092_vm2 }
 0x8e8   :  { %v2180_v30 = vpop.f32.mrf.mxu0 }
 0x8e9   :  { %v2181_v50 = vadd.f32 %v5312_v8, %v2180_v30 }
 0x8eb   :  { %v6763_v45 = vadd.f32 %v2181_v50, %v6655_v57 }
 0x8ed   :  { %v2203_v39 = vsel %vm8088_vm1, %v6763_v45, 0.0 }
 0x8ee   :  { %2204 = vadd.xlane.f32.xlu1 %v2203_v39 }
 0x8f0   :  { %v2182_v52 = vpop.f32.mrf.mxu0 }
 0x8f1   :  { %v2183_v28 = vadd.f32 %v5312_v8, %v2182_v52  ;;  %v6825_v52 = vld [vmem:[%s8032_s28 + $0x1] ss:$0 sm:$0xff] }
 0x8f3   :  { %v6768_v11 = vadd.f32 %v2183_v28, %v6660_v34 }
 0x8f5   :  { %v2206_v38 = vsel %vm8089_vm7, %v6768_v11, 0.0 }
 0x8f6   :  { %2207 = vadd.xlane.f32.xlu2 %v2206_v38 }
 0x921   :  { %v2185_v22 = vpop.f32.mrf.mxu0 }
 0x922   :  { %v2186_v49 = vadd.f32 %v5312_v8, %v2185_v22 }
 0x924   :  { %v6773_v5 = vadd.f32 %v2186_v49, %v6665_v29  ;;  %v5314_v49 = vld [vmem:[%s8033_s29 + $0x1] ss:$0 sm:$0xff] }
 0x926   :  { %v2209_v57 = vsel %vm8090_vm14, %v6773_v5, 0.0 }
 0x927   :  { %2210 = vadd.xlane.f32.xlu0 %v2209_v57 }
 0x929   :  { %v2187_v24 = vpop.f32.mrf.mxu0 }
 0x92a   :  { %v2188_v1 = vadd.f32 %v5312_v8, %v2187_v24 }
 0x92c   :  { %v6778_v44 = vadd.f32 %v2188_v1, %v6670_v9 }
 0x92e   :  { %v2212_v34 = vsel %vm8091_vm0, %v6778_v44, 0.0 }
 0x92f   :  { %2213 = vadd.xlane.f32.xlu1 %v2212_v34 }
 0x955   :  { %v2190_v63 = vpop.f32.mrf.mxu0 }
 0x956   :  { %v2191_v19 = vadd.f32 %v5312_v8, %v2190_v63 }
 0x958   :  { %v6783_v48 = vadd.f32 %v2191_v19, %v6681_v46 }
 0x95a   :  { %v2215_v29 = vsel %vm8092_vm2, %v6783_v48, 0.0 }
 0x95b   :  { %2216 = vadd.xlane.f32.xlu2 %v2215_v29 }
 0x95d   :  { %v2192_v37 = vpop.f32.mrf.mxu0 }
 0x961   :  { %v2205_v10 = vpop.xlane.xlu1 %2204 }
 0x962   :  { %v2218_v21 = vmul.f32 %v2205_v10, %v8075_v14 }
 0x964   :  { %v2223_v9 = vsub.f32 %v6763_v45, %v2218_v21 }
 0x966   :  { %v2228_v25 = vmul.f32 %v2223_v9, %v2223_v9 }
 0x968   :  { %v2233_v3 = vsel %vm8093_vm15, %v2228_v25, 0.0 }
 0x969   :  { %v2208_v18 = vpop.xlane.xlu2 %2207  ;;  %2234 = vadd.xlane.f32.xlu0 %v2233_v3 }
 0x96a   :  { %v2219_v33 = vmul.f32 %v2208_v18, %v8075_v14 }
 0x96c   :  { %v2224_v46 = vsub.f32 %v6768_v11, %v2219_v33 }
 0x96e   :  { %v2229_v4 = vmul.f32 %v2224_v46, %v2224_v46 }
 0x970   :  { %v2236_v32 = vsel %vm8094_vm3, %v2229_v4, 0.0 }
 0x971   :  { %2237 = vadd.xlane.f32.xlu1 %v2236_v32 }
 0x99a   :  { %v2211_v26 = vpop.xlane.xlu0 %2210 }
 0x99b   :  { %v2220_v31 = vmul.f32 %v2211_v26, %v8075_v14 }
 0x99d   :  { %v6795_v35 = vsub.f32 %v6773_v5, %v2220_v31 }
 0x99f   :  { %v2230_v59 = vmul.f32 %v6795_v35, %v6795_v35 }
 0x9a1   :  { %v2239_v15 = vsel %vm8095_vm9, %v2230_v59, 0.0 }
 0x9a2   :  { %v2214_v42 = vpop.xlane.xlu1 %2213  ;;  %2240 = vadd.xlane.f32.xlu2 %v2239_v15 }
 0x9a3   :  { %v2221_v53 = vmul.f32 %v2214_v42, %v8075_v14 }
 0x9a5   :  { %v6802_v23 = vsub.f32 %v6778_v44, %v2221_v53 }
 0x9a7   :  { %v2231_v60 = vmul.f32 %v6802_v23, %v6802_v23 }
 0x9a9   :  { %v2242_v0 = vsel %vm8096_vm6, %v2231_v60, 0.0 }
 0x9aa   :  { %2243 = vadd.xlane.f32.xlu0 %v2242_v0 }
 0x9ce   :  { %v2217_v16 = vpop.xlane.xlu2 %2216 }
 0x9cf   :  { %v2222_v17 = vmul.f32 %v2217_v16, %v8075_v14 }
 0x9d1   :  { %v6809_v61 = vsub.f32 %v6783_v48, %v2222_v17 }
 0x9d3   :  { %v2232_v43 = vmul.f32 %v6809_v61, %v6809_v61 }
 0x9d5   :  { %v2245_v56 = vsel %vm8097_vm5, %v2232_v43, 0.0 }
 0x9d6   :  { %2246 = vadd.xlane.f32.xlu1 %v2245_v56 }
 0x9dc   :  { %v2235_v13 = vpop.xlane.xlu0 %2234 }
 0x9dd   :  { %v2248_v7 = vmul.f32 %v2235_v13, %v8075_v14 }
 0x9df   :  { %v2253_v2 = vadd.f32 1e-05, %v2248_v7 }
 0x9e1   :  { %5455 = vrsqrt.f32 %v2253_v2  ;;  %vm2264_vm7 = vweird.f32 %v2253_v2 }
 0x9e4   :  { %v2238_v40 = vpop.xlane.xlu1 %2237 }
 0x9e5   :  { %v2249_v51 = vmul.f32 %v2238_v40, %v8075_v14 }
 0x9e7   :  { %v5456_v58 = vpop.eup %5455  ;;  %v2254_v41 = vadd.f32 1e-05, %v2249_v51 }
 0x9e8   :  { %v2259_v62 = vmul.f32 %v5456_v58, %v2253_v2  ;;  %vm2265_vm1 = vweird.f32 %v5456_v58 }
 0x9e9   :  { %5457 = vrsqrt.f32 %v2254_v41  ;;  %vm2266_vm14 = vmor %vm2264_vm7, %vm2265_vm1  ;;  %vm2274_vm2 = vweird.f32 %v2254_v41 }
 0x9ea   :  { %v2260_v36 = vmul.f32 %v5456_v58, %v2259_v62 }
 0x9ec   :  { %v2261_v20 = vmul.f32 0.5, %v2260_v36 }
 0x9ee   :  { %v2262_v54 = vsub.f32 1.5, %v2261_v20 }
 0x9ef   :  { %v5458_v55 = vpop.eup %5457 }
 0x9f0   :  { %v2263_v6 = vmul.f32 %v5456_v58, %v2262_v54  ;;  %v2269_v27 = vmul.f32 %v5458_v55, %v2254_v41  ;;  %vm2275_vm0 = vweird.f32 %v5458_v55 }
 0x9f1   :  { %vm2276_vm15 = vmor %vm2274_vm2, %vm2275_vm0 }
 0x9f2   :  { %v2270_v8 = vmul.f32 %v5458_v55, %v2269_v27  ;;  %v2267_v30 = vsel %vm2266_vm14, %v5456_v58, %v2263_v6  ;;  %vm8098_vm0 = vmmov %vm8094_vm3 }
 0x9f3   :  { %v2308_v28 = vmul.f32 %v2267_v30, %v2223_v9 }
 0x9f4   :  { %v2271_v50 = vmul.f32 0.5, %v2270_v8  ;;  %v5315_v8 = vld [vmem:[%s8034_s6 + $0x1] ss:$0 sm:$0xff]  ;;  %s8100_s6 = smov 120  }
 0x9f5   :  { %v2316_v57 = vmul.f32 %v6825_v52, %v2308_v28 }
 0x9f6   :  { %v2272_v39 = vsub.f32 1.5, %v2271_v50 }
 0x9f7   :  { %v2324_v34 = vadd.f32 %v5314_v49, %v2316_v57 }
 0x9f8   :  { %v2273_v38 = vmul.f32 %v5458_v55, %v2272_v39 }
 0x9fa   :  { %v2277_v22 = vsel %vm2276_vm15, %v5458_v55, %v2273_v38 }
 0x9fb   :  { %v2309_v24 = vmul.f32 %v2277_v22, %v2224_v46 }
 0x9fd   :  { %v2317_v1 = vmul.f32 %v6825_v52, %v2309_v24 }
 0x9ff   :  { %v2325_v63 = vadd.f32 %v5314_v49, %v2317_v1 }
 0xa01   :  { %v2329_v19 = vpack.c.bf16 %v2325_v63, %v2324_v34 }
 0xa03   :  { %4946 = vmatmul.msk.bf16.vlgmr.msrb.gmra.mxu2 %vm8094_vm3, %v2329_v19 }
 0xa15   :  { %v2241_v29 = vpop.xlane.xlu2 %2240 }
 0xa16   :  { %v2250_v37 = vmul.f32 %v2241_v29, %v8075_v14 }
 0xa18   :  { %v2255_v10 = vadd.f32 1e-05, %v2250_v37 }
 0xa1a   :  { %5459 = vrsqrt.f32 %v2255_v10  ;;  %vm2284_vm6 = vweird.f32 %v2255_v10 }
 0xa1d   :  { %v2244_v21 = vpop.xlane.xlu0 %2243 }
 0xa1e   :  { %v2251_v9 = vmul.f32 %v2244_v21, %v8075_v14 }
 0xa20   :  { %v5460_v25 = vpop.eup %5459  ;;  %v2256_v3 = vadd.f32 1e-05, %v2251_v9 }
 0xa21   :  { %v2279_v18 = vmul.f32 %v5460_v25, %v2255_v10  ;;  %vm2285_vm9 = vweird.f32 %v5460_v25 }
 0xa22   :  { %5461 = vrsqrt.f32 %v2256_v3  ;;  %vm2286_vm5 = vmor %vm2284_vm6, %vm2285_vm9  ;;  %vm2294_vm7 = vweird.f32 %v2256_v3  ;;  %vm8101_vm6 = vcmask 1045504  }
 0xa23   :  { %v2280_v33 = vmul.f32 %v5460_v25, %v2279_v18  ;;  %vm8099_vm9 = vmmov %vm8098_vm0 }
 0xa25   :  { %v2281_v46 = vmul.f32 0.5, %v2280_v33 }
 0xa27   :  { %v2282_v4 = vsub.f32 1.5, %v2281_v46 }
 0xa28   :  { %v5462_v32 = vpop.eup %5461 }
 0xa29   :  { %v2283_v26 = vmul.f32 %v5460_v25, %v2282_v4  ;;  %v2289_v31 = vmul.f32 %v5462_v32, %v2256_v3  ;;  %vm2295_vm1 = vweird.f32 %v5462_v32 }
 0xa2a   :  { %vm2296_vm14 = vmor %vm2294_vm7, %vm2295_vm1 }
 0xa2b   :  { %v2290_v59 = vmul.f32 %v5462_v32, %v2289_v31  ;;  %v2287_v15 = vsel %vm2286_vm5, %v5460_v25, %v2283_v26  ;;  %vm8102_vm5 = vmmov %vm8101_vm6 }
 0xa2c   :  { %v2310_v60 = vmul.f32 %v2287_v15, %v6795_v35 }
 0xa2d   :  { %v2291_v42 = vmul.f32 0.5, %v2290_v59 }
 0xa2e   :  { %v2318_v43 = vmul.f32 %v6825_v52, %v2310_v60 }
 0xa2f   :  { %v2292_v53 = vsub.f32 1.5, %v2291_v42 }
 0xa30   :  { %v2326_v13 = vadd.f32 %v5314_v49, %v2318_v43 }
 0xa31   :  { %v2293_v0 = vmul.f32 %v5462_v32, %v2292_v53 }
 0xa33   :  { %v2297_v16 = vsel %vm2296_vm14, %v5462_v32, %v2293_v0 }
 0xa34   :  { %v2311_v17 = vmul.f32 %v2297_v16, %v6802_v23 }
 0xa36   :  { %v2319_v56 = vmul.f32 %v6825_v52, %v2311_v17 }
 0xa38   :  { %v2327_v7 = vadd.f32 %v5314_v49, %v2319_v56 }
 0xa3a   :  { %v2330_v2 = vpack.c.bf16 %v2327_v7, %v2326_v13 }
 0xa3c   :  { %4947 = vmatmul.msk.bf16.gmra.mxu2 %vm8098_vm0, %v2330_v2 }
 0xa49   :  { %v2247_v12 = vpop.xlane.xlu1 %2246 }
 0xa4a   :  { %v2252_v47 = vmul.f32 %v2247_v12, %v8075_v14 }
 0xa4c   :  { %v2257_v40 = vadd.f32 1e-05, %v2252_v47 }
 0xa4e   :  { %5463 = vrsqrt.f32 %v2257_v40  ;;  %vm2304_vm15 = vweird.f32 %v2257_v40 }
 0xa54   :  { %v5464_v35 = vpop.eup %5463 }
 0xa55   :  { %v2299_v51 = vmul.f32 %v5464_v35, %v2257_v40  ;;  %vm2305_vm2 = vweird.f32 %v5464_v35 }
 0xa56   :  { %vm2306_vm3 = vmor %vm2304_vm15, %vm2305_vm2 }
 0xa57   :  { %v2300_v58 = vmul.f32 %v5464_v35, %v2299_v51 }
 0xa59   :  { %v2301_v41 = vmul.f32 0.5, %v2300_v58 }
 0xa5b   :  { %v2302_v62 = vsub.f32 1.5, %v2301_v41 }
 0xa5d   :  { %v2303_v23 = vmul.f32 %v5464_v35, %v2302_v62 }
 0xa5f   :  { %v2307_v36 = vsel %vm2306_vm3, %v5464_v35, %v2303_v23 }
 0xa60   :  { %v2312_v20 = vmul.f32 %v2307_v36, %v6809_v61 }
 0xa62   :  { %v2320_v54 = vmul.f32 %v6825_v52, %v2312_v20 }
 0xa64   :  { %v2328_v55 = vadd.f32 %v5314_v49, %v2320_v54 }
 0xa66   :  { %v2331_v6 = vpack.c.bf16 %v2328_v55, %v2328_v55 }
 0xa68   :  { %4948 = vmatmul.msk.bf16.gmra.mxu2 %vm8099_vm9, %v2331_v6 }
 0xa86   :  { %v2372_v27 = vpop.f32.mrf.mxu2 }
 0xa87   :  { %v2373_v30 = vadd.f32 %v5315_v8, %v2372_v27 }
 0xa89   :  { %v2453_v39 = vpack.c.bf16 %v2373_v30, %v2373_v30 }
 0xa8b   :  { %v2480_v22 = vunpack.c.l.b16 %v2453_v39 }
 0xa8e   :  { %v2374_v50 = vpop.f32.mrf.mxu2 }
 0xa8f   :  { %v2375_v28 = vadd.f32 %v5315_v8, %v2374_v50 }
 0xa91   :  { %v2454_v38 = vpack.c.bf16 %v2375_v28, %v2375_v28  ;;  %2409 = vrot.lane.b32.xlu0 %v2375_v28, %s5616_s2  ;;  %v5247_v1 = vpack.i.bf16 %v2375_v28, %v2373_v30 }
 0xa93   :  { %v2481_v61 = vunpack.c.l.b16 %v2454_v38 }
 0xa95   :  { %v6848_v57 = vpack.c.b16 %v2481_v61, %v2480_v22 }
 0xabf   :  { %v2377_v52 = vpop.f32.mrf.mxu2 }
 0xac0   :  { %v6850_v49 = vadd.f32 %v5315_v8, %v2377_v52 }
 0xac2   :  { %2402 = vrot.lane.b32.xlu0 %v6850_v49, %s5619_s8  ;;  %v5242_v24 = vpack.i.bf16 %v2373_v30, %v6850_v49  ;;  %v2418_v29 = vrot.slane %v6850_v49, 2  ;;  %v2455_v6 = vpack.c.bf16 %v6850_v49, %v6850_v49 }
 0xac4   :  { %5243 = vrot.lane.b32.xlu1 %v5242_v24, %s8100_s6  ;;  %5238 = vrot.lane.b32.xlu2 %v5242_v24, %s5616_s2  ;;  %v2482_v61 = vunpack.c.l.b16 %v2455_v6 }
 0xac6   :  { %v6896_v52 = vpack.c.b16 %v2482_v61, %v2482_v61 }
 0xac7   :  { %v2379_v34 = vpop.f32.mrf.mxu2 }
 0xac8   :  { %v2380_v63 = vadd.f32 %v5315_v8, %v2379_v34 }
 0xaca   :  { %5248 = vrot.lane.b32.xlu0 %v5247_v1, %s5619_s8  ;;  %v2419_v19 = vrot.slane %v2380_v63, 2 }
 0xacc   :  { %2391 = vrot.lane.b32.xlu2 %v2375_v28, %s8100_s6  ;;  %v2420_v10 = vsel %vm8101_vm6, %v2418_v29, %v2419_v19 }
 0xacd   :  { %v2465_v25 = vpack.c.bf16 %v2420_v10, %v2420_v10 }
 0xacf   :  { %v2648_v32 = vunpack.c.l.b16 %v2465_v25 }
 0xaeb   :  { %v2382_v37 = vpop.f32.mrf.mxu2 }
 0xaec   :  { %v2383_v21 = vadd.f32 %v5315_v8, %v2382_v37 }
 0xaee   :  { %v6861_v9 = vrot.slane %v2383_v21, 2 }
 0xaf0   :  { %v2422_v3 = vsel %vm8102_vm5, %v2419_v19, %v6861_v9  ;;  %v5257_v18 = vpack.i.bf16 %v2420_v10, %v6861_v9 }
 0xaf1   :  { %v2466_v33 = vpack.c.bf16 %v2422_v3, %v2422_v3  ;;  %2446 = vrot.lane.b32.xlu1 %v2422_v3, %s5616_s2 }
 0xaf2   :  { %5258 = vrot.lane.b32.xlu0 %v5257_v18, %s8100_s6  ;;  %5253 = vrot.lane.b32.xlu2 %v5257_v18, %s5616_s2  ;;  %s8103_s2 = smov 96  }
 0xaf3   :  { %v2649_v46 = vunpack.c.l.b16 %v2466_v33  ;;  %v2384_v4 = vpop.f32.mrf.mxu2 }
 0xaf5   :  { %v6869_v26 = vpack.c.b16 %v2649_v46, %v2648_v32 }
 0xafa   :  { %2428 = vrot.lane.b32.xlu0 %v2422_v3, %s8100_s6  ;;  %5263 = vrot.lane.b32.xlu2 %v5257_v18, %s5619_s8  ;;  %s4820_s6 = sshll.u32 %s7972_s27, 4  ;;  %s4821_s6 = int_to_ptr.hbm [resolvable:$true] %s4820_s6 }
 0xb02   :  { %2437 = vrot.lane.b32.xlu2 %v2422_v3, %s5619_s8  ;;  %s8104_s8 = smov 64  }
 0xb03   :  { %v2410_v60 = vpop.permute.xlu0 %2409 }
 0xb04   :  { %v2463_v17 = vpack.c.bf16 %v2410_v60, %v2410_v60 }
 0xb06   :  { %v2607_v56 = vunpack.c.l.b16 %v2463_v17 }
 0xb1e   :  { %v5239_v31 = vpop.permute.xlu2 %5238 }
 0xb1f   :  { %v5240_v59 = vunpack.i.l.bf16 %v5239_v31  ;;  %v5241_v15 = vunpack.i.h.bf16 %v5239_v31 }
 0xb21   :  { %v2464_v42 = vpack.c.bf16 %v5240_v59, %v5240_v59  ;;  %v2462_v0 = vpack.c.bf16 %v5241_v15, %v5241_v15 }
 0xb23   :  { %v2608_v53 = vunpack.c.l.b16 %v2464_v42  ;;  %v2606_v43 = vunpack.c.l.b16 %v2462_v0 }
 0xb25   :  { %v6874_v16 = vpack.c.b16 %v2608_v53, %v2608_v53  ;;  %v6878_v13 = vpack.c.b16 %v2607_v56, %v2606_v43 }
 0xb26   :  { %v2392_v7 = vpop.permute.xlu2 %2391 }
 0xb27   :  { %2613 = vrot.lane.b32.xlu1 %v6874_v16, %s8103_s2  ;;  %v2457_v40 = vpack.c.bf16 %v2392_v7, %v2392_v7 }
 0xb29   :  { %v2523_v36 = vunpack.c.l.b16 %v2457_v40 }
 0xb2f   :  { %2611 = vrot.lane.b32.xlu1 %v6878_v13, %s8103_s2 }
 0xb34   :  { %v2403_v2 = vpop.permute.xlu0 %2402 }
 0xb35   :  { %v2461_v12 = vpack.c.bf16 %v2403_v2, %v2403_v2 }
 0xb36   :  { %v5244_v47 = vpop.permute.xlu1 %5243 }
 0xb37   :  { %v2566_v35 = vunpack.c.l.b16 %v2461_v12  ;;  %v5246_v51 = vunpack.i.h.bf16 %v5244_v47  ;;  %v5245_v58 = vunpack.i.l.bf16 %v5244_v47 }
 0xb39   :  { %v6882_v41 = vpack.c.b16 %v2566_v35, %v2566_v35  ;;  %v2456_v62 = vpack.c.bf16 %v5246_v51, %v5246_v51  ;;  %v2458_v23 = vpack.c.bf16 %v5245_v58, %v5245_v58 }
 0xb3b   :  { %v2522_v20 = vunpack.c.l.b16 %v2456_v62  ;;  %v2524_v54 = vunpack.c.l.b16 %v2458_v23  ;;  %2571 = vrot.lane.b32.xlu2 %v6882_v41, %s8103_s2  ;;  %v2467_v62 = vpack.c.bf16 %v6861_v9, %v6861_v9 }
 0xb3c   :  { %v5249_v55 = vpop.permute.xlu0 %5248 }
 0xb3d   :  { %v6888_v27 = vpack.c.b16 %v2523_v36, %v2522_v20  ;;  %v6890_v8 = vpack.c.b16 %v2524_v54, %v2524_v54  ;;  %v5251_v30 = vunpack.i.h.bf16 %v5249_v55  ;;  %v5250_v50 = vunpack.i.l.bf16 %v5249_v55 }
 0xb3e   :  { %v2650_v20 = vunpack.c.l.b16 %v2467_v62 }
 0xb3f   :  { %v2460_v39 = vpack.c.bf16 %v5251_v30, %v5251_v30  ;;  %v2459_v28 = vpack.c.bf16 %v5250_v50, %v5250_v50  ;;  %2529 = vrot.lane.b32.xlu0 %v6890_v8, %s8103_s2  ;;  %2527 = vrot.lane.b32.xlu1 %v6888_v27, %s8103_s2 }
 0xb40   :  { %v6936_v54 = vpack.c.b16 %v2650_v20, %v2650_v20 }
 0xb41   :  { %v2565_v38 = vunpack.c.l.b16 %v2460_v39  ;;  %v2564_v22 = vunpack.c.l.b16 %v2459_v28 }
 0xb43   :  { %v6898_v49 = vpack.c.b16 %v2565_v38, %v2564_v22 }
 0xb47   :  { %2487 = vrot.lane.b32.xlu1 %v6896_v52, %s8103_s2  ;;  %2569 = vrot.lane.b32.xlu0 %v6898_v49, %s8103_s2 }
 0xb4c   :  { %v5254_v24 = vpop.permute.xlu2 %5253 }
 0xb4d   :  { %v5255_v1 = vunpack.i.l.bf16 %v5254_v24  ;;  %v5256_v4 = vunpack.i.h.bf16 %v5254_v24 }
 0xb4f   :  { %v2476_v34 = vpack.c.bf16 %v5255_v1, %v5255_v1  ;;  %v2474_v59 = vpack.c.bf16 %v5256_v4, %v5256_v4 }
 0xb51   :  { %v2776_v63 = vunpack.c.l.b16 %v2476_v34  ;;  %v2774_v17 = vunpack.c.l.b16 %v2474_v59 }
 0xb53   :  { %v6904_v19 = vpack.c.b16 %v2776_v63, %v2776_v63 }
 0xb54   :  { %v5264_v29 = vpop.permute.xlu2 %5263 }
 0xb55   :  { %v5265_v37 = vunpack.i.l.bf16 %v5264_v29  ;;  %2781 = vrot.lane.b32.xlu2 %v6904_v19, %s8103_s2  ;;  %v5266_v21 = vunpack.i.h.bf16 %v5264_v29 }
 0xb57   :  { %v2473_v10 = vpack.c.bf16 %v5265_v37, %v5265_v37  ;;  %v2471_v33 = vpack.c.bf16 %v5266_v21, %v5266_v21 }
 0xb59   :  { %v2734_v25 = vunpack.c.l.b16 %v2473_v10  ;;  %v2732_v31 = vunpack.c.l.b16 %v2471_v33 }
 0xb5b   :  { %v6908_v3 = vpack.c.b16 %v2734_v25, %v2734_v25 }
 0xb5c   :  { %v2438_v18 = vpop.permute.xlu2 %2437 }
 0xb5d   :  { %v2472_v46 = vpack.c.bf16 %v2438_v18, %v2438_v18  ;;  %2739 = vrot.lane.b32.xlu1 %v6908_v3, %s8103_s2 }
 0xb5f   :  { %v2733_v32 = vunpack.c.l.b16 %v2472_v46 }
 0xb61   :  { %v6912_v15 = vpack.c.b16 %v2733_v32, %v2732_v31 }
 0xb63   :  { %v2447_v42 = vpop.permute.xlu1 %2446 }
 0xb64   :  { %v2475_v53 = vpack.c.bf16 %v2447_v42, %v2447_v42  ;;  %v5259_v60 = vpop.permute.xlu0 %5258 }
 0xb65   :  { %v5260_v0 = vunpack.i.l.bf16 %v5259_v60  ;;  %2737 = vrot.lane.b32.xlu1 %v6912_v15, %s8103_s2  ;;  %v5261_v2 = vunpack.i.h.bf16 %v5259_v60 }
 0xb66   :  { %v2775_v43 = vunpack.c.l.b16 %v2475_v53 }
 0xb67   :  { %v2470_v56 = vpack.c.bf16 %v5260_v0, %v5260_v0  ;;  %v2468_v35 = vpack.c.bf16 %v5261_v2, %v5261_v2 }
 0xb68   :  { %v6916_v7 = vpack.c.b16 %v2775_v43, %v2774_v17 }
 0xb69   :  { %v2692_v12 = vunpack.c.l.b16 %v2470_v56  ;;  %v2690_v23 = vunpack.c.l.b16 %v2468_v35 }
 0xb6a   :  { %2779 = vrot.lane.b32.xlu0 %v6916_v7, %s8103_s2 }
 0xb6b   :  { %v6920_v47 = vpack.c.b16 %v2692_v12, %v2692_v12 }
 0xb6c   :  { %v2429_v40 = vpop.permute.xlu0 %2428 }
 0xb6d   :  { %v2469_v51 = vpack.c.bf16 %v2429_v40, %v2429_v40  ;;  %3543 = vrot.lane.b32.xlu1 %v6874_v16, %s8104_s8  ;;  %2697 = vrot.lane.b32.xlu2 %v6920_v47, %s8103_s2 }
 0xb6f   :  { %v2691_v58 = vunpack.c.l.b16 %v2469_v51 }
 0xb71   :  { %v6930_v36 = vpack.c.b16 %v2691_v58, %v2690_v23 }
 0xb72   :  { %2485 = vrot.lane.b32.xlu0 %v6848_v57, %s8103_s2 }
 0xb75   :  { %3541 = vrot.lane.b32.xlu1 %v6878_v13, %s8104_s8  ;;  %2695 = vrot.lane.b32.xlu2 %v6930_v36, %s8103_s2 }
 0xb7a   :  { %2655 = vrot.lane.b32.xlu0 %v6936_v54, %s8103_s2 }
 0xb7d   :  { %2653 = vrot.lane.b32.xlu2 %v6869_v26, %s8103_s2  ;;  %3501 = vrot.lane.b32.xlu1 %v6898_v49, %s8104_s8 }
 0xb82   :  { %3463 = vrot.lane.b32.xlu0 %v6890_v8, %s8104_s8 }
 0xb85   :  { %3503 = vrot.lane.b32.xlu2 %v6882_v41, %s8104_s8  ;;  %3703 = vrot.lane.b32.xlu1 %v6904_v19, %s8104_s8 }
 0xb8a   :  { %3461 = vrot.lane.b32.xlu0 %v6888_v27, %s8104_s8 }
 0xb8d   :  { %3423 = vrot.lane.b32.xlu2 %v6896_v52, %s8104_s8  ;;  %3663 = vrot.lane.b32.xlu1 %v6908_v3, %s8104_s8 }
 0xb92   :  { %3623 = vrot.lane.b32.xlu0 %v6920_v47, %s8104_s8 }
 0xb95   :  { %v2572_v9 = vpop.permute.xlu2 %2571 }
 0xb96   :  { %v2583_v55 = vsel %vm483_vm10, %v2572_v9, 0 }
 0xb97   :  { %2591 = vmatpush.bf16.xpose.msra.mxu0 %v2583_v55 }
 0xb99   :  { %v2614_v6 = vpop.permute.xlu1 %2613 }
 0xb9a   :  { %v2625_v30 = vsel %vm483_vm10, %v2614_v6, 0  ;;  %3701 = vrot.lane.b32.xlu0 %v6916_v7, %s8104_s8 }
 0xb9b   :  { %2633 = vmatpush.bf16.xpose.msra.mxu2 %v2625_v30 }
 0xba1   :  { %v2612_v50 = vpop.permute.xlu1 %2611 }
 0xba2   :  { %v2622_v39 = vsel %vm483_vm10, %v2612_v50, 0 }
 0xba3   :  { %2634 = vmatpush.bf16.xpose.msra.mxu2 %v2622_v39 }
 0xbaa   :  { %4955 = vmatmul.msk.bf16.vlgmr.msra.gmra.mxu2 %vm483_vm10, %v6878_v13 }
 0xbaf   :  { %v2782_v28 = vpop.permute.xlu2 %2781 }
 0xbb0   :  { %v2793_v38 = vsel %vm483_vm10, %v2782_v28, 0 }
 0xbb1   :  { %v2528_v22 = vpop.permute.xlu1 %2527  ;;  %v2530_v61 = vpop.permute.xlu0 %2529  ;;  %2801 = vmatpush.bf16.xpose.msrb.mxu2 %v2793_v38 }
 0xbb2   :  { %v2541_v24 = vsel %vm483_vm10, %v2530_v61, 0  ;;  %v2538_v63 = vsel %vm483_vm10, %v2528_v22, 0 }
 0xbb3   :  { %2549 = vmatpush.bf16.xpose.msra.mxu1 %v2541_v24 }
 0xbb9   :  { %v2488_v1 = vpop.permute.xlu1 %2487  ;;  %v2570_v34 = vpop.permute.xlu0 %2569 }
 0xbba   :  { %v2499_v29 = vsel %vm483_vm10, %v2488_v1, 0  ;;  %v2580_v37 = vsel %vm483_vm10, %v2570_v34, 0  ;;  %4956 = vmatmul.msk.bf16.gmra.mxu2 %vm483_vm10, %v6874_v16 }
 0xbbb   :  { %2507 = vmatpush.bf16.xpose.msrb.mxu3 %v2499_v29  ;;  %2550 = vmatpush.bf16.xpose.msra.mxu1 %v2538_v63 }
 0xbbc   :  { %2592 = vmatpush.bf16.xpose.msra.mxu0 %v2580_v37 }
 0xbc2   :  { %4951 = vmatmul.msk.bf16.vlgmr.msra.gmra.mxu1 %vm483_vm10, %v6888_v27 }
 0xbc3   :  { %4953 = vmatmul.msk.bf16.vlgmr.msra.gmra.mxu0 %vm483_vm10, %v6898_v49 }
 0xbc7   :  { %v2698_v13 = vpop.permute.xlu2 %2697 }
 0xbc8   :  { %v2709_v10 = vsel %vm483_vm10, %v2698_v13, 0 }
 0xbc9   :  { %2717 = vmatpush.bf16.xpose.msrb.mxu1 %v2709_v10 }
 0xbcf   :  { %v2740_v21 = vpop.permute.xlu1 %2739  ;;  %v2696_v25 = vpop.permute.xlu2 %2695 }
 0xbd0   :  { %v2751_v18 = vsel %vm483_vm10, %v2740_v21, 0  ;;  %v2706_v33 = vsel %vm483_vm10, %v2696_v25, 0 }
 0xbd1   :  { %2718 = vmatpush.bf16.xpose.msrb.mxu1 %v2706_v33  ;;  %2759 = vmatpush.bf16.xpose.msrb.mxu0 %v2751_v18 }
 0xbd2   :  { %4952 = vmatmul.msk.bf16.gmra.mxu1 %vm483_vm10, %v6890_v8 }
 0xbd3   :  { %4954 = vmatmul.msk.bf16.gmra.mxu0 %vm483_vm10, %v6882_v41 }
 0xbd7   :  { %v2738_v16 = vpop.permute.xlu1 %2737  ;;  %v2654_v27 = vpop.permute.xlu2 %2653 }
 0xbd8   :  { %v2748_v49 = vsel %vm483_vm10, %v2738_v16, 0 }
 0xbd9   :  { %2760 = vmatpush.bf16.xpose.msrb.mxu0 %v2748_v49 }
 0xbdc   :  { %v2780_v46 = vpop.permute.xlu0 %2779 }
 0xbdd   :  { %v2790_v4 = vsel %vm483_vm10, %v2780_v46, 0 }
 0xbde   :  { %2802 = vmatpush.bf16.xpose.msrb.mxu2 %v2790_v4 }
 0xbdf   :  { %v3544_v32 = vpop.permute.xlu1 %3543  ;;  %v3504_v31 = vpop.permute.xlu2 %3503 }
 0xbe0   :  { %v3553_v59 = vsel %vm1429_vm12, %v3544_v32, 0  ;;  %v3513_v42 = vsel %vm1429_vm12, %v3504_v31, 0 }
 0xbe1   :  { %3521 = vmatpush.bf16.msra.mxu0 %v3513_v42 }
 0xbe2   :  { %4959 = vmatmul.msk.bf16.vlgmr.msrb.gmra.mxu1 %vm483_vm10, %v6930_v36 }
 0xbe3   :  { %4961 = vmatmul.msk.bf16.vlgmr.msrb.gmra.mxu0 %vm483_vm10, %v6912_v15 }
 0xbe4   :  { %v2486_v41 = vpop.permute.xlu0 %2485 }
 0xbe5   :  { %v2496_v8 = vsel %vm483_vm10, %v2486_v41, 0  ;;  %4963 = vmatmul.msk.bf16.vlgmr.msrb.gmra.mxu2 %vm483_vm10, %v6916_v7  ;;  %v2664_v7 = vsel %vm483_vm10, %v2654_v27, 0 }
 0xbe6   :  { %3561 = vmatpush.bf16.msra.mxu2 %v3553_v59  ;;  %2508 = vmatpush.bf16.xpose.msrb.mxu3 %v2496_v8 }
 0xbe7   :  { %v3542_v53 = vpop.permute.xlu1 %3541  ;;  %v3424_v43 = vpop.permute.xlu2 %3423 }
 0xbe8   :  { %v3433_v12 = vsel %vm1429_vm12, %v3424_v43, 0 }
 0xbea   :  { %3562 = vmatpush.bf16.msra.mxu2 %v3542_v53 }
 0xbec   :  { %v2656_v60 = vpop.permute.xlu0 %2655 }
 0xbed   :  { %v2667_v0 = vsel %vm483_vm10, %v2656_v60, 0  ;;  %4949 = vmatmul.msk.bf16.vlgmr.msrb.gmra.mxu3 %vm483_vm10, %v6848_v57 }
 0xbee   :  { %2675 = vmatpush.bf16.xpose.msra.mxu3 %v2667_v0 }
 0xbef   :  { %v3502_v17 = vpop.permute.xlu1 %3501 }
 0xbf0   :  { %3522 = vmatpush.bf16.msra.mxu0 %v3502_v17 }
 0xbf2   :  { %4960 = vmatmul.msk.bf16.gmra.mxu1 %vm483_vm10, %v6920_v47 }
 0xbf3   :  { %4962 = vmatmul.msk.bf16.gmra.mxu0 %vm483_vm10, %v6908_v3 }
 0xbf4   :  { %v3464_v56 = vpop.permute.xlu0 %3463 }
 0xbf5   :  { %v3473_v2 = vsel %vm1429_vm12, %v3464_v56, 0  ;;  %4964 = vmatmul.msk.bf16.gmra.mxu2 %vm483_vm10, %v6904_v19 }
 0xbf6   :  { %2676 = vmatpush.bf16.xpose.msra.mxu3 %v2664_v7  ;;  %3481 = vmatpush.bf16.msra.mxu1 %v3473_v2 }
 0xbf7   :  { %v3704_v40 = vpop.permute.xlu1 %3703 }
 0xbf8   :  { %v3713_v47 = vsel %vm1429_vm12, %v3704_v40, 0 }
 0xbf9   :  { %3721 = vmatpush.bf16.msrb.mxu2 %v3713_v47 }
 0xbfc   :  { %v3462_v35 = vpop.permute.xlu0 %3461 }
 0xbfd   :  { %4950 = vmatmul.msk.bf16.gmra.mxu3 %vm483_vm10, %v6896_v52  ;;  %3482 = vmatpush.bf16.msra.mxu1 %v3462_v35 }
 0xbfe   :  { %3441 = vmatpush.bf16.msrb.mxu3 %v3433_v12 }
 0xbff   :  { %v3664_v3 = vpop.permute.xlu1 %3663 }
 0xc00   :  { %v3673_v51 = vsel %vm1429_vm12, %v3664_v3, 0 }
 0xc01   :  { %3681 = vmatpush.bf16.msrb.mxu0 %v3673_v51 }
 0xc04   :  { %v3624_v58 = vpop.permute.xlu0 %3623 }
 0xc05   :  { %v3633_v19 = vsel %vm1429_vm12, %v3624_v58, 0 }
 0xc06   :  { %3641 = vmatpush.bf16.msrb.mxu1 %v3633_v19 }
 0xc0c   :  { %v3702_v62 = vpop.permute.xlu0 %3701 }
 0xc0d   :  { %4957 = vmatmul.msk.bf16.vlgmr.msra.gmra.mxu3 %vm483_vm10, %v6869_v26  ;;  %3722 = vmatpush.bf16.msrb.mxu2 %v3702_v62 }
 0xc1d   :  { %4958 = vmatmul.msk.bf16.gmra.mxu3 %vm483_vm10, %v6936_v54 }
 0xc2d   :  { %v7015_v23 = vpop.f32.mrf.mxu2 }
 0xc2e   :  { %v2840_v52 = vsel %vm808_vm11, %v7015_v23, -inf }
 0xc2f   :  { %2841 = vmax.xlane.f32.xlu1 %v2840_v52 }
 0xc35   :  { %v7019_v20 = vpop.f32.mrf.mxu2 }
 0xc36   :  { %v2843_v43 = vsel %vm808_vm11, %v7019_v20, -inf }
 0xc3d   :  { %v7021_v9 = vpop.f32.mrf.mxu2 }
 0xc3e   :  { %v2846_v61 = vsel %vm815_vm13, %v7021_v9, -inf }
 0xc3f   :  { %v7023_v55 = vpop.f32.mrf.mxu1 }
 0xc40   :  { %v7025_v6 = vpop.f32.mrf.mxu0  ;;  %v2822_v56 = vsel %vm808_vm11, %v7023_v55, -inf }
 0xc41   :  { %v2831_v60 = vsel %vm808_vm11, %v7025_v6, -inf }
 0xc45   :  { %v2643_v30 = vpop.f32.mrf.mxu2 }
 0xc47   :  { %v7027_v50 = vpop.f32.mrf.mxu1 }
 0xc48   :  { %v7029_v39 = vpop.f32.mrf.mxu0  ;;  %v2825_v28 = vsel %vm808_vm11, %v7027_v50, -inf }
 0xc49   :  { %2826 = vmax.xlane.f32.xlu1 %v2825_v28  ;;  %v2834_v12 = vsel %vm808_vm11, %v7029_v39, -inf }
 0xc4f   :  { %v7033_v38 = vpop.f32.mrf.mxu1 }
 0xc50   :  { %v7035_v22 = vpop.f32.mrf.mxu0  ;;  %v2828_v2 = vsel %vm815_vm13, %v7033_v38, -inf }
 0xc51   :  { %2847 = vmax.xlane.f32.xlu1 %v2846_v61  ;;  %v2837_v40 = vsel %vm815_vm13, %v7035_v22, -inf }
 0xc57   :  { %v2559_v24 = vpop.f32.mrf.mxu1 }
 0xc58   :  { %v2601_v1 = vpop.f32.mrf.mxu0 }
 0xc5f   :  { %v7039_v34 = vpop.f32.mrf.mxu1 }
 0xc60   :  { %v7041_v63 = vpop.f32.mrf.mxu0  ;;  %v2858_v47 = vsel %vm808_vm11, %v7039_v34, -inf }
 0xc67   :  { %v7043_v29 = vpop.f32.mrf.mxu1 }
 0xc68   :  { %v7045_v37 = vpop.f32.mrf.mxu0  ;;  %v7047_v13 = vpop.f32.mrf.mxu2 }
 0xc6f   :  { %v7049_v10 = vpop.f32.mrf.mxu1 }
 0xc70   :  { %v7051_v21 = vpop.f32.mrf.mxu0  ;;  %v2510_v25 = vpop.f32.mrf.mxu3 }
 0xc71   :  { %v7053_v18 = vpop.f32.mrf.mxu2  ;;  %v2813_v33 = vsel %vm808_vm11, %v2510_v25, -inf }
 0xc72   :  { %2814 = vmax.xlane.f32.xlu0 %v2813_v33  ;;  %v2870_v33 = vsel %vm808_vm11, %v7045_v37, -inf }
 0xc77   :  { %v2727_v16 = vpop.f32.mrf.mxu1 }
 0xc78   :  { %v2769_v27 = vpop.f32.mrf.mxu0  ;;  %v2512_v49 = vpop.f32.mrf.mxu3 }
 0xc79   :  { %v7056_v46 = vpop.f32.mrf.mxu2  ;;  %v2816_v4 = vsel %vm808_vm11, %v2512_v49, -inf }
 0xc7a   :  { %2817 = vmax.xlane.f32.xlu2 %v2816_v4  ;;  %v2879_v4 = vsel %vm808_vm11, %v7053_v18, -inf }
 0xc80   :  { %v2515_v32 = vpop.f32.mrf.mxu3 }
 0xc81   :  { %v2811_v31 = vpop.f32.mrf.mxu2  ;;  %v2819_v59 = vsel %vm815_vm13, %v2515_v32, -inf }
 0xc82   :  { %2820 = vmax.xlane.f32.xlu0 %v2819_v59 }
 0xc88   :  { %v2517_v42 = vpop.f32.mrf.mxu3 }
 0xc90   :  { %v7060_v41 = vpop.f32.mrf.mxu3 }
 0xc91   :  { %v2849_v8 = vsel %vm808_vm11, %v7060_v41, -inf }
 0xc92   :  { %2850 = vmax.xlane.f32.xlu0 %v2849_v8  ;;  %v2876_v8 = vsel %vm808_vm11, %v7047_v13, -inf }
 0xc98   :  { %v7064_v53 = vpop.f32.mrf.mxu3 }
 0xc99   :  { %v2852_v0 = vsel %vm808_vm11, %v7064_v53, -inf }
 0xc9a   :  { %2832 = vmax.xlane.f32.xlu0 %v2831_v60  ;;  %2853 = vmax.xlane.f32.xlu2 %v2852_v0 }
 0xca0   :  { %v7070_v17 = vpop.f32.mrf.mxu3 }
 0xca2   :  { %2844 = vmax.xlane.f32.xlu0 %v2843_v43  ;;  %2823 = vmax.xlane.f32.xlu2 %v2822_v56  ;;  %v2842_v16 = vpop.xlane.xlu1 %2841 }
 0xca8   :  { %v2685_v7 = vpop.f32.mrf.mxu3 }
 0xcaa   :  { %2829 = vmax.xlane.f32.xlu0 %v2828_v2  ;;  %2835 = vmax.xlane.f32.xlu2 %v2834_v12  ;;  %v2861_v2 = vsel %vm808_vm11, %v7043_v29, -inf }
 0xcb2   :  { %2838 = vmax.xlane.f32.xlu2 %v2837_v40 }
 0xcba   :  { %2859 = vmax.xlane.f32.xlu2 %v2858_v47 }
 0xcbc   :  { %v2827_v31 = vpop.xlane.xlu1 %2826 }
 0xcbd   :  { %v2889_v42 = vsub.f32 %v7027_v50, %v2827_v31 }
 0xcbf   :  { %v2917_v60 = vmul.f32 1.442695, %v2889_v42 }
 0xcc4   :  { %v2848_v47 = vpop.xlane.xlu1 %2847 }
 0xce5   :  { %v2815_v35 = vpop.xlane.xlu0 %2814 }
 0xce6   :  { %v2885_v3 = vsub.f32 %v2510_v25, %v2815_v35 }
 0xce8   :  { %v2909_v51 = vmul.f32 1.442695, %v2885_v3 }
 0xcea   :  { %5465 = vpow2.f32 %v2909_v51  ;;  %v2894_v51 = vsub.f32 %v7015_v23, %v2842_v16 }
 0xced   :  { %v2818_v58 = vpop.xlane.xlu2 %2817 }
 0xcee   :  { %v2886_v19 = vsub.f32 %v2512_v49, %v2818_v58  ;;  %v2867_v49 = vsel %vm808_vm11, %v7041_v63, -inf }
 0xcf0   :  { %v7084_v62 = vpop.eup %5465  ;;  %v2911_v52 = vmul.f32 1.442695, %v2886_v19 }
 0xcf1   :  { %v2957_v30 = vsel %vm808_vm11, %v7084_v62, 0.0 }
 0xcf2   :  { %5467 = vpow2.f32 %v2911_v52  ;;  %2958 = vadd.xlane.f32.xlu0 %v2957_v30  ;;  %v2896_v52 = vsub.f32 %v7021_v9, %v2848_v47 }
 0xcf5   :  { %v2821_v28 = vpop.xlane.xlu0 %2820 }
 0xcf6   :  { %v2887_v61 = vsub.f32 %v2515_v32, %v2821_v28 }
 0xcf8   :  { %v7088_v24 = vpop.eup %5467  ;;  %v2913_v1 = vmul.f32 1.442695, %v2887_v61 }
 0xcf9   :  { %v2960_v25 = vsel %vm808_vm11, %v7088_v24, 0.0 }
 0xcfa   :  { %5469 = vpow2.f32 %v2913_v1  ;;  %2961 = vadd.xlane.f32.xlu1 %v2960_v25  ;;  %2871 = vmax.xlane.f32.xlu0 %v2870_v33 }
 0xcfb   :  { %5471 = vpow2.f32 %v2917_v60 }
 0xd00   :  { %v7094_v27 = vpop.eup %5469 }
 0xd01   :  { %v2963_v32 = vsel %vm815_vm13, %v7094_v27, 0.0  ;;  %v7112_v50 = vpop.eup %5471 }
 0xd02   :  { %2868 = vmax.xlane.f32.xlu1 %v2867_v49  ;;  %2880 = vmax.xlane.f32.xlu0 %v2879_v4  ;;  %v2969_v30 = vsel %vm808_vm11, %v7112_v50, 0.0 }
 0xd03   :  { %2964 = vadd.xlane.f32.xlu2 %v2963_v32 }
 0xd05   :  { %v7102_v59 = vpop.xlane.xlu0 %2850 }
 0xd0a   :  { %2877 = vmax.xlane.f32.xlu1 %v2876_v8 }
 0xd0d   :  { %v7107_v0 = vpop.xlane.xlu2 %2853  ;;  %v2833_v43 = vpop.xlane.xlu0 %2832 }
 0xd0e   :  { %v2891_v56 = vsub.f32 %v7025_v6, %v2833_v43 }
 0xd10   :  { %v2921_v7 = vmul.f32 1.442695, %v2891_v56 }
 0xd12   :  { %2862 = vmax.xlane.f32.xlu1 %v2861_v2  ;;  %5473 = vpow2.f32 %v2921_v7 }
 0xd15   :  { %v2824_v12 = vpop.xlane.xlu2 %2823  ;;  %v2845_v40 = vpop.xlane.xlu0 %2844 }
 0xd16   :  { %v2888_v35 = vsub.f32 %v7023_v55, %v2824_v12  ;;  %v2895_v3 = vsub.f32 %v7019_v20, %v2845_v40  ;;  %v2927_v55 = vmul.f32 1.442695, %v2894_v51  ;;  %v2931_v20 = vmul.f32 1.442695, %v2896_v52 }
 0xd18   :  { %v2915_v58 = vmul.f32 1.442695, %v2888_v35  ;;  %v2929_v6 = vmul.f32 1.442695, %v2895_v3  ;;  %v7117_v19 = vpop.eup %5473 }
 0xd19   :  { %v2975_v28 = vsel %vm808_vm11, %v7117_v19, 0.0 }
 0xd1a   :  { %5475 = vpow2.f32 %v2915_v58  ;;  %2970 = vadd.xlane.f32.xlu1 %v2969_v30  ;;  %2976 = vadd.xlane.f32.xlu0 %v2975_v28 }
 0xd1b   :  { %5477 = vpow2.f32 %v2929_v6  ;;  %v2897_v6 = vsub.f32 %v7060_v41, %v7102_v59 }
 0xd1c   :  { %5479 = vpow2.f32 %v2927_v55 }
 0xd1d   :  { %v2836_v61 = vpop.xlane.xlu2 %2835  ;;  %v2830_v23 = vpop.xlane.xlu0 %2829  ;;  %5481 = vpow2.f32 %v2931_v20  ;;  %v2933_v20 = vmul.f32 1.442695, %v2897_v6 }
 0xd1e   :  { %v2890_v1 = vsub.f32 %v7033_v38, %v2830_v23  ;;  %v2892_v9 = vsub.f32 %v7029_v39, %v2836_v61 }
 0xd20   :  { %v7125_v25 = vpop.eup %5475  ;;  %v2919_v33 = vmul.f32 1.442695, %v2890_v1  ;;  %v2923_v32 = vmul.f32 1.442695, %v2892_v9 }
 0xd21   :  { %v7128_v16 = vpop.eup %5477  ;;  %v2966_v49 = vsel %vm808_vm11, %v7125_v25, 0.0 }
 0xd22   :  { %2967 = vadd.xlane.f32.xlu2 %v2966_v49  ;;  %v2987_v4 = vsel %vm808_vm11, %v7128_v16, 0.0  ;;  %5483 = vpow2.f32 %v2919_v33  ;;  %v7134_v31 = vpop.eup %5479 }
 0xd23   :  { %2988 = vadd.xlane.f32.xlu1 %v2987_v4  ;;  %v7136_v42 = vpop.eup %5481  ;;  %5485 = vpow2.f32 %v2923_v32  ;;  %v2984_v60 = vsel %vm808_vm11, %v7134_v31, 0.0 }
 0xd24   :  { %v2990_v43 = vsel %vm815_vm13, %v7136_v42, 0.0 }
 0xd25   :  { %v2839_v38 = vpop.xlane.xlu2 %2838 }
 0xd26   :  { %v2893_v39 = vsub.f32 %v7035_v22, %v2839_v38 }
 0xd28   :  { %v7139_v8 = vpop.eup %5483  ;;  %v2925_v7 = vmul.f32 1.442695, %v2893_v39 }
 0xd29   :  { %v2972_v56 = vsel %vm815_vm13, %v7139_v8, 0.0  ;;  %v7147_v12 = vpop.eup %5485 }
 0xd2a   :  { %2985 = vadd.xlane.f32.xlu2 %v2984_v60  ;;  %2973 = vadd.xlane.f32.xlu0 %v2972_v56  ;;  %5487 = vpow2.f32 %v2925_v7  ;;  %v2978_v47 = vsel %vm808_vm11, %v7147_v12, 0.0 }
 0xd2b   :  { %2991 = vadd.xlane.f32.xlu1 %v2990_v43 }
 0xd2d   :  { %v2860_v2 = vpop.xlane.xlu2 %2859 }
 0xd2e   :  { %v2900_v22 = vsub.f32 %v7039_v34, %v2860_v2 }
 0xd30   :  { %v2939_v40 = vmul.f32 1.442695, %v2900_v22  ;;  %v7152_v35 = vpop.eup %5487 }
 0xd31   :  { %v2981_v51 = vsel %vm815_vm13, %v7152_v35, 0.0 }
 0xd32   :  { %5489 = vpow2.f32 %v2939_v40  ;;  %2979 = vadd.xlane.f32.xlu2 %v2978_v47 }
 0xd38   :  { %v7154_v3 = vpop.eup %5489 }
 0xd39   :  { %v3002_v58 = vsel %vm808_vm11, %v7154_v3, 0.0 }
 0xd3a   :  { %2982 = vadd.xlane.f32.xlu2 %v2981_v51  ;;  %3003 = vadd.xlane.f32.xlu1 %v3002_v58 }
 0xd53   :  { %3621 = vrot.lane.b32.xlu1 %v6930_v36, %s8104_s8 }
 0xd65   :  { %v2959_v34 = vpop.xlane.xlu0 %2958 }
 0xd66   :  { %5491 = vrcp.f32 %v2959_v34  ;;  %v3040_v33 = vand.u32 2147483648, %v2959_v34  ;;  %vm3034_vm7 = vweird.f32 %v2959_v34  ;;  %v3038_v49 = vand.u32 2147483647, %v2959_v34 }
 0xd68   :  { %v3041_v39 = vor.u32 1.1754944e-38, %v3040_v33  ;;  %vm3039_vm0 = vcmp.eq.f32.partialorder %v3038_v49, 8.507059e+37 }
 0xd6c   :  { %v5492_v52 = vpop.eup %5491 }
 0xd6d   :  { %v3030_v30 = vmul.f32 %v5492_v52, %v2959_v34  ;;  %v2962_v28 = vpop.xlane.xlu1 %2961  ;;  %v2872_v55 = vpop.xlane.xlu0 %2871  ;;  %vm3035_vm1 = vweird.f32 %v5492_v52 }
 0xd6e   :  { %5493 = vrcp.f32 %v2962_v28  ;;  %v2904_v23 = vsub.f32 %v7045_v37, %v2872_v55  ;;  %vm3036_vm14 = vmor %vm3034_vm7, %vm3035_vm1  ;;  %v3055_v2 = vand.u32 2147483648, %v2962_v28  ;;  %v3053_v51 = vand.u32 2147483647, %v2962_v28 }
 0xd6f   :  { %v3031_v61 = vsub.f32 1.0, %v3030_v30  ;;  %5495 = vpow2.f32 %v2933_v20  ;;  %vm3049_vm15 = vweird.f32 %v2962_v28 }
 0xd70   :  { %v2947_v9 = vmul.f32 1.442695, %v2904_v23  ;;  %v3056_v6 = vor.u32 1.1754944e-38, %v3055_v2  ;;  %vm3054_vm9 = vcmp.eq.f32.partialorder %v3053_v51, 8.507059e+37 }
 0xd71   :  { %v3032_v1 = vmul.f32 %v5492_v52, %v3031_v61 }
 0xd72   :  { %5497 = vpow2.f32 %v2947_v9 }
 0xd73   :  { %v3033_v36 = vadd.f32 %v5492_v52, %v3032_v1 }
 0xd74   :  { %v5494_v4 = vpop.eup %5493 }
 0xd75   :  { %v3037_v41 = vsel %vm3036_vm14, %v5492_v52, %v3033_v36  ;;  %v3045_v59 = vmul.f32 %v5494_v4, %v2962_v28  ;;  %v2869_v32 = vpop.xlane.xlu1 %2868  ;;  %v2881_v38 = vpop.xlane.xlu0 %2880  ;;  %vm3050_vm2 = vweird.f32 %v5494_v4 }
 0xd76   :  { %v2903_v60 = vsub.f32 %v7041_v63, %v2869_v32  ;;  %v2907_v37 = vsub.f32 %v7053_v18, %v2881_v38  ;;  %v7167_v56 = vpop.eup %5495  ;;  %v3042_v7 = vsel %vm3039_vm0, %v3041_v39, %v3037_v41  ;;  %vm3051_vm3 = vmor %vm3049_vm15, %vm3050_vm2 }
 0xd77   :  { %v3046_v43 = vsub.f32 1.0, %v3045_v59  ;;  %v3043_v63 = vmul.f32 %v7084_v62, %v3042_v7  ;;  %v2993_v52 = vsel %vm808_vm11, %v7167_v56, 0.0 }
 0xd78   :  { %v2945_v22 = vmul.f32 1.442695, %v2903_v60  ;;  %v7169_v40 = vpop.eup %5497  ;;  %v2953_v58 = vmul.f32 1.442695, %v2907_v37  ;;  %v7197_v60 = vpop.xlane.xlu2 %2964 }
 0xd79   :  { %v3047_v47 = vmul.f32 %v5494_v4, %v3046_v43  ;;  %v3014_v34 = vsel %vm808_vm11, %v7169_v40, 0.0  ;;  %v3389_v23 = vpack.c.bf16 %v3043_v63, %v3043_v63 }
 0xd7a   :  { %5499 = vpow2.f32 %v2945_v22  ;;  %3015 = vadd.xlane.f32.xlu0 %v3014_v34  ;;  %v2898_v22 = vsub.f32 %v7064_v53, %v7107_v0 }
 0xd7b   :  { %v3048_v18 = vadd.f32 %v5494_v4, %v3047_v47  ;;  %5501 = vpow2.f32 %v2953_v58 }
 0xd7d   :  { %v3052_v30 = vsel %vm3051_vm3, %v5494_v4, %v3048_v18  ;;  %v2878_v55 = vpop.xlane.xlu1 %2877  ;;  %2994 = vadd.xlane.f32.xlu1 %v2993_v52  ;;  %v7186_v4 = vunpack.c.l.b16 %v3389_v23 }
 0xd7e   :  { %v3057_v20 = vsel %vm3054_vm9, %v3056_v6, %v3052_v30  ;;  %v2906_v61 = vsub.f32 %v7047_v13, %v2878_v55  ;;  %v2935_v6 = vmul.f32 1.442695, %v2898_v22 }
 0xd7f   :  { %v3058_v1 = vmul.f32 %v7088_v24, %v3057_v20 }
 0xd80   :  { %v7178_v62 = vpop.eup %5499  ;;  %v2951_v28 = vmul.f32 1.442695, %v2906_v61 }
 0xd81   :  { %v7180_v9 = vpop.eup %5501  ;;  %v3390_v33 = vpack.c.bf16 %v3058_v1, %v3058_v1  ;;  %v3011_v36 = vsel %vm808_vm11, %v7178_v62, 0.0 }
 0xd82   :  { %5503 = vpow2.f32 %v2951_v28  ;;  %3012 = vadd.xlane.f32.xlu2 %v3011_v36  ;;  %v3023_v49 = vsel %vm808_vm11, %v7180_v9, 0.0 }
 0xd83   :  { %v7188_v13 = vunpack.c.l.b16 %v3390_v33  ;;  %3024 = vadd.xlane.f32.xlu0 %v3023_v49 }
 0xd85   :  { %v3419_v24 = vpack.c.b16 %v7188_v13, %v7186_v4  ;;  %v2863_v41 = vpop.xlane.xlu1 %2862 }
 0xd86   :  { %v2901_v59 = vsub.f32 %v7043_v29, %v2863_v41 }
 0xd88   :  { %v7193_v32 = vpop.eup %5503  ;;  %v2941_v38 = vmul.f32 1.442695, %v2901_v59 }
 0xd89   :  { %v3020_v39 = vsel %vm808_vm11, %v7193_v32, 0.0 }
 0xd8a   :  { %5505 = vpow2.f32 %v2941_v38  ;;  %3021 = vadd.xlane.f32.xlu2 %v3020_v39 }
 0xd8d   :  { %v2971_v37 = vpop.xlane.xlu1 %2970  ;;  %v7199_v43 = vpop.xlane.xlu0 %2976 }
 0xd8e   :  { %5507 = vrcp.f32 %v2971_v37  ;;  %v3098_v30 = vand.u32 2147483647, %v2971_v37  ;;  %v3100_v55 = vand.u32 2147483648, %v2971_v37  ;;  %vm3094_vm5 = vweird.f32 %v2971_v37 }
 0xd8f   :  { %5509 = vrcp.f32 %v7199_v43  ;;  %vm3124_vm7 = vweird.f32 %v7199_v43 }
 0xd90   :  { %v7202_v7 = vpop.eup %5505  ;;  %vm3099_vm14 = vcmp.eq.f32.partialorder %v3098_v30, 8.507059e+37  ;;  %v3101_v36 = vor.u32 1.1754944e-38, %v3100_v55  ;;  %v3130_v30 = vand.u32 2147483648, %v7199_v43 }
 0xd91   :  { %v3005_v29 = vsel %vm808_vm11, %v7202_v7, 0.0 }
 0xd92   :  { %3006 = vadd.xlane.f32.xlu2 %v3005_v29 }
 0xd94   :  { %v5508_v2 = vpop.eup %5507 }
 0xd95   :  { %v7208_v47 = vpop.eup %5509  ;;  %v3090_v51 = vmul.f32 %v5508_v2, %v2971_v37  ;;  %v2968_v58 = vpop.xlane.xlu2 %2967  ;;  %vm3095_vm6 = vweird.f32 %v5508_v2 }
 0xd96   :  { %v3120_v34 = vmul.f32 %v7208_v47, %v7199_v43  ;;  %5511 = vrcp.f32 %v2968_v58  ;;  %v2989_v63 = vpop.xlane.xlu1 %2988  ;;  %vm7214_vm1 = vmor %vm3094_vm5, %vm3095_vm6  ;;  %vm3125_vm0 = vweird.f32 %v7208_v47  ;;  %v3083_v39 = vand.u32 2147483647, %v2968_v58 }
 0xd97   :  { %v3091_v18 = vsub.f32 1.0, %v3090_v51  ;;  %5513 = vrcp.f32 %v2989_v63  ;;  %3421 = vrot.lane.b32.xlu0 %v6848_v57, %s8104_s8  ;;  %v3128_v57 = vand.u32 2147483647, %v7199_v43  ;;  %v3085_v29 = vand.u32 2147483648, %v2968_v58  ;;  %vm7241_vm3 = vmor %vm3124_vm7, %vm3125_vm0 }
 0xd98   :  { %v3121_v53 = vsub.f32 1.0, %v3120_v34  ;;  %5515 = vpow2.f32 %v2935_v6  ;;  %v3188_v22 = vand.u32 2147483647, %v2989_v63  ;;  %v3190_v34 = vand.u32 2147483648, %v2989_v63 }
 0xd99   :  { %v3092_v52 = vmul.f32 %v5508_v2, %v3091_v18  ;;  %vm7245_vm9 = vcmp.eq.f32.partialorder %v3128_v57, 8.507059e+37  ;;  %vm3079_vm6 = vweird.f32 %v2968_v58 }
 0xd9a   :  { %v3122_v49 = vmul.f32 %v7208_v47, %v3121_v53  ;;  %vm3189_vm7 = vcmp.eq.f32.partialorder %v3188_v22, 8.507059e+37  ;;  %v3191_v43 = vor.u32 1.1754944e-38, %v3190_v34 }
 0xd9b   :  { %v3093_v0 = vadd.f32 %v5508_v2, %v3092_v52 }
 0xd9c   :  { %v5512_v20 = vpop.eup %5511  ;;  %v3123_v52 = vadd.f32 %v7208_v47, %v3122_v49 }
 0xd9d   :  { %v5514_v23 = vpop.eup %5513  ;;  %v3097_v1 = vsel %vm7214_vm1, %v5508_v2, %v3093_v0  ;;  %v3075_v28 = vmul.f32 %v5512_v20, %v2968_v58  ;;  %v7222_v33 = vpop.xlane.xlu2 %2985  ;;  %vm3080_vm2 = vweird.f32 %v5512_v20  ;;  %vm3184_vm1 = vweird.f32 %v2989_v63 }
 0xd9e   :  { %v3180_v41 = vmul.f32 %v5514_v23, %v2989_v63  ;;  %v7225_v59 = vpop.xlane.xlu1 %2991  ;;  %5517 = vrcp.f32 %v7222_v33  ;;  %v3102_v37 = vsel %vm3099_vm14, %v3101_v36, %v3097_v1  ;;  %v7230_v18 = vpop.xlane.xlu0 %2973  ;;  %vm3185_vm15 = vweird.f32 %v5514_v23  ;;  %vm3081_vm5 = vmor %vm3079_vm6, %vm3080_vm2 }
 0xd9f   :  { %v3076_v38 = vsub.f32 1.0, %v3075_v28  ;;  %5519 = vrcp.f32 %v7225_v59  ;;  %v7232_v6 = vpop.eup %5515  ;;  %v3103_v53 = vmul.f32 %v7112_v50, %v3102_v37  ;;  %v3086_v28 = vor.u32 1.1754944e-38, %v3085_v29  ;;  %vm3186_vm4 = vmor %vm3184_vm1, %vm3185_vm15 }
 0xda0   :  { %v3181_v2 = vsub.f32 1.0, %v3180_v41  ;;  %5521 = vrcp.f32 %v7230_v18  ;;  %vm3084_vm14 = vcmp.eq.f32.partialorder %v3083_v39, 8.507059e+37  ;;  %v3127_v57 = vsel %vm7241_vm3, %v7208_v47, %v3123_v52 }
 0xda1   :  { %v3077_v51 = vmul.f32 %v5512_v20, %v3076_v38  ;;  %v3393_v63 = vpack.c.bf16 %v3103_v53, %v3103_v53  ;;  %v3173_v22 = vand.u32 2147483647, %v7222_v33  ;;  %v3175_v34 = vand.u32 2147483648, %v7222_v33 }
 0xda2   :  { %v3182_v55 = vmul.f32 %v5514_v23, %v3181_v2  ;;  %v3131_v2 = vor.u32 1.1754944e-38, %v3130_v30  ;;  %vm3169_vm0 = vweird.f32 %v7222_v33  ;;  %vm3199_vm6 = vweird.f32 %v7225_v59 }
 0xda3   :  { %v3078_v1 = vadd.f32 %v5512_v20, %v3077_v51  ;;  %v3457_v0 = vunpack.c.l.b16 %v3393_v63  ;;  %vm3174_vm2 = vcmp.eq.f32.partialorder %v3173_v22, 8.507059e+37  ;;  %vm3109_vm1 = vweird.f32 %v7230_v18 }
 0xda4   :  { %v3183_v36 = vadd.f32 %v5514_v23, %v3182_v55  ;;  %v5518_v50 = vpop.eup %5517  ;;  %v3132_v47 = vsel %vm7245_vm9, %v3131_v2, %v3127_v57  ;;  %v3113_v57 = vand.u32 2147483647, %v7230_v18 }
 0xda5   :  { %v3082_v49 = vsel %vm3081_vm5, %v5512_v20, %v3078_v1  ;;  %v7250_v41 = vpop.xlane.xlu2 %2979  ;;  %v3165_v37 = vmul.f32 %v5518_v50, %v7222_v33  ;;  %v7256_v29 = vpop.eup %5519  ;;  %v3115_v33 = vand.u32 2147483648, %v7230_v18 }
 0xda6   :  { %v3087_v38 = vsel %vm3084_vm14, %v3086_v28, %v3082_v49  ;;  %v3187_v58 = vsel %vm3186_vm4, %v5514_v23, %v3183_v36  ;;  %v3195_v55 = vmul.f32 %v7256_v29, %v7225_v59  ;;  %5523 = vrcp.f32 %v7250_v41  ;;  %v5522_v52 = vpop.eup %5521 }
 0xda7   :  { %v3088_v20 = vmul.f32 %v7125_v25, %v3087_v38  ;;  %v3192_v39 = vsel %vm3189_vm7, %v3191_v43, %v3187_v58  ;;  %v3166_v51 = vsub.f32 1.0, %v3165_v37  ;;  %vm3170_vm4 = vweird.f32 %v5518_v50 }
 0xda8   :  { %v3193_v30 = vmul.f32 %v7128_v16, %v3192_v39  ;;  %v3196_v25 = vsub.f32 1.0, %v3195_v55  ;;  %v3105_v28 = vmul.f32 %v5522_v52, %v7230_v18  ;;  %v3176_v36 = vor.u32 1.1754944e-38, %v3175_v34  ;;  %vm3171_vm15 = vmor %vm3169_vm0, %vm3170_vm4 }
 0xda9   :  { %v3392_v23 = vpack.c.bf16 %v3088_v20, %v3088_v20  ;;  %v3167_v53 = vmul.f32 %v5518_v50, %v3166_v51  ;;  %vm3200_vm3 = vweird.f32 %v7256_v29  ;;  %vm3110_vm9 = vweird.f32 %v5522_v52 }
 0xdaa   :  { %3661 = vrot.lane.b32.xlu2 %v6912_v15, %s8104_s8  ;;  %v3197_v49 = vmul.f32 %v7256_v29, %v3196_v25  ;;  %v3106_v16 = vsub.f32 1.0, %v3105_v28  ;;  %v3399_v15 = vpack.c.bf16 %v3193_v30, %v3193_v30  ;;  %v3203_v51 = vand.u32 2147483647, %v7225_v59  ;;  %vm7286_vm5 = vmor %vm3199_vm6, %vm3200_vm3 }
 0xdab   :  { %v3456_v1 = vunpack.c.l.b16 %v3392_v23  ;;  %v3168_v61 = vadd.f32 %v5518_v50, %v3167_v53  ;;  %v3205_v34 = vand.u32 2147483648, %v7225_v59  ;;  %vm3114_vm14 = vcmp.eq.f32.partialorder %v3113_v57, 8.507059e+37  ;;  %vm3111_vm7 = vmor %vm3109_vm1, %vm3110_vm9 }
 0xdac   :  { %v5524_v37 = vpop.eup %5523  ;;  %v3198_v2 = vadd.f32 %v7256_v29, %v3197_v49  ;;  %v3107_v20 = vmul.f32 %v5522_v52, %v3106_v16  ;;  %v3143_v53 = vand.u32 2147483647, %v7250_v41  ;;  %v3537_v25 = vunpack.c.l.b16 %v3399_v15 }
 0xdad   :  { %v3459_v43 = vpack.c.b16 %v3457_v0, %v3456_v1  ;;  %v7274_v38 = vpop.xlane.xlu2 %2982  ;;  %v3172_v58 = vsel %vm3171_vm15, %v5518_v50, %v3168_v61  ;;  %v3135_v50 = vmul.f32 %v5524_v37, %v7250_v41  ;;  %v3145_v59 = vand.u32 2147483648, %v7250_v41  ;;  %v7311_v22 = vpop.xlane.xlu1 %3003 }
 0xdae   :  { %5525 = vrcp.f32 %v7274_v38  ;;  %v3177_v63 = vsel %vm3174_vm2, %v3176_v36, %v3172_v58  ;;  %v3108_v55 = vadd.f32 %v5522_v52, %v3107_v20  ;;  %v3202_v0 = vsel %vm7286_vm5, %v7256_v29, %v3198_v2 }
 0xdaf   :  { %4967 = vmatmul.msk.bf16.vlgmr.msra.gmra.mxu1 %vm808_vm11, %v3459_v43  ;;  %v3178_v39 = vmul.f32 %v7134_v31, %v3177_v63  ;;  %v3116_v31 = vor.u32 1.1754944e-38, %v3115_v33  ;;  %v3136_v30 = vsub.f32 1.0, %v3135_v50  ;;  %vm3140_vm4 = vweird.f32 %v5524_v37 }
 0xdb0   :  { %v3112_v1 = vsel %vm3111_vm7, %v5522_v52, %v3108_v55  ;;  %v3133_v49 = vmul.f32 %v7117_v19, %v3132_v47  ;;  %v3206_v43 = vor.u32 1.1754944e-38, %v3205_v34  ;;  %vm3204_vm0 = vcmp.eq.f32.partialorder %v3203_v51, 8.507059e+37 }
 0xdb1   :  { %v3398_v23 = vpack.c.bf16 %v3178_v39, %v3178_v39  ;;  %v3137_v61 = vmul.f32 %v5524_v37, %v3136_v30  ;;  %v3117_v36 = vsel %vm3114_vm14, %v3116_v31, %v3112_v1  ;;  %vm3139_vm2 = vweird.f32 %v7250_v41 }
 0xdb2   :  { %3583 = vrot.lane.b32.xlu2 %v6936_v54, %s8104_s8  ;;  %v3118_v54 = vmul.f32 %v7139_v8, %v3117_v36  ;;  %vm3141_vm15 = vmor %vm3139_vm2, %vm3140_vm4  ;;  %v3146_v29 = vor.u32 1.1754944e-38, %v3145_v59  ;;  %v3207_v33 = vsel %vm3204_vm0, %v3206_v43, %v3202_v0  ;;  %vm3144_vm3 = vcmp.eq.f32.partialorder %v3143_v53, 8.507059e+37 }
 0xdb3   :  { %v3536_v18 = vunpack.c.l.b16 %v3398_v23  ;;  %v3138_v15 = vadd.f32 %v5524_v37, %v3137_v61  ;;  %v3395_v20 = vpack.c.bf16 %v3133_v49, %v3133_v49  ;;  %v3208_v41 = vmul.f32 %v7136_v42, %v3207_v33 }
 0xdb4   :  { %v5526_v28 = vpop.eup %5525  ;;  %v3394_v58 = vpack.c.bf16 %v3118_v54, %v3118_v54  ;;  %v3160_v51 = vand.u32 2147483648, %v7274_v38  ;;  %vm3154_vm6 = vweird.f32 %v7274_v38  ;;  %v2996_v42 = vsel %vm808_vm11, %v7232_v6, 0.0 }
 0xdb5   :  { %v3150_v16 = vmul.f32 %v5526_v28, %v7274_v38  ;;  %v3539_v57 = vpack.c.b16 %v3537_v25, %v3536_v18  ;;  %v3142_v63 = vsel %vm3141_vm15, %v5524_v37, %v3138_v15  ;;  %vm3155_vm9 = vweird.f32 %v5526_v28 }
 0xdb6   :  { %v3147_v19 = vsel %vm3144_vm3, %v3146_v29, %v3142_v63  ;;  %v3458_v2 = vunpack.c.l.b16 %v3394_v58  ;;  %v3158_v37 = vand.u32 2147483647, %v7274_v38  ;;  %vm3156_vm5 = vmor %vm3154_vm6, %vm3155_vm9  ;;  %v3496_v55 = vunpack.c.l.b16 %v3395_v20 }
 0xdb7   :  { %v3151_v52 = vsub.f32 1.0, %v3150_v16  ;;  %4971 = vmatmul.msk.bf16.vlgmr.msra.gmra.mxu2 %vm808_vm11, %v3539_v57  ;;  %v3148_v8 = vmul.f32 %v7147_v12, %v3147_v19  ;;  %v3400_v31 = vpack.c.bf16 %v3208_v41, %v3208_v41  ;;  %v3161_v30 = vor.u32 1.1754944e-38, %v3160_v51 }
 0xdb8   :  { %v3460_v34 = vpack.c.b16 %v3458_v2, %v3458_v2  ;;  %vm3159_vm1 = vcmp.eq.f32.partialorder %v3158_v37, 8.507059e+37  ;;  %v2855_v61 = vsel %vm815_vm13, %v7070_v17, -inf  ;;  %5527 = vrcp.f32 %v7197_v60 }
 0xdb9   :  { %v3152_v47 = vmul.f32 %v5526_v28, %v3151_v52  ;;  %v3396_v50 = vpack.c.bf16 %v3148_v8, %v3148_v8  ;;  %v3538_v38 = vunpack.c.l.b16 %v3400_v31  ;;  %vm3064_vm4 = vweird.f32 %v7197_v60 }
 0xdba   :  { %3581 = vrot.lane.b32.xlu2 %v6869_v26, %s8104_s8  ;;  %v3070_v51 = vand.u32 2147483648, %v7197_v60 }
 0xdbb   :  { %v3153_v39 = vadd.f32 %v5526_v28, %v3152_v47  ;;  %v3497_v12 = vunpack.c.l.b16 %v3396_v50  ;;  %v3540_v1 = vpack.c.b16 %v3538_v38, %v3538_v38 }
 0xdbd   :  { %v3157_v23 = vsel %vm3156_vm5, %v5526_v28, %v3153_v39  ;;  %v3499_v26 = vpack.c.b16 %v3497_v12, %v3496_v55 }
 0xdbe   :  { %v3162_v53 = vsel %vm3159_vm1, %v3161_v30, %v3157_v23 }
 0xdbf   :  { %4968 = vmatmul.msk.bf16.gmra.mxu1 %vm808_vm11, %v3460_v34  ;;  %4969 = vmatmul.msk.bf16.vlgmr.msra.gmra.mxu0 %vm808_vm11, %v3499_v26  ;;  %v3163_v25 = vmul.f32 %v7152_v35, %v3162_v53  ;;  %v7324_v35 = vpop.eup %5527 }
 0xdc0   :  { %v3060_v16 = vmul.f32 %v7324_v35, %v7197_v60  ;;  %vm3065_vm2 = vweird.f32 %v7324_v35 }
 0xdc1   :  { %2997 = vadd.xlane.f32.xlu0 %v2996_v42  ;;  %v3397_v59 = vpack.c.bf16 %v3163_v25, %v3163_v25 }
 0xdc2   :  { %v3061_v52 = vsub.f32 1.0, %v3060_v16 }
 0xdc3   :  { %v3498_v28 = vunpack.c.l.b16 %v3397_v59 }
 0xdc4   :  { %v3062_v39 = vmul.f32 %v7324_v35, %v3061_v52  ;;  %v3071_v52 = vor.u32 1.1754944e-38, %v3070_v51 }
 0xdc5   :  { %v3622_v0 = vpop.permute.xlu1 %3621  ;;  %v3500_v18 = vpack.c.b16 %v3498_v28, %v3498_v28 }
 0xdc6   :  { %3642 = vmatpush.bf16.msrb.mxu1 %v3622_v0  ;;  %v3063_v53 = vadd.f32 %v7324_v35, %v3062_v39 }
 0xdc7   :  { %4972 = vmatmul.msk.bf16.gmra.mxu2 %vm808_vm11, %v3540_v1 }
 0xdcf   :  { %4970 = vmatmul.msk.bf16.gmra.mxu0 %vm808_vm11, %v3500_v18 }
 0xde3   :  { %2856 = vmax.xlane.f32.xlu2 %v2855_v61 }
 0xded   :  { %v3016_v36 = vpop.xlane.xlu0 %3015 }
 0xdee   :  { %5529 = vrcp.f32 %v3016_v36  ;;  %v3325_v47 = vand.u32 2147483648, %v3016_v36  ;;  %vm3319_vm7 = vweird.f32 %v3016_v36  ;;  %v3323_v20 = vand.u32 2147483647, %v3016_v36 }
 0xdef   :  { %5531 = vrcp.f32 %v7311_v22 }
 0xdf0   :  { %v3326_v23 = vor.u32 1.1754944e-38, %v3325_v47  ;;  %vm3324_vm15 = vcmp.eq.f32.partialorder %v3323_v20, 8.507059e+37 }
 0xdf4   :  { %v5530_v49 = vpop.eup %5529 }
 0xdf5   :  { %v3013_v43 = vpop.xlane.xlu2 %3012  ;;  %v3315_v54 = vmul.f32 %v5530_v49, %v3016_v36  ;;  %v7331_v15 = vpop.eup %5531  ;;  %vm3320_vm14 = vweird.f32 %v5530_v49 }
 0xdf6   :  { %5533 = vrcp.f32 %v3013_v43  ;;  %v7328_v57 = vpop.xlane.xlu0 %3024  ;;  %v3255_v33 = vmul.f32 %v7331_v15, %v7311_v22  ;;  %vm7340_vm0 = vmor %vm3319_vm7, %vm3320_vm14  ;;  %v3310_v31 = vand.u32 2147483648, %v3013_v43  ;;  %v3308_v42 = vand.u32 2147483647, %v3013_v43 }
 0xdf7   :  { %5535 = vrcp.f32 %v7328_v57  ;;  %v3316_v29 = vsub.f32 1.0, %v3315_v54  ;;  %vm3304_vm6 = vweird.f32 %v3013_v43  ;;  %v3370_v59 = vand.u32 2147483648, %v7328_v57 }
 0xdf8   :  { %v3256_v34 = vsub.f32 1.0, %v3255_v33  ;;  %v3311_v28 = vor.u32 1.1754944e-38, %v3310_v31  ;;  %vm3364_vm1 = vweird.f32 %v7328_v57  ;;  %v3368_v61 = vand.u32 2147483647, %v7328_v57 }
 0xdf9   :  { %v3317_v58 = vmul.f32 %v5530_v49, %v3316_v29  ;;  %vm3309_vm14 = vcmp.eq.f32.partialorder %v3308_v42, 8.507059e+37  ;;  %v3371_v47 = vor.u32 1.1754944e-38, %v3370_v59 }
 0xdfa   :  { %v3257_v0 = vmul.f32 %v7331_v15, %v3256_v34  ;;  %v3263_v34 = vand.u32 2147483647, %v7311_v22 }
 0xdfb   :  { %v3318_v19 = vadd.f32 %v5530_v49, %v3317_v58 }
 0xdfc   :  { %v5534_v63 = vpop.eup %5533 }
 0xdfd   :  { %v5536_v2 = vpop.eup %5535  ;;  %v3300_v8 = vmul.f32 %v5534_v63, %v3013_v43  ;;  %v7335_v41 = vpop.xlane.xlu2 %3021  ;;  %v3322_v55 = vsel %vm7340_vm0, %v5530_v49, %v3318_v19  ;;  %vm3305_vm3 = vweird.f32 %v5534_v63  ;;  %v3068_v49 = vand.u32 2147483647, %v7197_v60  ;;  %vm7367_vm0 = vmor %vm3064_vm4, %vm3065_vm2 }
 0xdfe   :  { %v3360_v37 = vmul.f32 %v5536_v2, %v7328_v57  ;;  %5537 = vrcp.f32 %v7335_v41  ;;  %v3327_v38 = vsel %vm3324_vm15, %v3326_v23, %v3322_v55  ;;  %vm3365_vm9 = vweird.f32 %v5536_v2  ;;  %vm3306_vm5 = vmor %vm3304_vm6, %vm3305_vm3 }
 0xdff   :  { %v3301_v12 = vsub.f32 1.0, %v3300_v8  ;;  %v3328_v16 = vmul.f32 %v7169_v40, %v3327_v38  ;;  %vm7357_vm7 = vmor %vm3364_vm1, %vm3365_vm9  ;;  %v3258_v60 = vadd.f32 %v7331_v15, %v3257_v0  ;;  %vm3260_vm4 = vweird.f32 %v7331_v15 }
 0xe00   :  { %v3361_v30 = vsub.f32 1.0, %v3360_v37  ;;  %vm3369_vm2 = vcmp.eq.f32.partialorder %v3368_v61, 8.507059e+37  ;;  %v3355_v51 = vand.u32 2147483648, %v7335_v41  ;;  %v3265_v37 = vand.u32 2147483648, %v7311_v22 }
 0xe01   :  { %v3302_v26 = vmul.f32 %v5534_v63, %v3301_v12  ;;  %v3408_v8 = vpack.c.bf16 %v3328_v16, %v3328_v16  ;;  %vm3069_vm3 = vcmp.eq.f32.partialorder %v3068_v49, 8.507059e+37  ;;  %vm3259_vm9 = vweird.f32 %v7311_v22 }
 0xe02   :  { %v3362_v25 = vmul.f32 %v5536_v2, %v3361_v30  ;;  %vm7388_vm6 = vmor %vm3259_vm9, %vm3260_vm4  ;;  %v3356_v22 = vor.u32 1.1754944e-38, %v3355_v51 }
 0xe03   :  { %v3303_v1 = vadd.f32 %v5534_v63, %v3302_v26  ;;  %v3262_v42 = vsel %vm7388_vm6, %v7331_v15, %v3258_v60 }
 0xe04   :  { %v3363_v18 = vadd.f32 %v5536_v2, %v3362_v25  ;;  %v5538_v36 = vpop.eup %5537 }
 0xe05   :  { %v3307_v54 = vsel %vm3306_vm5, %v5534_v63, %v3303_v1  ;;  %v7361_v43 = vpop.xlane.xlu2 %3006  ;;  %v3345_v33 = vmul.f32 %v5538_v36, %v7335_v41  ;;  %v3067_v63 = vsel %vm7367_vm0, %v7324_v35, %v3063_v53  ;;  %vm3350_vm15 = vweird.f32 %v5538_v36 }
 0xe06   :  { %v3312_v58 = vsel %vm3309_vm14, %v3311_v28, %v3307_v54  ;;  %v3367_v40 = vsel %vm7357_vm7, %v5536_v2, %v3363_v18  ;;  %5539 = vrcp.f32 %v7361_v43  ;;  %vm3349_vm5 = vweird.f32 %v7335_v41 }
 0xe07   :  { %v3313_v19 = vmul.f32 %v7178_v62, %v3312_v58  ;;  %v3346_v20 = vsub.f32 1.0, %v3345_v33  ;;  %v3372_v2 = vsel %vm3369_vm2, %v3371_v47, %v3367_v40  ;;  %v3353_v62 = vand.u32 2147483647, %v7335_v41  ;;  %vm3351_vm1 = vmor %vm3349_vm5, %vm3350_vm15 }
 0xe08   :  { %v3373_v23 = vmul.f32 %v7180_v9, %v3372_v2  ;;  %v3072_v30 = vsel %vm3069_vm3, %v3071_v52, %v3067_v63  ;;  %v3657_v53 = vunpack.c.l.b16 %v3408_v8  ;;  %v3266_v9 = vor.u32 1.1754944e-38, %v3265_v37  ;;  %v2995_v2 = vpop.xlane.xlu1 %2994 }
 0xe09   :  { %v3407_v39 = vpack.c.bf16 %v3313_v19, %v3313_v19  ;;  %v3422_v50 = vpop.permute.xlu0 %3421  ;;  %v3347_v35 = vmul.f32 %v5538_v36, %v3346_v20  ;;  %vm3354_vm14 = vcmp.eq.f32.partialorder %v3353_v62, 8.507059e+37  ;;  %vm3264_vm7 = vcmp.eq.f32.partialorder %v3263_v34, 8.507059e+37 }
 0xe0a   :  { %3442 = vmatpush.bf16.msrb.mxu3 %v3422_v50  ;;  %v3073_v15 = vmul.f32 %v7094_v27, %v3072_v30  ;;  %v3267_v59 = vsel %vm3264_vm7, %v3266_v9, %v3262_v42  ;;  %v3411_v28 = vpack.c.bf16 %v3373_v23, %v3373_v23  ;;  %v3280_v4 = vand.u32 2147483648, %v7361_v43 }
 0xe0b   :  { %v3656_v55 = vunpack.c.l.b16 %v3407_v39  ;;  %v3348_v31 = vadd.f32 %v5538_v36, %v3347_v35  ;;  %v3268_v49 = vmul.f32 %v7154_v3, %v3267_v59  ;;  %vm3274_vm4 = vweird.f32 %v7361_v43 }
 0xe0c   :  { %v5540_v26 = vpop.eup %5539  ;;  %v3391_v16 = vpack.c.bf16 %v3073_v15, %v3073_v15  ;;  %v3697_v54 = vunpack.c.l.b16 %v3411_v28  ;;  %5541 = vrcp.f32 %v2995_v2  ;;  %v3220_v23 = vand.u32 2147483648, %v2995_v2 }
 0xe0d   :  { %4965 = vmatmul.msk.bf16.vlgmr.msrb.gmra.mxu3 %vm808_vm11, %v3419_v24  ;;  %v3662_v38 = vpop.permute.xlu2 %3661  ;;  %v3352_v25 = vsel %vm3351_vm1, %v5538_v36, %v3348_v31  ;;  %v3270_v41 = vmul.f32 %v5540_v26, %v7361_v43  ;;  %v3659_v0 = vpack.c.b16 %v3657_v53, %v3656_v55  ;;  %vm3275_vm0 = vweird.f32 %v5540_v26 }
 0xe0e   :  { %3682 = vmatpush.bf16.msrb.mxu0 %v3662_v38  ;;  %v3357_v1 = vsel %vm3354_vm14, %v3356_v22, %v3352_v25  ;;  %v3278_v36 = vand.u32 2147483647, %v7361_v43  ;;  %vm3276_vm2 = vmor %vm3274_vm4, %vm3275_vm0  ;;  %v3418_v63 = vunpack.c.l.b16 %v3391_v16  ;;  %v3404_v19 = vpack.c.bf16 %v3268_v49, %v3268_v49 }
 0xe0f   :  { %v3358_v18 = vmul.f32 %v7193_v32, %v3357_v1  ;;  %v3271_v61 = vsub.f32 1.0, %v3270_v41  ;;  %v3281_v32 = vor.u32 1.1754944e-38, %v3280_v4  ;;  %vm3214_vm9 = vweird.f32 %v2995_v2 }
 0xe10   :  { %vm3279_vm15 = vcmp.eq.f32.partialorder %v3278_v36, 8.507059e+37  ;;  %v3420_v60 = vpack.c.b16 %v3418_v63, %v3418_v63  ;;  %v3616_v20 = vunpack.c.l.b16 %v3404_v19  ;;  %v3218_v31 = vand.u32 2147483647, %v2995_v2 }
 0xe11   :  { %4977 = vmatmul.msk.bf16.vlgmr.msrb.gmra.mxu0 %vm808_vm11, %v3659_v0  ;;  %v3410_v13 = vpack.c.bf16 %v3358_v18, %v3358_v18  ;;  %v3272_v24 = vmul.f32 %v5540_v26, %v3271_v61  ;;  %v3221_v38 = vor.u32 1.1754944e-38, %v3220_v23 }
 0xe12   :  { %v5542_v51 = vpop.eup %5541  ;;  %vm3219_vm5 = vcmp.eq.f32.partialorder %v3218_v31, 8.507059e+37 }
 0xe13   :  { %v3696_v29 = vunpack.c.l.b16 %v3410_v13  ;;  %v3273_v27 = vadd.f32 %v5540_v26, %v3272_v24  ;;  %v3210_v50 = vmul.f32 %v5542_v51, %v2995_v2  ;;  %vm3215_vm3 = vweird.f32 %v5542_v51 }
 0xe14   :  { %vm3216_vm6 = vmor %vm3214_vm9, %vm3215_vm3  ;;  %vm8124_vm9 = vcmask 195584  }
 0xe15   :  { %v3584_v57 = vpop.permute.xlu2 %3583  ;;  %v3699_v52 = vpack.c.b16 %v3697_v54, %v3696_v29  ;;  %v3277_v58 = vsel %vm3276_vm2, %v5540_v26, %v3273_v27  ;;  %v3211_v35 = vsub.f32 1.0, %v3210_v50 }
 0xe16   :  { %v3593_v40 = vsel %vm1429_vm12, %v3584_v57, 0  ;;  %v3282_v33 = vsel %vm3279_vm15, %v3281_v32, %v3277_v58 }
 0xe17   :  { %3601 = vmatpush.bf16.msra.mxu3 %v3593_v40  ;;  %v3283_v3 = vmul.f32 %v7202_v7, %v3282_v33  ;;  %4979 = vmatmul.msk.bf16.vlgmr.msrb.gmra.mxu2 %vm808_vm11, %v3699_v52  ;;  %v3212_v7 = vmul.f32 %v5542_v51, %v3211_v35 }
 0xe19   :  { %v3405_v47 = vpack.c.bf16 %v3283_v3, %v3283_v3  ;;  %v3213_v12 = vadd.f32 %v5542_v51, %v3212_v7 }
 0xe1b   :  { %v3617_v43 = vunpack.c.l.b16 %v3405_v47  ;;  %v3217_v42 = vsel %vm3216_vm6, %v5542_v51, %v3213_v12  ;;  %v5131_v12 = vld [vmem:[%s8060_s11 + $0x10] sm:$0xff]  ;;  %vm8125_vm6 = vmmov %vm8124_vm9 }
 0xe1c   :  { %v3222_v25 = vsel %vm3219_vm5, %v3221_v38, %v3217_v42  ;;  %v2864_v42 = vsel %vm815_vm13, %v7049_v10, -inf  ;;  %vm8126_vm5 = vcmask 261120  }
 0xe1d   :  { %4966 = vmatmul.msk.bf16.gmra.mxu3 %vm808_vm11, %v3420_v60  ;;  %v3582_v8 = vpop.permute.xlu2 %3581  ;;  %v3619_v39 = vpack.c.b16 %v3617_v43, %v3616_v20  ;;  %v3223_v59 = vmul.f32 %v7167_v56, %v3222_v25 }
 0xe1e   :  { %3602 = vmatpush.bf16.msra.mxu3 %v3582_v8 }
 0xe1f   :  { %4975 = vmatmul.msk.bf16.vlgmr.msrb.gmra.mxu1 %vm808_vm11, %v3619_v39  ;;  %v3401_v49 = vpack.c.bf16 %v3223_v59, %v3223_v59 }
 0xe21   :  { %v3576_v27 = vunpack.c.l.b16 %v3401_v49 }
 0xe2c   :  { %v3484_v37 = vpop.f32.mrf.mxu1 }
 0xe34   :  { %v2998_v62 = vpop.xlane.xlu0 %2997  ;;  %v3486_v34 = vpop.f32.mrf.mxu1 }
 0xe35   :  { %5543 = vrcp.f32 %v2998_v62  ;;  %v5267_v55 = vpack.i.bf16 %v3486_v34, %v3484_v37  ;;  %v3235_v41 = vand.u32 2147483648, %v2998_v62  ;;  %v3233_v15 = vand.u32 2147483647, %v2998_v62 }
 0xe36   :  { %vm3229_vm14 = vweird.f32 %v2998_v62 }
 0xe37   :  { %5268 = vrot.lane.b32.xlu0 %v5267_v55, %s8121_s9  ;;  %v3236_v18 = vor.u32 1.1754944e-38, %v3235_v41  ;;  %vm3234_vm0 = vcmp.eq.f32.partialorder %v3233_v15, 8.507059e+37  ;;  %v5132_v55 = vld [vmem:[%s8060_s11 + $0x18] sm:$0xff]  ;;  %s8142_s11 = sld [smem:[#allocation13_spill]] }
 0xe38   :  { %3875 = vmatpush.bf16.msrb.mxu3 %v5132_v55 }
 0xe3a   :  { %v3564_v26 = vpop.f32.mrf.mxu2 }
 0xe3b   :  { %v5544_v30 = vpop.eup %5543 }
 0xe3c   :  { %v3225_v53 = vmul.f32 %v5544_v30, %v2998_v62  ;;  %v3489_v22 = vpop.f32.mrf.mxu1  ;;  %v3524_v0 = vpop.f32.mrf.mxu0  ;;  %vm3230_vm1 = vweird.f32 %v5544_v30  ;;  %3876 = vmatpush.bf16.msrb.mxu3 %v5131_v12 }
 0xe3d   :  { %vm3231_vm7 = vmor %vm3229_vm14, %vm3230_vm1 }
 0xe3e   :  { %v3226_v9 = vsub.f32 1.0, %v3225_v53  ;;  %vm8127_vm1 = vmmov %vm8125_vm6 }
 0xe3f   :  { %vm8128_vm14 = vmmov %vm8127_vm1 }
 0xe40   :  { %v3227_v1 = vmul.f32 %v5544_v30, %v3226_v9 }
 0xe42   :  { %v3228_v28 = vadd.f32 %v5544_v30, %v3227_v1  ;;  %v3566_v61 = vpop.f32.mrf.mxu2 }
 0xe43   :  { %v5277_v13 = vpack.i.bf16 %v3566_v61, %v3564_v26 }
 0xe44   :  { %v3232_v4 = vsel %vm3231_vm7, %v5544_v30, %v3228_v28  ;;  %v3491_v24 = vpop.f32.mrf.mxu1  ;;  %v3526_v54 = vpop.f32.mrf.mxu0  ;;  %vm8129_vm7 = vmmov %vm8127_vm1 }
 0xe45   :  { %v3237_v36 = vsel %vm3234_vm0, %v3236_v18, %v3232_v4  ;;  %5278 = vrot.lane.b32.xlu2 %v5277_v13, %s8122_s5  ;;  %v5272_v47 = vpack.i.bf16 %v3526_v54, %v3524_v0  ;;  %vm8130_vm0 = vcmask 1041408  }
 0xe46   :  { %v3238_v16 = vmul.f32 %v7232_v6, %v3237_v36 }
 0xe48   :  { %v3402_v29 = vpack.c.bf16 %v3238_v16, %v3238_v16 }
 0xe4a   :  { %v3577_v32 = vunpack.c.l.b16 %v3402_v29  ;;  %v3569_v56 = vpop.f32.mrf.mxu2 }
 0xe4c   :  { %v3579_v57 = vpack.c.b16 %v3577_v32, %v3576_v27  ;;  %v3529_v52 = vpop.f32.mrf.mxu0 }
 0xe4d   :  { %3764 = vrot.lane.b32.xlu2 %v3569_v56, %s8122_s5 }
 0xe4e   :  { %4973 = vmatmul.msk.bf16.vlgmr.msra.gmra.mxu3 %vm808_vm11, %v3579_v57 }
 0xe52   :  { %v3571_v58 = vpop.f32.mrf.mxu2 }
 0xe54   :  { %v3531_v33 = vpop.f32.mrf.mxu0 }
 0xe56   :  { %v2857_v40 = vpop.xlane.xlu2 %2856 }
 0xe57   :  { %v2899_v63 = vsub.f32 %v7070_v17, %v2857_v40 }
 0xe59   :  { %v2937_v19 = vmul.f32 1.442695, %v2899_v63 }
 0xe5b   :  { %5545 = vpow2.f32 %v2937_v19 }
 0xe61   :  { %v5546_v6 = vpop.eup %5545 }
 0xe62   :  { %v2999_v3 = vsel %vm815_vm13, %v5546_v6, 0.0 }
 0xe63   :  { %3000 = vadd.xlane.f32.xlu1 %v2999_v3 }
 0xe7c   :  { %5273 = vrot.lane.b32.xlu1 %v5272_v47, %s8123_s0 }
 0xe84   :  { %3740 = vrot.lane.b32.xlu1 %v3489_v22, %s8121_s9 }
 0xe8c   :  { %3752 = vrot.lane.b32.xlu1 %v3529_v52, %s8123_s0 }
 0xe8e   :  { %v3684_v39 = vpop.f32.mrf.mxu0 }
 0xe90   :  { %v3444_v60 = vpop.f32.mrf.mxu3 }
 0xe96   :  { %v3686_v37 = vpop.f32.mrf.mxu0 }
 0xe97   :  { %v5287_v35 = vpack.i.bf16 %v3686_v37, %v3684_v39 }
 0xe98   :  { %v3446_v20 = vpop.f32.mrf.mxu3 }
 0xe9a   :  { %v3724_v50 = vpop.f32.mrf.mxu2 }
 0xe9c   :  { %v3644_v43 = vpop.f32.mrf.mxu1 }
 0xe9f   :  { %v5279_v61 = vpop.permute.xlu2 %5278 }
 0xea0   :  { %v7426_v8 = vpop.f32.mrf.mxu3  ;;  %v5281_v49 = vunpack.i.h.bf16 %v5279_v61  ;;  %v5280_v16 = vunpack.i.l.bf16 %v5279_v61 }
 0xea2   :  { %v3726_v7 = vpop.f32.mrf.mxu2 }
 0xea3   :  { %v5292_v62 = vpack.i.bf16 %v3726_v7, %v3724_v50 }
 0xea4   :  { %v3646_v17 = vpop.f32.mrf.mxu1 }
 0xea5   :  { %v5282_v2 = vpack.i.bf16 %v3646_v17, %v3644_v43 }
 0xea7   :  { %5283 = vrot.lane.b32.xlu0 %v5282_v2, %s8121_s9  ;;  %v3765_v55 = vpop.permute.xlu2 %3764 }
 0xea8   :  { %v3451_v51 = vpop.f32.mrf.mxu3 }
 0xea9   :  { %v5269_v1 = vpop.permute.xlu0 %5268 }
 0xeaa   :  { %v5271_v59 = vunpack.i.h.bf16 %v5269_v1  ;;  %v5270_v28 = vunpack.i.l.bf16 %v5269_v1 }
 0xeac   :  { %v3770_v54 = vsel %vm483_vm10, %v3446_v20, %v5271_v59  ;;  %v3769_v29 = vsel %vm483_vm10, %v3444_v60, %v5270_v28 }
 0xeaf   :  { %5288 = vrot.lane.b32.xlu0 %v5287_v35, %s8123_s0 }
 0xeb7   :  { %5293 = vrot.lane.b32.xlu0 %v5292_v62, %s8122_s5 }
 0xed1   :  { %v3604_v33 = vpop.f32.mrf.mxu3 }
 0xed6   :  { %v3001_v34 = vpop.xlane.xlu1 %3000 }
 0xed7   :  { %5547 = vrcp.f32 %v3001_v34  ;;  %v3250_v26 = vand.u32 2147483648, %v3001_v34  ;;  %v3248_v22 = vand.u32 2147483647, %v3001_v34  ;;  %vm3244_vm2 = vweird.f32 %v3001_v34 }
 0xed9   :  { %v3251_v9 = vor.u32 1.1754944e-38, %v3250_v26  ;;  %vm3249_vm3 = vcmp.eq.f32.partialorder %v3248_v22, 8.507059e+37  ;;  %v3606_v20 = vpop.f32.mrf.mxu3  ;;  %v5316_v22 = vld [vmem:[%s7957_s12 + $0x1] ss:$0 sm:$0xff] }
 0xedd   :  { %v5548_v23 = vpop.eup %5547 }
 0xede   :  { %v3240_v31 = vmul.f32 %v5548_v23, %v3001_v34  ;;  %vm3245_vm4 = vweird.f32 %v5548_v23 }
 0xedf   :  { %vm3246_vm15 = vmor %vm3244_vm2, %vm3245_vm4 }
 0xee0   :  { %v3241_v30 = vsub.f32 1.0, %v3240_v31  ;;  %vm8131_vm4 = vmmov %vm8130_vm0 }
 0xee1   :  { %2865 = vmax.xlane.f32.xlu0 %v2864_v42  ;;  %vm8132_vm2 = vmmov %vm8126_vm5 }
 0xee2   :  { %v3242_v53 = vmul.f32 %v5548_v23, %v3241_v30 }
 0xee4   :  { %v3243_v38 = vadd.f32 %v5548_v23, %v3242_v53 }
 0xee6   :  { %v3247_v25 = vsel %vm3246_vm15, %v5548_v23, %v3243_v38  ;;  %vm8133_vm15 = vmmov %vm8132_vm2 }
 0xee7   :  { %v3252_v41 = vsel %vm3249_vm3, %v3251_v9, %v3247_v25  ;;  %vm8134_vm3 = vmmov %vm8132_vm2 }
 0xee8   :  { %v3253_v0 = vmul.f32 %v5546_v6, %v3252_v41 }
 0xeea   :  { %v3403_v15 = vpack.c.bf16 %v3253_v0, %v3253_v0 }
 0xeec   :  { %v3578_v18 = vunpack.c.l.b16 %v3403_v15 }
 0xeee   :  { %v5274_v4 = vpop.permute.xlu1 %5273  ;;  %v3580_v13 = vpack.c.b16 %v3578_v18, %v3578_v18 }
 0xeef   :  { %v5276_v24 = vunpack.i.h.bf16 %v5274_v4  ;;  %v5275_v36 = vunpack.i.l.bf16 %v5274_v4 }
 0xef0   :  { %4974 = vmatmul.msk.bf16.gmra.mxu3 %vm808_vm11, %v3580_v13 }
 0xef1   :  { %v3772_v27 = vsel %vm1770_vm8, %v3769_v29, %v5275_v36  ;;  %v3773_v32 = vsel %vm1770_vm8, %v3770_v54, %v5276_v24 }
 0xef2   :  { %v3775_v56 = vsel %vm8124_vm9, %v3772_v27, %v5280_v16  ;;  %v3776_v57 = vsel %vm8125_vm6, %v3773_v32, %v5281_v49  ;;  %vm8135_vm9 = vmmov %vm8132_vm2 }
 0xef3   :  { %v3835_v52 = vpack.c.bf16 %v3776_v57, %v3775_v56  ;;  %vm8136_vm6 = vmmov %vm8132_vm2 }
 0xef6   :  { %v3741_v40 = vpop.permute.xlu1 %3740 }
 0xef7   :  { %v3771_v43 = vsel %vm483_vm10, %v7426_v8, %v3741_v40 }
 0xefe   :  { %v3753_v60 = vpop.permute.xlu1 %3752 }
 0xeff   :  { %v3774_v37 = vsel %vm1770_vm8, %v3771_v43, %v3753_v60 }
 0xf00   :  { %4994 = vmatmul.msk.bf16.vlgmr.msrb.gmra.mxu3 %vm8126_vm5, %v3835_v52  ;;  %v3777_v23 = vsel %vm8129_vm7, %v3774_v37, %v3765_v55  ;;  %vm8137_vm5 = vmmov %vm8132_vm2 }
 0xf19   :  { %v5284_v58 = vpop.permute.xlu0 %5283 }
 0xf1a   :  { %v5286_v19 = vunpack.i.h.bf16 %v5284_v58  ;;  %v5285_v6 = vunpack.i.l.bf16 %v5284_v58 }
 0xf1c   :  { %v3815_v17 = vsel %vm483_vm10, %v3606_v20, %v5286_v19  ;;  %v3814_v2 = vsel %vm483_vm10, %v3604_v33, %v5285_v6  ;;  %v2882_v19 = vsel %vm815_vm13, %v7056_v46, -inf }
 0xf21   :  { %v5289_v63 = vpop.permute.xlu0 %5288 }
 0xf22   :  { %v5291_v3 = vunpack.i.h.bf16 %v5289_v63  ;;  %v5290_v47 = vunpack.i.l.bf16 %v5289_v63 }
 0xf24   :  { %v3817_v35 = vsel %vm1770_vm8, %v3814_v2, %v5290_v47  ;;  %v3818_v7 = vsel %vm1770_vm8, %v3815_v17, %v5291_v3 }
 0xf29   :  { %v5294_v39 = vpop.permute.xlu0 %5293 }
 0xf2a   :  { %v5296_v51 = vunpack.i.h.bf16 %v5294_v39  ;;  %v5295_v50 = vunpack.i.l.bf16 %v5294_v39 }
 0xf2c   :  { %v3820_v62 = vsel %vm8127_vm1, %v3817_v35, %v5295_v50  ;;  %v7456_v34 = vsel %vm8128_vm14, %v3818_v7, %v5296_v51  ;;  %vm8138_vm1 = vmmov %vm8132_vm2 }
 0xf2d   :  { %v3826_v8 = vrot.slane %v3820_v62, 6  ;;  %v3827_v12 = vrot.slane %v7456_v34, 6 }
 0xf2f   :  { %v3828_v31 = vsel %vm8130_vm0, %v3826_v8, %v3827_v12  ;;  %v3834_v30 = vsel %vm8131_vm4, %v3777_v23, %v3826_v8 }
 0xf30   :  { %v3836_v26 = vpack.c.bf16 %v3828_v31, %v3834_v30 }
 0xf32   :  { %4995 = vmatmul.msk.bf16.gmra.mxu3 %vm8132_vm2, %v3836_v26  ;;  %vm8139_vm2 = vmmov %vm8138_vm1 }
 0xf54   :  { %v2866_v9 = vpop.xlane.xlu0 %2865 }
 0xf55   :  { %v2902_v0 = vsub.f32 %v7049_v10, %v2866_v9 }
 0xf57   :  { %v2943_v15 = vmul.f32 1.442695, %v2902_v0 }
 0xf59   :  { %5549 = vpow2.f32 %v2943_v15  ;;  %v5133_v15 = vld [vmem:[%s7960_s15 + $0x10] sm:$0xff] }
 0xf5f   :  { %v5550_v4 = vpop.eup %5549 }
 0xf60   :  { %v3008_v13 = vsel %vm815_vm13, %v5550_v4, 0.0 }
 0xf73   :  { %v7465_v42 = vpop.f32.mrf.mxu3 }
 0xf7b   :  { %v3611_v53 = vpop.f32.mrf.mxu3 }
 0xf83   :  { %v3878_v38 = vpop.f32.mrf.mxu3 }
 0xf84   :  { %v3879_v25 = vadd.f32 %v5316_v22, %v3878_v38 }
 0xf86   :  { %v7471_v41 = vadd.f32 %v3879_v25, %v6763_v45 }
 0xf88   :  { %v3901_v1 = vsel %vm8133_vm15, %v7471_v41, 0.0  ;;  %vm8140_vm15 = vmmov %vm8138_vm1 }
 0xf89   :  { %3902 = vadd.xlane.f32.xlu1 %v3901_v1  ;;  %v5134_v1 = vld [vmem:[%s7960_s15 + $0x18] sm:$0xff]  ;;  %s8144_s15 = sld [smem:[#allocation14_spill]] }
 0xf8a   :  { %4067 = vmatpush.bf16.msra.mxu1 %v5134_v1 }
 0xf8b   :  { %v3880_v59 = vpop.f32.mrf.mxu3 }
 0xf8c   :  { %v3881_v28 = vadd.f32 %v5316_v22, %v3880_v59 }
 0xf8e   :  { %v3893_v18 = vadd.f32 %v3881_v28, %v6768_v11  ;;  %4068 = vmatpush.bf16.msra.mxu1 %v5133_v15 }
 0xf90   :  { %v3904_v61 = vsel %vm8134_vm3, %v3893_v18, 0.0 }
 0xf91   :  { %3905 = vadd.xlane.f32.xlu2 %v3904_v61 }
 0xf99   :  { %3009 = vadd.xlane.f32.xlu2 %v3008_v13 }
 0xfb5   :  { %v3883_v45 = vpop.f32.mrf.mxu3 }
 0xfb6   :  { %v3884_v24 = vadd.f32 %v5316_v22, %v3883_v45 }
 0xfb8   :  { %v7480_v10 = vadd.f32 %v3884_v24, %v6773_v5 }
 0xfba   :  { %v3907_v36 = vsel %vm8135_vm9, %v7480_v10, 0.0 }
 0xfbb   :  { %3908 = vadd.xlane.f32.xlu0 %v3907_v36 }
 0xfbd   :  { %v3885_v49 = vpop.f32.mrf.mxu3 }
 0xfbe   :  { %v3886_v16 = vadd.f32 %v5316_v22, %v3885_v49  ;;  %v2873_v22 = vsel %vm815_vm13, %v7051_v21, -inf }
 0xfc0   :  { %v3895_v11 = vadd.f32 %v3886_v16, %v6778_v44 }
 0xfc2   :  { %v3910_v54 = vsel %vm8136_vm6, %v3895_v11, 0.0 }
 0xfc3   :  { %3911 = vadd.xlane.f32.xlu1 %v3910_v54 }
 0xffc   :  { %v3903_v29 = vpop.xlane.xlu1 %3902 }
 0xffd   :  { %v3916_v27 = vmul.f32 %v3903_v29, %v8075_v14 }
 0xfff   :  { %v7488_v32 = vsub.f32 %v7471_v41, %v3916_v27 }
0x1001   :  { %v3926_v5 = vmul.f32 %v7488_v32, %v7488_v32 }
0x1003   :  { %v3931_v56 = vsel %vm8137_vm5, %v3926_v5, 0.0 }
0x1004   :  { %v3906_v57 = vpop.xlane.xlu2 %3905  ;;  %3932 = vadd.xlane.f32.xlu0 %v3931_v56 }
0x1005   :  { %v3917_v52 = vmul.f32 %v3906_v57, %v8075_v14 }
0x1007   :  { %v7494_v58 = vsub.f32 %v3893_v18, %v3917_v52 }
0x1009   :  { %v3927_v44 = vmul.f32 %v7494_v58, %v7494_v58 }
0x100b   :  { %v3934_v40 = vsel %vm8138_vm1, %v3927_v44, 0.0 }
0x100c   :  { %v3010_v33 = vpop.xlane.xlu2 %3009  ;;  %3935 = vadd.xlane.f32.xlu1 %v3934_v40 }
0x100d   :  { %5551 = vrcp.f32 %v3010_v33  ;;  %v3295_v47 = vand.u32 2147483648, %v3010_v33  ;;  %v3293_v20 = vand.u32 2147483647, %v3010_v33  ;;  %vm3289_vm7 = vweird.f32 %v3010_v33 }
0x100f   :  { %v3296_v39 = vor.u32 1.1754944e-38, %v3295_v47  ;;  %vm3294_vm4 = vcmp.eq.f32.partialorder %v3293_v20, 8.507059e+37 }
0x1013   :  { %v5552_v63 = vpop.eup %5551 }
0x1014   :  { %v3285_v6 = vmul.f32 %v5552_v63, %v3010_v33  ;;  %2883 = vmax.xlane.f32.xlu1 %v2882_v19  ;;  %vm3290_vm14 = vweird.f32 %v5552_v63  ;;  %v5318_v19 = vld [vmem:[%s7959_s14 + $0x1] ss:$0 sm:$0xff] }
0x1015   :  { %vm3291_vm0 = vmor %vm3289_vm7, %vm3290_vm14 }
0x1016   :  { %v3286_v3 = vsub.f32 1.0, %v3285_v6  ;;  %vm8141_vm7 = vmmov %vm8139_vm2 }
0x1018   :  { %v3287_v60 = vmul.f32 %v5552_v63, %v3286_v3 }
0x101a   :  { %v3288_v43 = vadd.f32 %v5552_v63, %v3287_v60 }
0x101c   :  { %v3292_v17 = vsel %vm3291_vm0, %v5552_v63, %v3288_v43 }
0x101d   :  { %v3297_v2 = vsel %vm3294_vm4, %v3296_v39, %v3292_v17 }
0x101e   :  { %v3298_v51 = vmul.f32 %v5550_v4, %v3297_v2 }
0x1020   :  { %v3406_v50 = vpack.c.bf16 %v3298_v51, %v3298_v51 }
0x1022   :  { %v3618_v37 = vunpack.c.l.b16 %v3406_v50  ;;  %v5624_v50 = vmov 0  }
0x1023   :  { %5298 = vset.pattern.permute.xlu0 %v5624_v50  ;;  %5297 = vset.pattern.permute.xlu2 %v5624_v50 }
0x1024   :  { %v3620_v35 = vpack.c.b16 %v3618_v37, %v3618_v37 }
0x1026   :  { %4976 = vmatmul.msk.bf16.gmra.mxu1 %vm808_vm11, %v3620_v35 }
0x102e   :  { %v3909_v7 = vpop.xlane.xlu0 %3908 }
0x102f   :  { %v3918_v62 = vmul.f32 %v3909_v7, %v8075_v14 }
0x1031   :  { %v7504_v55 = vsub.f32 %v7480_v10, %v3918_v62 }
0x1033   :  { %v3928_v8 = vmul.f32 %v7504_v55, %v7504_v55 }
0x1035   :  { %v3937_v23 = vsel %vm8139_vm2, %v3928_v8, 0.0 }
0x1036   :  { %3938 = vadd.xlane.f32.xlu2 %v3937_v23  ;;  %v3912_v31 = vpop.xlane.xlu1 %3911 }
0x1037   :  { %v3919_v30 = vmul.f32 %v3912_v31, %v8075_v14 }
0x1039   :  { %v7510_v26 = vsub.f32 %v3895_v11, %v3919_v30 }
0x103b   :  { %v3929_v53 = vmul.f32 %v7510_v26, %v7510_v26 }
0x103d   :  { %v3940_v38 = vsel %vm8140_vm15, %v3929_v53, 0.0 }
0x103e   :  { %2874 = vmax.xlane.f32.xlu2 %v2873_v22  ;;  %3941 = vadd.xlane.f32.xlu0 %v3940_v38  ;;  %v4238_v22 = vld [vmem:[%s8142_s11] sm:$0xff] }
0x1056   :  { %4243 = vperm.xlu2 %5297, %v4238_v22  }
0x1077   :  { %v3933_v9 = vpop.xlane.xlu0 %3932 }
0x1078   :  { %v3946_v25 = vmul.f32 %v3933_v9, %v8075_v14 }
0x107a   :  { %v3951_v0 = vadd.f32 1e-05, %v3946_v25 }
0x107c   :  { %5553 = vrsqrt.f32 %v3951_v0  ;;  %vm3962_vm9 = vweird.f32 %v3951_v0 }
0x107f   :  { %v3936_v59 = vpop.xlane.xlu1 %3935 }
0x1080   :  { %v3947_v28 = vmul.f32 %v3936_v59, %v8075_v14 }
0x1082   :  { %v5554_v18 = vpop.eup %5553  ;;  %v3952_v61 = vadd.f32 1e-05, %v3947_v28 }
0x1083   :  { %v3957_v4 = vmul.f32 %v5554_v18, %v3951_v0  ;;  %vm3963_vm3 = vweird.f32 %v5554_v18 }
0x1084   :  { %5555 = vrsqrt.f32 %v3952_v61  ;;  %vm3964_vm6 = vmor %vm3962_vm9, %vm3963_vm3  ;;  %vm3972_vm1 = vweird.f32 %v3952_v61 }
0x1085   :  { %v3958_v13 = vmul.f32 %v5554_v18, %v3957_v4 }
0x1087   :  { %v3959_v45 = vmul.f32 0.5, %v3958_v13  ;;  %v2884_v24 = vpop.xlane.xlu1 %2883 }
0x1088   :  { %v2908_v36 = vsub.f32 %v7056_v46, %v2884_v24  ;;  %v7531_v46 = vld [vmem:[%s7958_s13 + $0x1] ss:$0 sm:$0xff] }
0x1089   :  { %v3960_v49 = vsub.f32 1.5, %v3959_v45 }
0x108a   :  { %v5556_v16 = vpop.eup %5555  ;;  %v2955_v11 = vmul.f32 1.442695, %v2908_v36 }
0x108b   :  { %v3961_v54 = vmul.f32 %v5554_v18, %v3960_v49  ;;  %v3967_v29 = vmul.f32 %v5556_v16, %v3952_v61  ;;  %vm3973_vm5 = vweird.f32 %v5556_v16 }
0x108c   :  { %5557 = vpow2.f32 %v2955_v11  ;;  %vm3974_vm14 = vmor %vm3972_vm1, %vm3973_vm5 }
0x108d   :  { %v3968_v27 = vmul.f32 %v5556_v16, %v3967_v29  ;;  %v3965_v5 = vsel %vm3964_vm6, %v5554_v18, %v3961_v54 }
0x108e   :  { %v4006_v44 = vmul.f32 %v3965_v5, %v7488_v32 }
0x108f   :  { %v3969_v56 = vmul.f32 0.5, %v3968_v27 }
0x1090   :  { %v4014_v6 = vmul.f32 %v7531_v46, %v4006_v44 }
0x1091   :  { %v3970_v57 = vsub.f32 1.5, %v3969_v56 }
0x1092   :  { %v7526_v52 = vpop.eup %5557  ;;  %v4022_v60 = vadd.f32 %v5318_v19, %v4014_v6 }
0x1093   :  { %v3971_v40 = vmul.f32 %v5556_v16, %v3970_v57  ;;  %v3026_v33 = vsel %vm815_vm13, %v7526_v52, 0.0 }
0x1094   :  { %3027 = vadd.xlane.f32.xlu0 %v3026_v33 }
0x1095   :  { %v3975_v63 = vsel %vm3974_vm14, %v5556_v16, %v3971_v40 }
0x1096   :  { %v4007_v3 = vmul.f32 %v3975_v63, %v7494_v58  ;;  %v4239_v58 = vld [vmem:[%s8142_s11 + $0x8] sm:$0xff]  ;;  %s5631_s11 = smov 32  }
0x1098   :  { %v4015_v47 = vmul.f32 %v7531_v46, %v4007_v3 }
0x109a   :  { %v4023_v32 = vadd.f32 %v5318_v19, %v4015_v47  ;;  %v7568_v47 = vld [vmem:[%s7961_s16 + $0x1] ss:$0 sm:$0xff] }
0x109c   :  { %v4027_v20 = vpack.c.bf16 %v4023_v32, %v4022_v60 }
0x109e   :  { %5012 = vmatmul.msk.bf16.vlgmr.msra.gmra.mxu1 %vm8141_vm7, %v4027_v20  ;;  %v5320_v20 = vld [vmem:[%s8144_s15] ss:$0 sm:$0xff] }
0x10a3   :  { %v3649_v43 = vpop.f32.mrf.mxu1 }
0x10a8   :  { %4248 = vperm.xlu0 %5298, %v4239_v58  }
0x10a9   :  { %v3939_v39 = vpop.xlane.xlu2 %3938 }
0x10aa   :  { %v3948_v17 = vmul.f32 %v3939_v39, %v8075_v14 }
0x10ab   :  { %v3651_v2 = vpop.f32.mrf.mxu1 }
0x10ac   :  { %v3953_v51 = vadd.f32 1e-05, %v3948_v17 }
0x10ae   :  { %5559 = vrsqrt.f32 %v3953_v51  ;;  %vm3982_vm4 = vweird.f32 %v3953_v51 }
0x10b1   :  { %v2875_v37 = vpop.xlane.xlu2 %2874  ;;  %v3942_v35 = vpop.xlane.xlu0 %3941 }
0x10b2   :  { %v2905_v7 = vsub.f32 %v7051_v21, %v2875_v37  ;;  %v3949_v62 = vmul.f32 %v3942_v35, %v8075_v14 }
0x10b4   :  { %v5560_v8 = vpop.eup %5559  ;;  %v2949_v23 = vmul.f32 1.442695, %v2905_v7  ;;  %v3954_v31 = vadd.f32 1e-05, %v3949_v62 }
0x10b5   :  { %v3977_v30 = vmul.f32 %v5560_v8, %v3953_v51  ;;  %vm3983_vm0 = vweird.f32 %v5560_v8 }
0x10b6   :  { %5561 = vpow2.f32 %v2949_v23  ;;  %vm3984_vm2 = vmor %vm3982_vm4, %vm3983_vm0  ;;  %vm3992_vm3 = vweird.f32 %v3954_v31 }
0x10b7   :  { %v3978_v53 = vmul.f32 %v5560_v8, %v3977_v30  ;;  %5563 = vrsqrt.f32 %v3954_v31 }
0x10b9   :  { %v3979_v38 = vmul.f32 0.5, %v3978_v53 }
0x10bb   :  { %v3980_v9 = vsub.f32 1.5, %v3979_v38 }
0x10bc   :  { %v7554_v25 = vpop.eup %5561 }
0x10bd   :  { %v5564_v0 = vpop.eup %5563  ;;  %v3017_v21 = vsel %vm815_vm13, %v7554_v25, 0.0  ;;  %v3981_v1 = vmul.f32 %v5560_v8, %v3980_v9  ;;  %vm8143_vm13 = vmmov %vm8141_vm7 }
0x10be   :  { %v3987_v15 = vmul.f32 %v5564_v0, %v3954_v31  ;;  %3018 = vadd.xlane.f32.xlu1 %v3017_v21  ;;  %vm3993_vm15 = vweird.f32 %v5564_v0 }
0x10bf   :  { %v3985_v28 = vsel %vm3984_vm2, %v5560_v8, %v3981_v1  ;;  %vm3994_vm9 = vmor %vm3992_vm3, %vm3993_vm15 }
0x10c0   :  { %v3988_v59 = vmul.f32 %v5564_v0, %v3987_v15  ;;  %v4008_v4 = vmul.f32 %v3985_v28, %v7504_v55 }
0x10c2   :  { %v3989_v18 = vmul.f32 0.5, %v3988_v59  ;;  %v4016_v36 = vmul.f32 %v7531_v46, %v4008_v4 }
0x10c4   :  { %v3990_v61 = vsub.f32 1.5, %v3989_v18  ;;  %v4024_v16 = vadd.f32 %v5318_v19, %v4016_v36  ;;  %v5626_v36 = vmov 2475754826  }
0x10c6   :  { %v3991_v13 = vmul.f32 %v5564_v0, %v3990_v61 }
0x10c8   :  { %v3995_v45 = vsel %vm3994_vm9, %v5564_v0, %v3991_v13 }
0x10c9   :  { %v4009_v24 = vmul.f32 %v3995_v45, %v7510_v26  ;;  %v5625_v45 = vmov 683565275  }
0x10cb   :  { %v4017_v49 = vmul.f32 %v7531_v46, %v4009_v24 }
0x10cd   :  { %v4025_v11 = vadd.f32 %v5318_v19, %v4017_v49 }
0x10cf   :  { %v4028_v54 = vpack.c.bf16 %v4025_v11, %v4024_v16  ;;  %v5627_v16 = vmov 2131351028  }
0x10d1   :  { %5013 = vmatmul.msk.bf16.gmra.mxu1 %vm8143_vm13, %v4028_v54  ;;  %v5628_v54 = vmov 2102212464  }
0x10d7   :  { %3785 = vrot.lane.b32.xlu1 %v3649_v43, %s8121_s9  ;;  %v4244_v43 = vpop.permute.xlu2 %4243 }
0x10d8   :  { %v7580_v2 = vmul.f32 %v5320_v20, %v4244_v43 }
0x10da   :  { %v4259_v35 = vand.u32 2139095040, %v7580_v2  ;;  %v4256_v7 = vand.u32 2147483647, %v7580_v2 }
0x10dc   :  { %v4260_v62 = vshrl.u32 %v4259_v35, 23  ;;  %v4263_v53 = vand.u32 8388607, %v4256_v7 }
0x10de   :  { %v5043_v30 = vadd.s32 4294967169, %v4260_v62  ;;  %v4264_v1 = vor.u32 8388608, %v4263_v53 }
0x10e0   :  { %v4266_v22 = vadd.s32 1, %v5043_v30 }
0x10e2   :  { %vm4267_vm7 = vcmp.gt.s32.totalorder %v4266_v22, 0 }
0x10e3   :  { %v4268_v21 = vsel %vm4267_vm7, %v4266_v22, 0 }
0x10e4   :  { %v4270_v15 = vand.u32 31, %v4268_v21  ;;  %v4269_v4 = vshrl.u32 %v4268_v21, 5 }
0x10e6   :  { %v4271_v13 = vsub.s32 32, %v4270_v15  ;;  %v4273_v24 = vshll.u32 %v5625_v45, %v4270_v15  ;;  %v4276_v49 = vshll.u32 %v5626_v36, %v4270_v15  ;;  %v4279_v11 = vshll.u32 %v5627_v16, %v4270_v15 }
0x10e7   :  { %vm4288_vm0 = vcmp.lt.s32.totalorder %v4269_v4, 1  ;;  %vm4290_vm4 = vcmp.lt.s32.totalorder %v4269_v4, 3  ;;  %vm4291_vm2 = vcmp.lt.s32.totalorder %v4269_v4, 4  ;;  %vm4289_vm3 = vcmp.lt.s32.totalorder %v4269_v4, 2 }
0x1107   :  { %v3028_v29 = vpop.xlane.xlu0 %3027 }
0x1108   :  { %5565 = vrcp.f32 %v3028_v29  ;;  %v3385_v56 = vand.u32 2147483648, %v3028_v29  ;;  %v3383_v26 = vand.u32 2147483647, %v3028_v29  ;;  %vm3379_vm5 = vweird.f32 %v3028_v29 }
0x110a   :  { %v3386_v46 = vor.u32 1.1754944e-38, %v3385_v56  ;;  %vm3384_vm14 = vcmp.eq.f32.partialorder %v3383_v26, 8.507059e+37  ;;  %v4277_v26 = vshrl.u32 %v5627_v16, %v4271_v13 }
0x110e   :  { %v5566_v55 = vpop.eup %5565 }
0x110f   :  { %v3375_v27 = vmul.f32 %v5566_v55, %v3028_v29  ;;  %vm3380_vm6 = vweird.f32 %v5566_v55  ;;  %v4282_v29 = vshll.u32 %v5628_v54, %v4270_v15 }
0x1110   :  { %vm3381_vm1 = vmor %vm3379_vm5, %vm3380_vm6 }
0x1111   :  { %v3376_v5 = vsub.f32 1.0, %v3375_v27 }
0x1113   :  { %v3377_v57 = vmul.f32 %v5566_v55, %v3376_v5  ;;  %v7605_v5 = vshll.u32 %v4264_v1, 8 }
0x1115   :  { %v3378_v44 = vadd.f32 %v5566_v55, %v3377_v57  ;;  %v4274_v57 = vshrl.u32 %v5626_v36, %v4271_v13 }
0x1117   :  { %v3382_v40 = vsel %vm3381_vm1, %v5566_v55, %v3378_v44  ;;  %v5629_v55 = vmov 920167782  }
0x1118   :  { %v3387_v33 = vsel %vm3384_vm14, %v3386_v46, %v3382_v40  ;;  %v4285_v27 = vshll.u32 %v5629_v55, %v4270_v15  ;;  %v4272_v46 = vshrl.u32 %v5625_v45, %v4271_v13  ;;  %v4280_v40 = vshrl.u32 %v5628_v54, %v4271_v13 }
0x1119   :  { %v3388_v63 = vmul.f32 %v7526_v52, %v3387_v33  ;;  %v4283_v33 = vshrl.u32 %v5629_v55, %v4271_v13 }
0x111a   :  { %v4249_v17 = vpop.permute.xlu0 %4248  ;;  %v4281_v43 = vor.u32 %v4280_v40, %v4279_v11 }
0x111b   :  { %v4070_v19 = vpop.f32.mrf.mxu1  ;;  %v3412_v6 = vpack.c.bf16 %v3388_v63, %v3388_v63  ;;  %v7584_v58 = vmul.f32 %v5320_v20, %v4249_v17  ;;  %v5630_v63 = vmov 1326507024  }
0x111c   :  { %v7572_v32 = vadd.f32 %v7568_v47, %v4070_v19  ;;  %v4286_v19 = vshrl.u32 %v5630_v63, %v4271_v13  ;;  %v4293_v62 = vsel %vm4291_vm2, %v4281_v43, 2102212464 }
0x111d   :  { %v3698_v3 = vunpack.c.l.b16 %v3412_v6  ;;  %v4413_v23 = vand.u32 2139095040, %v7584_v58  ;;  %v4410_v4 = vand.u32 2147483647, %v7584_v58 }
0x111e   :  { %v4084_v51 = vmul.f32 %v7572_v32, %v7572_v32  ;;  %v4287_v17 = vor.u32 %v4286_v19, %v4285_v27 }
0x111f   :  { %v3700_v60 = vpack.c.b16 %v3698_v3, %v3698_v3  ;;  %v4414_v9 = vshrl.u32 %v4413_v23, 23  ;;  %v4275_v3 = vor.u32 %v4274_v57, %v4273_v24 }
0x1120   :  { %v4089_v8 = vmul.f32 %v4084_v51, %v7572_v32  ;;  %v4305_v51 = vand.u32 65535, %v7605_v5 }
0x1121   :  { %4980 = vmatmul.msk.bf16.gmra.mxu2 %vm808_vm11, %v3700_v60  ;;  %v5046_v18 = vadd.s32 4294967169, %v4414_v9  ;;  %v4278_v60 = vor.u32 %v4277_v26, %v4276_v49  ;;  %v4292_v35 = vsel %vm4288_vm0, %v4272_v46, %v4275_v3  ;;  %v4306_v9 = vshrl.u32 %v7605_v5, 16 }
0x1122   :  { %v4094_v38 = vmul.f32 0.044715, %v4089_v8 }
0x1123   :  { %v4072_v52 = vpop.f32.mrf.mxu1  ;;  %v4420_v44 = vadd.s32 1, %v5046_v18  ;;  %v4296_v8 = vsel %vm4288_vm0, %v4275_v3, %v4278_v60  ;;  %v4300_v53 = vsel %vm4288_vm0, %v4278_v60, %v4281_v43 }
0x1124   :  { %v7578_v39 = vadd.f32 %v7568_v47, %v4072_v52  ;;  %v4099_v59 = vadd.f32 %v4094_v38, %v7572_v32  ;;  %v4284_v52 = vor.u32 %v4283_v33, %v4282_v29  ;;  %v4301_v38 = vsel %vm4291_vm2, %v4287_v17, 1326507024 }
0x1125   :  { %vm4421_vm15 = vcmp.gt.s32.totalorder %v4420_v44, 0 }
0x1126   :  { %v4085_v37 = vmul.f32 %v7578_v39, %v7578_v39  ;;  %v4104_v56 = vmul.f32 0.7978846, %v4099_v59  ;;  %v4297_v30 = vsel %vm4291_vm2, %v4284_v52, 920167782  ;;  %v4302_v15 = vsel %vm4290_vm4, %v4284_v52, %v4301_v38 }
0x1127   :  { %v4298_v22 = vsel %vm4290_vm4, %v4281_v43, %v4297_v30  ;;  %v4303_v59 = vsel %vm4289_vm3, %v4300_v53, %v4302_v15 }
0x1128   :  { %v4090_v31 = vmul.f32 %v4085_v37, %v7578_v39  ;;  %v4299_v1 = vsel %vm4289_vm3, %v4296_v8, %v4298_v22  ;;  %v4307_v24 = vand.u32 65535, %v4303_v59  ;;  %v4308_v49 = vshrl.u32 %v4303_v59, 16 }
0x1129   :  { %v4329_v18 = vand.u32 65535, %v4299_v1 }
0x112a   :  { %v4095_v0 = vmul.f32 0.044715, %v4090_v31  ;;  %v4294_v31 = vsel %vm4290_vm4, %v4278_v60, %v4293_v62  ;;  %v4309_v26 = vmul.u32 %v4307_v24, %v4305_v51  ;;  %v4311_v46 = vmul.u32 %v4307_v24, %v4306_v9 }
0x112b   :  { %v7625_v21 = vsel %vm4289_vm3, %v4292_v35, %v4294_v31  ;;  %v4331_v29 = vmul.u32 %v4329_v18, %v4305_v51  ;;  %v4312_v60 = vmul.u32 %v4308_v49, %v4306_v9 }
0x112c   :  { %v4100_v61 = vadd.f32 %v4095_v0, %v7578_v39  ;;  %v4422_v0 = vsel %vm4421_vm15, %v4420_v44, 0  ;;  %v4349_v57 = vmul.u32 %v7605_v5, %v7625_v21  ;;  %v4310_v44 = vmul.u32 %v4308_v49, %v4305_v51 }
0x112d   :  { %v4424_v11 = vand.u32 31, %v4422_v0  ;;  %v4315_v52 = vshll.u32 %v4311_v46, 16  ;;  %v4316_v62 = vshrl.u32 %v4311_v46, 16 }
0x112e   :  { %v4105_v6 = vmul.f32 0.7978846, %v4100_v61  ;;  %v4330_v61 = vshrl.u32 %v4299_v1, 16  ;;  %v4313_v43 = vshll.u32 %v4310_v44, 16  ;;  %v4314_v35 = vshrl.u32 %v4310_v44, 16  ;;  %v5138_v1 = vld [vmem:[%s7962_s17 + $0x38] sm:$0xff] }
0x112f   :  { %v4425_v31 = vsub.s32 32, %v4424_v11  ;;  %4183 = vmatpush.bf16.msra.mxu0 %v5138_v1  ;;  %v4436_v46 = vshll.u32 %v5628_v54, %v4424_v11 }
0x1130   :  { %v4332_v27 = vmul.u32 %v4330_v61, %v4305_v51  ;;  %v4334_v40 = vmul.u32 %v4330_v61, %v4306_v9  ;;  %vm4317_vm13 = vc.u32 %v4309_v26, %v4313_v43  ;;  %v4319_v8 = vadd.s32 %v4313_v43, %v4309_v26  ;;  %v5137_v43 = vld [vmem:[%s7962_s17 + $0x30] sm:$0xff] }
0x1131   :  { %v7596_v28 = vpop.xlane.xlu1 %3018  ;;  %v4318_v30 = vsel %vm4317_vm13, 1, %v5624_v50  ;;  %v4427_v61 = vshll.u32 %v5625_v45, %v4424_v11  ;;  %v4428_v49 = vshrl.u32 %v5626_v36, %v4425_v31  ;;  %v4433_v26 = vshll.u32 %v5627_v16, %v4424_v11 }
0x1132   :  { %5567 = vrcp.f32 %v7596_v28  ;;  %v4335_v33 = vshll.u32 %v4332_v27, 16  ;;  %v4336_v17 = vshrl.u32 %v4332_v27, 16  ;;  %v4320_v38 = vadd.s32 %v4318_v30, %v4312_v60 }
0x1133   :  { %5569 = vtanh.f32 %v4104_v56  ;;  %v4333_v56 = vmul.u32 %v4329_v18, %v4306_v9  ;;  %vm4321_vm5 = vc.u32 %v4319_v8, %v4315_v52  ;;  %v4431_v27 = vshrl.u32 %v5627_v16, %v4425_v31  ;;  %4184 = vmatpush.bf16.msra.mxu0 %v5137_v43 }
0x1134   :  { %5571 = vtanh.f32 %v4105_v6  ;;  %v7636_v6 = vshrl.u32 %v4422_v0, 5  ;;  %vm4339_vm9 = vc.u32 %v4331_v29, %v4335_v33  ;;  %v4341_v51 = vadd.s32 %v4335_v33, %v4331_v29 }
0x1135   :  { %v4337_v19 = vshll.u32 %v4333_v56, 16  ;;  %v4338_v53 = vshrl.u32 %v4333_v56, 16  ;;  %v4417_v0 = vand.u32 8388607, %v4410_v4  ;;  %v4322_v15 = vsel %vm4321_vm5, 1, %v5624_v50 }
0x1136   :  { %v4324_v24 = vadd.s32 %v4322_v15, %v4320_v38  ;;  %v4430_v29 = vshll.u32 %v5626_v36, %v4424_v11  ;;  %v4434_v44 = vshrl.u32 %v5628_v54, %v4425_v31  ;;  %v4437_v60 = vshrl.u32 %v5629_v55, %v4425_v31 }
0x1137   :  { %vm4343_vm6 = vc.u32 %v4341_v51, %v4337_v19  ;;  %v7651_v59 = vadd.s32 %v4341_v51, %v4337_v19  ;;  %v4418_v33 = vor.u32 8388608, %v4417_v0  ;;  %v4429_v19 = vor.u32 %v4428_v49, %v4427_v61 }
0x1138   :  { %v7613_v20 = vpop.eup %5567  ;;  %v4344_v9 = vsel %vm4343_vm6, 1, %v5624_v50  ;;  %vm3334_vm1 = vweird.f32 %v7596_v28  ;;  %v4432_v52 = vor.u32 %v4431_v27, %v4430_v29  ;;  %v4440_v16 = vshrl.u32 %v5630_v63, %v4425_v31 }
0x1139   :  { %v3330_v37 = vmul.f32 %v7613_v20, %v7596_v28  ;;  %v7638_v3 = vpop.eup %5569  ;;  %v4435_v54 = vor.u32 %v4434_v44, %v4433_v26  ;;  %vm4442_vm14 = vcmp.lt.s32.totalorder %v7636_v6, 1  ;;  %vm4444_vm7 = vcmp.lt.s32.totalorder %v7636_v6, 3 }
0x113a   :  { %vm4445_vm0 = vcmp.lt.s32.totalorder %v7636_v6, 4  ;;  %v3338_v30 = vand.u32 2147483647, %v7596_v28  ;;  %vm4443_vm2 = vcmp.lt.s32.totalorder %v7636_v6, 2  ;;  %vm3335_vm15 = vweird.f32 %v7613_v20 }
0x113b   :  { %v3331_v23 = vsub.f32 1.0, %v3330_v37  ;;  %v7640_v37 = vpop.eup %5571  ;;  %v4454_v0 = vsel %vm4442_vm14, %v4432_v52, %v4435_v54  ;;  %v4426_v1 = vshrl.u32 %v5625_v45, %v4425_v31  ;;  %v4447_v26 = vsel %vm4445_vm0, %v4435_v54, 2102212464 }
0x113c   :  { %vm7706_vm3 = vcmp.eq.f32.partialorder %v3338_v30, 8.507059e+37 }
0x113d   :  { %v7631_v13 = vmul.f32 %v7613_v20, %v3331_v23  ;;  %v4340_v23 = vsel %vm4339_vm9, 1, %v5624_v50  ;;  %vm7718_vm9 = vmor %vm3334_vm1, %vm3335_vm15  ;;  %vm8151_vm15 = vcmask 523264  }
0x113e   :  { %v4342_v22 = vadd.s32 %v4340_v23, %v4334_v40  ;;  %v4325_v40 = vadd.s32 %v4324_v24, %v4314_v35  ;;  %v4438_v35 = vor.u32 %v4437_v60, %v4436_v46  ;;  %v5135_v24 = vld [vmem:[%s7962_s17 + $0x20] sm:$0xff] }
0x1140   :  { %v4346_v18 = vadd.s32 %v4344_v9, %v4342_v22  ;;  %v7667_v51 = vadd.s32 %v4325_v40, %v4316_v62  ;;  %v4451_v62 = vsel %vm4445_vm0, %v4438_v35, 920167782  ;;  %v3333_v22 = vadd.f32 %v7613_v20, %v7631_v13 }
0x1141   :  { %v4452_v9 = vsel %vm4444_vm7, %v4435_v54, %v4451_v62  ;;  %v7699_v13 = vshll.u32 %v4418_v33, 8  ;;  %v4448_v54 = vsel %vm4444_vm7, %v4432_v52, %v4447_v26 }
0x1142   :  { %v4347_v56 = vadd.s32 %v4346_v18, %v4336_v17  ;;  %v4439_v17 = vshll.u32 %v5629_v55, %v4424_v11  ;;  %vm4351_vm4 = vc.u32 %v7667_v51, %v7651_v59  ;;  %v5136_v55 = vld [vmem:[%s7962_s17 + $0x28] sm:$0xff]  ;;  %v4450_v11 = vsel %vm4442_vm14, %v4429_v19, %v4432_v52 }
0x1143   :  { %4185 = vmatpush.bf16.msra.mxu0 %v5136_v55  ;;  %v4453_v15 = vsel %vm4443_vm2, %v4450_v11, %v4452_v9  ;;  %v4459_v49 = vand.u32 65535, %v7699_v13  ;;  %v4460_v29 = vshrl.u32 %v7699_v13, 16  ;;  %v3337_v33 = vsel %vm7718_vm9, %v7613_v20, %v3333_v22 }
0x1144   :  { %v4348_v36 = vadd.s32 %v4347_v56, %v4338_v53  ;;  %v4441_v23 = vor.u32 %v4440_v16, %v4439_v17  ;;  %v3340_v53 = vand.u32 2147483648, %v7596_v28  ;;  %v4483_v21 = vand.u32 65535, %v4453_v15 }
0x1145   :  { %v4446_v17 = vsel %vm4442_vm14, %v4426_v1, %v4429_v19  ;;  %v4350_v27 = vadd.s32 %v7651_v59, %v7667_v51  ;;  %vm4412_vm9 = vcmp.lt.s32.totalorder %v7584_v58, 0 }
0x1146   :  { %v4352_v8 = vadd.s32 1, %v4348_v36  ;;  %v4455_v18 = vsel %vm4445_vm0, %v4441_v23, 1326507024  ;;  %v3341_v60 = vor.u32 1.1754944e-38, %v3340_v53  ;;  %v4487_v28 = vmul.u32 %v4483_v21, %v4460_v29 }
0x1147   :  { %v4456_v5 = vsel %vm4444_vm7, %v4438_v35, %v4455_v18  ;;  %4186 = vmatpush.bf16.msra.mxu0 %v5135_v24  ;;  %v4485_v23 = vmul.u32 %v4483_v21, %v4459_v49 }
0x1148   :  { %v4353_v63 = vsel %vm4351_vm4, %v4352_v8, %v4348_v36  ;;  %v4457_v31 = vsel %vm4443_vm2, %v4454_v0, %v4456_v5  ;;  %v3342_v20 = vsel %vm7706_vm3, %v3341_v60, %v3337_v33  ;;  %v4491_v9 = vshll.u32 %v4487_v28, 16 }
0x1149   :  { %v4354_v38 = vadd.s32 %v4353_v63, %v4349_v57  ;;  %v4484_v57 = vshrl.u32 %v4453_v15, 16  ;;  %v4461_v44 = vand.u32 65535, %v4457_v31  ;;  %v4462_v46 = vshrl.u32 %v4457_v31, 16 }
0x114a   :  { %v4449_v33 = vsel %vm4443_vm2, %v4446_v17, %v4448_v54  ;;  %vm4258_vm4 = vcmp.lt.s32.totalorder %v7580_v2, 0 }
0x114b   :  { %v4355_v61 = vadd.s32 536870912, %v4354_v38  ;;  %v4486_v43 = vmul.u32 %v4484_v57, %v4459_v49  ;;  %v4463_v16 = vmul.u32 %v4461_v44, %v4459_v49  ;;  %v4464_v35 = vmul.u32 %v4462_v46, %v4459_v49 }
0x114c   :  { %v4465_v8 = vmul.u32 %v4461_v44, %v4460_v29  ;;  %v4466_v63 = vmul.u32 %v4462_v46, %v4460_v29  ;;  %v4488_v62 = vmul.u32 %v4484_v57, %v4460_v29  ;;  %v3343_v49 = vmul.f32 %v7554_v25, %v3342_v20 }
0x114d   :  { %v7722_v56 = vshrl.u32 %v4355_v61, 30  ;;  %v4489_v30 = vshll.u32 %v4486_v43, 16  ;;  %v4467_v11 = vshll.u32 %v4464_v35, 16  ;;  %v4490_v22 = vshrl.u32 %v4486_v43, 16 }
0x114e   :  { %v4075_v40 = vpop.f32.mrf.mxu1  ;;  %v4469_v53 = vshll.u32 %v4465_v8, 16  ;;  %v4468_v1 = vshrl.u32 %v4464_v35, 16  ;;  %v4470_v24 = vshrl.u32 %v4465_v8, 16  ;;  %v4492_v43 = vshrl.u32 %v4487_v28, 16 }
0x114f   :  { %v4357_v36 = vshll.u32 %v7722_v56, 30  ;;  %vm4471_vm6 = vc.u32 %v4463_v16, %v4467_v11  ;;  %v4473_v0 = vadd.s32 %v4467_v11, %v4463_v16  ;;  %vm4493_vm5 = vc.u32 %v4485_v23, %v4489_v30 }
0x1150   :  { %v4472_v52 = vsel %vm4471_vm6, 1, %v5624_v50  ;;  %v4495_v15 = vadd.s32 %v4489_v30, %v4485_v23  ;;  %v4494_v61 = vsel %vm4493_vm5, 1, %v5624_v50  ;;  %v7744_v46 = vadd.f32 %v7568_v47, %v4075_v40 }
0x1151   :  { %v4358_v55 = vsub.s32 %v4354_v38, %v4357_v36  ;;  %v4474_v38 = vadd.s32 %v4472_v52, %v4466_v63  ;;  %vm4475_vm1 = vc.u32 %v4473_v0, %v4469_v53  ;;  %v4496_v57 = vadd.s32 %v4494_v61, %v4488_v62 }
0x1152   :  { %v4476_v21 = vsel %vm4475_vm1, 1, %v5624_v50  ;;  %vm4497_vm14 = vc.u32 %v4495_v15, %v4491_v9  ;;  %v3409_v36 = vpack.c.bf16 %v3343_v49, %v3343_v49  ;;  %v7748_v16 = vadd.s32 %v4495_v15, %v4491_v9 }
0x1153   :  { %vm4359_vm13 = vcmp.lt.s32.totalorder %v4358_v55, 0  ;;  %v4360_v19 = vsub.s32 0, %v4358_v55  ;;  %v4478_v45 = vadd.s32 %v4476_v21, %v4474_v38  ;;  %v4498_v31 = vsel %vm4497_vm14, 1, %v5624_v50 }
0x1154   :  { %v4500_v44 = vadd.s32 %v4498_v31, %v4496_v57  ;;  %v3658_v51 = vunpack.c.l.b16 %v3409_v36  ;;  %v4086_v40 = vmul.f32 %v7744_v46, %v7744_v46  ;;  %v4503_v28 = vmul.u32 %v7699_v13, %v4449_v33 }
0x1155   :  { %v4361_v18 = vsel %vm4359_vm13, %v4360_v19, %v4358_v55  ;;  %v4479_v60 = vadd.s32 %v4478_v45, %v4468_v1  ;;  %v4115_v13 = vadd.f32 1.0, %v7640_v37  ;;  %vm8152_vm13 = vmmov %vm8151_vm15  ;;  %vm7805_vm6 = vcmp.le.f32.partialorder %v4410_v4, 0.7853982  ;;  %v5139_v4 = vld [vmem:[%s7966_s21] sm:$0xff] }
0x1156   :  { %v4362_v5 = vclz %v4361_v18  ;;  %v4077_v29 = vpop.f32.mrf.mxu1  ;;  %v4501_v50 = vadd.s32 %v4500_v44, %v4490_v22  ;;  %v3660_v63 = vpack.c.b16 %v3658_v51, %v3658_v51  ;;  %v4114_v18 = vadd.f32 1.0, %v7638_v3 }
0x1157   :  { %v7751_v25 = vadd.f32 %v7568_v47, %v4077_v29  ;;  %v4480_v59 = vadd.s32 %v4479_v60, %v4470_v24  ;;  %v4091_v47 = vmul.f32 %v4086_v40, %v7744_v46  ;;  %v4120_v57 = vmul.f32 0.5, %v4115_v13 }
0x1158   :  { %v5044_v26 = vadd.s32 4294967294, %v4362_v5  ;;  %v4502_v17 = vadd.s32 %v4501_v50, %v4492_v43  ;;  %4978 = vmatmul.msk.bf16.gmra.mxu0 %vm808_vm11, %v3660_v63  ;;  %vm7770_vm11 = vcmp.le.f32.partialorder %v4256_v7, 0.7853982  ;;  %v4119_v49 = vmul.f32 0.5, %v4114_v18 }
0x1159   :  { %vm4505_vm0 = vc.u32 %v4480_v59, %v7748_v16  ;;  %v4087_v20 = vmul.f32 %v7751_v25, %v7751_v25  ;;  %v4096_v22 = vmul.f32 0.044715, %v4091_v47 }
0x115a   :  { %vm5045_vm7 = vcmp.lt.s32.totalorder %v5044_v26, 0  ;;  %v4506_v11 = vadd.s32 1, %v4502_v17  ;;  %v4124_v33 = vmul.f32 %v4119_v49, %v7572_v32 }
0x115b   :  { %v4365_v35 = vsel %vm5045_vm7, 0, %v5044_v26  ;;  %v4092_v9 = vmul.f32 %v4087_v20, %v7751_v25  ;;  %v4101_v52 = vadd.f32 %v4096_v22, %v7744_v46 }
0x115c   :  { %v4366_v8 = vsub.s32 32, %v4365_v35  ;;  %v4367_v23 = vshll.u32 %v4358_v55, %v4365_v35  ;;  %v4370_v6 = vsub.s32 4294967266, %v4365_v35  ;;  %v4507_v55 = vsel %vm4505_vm0, %v4506_v11, %v4502_v17 }
0x115d   :  { %v4508_v1 = vadd.s32 %v4507_v55, %v4503_v28  ;;  %v4097_v15 = vmul.f32 0.044715, %v4092_v9  ;;  %v4106_v5 = vmul.f32 0.7978846, %v4101_v52  ;;  %v4504_v17 = vadd.s32 %v7748_v16, %v4480_v59  ;;  %v5142_v16 = vld [vmem:[%s7966_s21 + $0x18] sm:$0xff] }
0x115e   :  { %v4368_v54 = vshrl.u32 %v4350_v27, %v4366_v8  ;;  %v4371_v30 = vadd.s32 127, %v4370_v6  ;;  %v4125_v27 = vmul.f32 %v4120_v57, %v7578_v39  ;;  %4608 = vmatpush.bf16.msra.mxu2 %v5142_v16  ;;  %vm4399_vm0 = vweird.f32 %v7580_v2 }
0x115f   :  { %v4509_v61 = vadd.s32 536870912, %v4508_v1  ;;  %v4102_v21 = vadd.f32 %v4097_v15, %v7751_v25  ;;  %5573 = vtanh.f32 %v4106_v5  ;;  %v5141_v15 = vld [vmem:[%s7966_s21 + $0x10] sm:$0xff]  ;;  %v4380_v5 = vsub.s32 4, %v7722_v56 }
0x1160   :  { %v4369_v53 = vor.u32 %v4368_v54, %v4367_v23  ;;  %v4372_v62 = vshll.u32 %v4371_v30, 23  ;;  %v4129_v50 = vpack.c.bf16 %v4125_v27, %v4124_v33 }
0x1161   :  { %v7766_v45 = vshrl.u32 %v4509_v61, 30  ;;  %v4107_v31 = vmul.f32 0.7978846, %v4102_v21 }
0x1162   :  { %v4373_v19 = vor.u32 4788187, %v4372_v62  ;;  %v4376_v0 = vcvt.s32.f32 %v4369_v53  ;;  %4609 = vmatpush.bf16.msra.mxu2 %v5141_v15 }
0x1163   :  { %v4511_v29 = vshll.u32 %v7766_v45, 30  ;;  %5575 = vtanh.f32 %v4107_v31 }
0x1164   :  { %v4374_v38 = vand.u32 2147483647, %v4373_v19 }
0x1165   :  { %v4512_v44 = vsub.s32 %v4508_v1, %v4511_v29  ;;  %v5574_v36 = vpop.eup %5573  ;;  %v4534_v29 = vsub.s32 4, %v7766_v45 }
0x1166   :  { %v4377_v24 = vmul.f32 %v4376_v0, %v4374_v38  ;;  %v4116_v6 = vadd.f32 1.0, %v5574_v36 }
0x1167   :  { %vm4513_vm2 = vcmp.lt.s32.totalorder %v4512_v44, 0  ;;  %v4514_v60 = vsub.s32 0, %v4512_v44 }
0x1168   :  { %v4378_v3 = vxor.u32 2147483648, %v4377_v24  ;;  %5040 = vmatmul.msk.bf16.vlgmr.msra.gmra.mxu0 %vm8151_vm15, %v4129_v50  ;;  %v4121_v20 = vmul.f32 0.5, %v4116_v6  ;;  %vm8155_vm15 = vmmov %vm8152_vm13 }
0x1169   :  { %v4515_v35 = vsel %vm4513_vm2, %v4514_v60, %v4512_v44  ;;  %v5576_v39 = vpop.eup %5575  ;;  %vm4553_vm2 = vweird.f32 %v7584_v58 }
0x116a   :  { %v4379_v26 = vsel %vm4258_vm4, %v4378_v3, %v4377_v24  ;;  %v4516_v51 = vclz %v4515_v35  ;;  %v4117_v40 = vadd.f32 1.0, %v5576_v39  ;;  %v4126_v0 = vmul.f32 %v4121_v20, %v7744_v46  ;;  %v5140_v46 = vld [vmem:[%s7966_s21 + $0x8] sm:$0xff] }
0x116b   :  { %v7782_v7 = vsel %vm7770_vm11, %v7580_v2, %v4379_v26  ;;  %v4381_v3 = vsel %vm4258_vm4, %v4380_v5, %v7722_v56  ;;  %4610 = vmatpush.bf16.msra.mxu2 %v5140_v46  ;;  %v4535_v56 = vsel %vm4412_vm9, %v4534_v29, %v7766_v45 }
0x116c   :  { %v4384_v43 = vmul.f32 %v7782_v7, %v7782_v7  ;;  %v5047_v23 = vadd.s32 4294967294, %v4516_v51  ;;  %v4122_v54 = vmul.f32 0.5, %v4117_v40  ;;  %v4383_v60 = vsel %vm7770_vm11, 0, %v4381_v3 }
0x116e   :  { %v4392_v8 = vmul.f32 -0.00019511016, %v4384_v43  ;;  %vm5048_vm3 = vcmp.lt.s32.totalorder %v5047_v23, 0  ;;  %v4385_v32 = vmul.f32 -0.001358992, %v4384_v43  ;;  %v4127_v55 = vmul.f32 %v4122_v54, %v7751_v25 }
0x116f   :  { %v4519_v28 = vsel %vm5048_vm3, 0, %v5047_v23  ;;  %4611 = vmatpush.bf16.msra.mxu2 %v5139_v4  ;;  %vm8156_vm3 = vcmask 1041408  }
0x1170   :  { %v4393_v30 = vadd.f32 0.008332121, %v4392_v8  ;;  %v4520_v63 = vsub.s32 32, %v4519_v28  ;;  %v4521_v11 = vshll.u32 %v4512_v44, %v4519_v28  ;;  %v4524_v47 = vsub.s32 4294967266, %v4519_v28 }
0x1171   :  { %v4386_v22 = vadd.f32 0.041655596, %v4385_v32  ;;  %v4130_v52 = vpack.c.bf16 %v4127_v55, %v4126_v0  ;;  %v4400_v8 = vand.u32 3, %v4383_v60 }
0x1172   :  { %v4522_v53 = vshrl.u32 %v4504_v17, %v4520_v63  ;;  %v4525_v62 = vadd.s32 127, %v4524_v47  ;;  %v4394_v9 = vmul.f32 %v4393_v30, %v4384_v43 }
0x1173   :  { %v4387_v18 = vmul.f32 %v4386_v22, %v4384_v43  ;;  %vm4402_vm5 = vcmp.eq.s32.totalorder %v4400_v8, 0  ;;  %vm4405_vm1 = vcmp.eq.s32.totalorder %v4400_v8, 2  ;;  %vm4401_vm14 = vcmp.lt.s32.totalorder %v4400_v8, 2 }
0x1174   :  { %v4523_v13 = vor.u32 %v4522_v53, %v4521_v11  ;;  %v4526_v19 = vshll.u32 %v4525_v62, 23  ;;  %v4395_v25 = vadd.f32 -0.16666654, %v4394_v9 }
0x1175   :  { %v4388_v21 = vadd.f32 -0.4999988, %v4387_v18 }
0x1176   :  { %v4527_v59 = vor.u32 4788187, %v4526_v19  ;;  %v4530_v1 = vcvt.s32.f32 %v4523_v13  ;;  %v4396_v57 = vmul.f32 %v4395_v25, %v4384_v43 }
0x1177   :  { %v4389_v26 = vmul.f32 %v4388_v21, %v4384_v43  ;;  %v4537_v43 = vsel %vm7805_vm6, 0, %v4535_v56 }
0x1178   :  { %v4528_v38 = vand.u32 2147483647, %v4527_v59  ;;  %5041 = vmatmul.msk.bf16.gmra.mxu0 %vm8152_vm13, %v4130_v52  ;;  %v4397_v44 = vadd.f32 1.0, %v4396_v57  ;;  %v4554_v54 = vand.u32 3, %v4537_v43  ;;  %vm8158_vm13 = vcmask 195584  }
0x1179   :  { %v4390_v35 = vadd.f32 1.0, %v4389_v26  ;;  %v3786_v26 = vpop.permute.xlu1 %3785 }
0x117a   :  { %v4531_v61 = vmul.f32 %v4530_v1, %v4528_v38  ;;  %v4398_v39 = vmul.f32 %v4397_v44, %v7782_v7  ;;  %vm4559_vm7 = vcmp.eq.s32.totalorder %v4554_v54, 2  ;;  %vm4556_vm11 = vcmp.eq.s32.totalorder %v4554_v54, 0 }
0x117b   :  { %v4406_v17 = vxor.u32 2147483648, %v4390_v35  ;;  %vm4555_vm4 = vcmp.lt.s32.totalorder %v4554_v54, 2  ;;  %v3816_v44 = vsel %vm483_vm10, %v7465_v42, %v3786_v26 }
0x117c   :  { %v4532_v31 = vxor.u32 2147483648, %v4531_v61  ;;  %v4403_v37 = vxor.u32 2147483648, %v4398_v39 }
0x117d   :  { %v4407_v7 = vsel %vm4405_vm1, %v4406_v17, %v4398_v39 }
0x117e   :  { %v4533_v49 = vsel %vm4412_vm9, %v4532_v31, %v4531_v61  ;;  %v4404_v63 = vsel %vm4402_vm5, %v4390_v35, %v4403_v37  ;;  %vm8157_vm9 = vcmask 257024   ;;  %v5322_v31 = vld [vmem:[%s7967_s22] ss:$0 sm:$0xff]  ;;  %vm8160_vm5 = vcmask 261120  }
0x117f   :  { %v4536_v27 = vsel %vm7805_vm6, %v7584_v58, %v4533_v49  ;;  %v4408_v62 = vsel %vm4401_vm14, %v4404_v63, %v4407_v7  ;;  %v5321_v58 = vld [vmem:[%s7963_s18 + $0x1] ss:$0 sm:$0xff]  ;;  %vm8159_vm6 = vmmov %vm8156_vm3 }
0x1180   :  { %v4538_v33 = vmul.f32 %v4536_v27, %v4536_v27  ;;  %v4409_v9 = vsel %vm4399_vm0, nan, %v4408_v62  ;;  %vm8161_vm1 = vmmov %vm8157_vm9 }
0x1181   :  { %vm8162_vm10 = vmmov %vm8161_vm1 }
0x1182   :  { %v4539_v36 = vmul.f32 -0.001358992, %v4538_v33  ;;  %v4546_v50 = vmul.f32 -0.00019511016, %v4538_v33  ;;  %vm8163_vm0 = vmmov %vm8161_vm1 }
0x1184   :  { %v4540_v51 = vadd.f32 0.041655596, %v4539_v36  ;;  %v4547_v40 = vadd.f32 0.008332121, %v4546_v50 }
0x1186   :  { %v4541_v23 = vmul.f32 %v4540_v51, %v4538_v33  ;;  %v4548_v6 = vmul.f32 %v4547_v40, %v4538_v33 }
0x1188   :  { %v4542_v32 = vadd.f32 -0.4999988, %v4541_v23  ;;  %v4549_v28 = vadd.f32 -0.16666654, %v4548_v6  ;;  %v5585_v23 = vld [vmem:[%s7957_s12 + $0x1] ss:$0 sm:$0xff] }
0x118a   :  { %v4543_v45 = vmul.f32 %v4542_v32, %v4538_v33  ;;  %v4550_v30 = vmul.f32 %v4549_v28, %v4538_v33 }
0x118c   :  { %v4544_v11 = vadd.f32 1.0, %v4543_v45  ;;  %v4551_v47 = vadd.f32 1.0, %v4550_v30 }
0x118e   :  { %v4552_v20 = vmul.f32 %v4551_v47, %v4536_v27  ;;  %v4560_v53 = vxor.u32 2147483648, %v4544_v11 }
0x1190   :  { %v4557_v55 = vxor.u32 2147483648, %v4552_v20  ;;  %v4561_v22 = vsel %vm4559_vm7, %v4560_v53, %v4552_v20  ;;  %v5324_v53 = vld [vmem:[%s7965_s20] ss:$0 sm:$0xff] }
0x1192   :  { %v4558_v13 = vsel %vm4556_vm11, %v4544_v11, %v4557_v55  ;;  %vm8164_vm11 = vmmov %vm8160_vm5 }
0x1193   :  { %v4562_v19 = vsel %vm4555_vm4, %v4558_v13, %v4561_v22  ;;  %vm8165_vm4 = vmmov %vm8160_vm5 }
0x1194   :  { %v4563_v0 = vsel %vm4553_vm2, nan, %v4562_v19  ;;  %vm8166_vm2 = vmmov %vm8155_vm15 }
0x1195   :  { %v4564_v16 = vpack.c.bf16 %v4563_v0, %v4409_v9 }
0x1197   :  { %5065 = vmatmul.msk.bf16.vlgmr.msra.gmra.mxu2 %vm8155_vm15, %v4564_v16 }
0x11a4   :  { %v3729_v59 = vpop.f32.mrf.mxu2 }
0x11ac   :  { %v3731_v1 = vpop.f32.mrf.mxu2 }
0x11ad   :  { %v5146_v1 = vld [vmem:[%s7968_s23 + $0x18] sm:$0xff] }
0x11ae   :  { %4686 = vmatpush.bf16.msrb.mxu2 %v5146_v1 }
0x11d5   :  { %v3689_v52 = vpop.f32.mrf.mxu0 }
0x11d6   :  { %3797 = vrot.lane.b32.xlu2 %v3689_v52, %s8123_s0  ;;  %v5145_v52 = vld [vmem:[%s7968_s23 + $0x10] sm:$0xff] }
0x11d7   :  { %4687 = vmatpush.bf16.msrb.mxu2 %v5145_v52  ;;  %v5632_v52 = vmov 8.0  }
0x11dd   :  { %v3691_v2 = vpop.f32.mrf.mxu0 }
0x11de   :  { %3809 = vrot.lane.b32.xlu2 %v3729_v59, %s8122_s5  ;;  %v5144_v2 = vld [vmem:[%s7968_s23 + $0x8] sm:$0xff] }
0x11df   :  { %4688 = vmatpush.bf16.msrb.mxu2 %v5144_v2  ;;  %v5326_v2 = vld [vmem:[%s7971_s26] ss:$0 sm:$0xff]  ;;  %s5634_s26 = smov [#allocation2]  }
0x11e0   :  { %s4818_s28 = sshll.u32 %s5634_s26, 4  ;;  %s4819_s28 = int_to_ptr.vmem [resolvable:$true] %s4818_s28 }
0x11e5   :  { %v4188_v15 = vpop.f32.mrf.mxu0 }
0x11e6   :  { %v4189_v25 = vadd.f32 %v5321_v58, %v4188_v15 }
0x11e8   :  { %v4199_v5 = vadd.f32 %v4189_v25, %v7471_v41 }
0x11ed   :  { %v4190_v18 = vpop.f32.mrf.mxu0 }
0x11f5   :  { %v4192_v38 = vpop.f32.mrf.mxu0 }
0x11f6   :  { %v4193_v61 = vadd.f32 %v5321_v58, %v4192_v38 }
0x11f8   :  { %v4200_v46 = vadd.f32 %v4193_v61, %v7480_v10  ;;  %v5143_v61 = vld [vmem:[%s7968_s23] sm:$0xff] }
0x11f9   :  { %4689 = vmatpush.bf16.msrb.mxu2 %v5143_v61 }
0x11fa   :  { %v4201_v21 = vsel %vm8156_vm3, %v4199_v5, %v4200_v46 }
0x11fb   :  { %v4204_v57 = vsel %vm8157_vm9, %v4201_v21, 0.0 }
0x11fc   :  { %4205 = vadd.xlane.f32.xlu1 %v4204_v57 }
0x11fd   :  { %v4194_v24 = vpop.f32.mrf.mxu0 }
0x121a   :  { %v4613_v49 = vpop.f32.mrf.mxu2 }
0x121b   :  { %v7844_v3 = vadd.f32 %v5322_v31, %v4613_v49 }
0x121d   :  { %v4618_v29 = vmax.f32 %v7844_v3, 0.0  ;;  %v5153_v3 = vld [vmem:[%s7970_s25 + $0x30] sm:$0xff] }
0x121f   :  { %4624 = vrot.lane.b32.xlu0 %v4618_v29, %s8103_s2 }
0x1222   :  { %v4615_v41 = vpop.f32.mrf.mxu2 }
0x1223   :  { %v7850_v10 = vadd.f32 %v5322_v31, %v4615_v41 }
0x1225   :  { %v4619_v27 = vmax.f32 %v7850_v10, 0.0  ;;  %v5152_v10 = vld [vmem:[%s7970_s25 + $0x28] sm:$0xff] }
0x1227   :  { %4626 = vrot.lane.b32.xlu0 %v4619_v27, %s8103_s2 }
0x1230   :  { %v3798_v4 = vpop.permute.xlu2 %3797 }
0x1231   :  { %v3819_v33 = vsel %vm1770_vm8, %v3816_v44, %v3798_v4  ;;  %v5154_v44 = vld [vmem:[%s7970_s25 + $0x38] sm:$0xff] }
0x1232   :  { %4767 = vmatpush.bf16.msra.mxu3 %v5154_v44 }
0x1236   :  { %4768 = vmatpush.bf16.msra.mxu3 %v5153_v3 }
0x1238   :  { %v3810_v60 = vpop.permute.xlu2 %3809 }
0x1239   :  { %v3822_v36 = vsel %vm8158_vm13, %v3819_v33, %v3810_v60  ;;  %vm8167_vm13 = vmmov %vm8165_vm4 }
0x123a   :  { %v3829_v50 = vrot.slane %v3822_v36, 6  ;;  %4769 = vmatpush.bf16.msra.mxu3 %v5152_v10 }
0x123c   :  { %v3830_v56 = vsel %vm8159_vm6, %v3827_v12, %v3829_v50  ;;  %vm8168_vm6 = vmmov %vm8166_vm2 }
0x123d   :  { %v3837_v35 = vpack.c.bf16 %v3830_v56, %v3830_v56 }
0x123f   :  { %4996 = vmatmul.msk.bf16.gmra.mxu3 %vm8160_vm5, %v3837_v35  ;;  %vm4781_vm5 = vcmask 80896  }
0x126f   :  { %v4206_v39 = vpop.xlane.xlu1 %4205 }
0x1270   :  { %v4207_v51 = vmul.f32 %v4206_v39, %v8075_v14 }
0x1272   :  { %v4208_v40 = vsub.f32 %v4201_v21, %v4207_v51 }
0x1274   :  { %v4209_v8 = vmul.f32 %v4208_v40, %v4208_v40 }
0x1276   :  { %v4210_v42 = vsel %vm8161_vm1, %v4209_v8, 0.0  ;;  %v5586_v8 = vld [vmem:[%s7958_s13 + $0x1] ss:$0 sm:$0xff] }
0x1277   :  { %4211 = vadd.xlane.f32.xlu2 %v4210_v42 }
0x1291   :  { %v4625_v11 = vpop.permute.xlu0 %4624 }
0x1299   :  { %v4627_v19 = vpop.permute.xlu0 %4626 }
0x12c2   :  { %v3888_v43 = vpop.f32.mrf.mxu3 }
0x12c3   :  { %v3889_v6 = vadd.f32 %v5585_v23, %v3888_v43  ;;  %v5587_v43 = vld [vmem:[%s7959_s14 + $0x1] ss:$0 sm:$0xff] }
0x12c5   :  { %v3896_v34 = vadd.f32 %v3889_v6, %v6783_v48  ;;  %v5323_v48 = vld [vmem:[%s7964_s19] ss:$0 sm:$0xff] }
0x12c7   :  { %v3913_v12 = vsel %vm8162_vm10, %v3896_v34, 0.0  ;;  %vm4811_vm10 = vcmask 33792  }
0x12c8   :  { %3914 = vadd.xlane.f32.xlu0 %v3913_v12  ;;  %v5149_v12 = vld [vmem:[%s7970_s25 + $0x10] sm:$0xff] }
0x12ca   :  { %v3890_v37 = vpop.f32.mrf.mxu3 }
0x12cb   :  { %v5148_v37 = vld [vmem:[%s7970_s25 + $0x8] sm:$0xff] }
0x12ea   :  { %v4212_v17 = vpop.xlane.xlu2 %4211 }
0x12eb   :  { %v4213_v32 = vmul.f32 %v4212_v17, %v8075_v14  ;;  %v5147_v17 = vld [vmem:[%s7970_s25] sm:$0xff] }
0x12ed   :  { %v4214_v28 = vadd.f32 1e-05, %v4213_v32 }
0x12ef   :  { %5577 = vrsqrt.f32 %v4214_v28  ;;  %vm4221_vm14 = vweird.f32 %v4214_v28 }
0x12f5   :  { %v5578_v54 = vpop.eup %5577 }
0x12f6   :  { %v4216_v45 = vmul.f32 %v5578_v54, %v4214_v28  ;;  %vm4222_vm8 = vweird.f32 %v5578_v54  ;;  %v5325_v28 = vld [vmem:[%s7969_s24] ss:$0 sm:$0xff] }
0x12f7   :  { %vm4223_vm7 = vmor %vm4221_vm14, %vm4222_vm8 }
0x12f8   :  { %v4217_v30 = vmul.f32 %v5578_v54, %v4216_v45 }
0x12fa   :  { %v4218_v63 = vmul.f32 0.5, %v4217_v30 }
0x12fc   :  { %v4219_v7 = vsub.f32 1.5, %v4218_v63 }
0x12fe   :  { %v4220_v47 = vmul.f32 %v5578_v54, %v4219_v7 }
0x1300   :  { %v4224_v20 = vsel %vm4223_vm7, %v5578_v54, %v4220_v47 }
0x1301   :  { %v4225_v62 = vmul.f32 %v4224_v20, %v4208_v40 }
0x1303   :  { %v4229_v55 = vmul.f32 %v5323_v48, %v4225_v62  ;;  %v5588_v48 = vld [vmem:[%s7961_s16 + $0x1] ss:$0 sm:$0xff]  ;;  %s5633_s16 = smov 123  }
0x1305   :  { %v4233_v22 = vadd.f32 %v5324_v53, %v4229_v55 }
0x1307   :  { %v4236_v9 = vperm.slane %v4233_v22, 1  ;;  %v4237_v13 = vperm.slane %v4233_v22, 3  ;;  %v4234_v5 = vperm.slane %v4233_v22, 0  ;;  %v4235_v46 = vperm.slane %v4233_v22, 2 }
0x1309   :  { %v4630_v0 = vmul.f32 %v4625_v11, %v4236_v9  ;;  %v4631_v16 = vmul.f32 %v4627_v19, %v4237_v13  ;;  %v4620_v31 = vmul.f32 %v4618_v29, %v4234_v5  ;;  %v4621_v49 = vmul.f32 %v4619_v27, %v4235_v46  ;;  %v5151_v27 = vld [vmem:[%s7970_s25 + $0x20] sm:$0xff] }
0x130a   :  { %4770 = vmatpush.bf16.msra.mxu3 %v5151_v27 }
0x130b   :  { %v5299_v59 = vpack.i.bf16 %v4631_v16, %v4630_v0 }
0x130d   :  { %5300 = vrot.lane.b32.xlu1 %v5299_v59, %s5631_s11 }
0x133b   :  { %v3915_v15 = vpop.xlane.xlu0 %3914 }
0x133c   :  { %v3920_v18 = vmul.f32 %v3915_v15, %v8075_v14 }
0x133e   :  { %v3925_v58 = vsub.f32 %v3896_v34, %v3920_v18  ;;  %v5150_v34 = vld [vmem:[%s7970_s25 + $0x18] sm:$0xff] }
0x133f   :  { %4771 = vmatpush.bf16.msra.mxu3 %v5150_v34 }
0x1340   :  { %v3930_v25 = vmul.f32 %v3925_v58, %v3925_v58 }
0x1342   :  { %v3943_v38 = vsel %vm8163_vm0, %v3930_v25, 0.0 }
0x1343   :  { %3944 = vadd.xlane.f32.xlu2 %v3943_v38  ;;  %4772 = vmatpush.bf16.msra.mxu3 %v5149_v12 }
0x1347   :  { %4773 = vmatpush.bf16.msra.mxu3 %v5148_v37 }
0x134b   :  { %4774 = vmatpush.bf16.msra.mxu3 %v5147_v17 }
0x137f   :  { %v5301_v21 = vpop.permute.xlu1 %5300 }
0x1380   :  { %v5303_v57 = vunpack.i.h.bf16 %v5301_v21  ;;  %v5302_v24 = vunpack.i.l.bf16 %v5301_v21 }
0x1382   :  { %v4640_v41 = vsel %vm8164_vm11, %v4620_v31, %v5302_v24  ;;  %v4641_v4 = vsel %vm8165_vm4, %v4621_v49, %v5303_v57 }
0x1383   :  { %v4642_v26 = vpack.c.bf16 %v4641_v4, %v4640_v41 }
0x1385   :  { %5082 = vmatmul.msk.bf16.vlgmr.msrb.gmra.mxu2 %vm8166_vm2, %v4642_v26 }
0x13b6   :  { %v3945_v33 = vpop.xlane.xlu2 %3944 }
0x13b7   :  { %v3950_v60 = vmul.f32 %v3945_v33, %v8075_v14 }
0x13b9   :  { %v3955_v29 = vadd.f32 1e-05, %v3950_v60 }
0x13bb   :  { %5579 = vrsqrt.f32 %v3955_v29  ;;  %vm4002_vm3 = vweird.f32 %v3955_v29 }
0x13c1   :  { %v5580_v36 = vpop.eup %5579 }
0x13c2   :  { %v3997_v50 = vmul.f32 %v5580_v36, %v3955_v29  ;;  %vm4003_vm15 = vweird.f32 %v5580_v36 }
0x13c3   :  { %vm4004_vm9 = vmor %vm4002_vm3, %vm4003_vm15 }
0x13c4   :  { %v3998_v14 = vmul.f32 %v5580_v36, %v3997_v50 }
0x13c6   :  { %v3999_v56 = vmul.f32 0.5, %v3998_v14 }
0x13c8   :  { %v4000_v35 = vsub.f32 1.5, %v3999_v56 }
0x13ca   :  { %v4001_v39 = vmul.f32 %v5580_v36, %v4000_v35 }
0x13cc   :  { %v4005_v51 = vsel %vm4004_vm9, %v5580_v36, %v4001_v39 }
0x13cd   :  { %v4010_v40 = vmul.f32 %v4005_v51, %v3925_v58 }
0x13cf   :  { %v4018_v42 = vmul.f32 %v5586_v8, %v4010_v40 }
0x13d1   :  { %v4026_v23 = vadd.f32 %v5587_v43, %v4018_v42 }
0x13d3   :  { %v4029_v6 = vpack.c.bf16 %v4026_v23, %v4026_v23 }
0x13d5   :  { %5014 = vmatmul.msk.bf16.gmra.mxu1 %vm8167_vm13, %v4029_v6 }
0x1408   :  { %v4691_v32 = vpop.f32.mrf.mxu2 }
0x1409   :  { %v4692_v54 = vadd.f32 %v5325_v28, %v4691_v32 }
0x140b   :  { %v4696_v63 = vmax.f32 %v4692_v54, 0.0 }
0x1410   :  { %v4693_v45 = vpop.f32.mrf.mxu2 }
0x1411   :  { %v4694_v30 = vadd.f32 %v5325_v28, %v4693_v45 }
0x1413   :  { %v4697_v7 = vmax.f32 %v4694_v30, 0.0 }
0x1415   :  { %v4698_v11 = vpack.c.bf16 %v4697_v7, %v4696_v63 }
0x1417   :  { %4775 = vmatmul.bf16.vlgmr.msra.gmra.mxu3 %v4698_v11 }
0x1452   :  { %v4080_v47 = vpop.f32.mrf.mxu1 }
0x1453   :  { %v4081_v20 = vadd.f32 %v5588_v48, %v4080_v47 }
0x1455   :  { %v4088_v53 = vmul.f32 %v4081_v20, %v4081_v20 }
0x1457   :  { %v4093_v62 = vmul.f32 %v4088_v53, %v4081_v20 }
0x1459   :  { %v4098_v55 = vmul.f32 0.044715, %v4093_v62 }
0x145a   :  { %v4082_v22 = vpop.f32.mrf.mxu1 }
0x145b   :  { %v4103_v9 = vadd.f32 %v4098_v55, %v4081_v20 }
0x145d   :  { %v4108_v13 = vmul.f32 0.7978846, %v4103_v9 }
0x145f   :  { %5581 = vtanh.f32 %v4108_v13 }
0x1460   :  { %5583 = vrcp.f32 %v5632_v52 }
0x1465   :  { %v5582_v19 = vpop.eup %5581 }
0x1466   :  { %v4118_v0 = vadd.f32 1.0, %v5582_v19  ;;  %v5584_v58 = vpop.eup %5583 }
0x1467   :  { %v4790_v61 = vmul.f32 8.0, %v5584_v58  ;;  %vm4794_vm1 = vweird.f32 %v5584_v58 }
0x1468   :  { %v4123_v16 = vmul.f32 0.5, %v4118_v0 }
0x1469   :  { %v4791_v24 = vsub.f32 1.0, %v4790_v61 }
0x146a   :  { %v4128_v59 = vmul.f32 %v4123_v16, %v4081_v20 }
0x146b   :  { %v4792_v4 = vmul.f32 %v5584_v58, %v4791_v24 }
0x146c   :  { %v4131_v1 = vpack.c.bf16 %v4128_v59, %v4128_v59 }
0x146d   :  { %v4793_v60 = vadd.f32 %v5584_v58, %v4792_v4 }
0x146e   :  { %5042 = vmatmul.msk.bf16.gmra.mxu0 %vm8168_vm6, %v4131_v1 }
0x146f   :  { %v4795_v27 = vsel %vm4794_vm1, %v5584_v58, %v4793_v60 }
0x149a   :  { %v4776_v15 = vpop.f32.mrf.mxu3 }
0x149b   :  { %v4777_v18 = vadd.f32 %v5326_v2, %v4776_v15 }
0x149d   :  { %v4782_v25 = vsel %vm4781_vm5, %v4777_v18, 0.0 }
0x149e   :  { %v4783_v38 = vrot.slane %v4782_v25, 4 }
0x14a0   :  { %v4784_v5 = vadd.f32 %v4783_v38, %v4782_v25 }
0x14a2   :  { %v4785_v46 = vrot.slane %v4784_v5, 2  ;;  %v4778_v21 = vpop.f32.mrf.mxu3 }
0x14a3   :  { %v4779_v57 = vadd.f32 %v5326_v2, %v4778_v21 }
0x14a4   :  { %v4786_v49 = vadd.f32 %v4785_v46, %v4784_v5 }
0x14a5   :  { %v4797_v31 = vsel %vm4781_vm5, %v4779_v57, 0.0 }
0x14a6   :  { %v4798_v41 = vrot.slane %v4797_v31, 4  ;;  %v4787_v44 = vrot.slane %v4786_v49, 1 }
0x14a8   :  { %v4799_v26 = vadd.f32 %v4798_v41, %v4797_v31  ;;  %v4788_v29 = vadd.f32 %v4787_v44, %v4786_v49 }
0x14aa   :  { %v4800_v33 = vrot.slane %v4799_v26, 2  ;;  %v4796_v50 = vmul.f32 %v4795_v27, %v4788_v29 }
0x14ac   :  { %v4801_v3 = vadd.f32 %v4800_v33, %v4799_v26 }
0x14ae   :  { %v4802_v10 = vrot.slane %v4801_v3, 1 }
0x14b0   :  { %v4803_v36 = vadd.f32 %v4802_v10, %v4801_v3 }
0x14b2   :  { %v4804_v14 = vmul.f32 %v4803_v36, %v4795_v27 }
0x14b4   :  { %v4805_v56 = vsel %vm1429_vm12, %v4796_v50, %v4804_v14 }
0x14b5   :  { %4807 = vrot.lane.b32.xlu2 %v4805_v56, %s5633_s16 }
0x14eb   :  { %v4196_v35 = vpop.f32.mrf.mxu0 }
0x14f3   :  { %v4197_v39 = vpop.f32.mrf.mxu0 }
0x150f   :  { %v4808_v51 = vpop.permute.xlu2 %4807 }
0x1510   :  { %v4810_v40 = vsub.f32 %v4805_v56, %v4808_v51 }
0x1512   :  { %4812 = vst.msk [vmem:[#allocation2] sm:$0x3] %vm4811_vm10, %v4810_v40 }
0x1513   :  { %4823 = dma.vmem_to_hbm [thread:$0]  %s4819_s28, 32, %s4821_s6, [#allocation3]  }
0x1514   :  { %5613 = dma.done.wait [#allocation3], 32  }
0x1515   :  { %5614 = vsyncadd [#allocation3], 4294967264 }
0x1516   :  { %4828 = vsyncpa [#allocation3], 1 }

</bundles_post_ra>
